<compile_context>
chip_gen: v7x
topology: tpu7x:2x2x1
jax: 0.10.0
libtpu: 0.0.40
codegen_flags: <defaults>
</compile_context>

<pallas_src>
import functools
import math

import jax
import jax.numpy as jnp
from jax.experimental import pallas as pl
from jax.experimental.pallas import tpu as pltpu

LN_EPS = 1e-5

# Order in which each stage's stacked per-layer parameters are passed.
PACKED_ORDER = ("g1", "b1", "wqkv", "bqkv", "wo", "bo",
                "g2", "b2", "w1", "bf1", "w2", "bf2")


def _layer_norm(x, g, b):
    mu = jnp.mean(x, axis=-1, keepdims=True)
    var = jnp.mean(jnp.square(x - mu), axis=-1, keepdims=True)
    return (x - mu) * jax.lax.rsqrt(var + LN_EPS) * g + b


# ------------------------------ Pallas kernel --------------------------------

def ambi_mimo_kernel(x_ref, pe_ref, *rest, dims, num_heads, num_layers):
    """Whole AmbiMiMo forward in one kernel invocation (no grid).

    Canonical activation layout: (R, E) rows ordered (ch, b, c, nc), embedding
    last.  Each stage regroups the rows by its attention-batch index (ch / c /
    nc), runs `num_layers` encoder layers, and scatters the rows back.
    """
    o_ref = rest[-1]
    wrefs = rest[:-1]
    nw = len(PACKED_ORDER)
    stage_weights = {"interchannel": wrefs[:nw], "intrachunk": wrefs[nw:2 * nw]}

    B, Ch, C, NC, E = dims
    R = B * Ch * C * NC
    H = num_heads
    hd = E // H

    pe = pe_ref[...]                                    # (maxP, E) f32

    # ---- one TransformerEncoder layer on a (n*seq, E) row slab --------------
    def encoder_layer(flat, refs, layer, n, seq):
        (g1, b1, wqkv, bqkv, wo, bo, g2, b2, w1, bf1, w2, bf2) = (
            r[layer] for r in refs)

        x1 = _layer_norm(flat, g1, b1)

        # Fused QKV projection (1/sqrt(head_dim) pre-folded into the Q part);
        # bf16 MXU operands, f32 accumulation.
        qkv = jnp.dot(x1.astype(jnp.bfloat16), wqkv,
                      preferred_element_type=jnp.float32) + bqkv
        q = qkv[:, :E].reshape(n, seq, E)
        k = qkv[:, E:2 * E].reshape(n, seq, E)
        v = qkv[:, 2 * E:].reshape(n, seq, E)

        # All heads at once: fold (head, attention-batch) into one leading
        # einsum batch dim — no per-head VMEM scratch round trip.
        def split_heads(t):                       # (n, seq, E) -> (H*n, seq, hd)
            return jnp.concatenate(
                [t[:, :, h * hd:(h + 1) * hd] for h in range(H)], axis=0)

        qh = split_heads(q).astype(jnp.bfloat16)
        kh = split_heads(k).astype(jnp.bfloat16)
        vh = split_heads(v).astype(jnp.bfloat16)
        s = jnp.einsum("bqd,bkd->bqk", qh, kh,
                       preferred_element_type=jnp.float32)
        s = s - jnp.max(s, axis=-1, keepdims=True)
        p = jnp.exp(s)
        p = p / jnp.sum(p, axis=-1, keepdims=True)
        oh = jnp.einsum("bqk,bkd->bqd", p.astype(jnp.bfloat16), vh,
                        preferred_element_type=jnp.float32)     # (H*n, seq, hd)
        attn = jnp.concatenate(
            [oh[h * n:(h + 1) * n] for h in range(H)], axis=-1)  # (n, seq, E)

        ao = jnp.dot(attn.reshape(n * seq, E).astype(jnp.bfloat16), wo,
                     preferred_element_type=jnp.float32) + bo
        x3 = ao + flat                             # dropout1 == identity (eval)

        x4 = _layer_norm(x3, g2, b2)
        hid = jnp.maximum(
            jnp.dot(x4.astype(jnp.bfloat16), w1,
                    preferred_element_type=jnp.float32) + bf1, 0.0)
        y = jnp.dot(hid.astype(jnp.bfloat16), w2,
                    preferred_element_type=jnp.float32) + bf2
        return y + x3                              # dropout2 == identity (eval)

    # ---- row regrouping between stages ---------------------------------------
    # Canonical rows are ordered (outer, group, inner); a stage attends within
    # each `group` over all (outer, inner) rows.  Row order *inside* a group is
    # irrelevant (softmax attention is permutation-equivariant along its
    # sequence and PE is constant along it), only the grouping matters, so the
    # regroup is a pure row permutation done with static slices / concats.
    def group_rows(act, n_outer, n_group, n_inner):
        if n_outer == 1:                           # group dim already leading
            return act.reshape(n_group, n_inner, E)
        a = act.reshape(n_outer, n_group, n_inner, E)
        return jnp.concatenate(
            [a[:, g].reshape(1, n_outer * n_inner, E) for g in range(n_group)],
            axis=0)

    def ungroup_rows(grouped, n_outer, n_group, n_inner):
        if n_outer == 1:
            return grouped.reshape(R, E)
        parts = [grouped[g].reshape(n_outer, n_inner, E)
                 for g in range(n_group)]
        return jnp.stack(parts, axis=1).reshape(R, E)

    act = x_ref[...]                                    # (R, E) f32, canonical

    # (weight set, group size, outer, inner); stage 3 reuses the intrachunk
    # weights exactly like the PyTorch forward does.
    stages = (
        ("interchannel", Ch, 1,          B * C * NC),   # inter-channel
        ("intrachunk",   C,  Ch * B,     NC),           # intra-chunk
        ("intrachunk",   NC, Ch * B * C, 1),            # inter-chunk (reused)
    )
    for wname, n_group, n_outer, n_inner in stages:
        refs = stage_weights[wname]
        seq = n_outer * n_inner
        g = group_rows(act, n_outer, n_group, n_inner)   # (n_group, seq, E)
        # x + PE(x) == 2*x + pe; PE positions index the attention *batch*
        # (dim 1 of the PyTorch stage tensor) and are constant along seq.
        g = 2.0 * g + pe[:n_group][:, None, :]
        flat = g.reshape(n_group * seq, E)
        for layer in range(num_layers):                  # static unroll
            flat = encoder_layer(flat, refs, layer, n_group, seq)
        act = ungroup_rows(flat.reshape(n_group, seq, E),
                           n_outer, n_group, n_inner)

    o_ref[...] = act


# ------------------------------ plain-JAX glue --------------------------------

def positional_encoding_table(max_len, d_model):
    position = jnp.arange(max_len, dtype=jnp.float32)[:, None]
    div_term = jnp.exp(jnp.arange(0, d_model, 2, dtype=jnp.float32) *
                       (-math.log(10000.0) / d_model))
    ang = position * div_term                      # (max_len, d_model // 2)
    pe = jnp.zeros((max_len, d_model), jnp.float32)
    pe = pe.at[:, 0::2].set(jnp.sin(ang))
    pe = pe.at[:, 1::2].set(jnp.cos(ang))
    return pe                                      # pe[pos, dim]


def init_encoder(key, E):
    ks = jax.random.split(key, 6)

    def w(k, fan_in, shape):
        return jax.random.normal(k, shape, jnp.float32) / math.sqrt(fan_in)

    return {
        "g1": jnp.ones((1, E), jnp.float32), "b1": jnp.zeros((1, E), jnp.float32),
        "wq": w(ks[0], E, (E, E)), "bq": jnp.zeros((1, E), jnp.float32),
        "wk": w(ks[1], E, (E, E)), "bk": jnp.zeros((1, E), jnp.float32),
        "wv": w(ks[2], E, (E, E)), "bv": jnp.zeros((1, E), jnp.float32),
        "wo": w(ks[3], E, (E, E)), "bo": jnp.zeros((1, E), jnp.float32),
        "g2": jnp.ones((1, E), jnp.float32), "b2": jnp.zeros((1, E), jnp.float32),
        "w1": w(ks[4], E, (E, 4 * E)), "bf1": jnp.zeros((1, 4 * E), jnp.float32),
        "w2": w(ks[5], 4 * E, (4 * E, E)), "bf2": jnp.zeros((1, E), jnp.float32),
    }


def pack_stage(layers, num_heads):
    """Stack per-layer params on a leading layer axis, fuse Q/K/V into one
    (E, 3E) weight, fold 1/sqrt(head_dim) into the Q projection, and cast the
    matmul weights to bf16 (biases / LN params stay f32)."""
    E = layers[0]["wq"].shape[0]
    scale = 1.0 / math.sqrt(E // num_heads)
    stack = lambda f: jnp.stack([f(p) for p in layers], axis=0)
    return {
        "g1": stack(lambda p: p["g1"]), "b1": stack(lambda p: p["b1"]),
        "wqkv": stack(lambda p: jnp.concatenate(
            [p["wq"] * scale, p["wk"], p["wv"]], axis=1)).astype(jnp.bfloat16),
        "bqkv": stack(lambda p: jnp.concatenate(
            [p["bq"] * scale, p["bk"], p["bv"]], axis=1)),
        "wo": stack(lambda p: p["wo"]).astype(jnp.bfloat16),
        "bo": stack(lambda p: p["bo"]),
        "g2": stack(lambda p: p["g2"]), "b2": stack(lambda p: p["b2"]),
        "w1": stack(lambda p: p["w1"]).astype(jnp.bfloat16),
        "bf1": stack(lambda p: p["bf1"]),
        "w2": stack(lambda p: p["w2"]).astype(jnp.bfloat16),
        "bf2": stack(lambda p: p["bf2"]),
    }


def init_ambi_mimo(key, embed_dim, num_encoders, num_heads):
    keys = jax.random.split(key, 3 * num_encoders)
    mk = lambda i0: [init_encoder(keys[i0 + i], embed_dim)
                     for i in range(num_encoders)]
    return {
        "interchannel": pack_stage(mk(0), num_heads),
        "intrachunk": pack_stage(mk(num_encoders), num_heads),
        # interchunk weights exist in the PyTorch __init__ but its forward
        # reuses intrachunk_block for stage 3; kept for parity, unused.
        "interchunk": pack_stage(mk(2 * num_encoders), num_heads),
    }


def ambi_mimo_forward(x, params, *, num_heads):
    B, Ch, NBin, C, NC = x.shape
    E = NBin
    R = B * Ch * C * NC
    num_layers = params["interchannel"]["wqkv"].shape[0]

    pe = positional_encoding_table(max(Ch, C, NC), E)

    # One XLA transpose into the kernel's canonical layout (rows ordered
    # (ch, b, c, nc), embedding last) and one back out; every other permute of
    # the PyTorch forward happens as a row regroup inside the fused kernel.
    x_canon = jnp.transpose(x, (1, 0, 3, 4, 2)).reshape(R, E)

    plist = [params[sname][wname]
             for sname in ("interchannel", "intrachunk")
             for wname in PACKED_ORDER]

    y = pl.pallas_call(
        functools.partial(ambi_mimo_kernel,
                          dims=(B, Ch, C, NC, E),
                          num_heads=num_heads,
                          num_layers=num_layers),
        out_shape=jax.ShapeDtypeStruct((R, E), jnp.float32),
        compiler_params=pltpu.CompilerParams(
            vmem_limit_bytes=32 * 1024 * 1024),
    )(x_canon, pe, *plist)

    y = y.reshape(Ch, B, C, NC, E)
    return jnp.transpose(y, (1, 0, 4, 2, 3))       # (B, Ch, NBin, C, NC)


# ----------------------------------- main -------------------------------------

if __name__ == "__main__":
    B, Ch, NBin, C, NC = 2, 2, 32, 2, 4            # NBin == embed_dim
    num_heads, num_encoders = 4, 2

    key = jax.random.PRNGKey(0)
    kx, kp = jax.random.split(key)
    x = jax.random.normal(kx, (B, Ch, NBin, C, NC), jnp.float32)
    params = init_ambi_mimo(kp, NBin, num_encoders, num_heads)

    fwd = jax.jit(functools.partial(ambi_mimo_forward, num_heads=num_heads))
    out = jax.block_until_ready(fwd(x, params))

    assert out.shape == (B, Ch, NBin, C, NC), out.shape
    assert bool(jnp.all(jnp.isfinite(out)))
    print("KERNEL_OK")
</pallas_src>

<mosaic_0001>
module attributes {stable_mosaic.version = 11 : i64} {
  func.func @ambi_mimo_kernel(%arg0: memref<32x32xf32, #tpu.memory_space<vmem>>, %arg1: memref<4x32xf32, #tpu.memory_space<vmem>>, %arg2: memref<2x1x32xf32, #tpu.memory_space<vmem>>, %arg3: memref<2x1x32xf32, #tpu.memory_space<vmem>>, %arg4: memref<2x32x96xbf16, #tpu.memory_space<vmem>>, %arg5: memref<2x1x96xf32, #tpu.memory_space<vmem>>, %arg6: memref<2x32x32xbf16, #tpu.memory_space<vmem>>, %arg7: memref<2x1x32xf32, #tpu.memory_space<vmem>>, %arg8: memref<2x1x32xf32, #tpu.memory_space<vmem>>, %arg9: memref<2x1x32xf32, #tpu.memory_space<vmem>>, %arg10: memref<2x32x128xbf16, #tpu.memory_space<vmem>>, %arg11: memref<2x1x128xf32, #tpu.memory_space<vmem>>, %arg12: memref<2x128x32xbf16, #tpu.memory_space<vmem>>, %arg13: memref<2x1x32xf32, #tpu.memory_space<vmem>>, %arg14: memref<2x1x32xf32, #tpu.memory_space<vmem>>, %arg15: memref<2x1x32xf32, #tpu.memory_space<vmem>>, %arg16: memref<2x32x96xbf16, #tpu.memory_space<vmem>>, %arg17: memref<2x1x96xf32, #tpu.memory_space<vmem>>, %arg18: memref<2x32x32xbf16, #tpu.memory_space<vmem>>, %arg19: memref<2x1x32xf32, #tpu.memory_space<vmem>>, %arg20: memref<2x1x32xf32, #tpu.memory_space<vmem>>, %arg21: memref<2x1x32xf32, #tpu.memory_space<vmem>>, %arg22: memref<2x32x128xbf16, #tpu.memory_space<vmem>>, %arg23: memref<2x1x128xf32, #tpu.memory_space<vmem>>, %arg24: memref<2x128x32xbf16, #tpu.memory_space<vmem>>, %arg25: memref<2x1x32xf32, #tpu.memory_space<vmem>>, %arg26: memref<32x32xf32, #tpu.memory_space<vmem>>) attributes {dimension_semantics = [], scalar_prefetch = 0 : i64, scratch_operands = 0 : i64, tpu.core_type = #tpu.core_type<tc>} {
    %c0 = arith.constant 0 : index
    %c0_0 = arith.constant 0 : index
    %0 = vector.load %arg1[%c0, %c0_0] : memref<4x32xf32, #tpu.memory_space<vmem>>, vector<4x32xf32>
    %c0_1 = arith.constant 0 : index
    %c0_2 = arith.constant 0 : index
    %1 = vector.load %arg0[%c0_1, %c0_2] : memref<32x32xf32, #tpu.memory_space<vmem>>, vector<32x32xf32>
    %2 = vector.shape_cast %1 : vector<32x32xf32> to vector<2x16x32xf32>
    %cst = arith.constant 2.000000e+00 : f32
    %3 = vector.broadcast %cst : f32 to vector<2x16x32xf32>
    %4 = arith.mulf %3, %2 : vector<2x16x32xf32>
    %5 = vector.extract_strided_slice %0 {offsets = [0, 0], sizes = [2, 32], strides = [1, 1]} : vector<4x32xf32> to vector<2x32xf32>
    %6 = vector.shape_cast %5 : vector<2x32xf32> to vector<2x1x32xf32>
    %7 = vector.broadcast %6 : vector<2x1x32xf32> to vector<2x16x32xf32>
    %8 = arith.addf %4, %7 : vector<2x16x32xf32>
    %9 = vector.shape_cast %8 : vector<2x16x32xf32> to vector<32x32xf32>
    %c0_3 = arith.constant 0 : index
    %c0_4 = arith.constant 0 : index
    %c0_5 = arith.constant 0 : index
    %10 = vector.load %arg2[%c0_3, %c0_4, %c0_5] : memref<2x1x32xf32, #tpu.memory_space<vmem>>, vector<1x1x32xf32>
    %11 = vector.shape_cast %10 : vector<1x1x32xf32> to vector<1x32xf32>
    %c0_6 = arith.constant 0 : index
    %c0_7 = arith.constant 0 : index
    %c0_8 = arith.constant 0 : index
    %12 = vector.load %arg3[%c0_6, %c0_7, %c0_8] : memref<2x1x32xf32, #tpu.memory_space<vmem>>, vector<1x1x32xf32>
    %13 = vector.shape_cast %12 : vector<1x1x32xf32> to vector<1x32xf32>
    %c0_9 = arith.constant 0 : index
    %c0_10 = arith.constant 0 : index
    %c0_11 = arith.constant 0 : index
    %14 = vector.load %arg4[%c0_9, %c0_10, %c0_11] : memref<2x32x96xbf16, #tpu.memory_space<vmem>>, vector<1x32x96xbf16>
    %15 = vector.shape_cast %14 : vector<1x32x96xbf16> to vector<32x96xbf16>
    %c0_12 = arith.constant 0 : index
    %c0_13 = arith.constant 0 : index
    %c0_14 = arith.constant 0 : index
    %16 = vector.load %arg5[%c0_12, %c0_13, %c0_14] : memref<2x1x96xf32, #tpu.memory_space<vmem>>, vector<1x1x96xf32>
    %17 = vector.shape_cast %16 : vector<1x1x96xf32> to vector<1x96xf32>
    %c0_15 = arith.constant 0 : index
    %c0_16 = arith.constant 0 : index
    %c0_17 = arith.constant 0 : index
    %18 = vector.load %arg6[%c0_15, %c0_16, %c0_17] : memref<2x32x32xbf16, #tpu.memory_space<vmem>>, vector<1x32x32xbf16>
    %19 = vector.shape_cast %18 : vector<1x32x32xbf16> to vector<32x32xbf16>
    %c0_18 = arith.constant 0 : index
    %c0_19 = arith.constant 0 : index
    %c0_20 = arith.constant 0 : index
    %20 = vector.load %arg7[%c0_18, %c0_19, %c0_20] : memref<2x1x32xf32, #tpu.memory_space<vmem>>, vector<1x1x32xf32>
    %21 = vector.shape_cast %20 : vector<1x1x32xf32> to vector<1x32xf32>
    %c0_21 = arith.constant 0 : index
    %c0_22 = arith.constant 0 : index
    %c0_23 = arith.constant 0 : index
    %22 = vector.load %arg8[%c0_21, %c0_22, %c0_23] : memref<2x1x32xf32, #tpu.memory_space<vmem>>, vector<1x1x32xf32>
    %23 = vector.shape_cast %22 : vector<1x1x32xf32> to vector<1x32xf32>
    %c0_24 = arith.constant 0 : index
    %c0_25 = arith.constant 0 : index
    %c0_26 = arith.constant 0 : index
    %24 = vector.load %arg9[%c0_24, %c0_25, %c0_26] : memref<2x1x32xf32, #tpu.memory_space<vmem>>, vector<1x1x32xf32>
    %25 = vector.shape_cast %24 : vector<1x1x32xf32> to vector<1x32xf32>
    %c0_27 = arith.constant 0 : index
    %c0_28 = arith.constant 0 : index
    %c0_29 = arith.constant 0 : index
    %26 = vector.load %arg10[%c0_27, %c0_28, %c0_29] : memref<2x32x128xbf16, #tpu.memory_space<vmem>>, vector<1x32x128xbf16>
    %27 = vector.shape_cast %26 : vector<1x32x128xbf16> to vector<32x128xbf16>
    %c0_30 = arith.constant 0 : index
    %c0_31 = arith.constant 0 : index
    %c0_32 = arith.constant 0 : index
    %28 = vector.load %arg11[%c0_30, %c0_31, %c0_32] : memref<2x1x128xf32, #tpu.memory_space<vmem>>, vector<1x1x128xf32>
    %29 = vector.shape_cast %28 : vector<1x1x128xf32> to vector<1x128xf32>
    %c0_33 = arith.constant 0 : index
    %c0_34 = arith.constant 0 : index
    %c0_35 = arith.constant 0 : index
    %30 = vector.load %arg12[%c0_33, %c0_34, %c0_35] : memref<2x128x32xbf16, #tpu.memory_space<vmem>>, vector<1x128x32xbf16>
    %31 = vector.shape_cast %30 : vector<1x128x32xbf16> to vector<128x32xbf16>
    %c0_36 = arith.constant 0 : index
    %c0_37 = arith.constant 0 : index
    %c0_38 = arith.constant 0 : index
    %32 = vector.load %arg13[%c0_36, %c0_37, %c0_38] : memref<2x1x32xf32, #tpu.memory_space<vmem>>, vector<1x1x32xf32>
    %33 = vector.shape_cast %32 : vector<1x1x32xf32> to vector<1x32xf32>
    %cst_39 = arith.constant dense<0.000000e+00> : vector<32xf32>
    %34 = vector.multi_reduction <add>, %9, %cst_39 [1] : vector<32x32xf32> to vector<32xf32>
    %35 = vector.shape_cast %34 : vector<32xf32> to vector<32x1xf32>
    %cst_40 = arith.constant 3.200000e+01 : f32
    %36 = vector.broadcast %cst_40 : f32 to vector<32x1xf32>
    %37 = arith.divf %35, %36 : vector<32x1xf32>
    %38 = vector.broadcast %37 : vector<32x1xf32> to vector<32x32xf32>
    %39 = arith.subf %9, %38 : vector<32x32xf32>
    %40 = arith.mulf %39, %39 : vector<32x32xf32>
    %cst_41 = arith.constant dense<0.000000e+00> : vector<32xf32>
    %41 = vector.multi_reduction <add>, %40, %cst_41 [1] : vector<32x32xf32> to vector<32xf32>
    %42 = vector.shape_cast %41 : vector<32xf32> to vector<32x1xf32>
    %cst_42 = arith.constant 3.200000e+01 : f32
    %43 = vector.broadcast %cst_42 : f32 to vector<32x1xf32>
    %44 = arith.divf %42, %43 : vector<32x1xf32>
    %45 = vector.broadcast %37 : vector<32x1xf32> to vector<32x32xf32>
    %46 = arith.subf %9, %45 : vector<32x32xf32>
    %cst_43 = arith.constant 9.99999974E-6 : f32
    %47 = vector.broadcast %cst_43 : f32 to vector<32x1xf32>
    %48 = arith.addf %44, %47 : vector<32x1xf32>
    %49 = math.rsqrt %48 : vector<32x1xf32>
    %50 = vector.broadcast %49 : vector<32x1xf32> to vector<32x32xf32>
    %51 = arith.mulf %46, %50 : vector<32x32xf32>
    %52 = vector.broadcast %11 : vector<1x32xf32> to vector<32x32xf32>
    %53 = arith.mulf %51, %52 : vector<32x32xf32>
    %54 = vector.broadcast %13 : vector<1x32xf32> to vector<32x32xf32>
    %55 = arith.addf %53, %54 : vector<32x32xf32>
    %56 = arith.truncf %55 : vector<32x32xf32> to vector<32x32xbf16>
    %cst_44 = arith.constant dense<0.000000e+00> : vector<32x96xf32>
    %57 = tpu.matmul %56, %15, %cst_44 {dimension_numbers = #tpu.dot_dimension_numbers<[1], [0], [0], [1], [0, 0, 1, 1], [], []>} : vector<32x32xbf16>, vector<32x96xbf16>, vector<32x96xf32> -> vector<32x96xf32>
    %58 = vector.broadcast %17 : vector<1x96xf32> to vector<32x96xf32>
    %59 = arith.addf %57, %58 : vector<32x96xf32>
    %60 = vector.extract_strided_slice %59 {offsets = [0, 0], sizes = [32, 32], strides = [1, 1]} : vector<32x96xf32> to vector<32x32xf32>
    %61 = vector.shape_cast %60 : vector<32x32xf32> to vector<2x16x32xf32>
    %62 = vector.extract_strided_slice %59 {offsets = [0, 32], sizes = [32, 32], strides = [1, 1]} : vector<32x96xf32> to vector<32x32xf32>
    %63 = vector.shape_cast %62 : vector<32x32xf32> to vector<2x16x32xf32>
    %64 = vector.extract_strided_slice %59 {offsets = [0, 64], sizes = [32, 32], strides = [1, 1]} : vector<32x96xf32> to vector<32x32xf32>
    %65 = vector.shape_cast %64 : vector<32x32xf32> to vector<2x16x32xf32>
    %66 = vector.extract_strided_slice %61 {offsets = [0, 0, 0], sizes = [2, 16, 8], strides = [1, 1, 1]} : vector<2x16x32xf32> to vector<2x16x8xf32>
    %67 = vector.extract_strided_slice %61 {offsets = [0, 0, 8], sizes = [2, 16, 8], strides = [1, 1, 1]} : vector<2x16x32xf32> to vector<2x16x8xf32>
    %68 = vector.extract_strided_slice %61 {offsets = [0, 0, 16], sizes = [2, 16, 8], strides = [1, 1, 1]} : vector<2x16x32xf32> to vector<2x16x8xf32>
    %69 = vector.extract_strided_slice %61 {offsets = [0, 0, 24], sizes = [2, 16, 8], strides = [1, 1, 1]} : vector<2x16x32xf32> to vector<2x16x8xf32>
    %70 = tpu.concatenate %66, %67, %68, %69 in 0 : vector<2x16x8xf32>, vector<2x16x8xf32>, vector<2x16x8xf32>, vector<2x16x8xf32> -> vector<8x16x8xf32>
    %71 = arith.truncf %70 : vector<8x16x8xf32> to vector<8x16x8xbf16>
    %72 = vector.extract_strided_slice %63 {offsets = [0, 0, 0], sizes = [2, 16, 8], strides = [1, 1, 1]} : vector<2x16x32xf32> to vector<2x16x8xf32>
    %73 = vector.extract_strided_slice %63 {offsets = [0, 0, 8], sizes = [2, 16, 8], strides = [1, 1, 1]} : vector<2x16x32xf32> to vector<2x16x8xf32>
    %74 = vector.extract_strided_slice %63 {offsets = [0, 0, 16], sizes = [2, 16, 8], strides = [1, 1, 1]} : vector<2x16x32xf32> to vector<2x16x8xf32>
    %75 = vector.extract_strided_slice %63 {offsets = [0, 0, 24], sizes = [2, 16, 8], strides = [1, 1, 1]} : vector<2x16x32xf32> to vector<2x16x8xf32>
    %76 = tpu.concatenate %72, %73, %74, %75 in 0 : vector<2x16x8xf32>, vector<2x16x8xf32>, vector<2x16x8xf32>, vector<2x16x8xf32> -> vector<8x16x8xf32>
    %77 = arith.truncf %76 : vector<8x16x8xf32> to vector<8x16x8xbf16>
    %78 = vector.extract_strided_slice %65 {offsets = [0, 0, 0], sizes = [2, 16, 8], strides = [1, 1, 1]} : vector<2x16x32xf32> to vector<2x16x8xf32>
    %79 = vector.extract_strided_slice %65 {offsets = [0, 0, 8], sizes = [2, 16, 8], strides = [1, 1, 1]} : vector<2x16x32xf32> to vector<2x16x8xf32>
    %80 = vector.extract_strided_slice %65 {offsets = [0, 0, 16], sizes = [2, 16, 8], strides = [1, 1, 1]} : vector<2x16x32xf32> to vector<2x16x8xf32>
    %81 = vector.extract_strided_slice %65 {offsets = [0, 0, 24], sizes = [2, 16, 8], strides = [1, 1, 1]} : vector<2x16x32xf32> to vector<2x16x8xf32>
    %82 = tpu.concatenate %78, %79, %80, %81 in 0 : vector<2x16x8xf32>, vector<2x16x8xf32>, vector<2x16x8xf32>, vector<2x16x8xf32> -> vector<8x16x8xf32>
    %83 = arith.truncf %82 : vector<8x16x8xf32> to vector<8x16x8xbf16>
    "tpu.trace_start"() <{level = 10 : i32, message = "bqd,bkd->bqk"}> : () -> ()
    %cst_45 = arith.constant dense<0.000000e+00> : vector<8x16x16xf32>
    %84 = tpu.matmul %71, %77, %cst_45 {dimension_numbers = #tpu.dot_dimension_numbers<[2], [2], [1], [1], [0, 0, 0, 1, 1, 1], [0], [0]>} : vector<8x16x8xbf16>, vector<8x16x8xbf16>, vector<8x16x16xf32> -> vector<8x16x16xf32>
    "tpu.trace_stop"() : () -> ()
    %cst_46 = arith.constant dense<0xFF800000> : vector<8x16xf32>
    %85 = vector.multi_reduction <maximumf>, %84, %cst_46 [2] : vector<8x16x16xf32> to vector<8x16xf32>
    %86 = vector.shape_cast %85 : vector<8x16xf32> to vector<8x16x1xf32>
    %87 = vector.broadcast %86 : vector<8x16x1xf32> to vector<8x16x16xf32>
    %88 = arith.subf %84, %87 : vector<8x16x16xf32>
    %89 = math.exp %88 : vector<8x16x16xf32>
    %cst_47 = arith.constant dense<0.000000e+00> : vector<8x16xf32>
    %90 = vector.multi_reduction <add>, %89, %cst_47 [2] : vector<8x16x16xf32> to vector<8x16xf32>
    %91 = vector.shape_cast %90 : vector<8x16xf32> to vector<8x16x1xf32>
    %92 = vector.broadcast %91 : vector<8x16x1xf32> to vector<8x16x16xf32>
    %93 = arith.divf %89, %92 : vector<8x16x16xf32>
    %94 = arith.truncf %93 : vector<8x16x16xf32> to vector<8x16x16xbf16>
    "tpu.trace_start"() <{level = 10 : i32, message = "bqk,bkd->bqd"}> : () -> ()
    %cst_48 = arith.constant dense<0.000000e+00> : vector<8x16x8xf32>
    %95 = tpu.matmul %94, %83, %cst_48 {dimension_numbers = #tpu.dot_dimension_numbers<[2], [1], [1], [2], [0, 0, 0, 1, 1, 2], [0], [0]>} : vector<8x16x16xbf16>, vector<8x16x8xbf16>, vector<8x16x8xf32> -> vector<8x16x8xf32>
    "tpu.trace_stop"() : () -> ()
    %96 = vector.extract_strided_slice %95 {offsets = [0, 0, 0], sizes = [2, 16, 8], strides = [1, 1, 1]} : vector<8x16x8xf32> to vector<2x16x8xf32>
    %97 = vector.extract_strided_slice %95 {offsets = [2, 0, 0], sizes = [2, 16, 8], strides = [1, 1, 1]} : vector<8x16x8xf32> to vector<2x16x8xf32>
    %98 = vector.extract_strided_slice %95 {offsets = [4, 0, 0], sizes = [2, 16, 8], strides = [1, 1, 1]} : vector<8x16x8xf32> to vector<2x16x8xf32>
    %99 = vector.extract_strided_slice %95 {offsets = [6, 0, 0], sizes = [2, 16, 8], strides = [1, 1, 1]} : vector<8x16x8xf32> to vector<2x16x8xf32>
    %100 = tpu.concatenate %96, %97, %98, %99 in 2 : vector<2x16x8xf32>, vector<2x16x8xf32>, vector<2x16x8xf32>, vector<2x16x8xf32> -> vector<2x16x32xf32>
    %101 = vector.shape_cast %100 : vector<2x16x32xf32> to vector<32x32xf32>
    %102 = arith.truncf %101 : vector<32x32xf32> to vector<32x32xbf16>
    %cst_49 = arith.constant dense<0.000000e+00> : vector<32x32xf32>
    %103 = tpu.matmul %102, %19, %cst_49 {dimension_numbers = #tpu.dot_dimension_numbers<[1], [0], [0], [1], [0, 0, 1, 1], [], []>} : vector<32x32xbf16>, vector<32x32xbf16>, vector<32x32xf32> -> vector<32x32xf32>
    %104 = vector.broadcast %21 : vector<1x32xf32> to vector<32x32xf32>
    %105 = arith.addf %103, %104 : vector<32x32xf32>
    %106 = arith.addf %105, %9 : vector<32x32xf32>
    %cst_50 = arith.constant dense<0.000000e+00> : vector<32xf32>
    %107 = vector.multi_reduction <add>, %106, %cst_50 [1] : vector<32x32xf32> to vector<32xf32>
    %108 = vector.shape_cast %107 : vector<32xf32> to vector<32x1xf32>
    %cst_51 = arith.constant 3.200000e+01 : f32
    %109 = vector.broadcast %cst_51 : f32 to vector<32x1xf32>
    %110 = arith.divf %108, %109 : vector<32x1xf32>
    %111 = vector.broadcast %110 : vector<32x1xf32> to vector<32x32xf32>
    %112 = arith.subf %106, %111 : vector<32x32xf32>
    %113 = arith.mulf %112, %112 : vector<32x32xf32>
    %cst_52 = arith.constant dense<0.000000e+00> : vector<32xf32>
    %114 = vector.multi_reduction <add>, %113, %cst_52 [1] : vector<32x32xf32> to vector<32xf32>
    %115 = vector.shape_cast %114 : vector<32xf32> to vector<32x1xf32>
    %cst_53 = arith.constant 3.200000e+01 : f32
    %116 = vector.broadcast %cst_53 : f32 to vector<32x1xf32>
    %117 = arith.divf %115, %116 : vector<32x1xf32>
    %118 = vector.broadcast %110 : vector<32x1xf32> to vector<32x32xf32>
    %119 = arith.subf %106, %118 : vector<32x32xf32>
    %cst_54 = arith.constant 9.99999974E-6 : f32
    %120 = vector.broadcast %cst_54 : f32 to vector<32x1xf32>
    %121 = arith.addf %117, %120 : vector<32x1xf32>
    %122 = math.rsqrt %121 : vector<32x1xf32>
    %123 = vector.broadcast %122 : vector<32x1xf32> to vector<32x32xf32>
    %124 = arith.mulf %119, %123 : vector<32x32xf32>
    %125 = vector.broadcast %23 : vector<1x32xf32> to vector<32x32xf32>
    %126 = arith.mulf %124, %125 : vector<32x32xf32>
    %127 = vector.broadcast %25 : vector<1x32xf32> to vector<32x32xf32>
    %128 = arith.addf %126, %127 : vector<32x32xf32>
    %129 = arith.truncf %128 : vector<32x32xf32> to vector<32x32xbf16>
    %cst_55 = arith.constant dense<0.000000e+00> : vector<32x128xf32>
    %130 = tpu.matmul %129, %27, %cst_55 {dimension_numbers = #tpu.dot_dimension_numbers<[1], [0], [0], [1], [0, 0, 1, 1], [], []>} : vector<32x32xbf16>, vector<32x128xbf16>, vector<32x128xf32> -> vector<32x128xf32>
    %131 = vector.broadcast %29 : vector<1x128xf32> to vector<32x128xf32>
    %132 = arith.addf %130, %131 : vector<32x128xf32>
    %cst_56 = arith.constant 0.000000e+00 : f32
    %133 = vector.broadcast %cst_56 : f32 to vector<32x128xf32>
    %134 = arith.maximumf %132, %133 : vector<32x128xf32>
    %135 = arith.truncf %134 : vector<32x128xf32> to vector<32x128xbf16>
    %cst_57 = arith.constant dense<0.000000e+00> : vector<32x32xf32>
    %136 = tpu.matmul %135, %31, %cst_57 {dimension_numbers = #tpu.dot_dimension_numbers<[1], [0], [0], [1], [0, 0, 1, 1], [], []>} : vector<32x128xbf16>, vector<128x32xbf16>, vector<32x32xf32> -> vector<32x32xf32>
    %137 = vector.broadcast %33 : vector<1x32xf32> to vector<32x32xf32>
    %138 = arith.addf %136, %137 : vector<32x32xf32>
    %139 = arith.addf %138, %106 : vector<32x32xf32>
    %c1 = arith.constant 1 : index
    %c0_58 = arith.constant 0 : index
    %c0_59 = arith.constant 0 : index
    %140 = vector.load %arg2[%c1, %c0_58, %c0_59] : memref<2x1x32xf32, #tpu.memory_space<vmem>>, vector<1x1x32xf32>
    %141 = vector.shape_cast %140 : vector<1x1x32xf32> to vector<1x32xf32>
    %c1_60 = arith.constant 1 : index
    %c0_61 = arith.constant 0 : index
    %c0_62 = arith.constant 0 : index
    %142 = vector.load %arg3[%c1_60, %c0_61, %c0_62] : memref<2x1x32xf32, #tpu.memory_space<vmem>>, vector<1x1x32xf32>
    %143 = vector.shape_cast %142 : vector<1x1x32xf32> to vector<1x32xf32>
    %c1_63 = arith.constant 1 : index
    %c0_64 = arith.constant 0 : index
    %c0_65 = arith.constant 0 : index
    %144 = vector.load %arg4[%c1_63, %c0_64, %c0_65] : memref<2x32x96xbf16, #tpu.memory_space<vmem>>, vector<1x32x96xbf16>
    %145 = vector.shape_cast %144 : vector<1x32x96xbf16> to vector<32x96xbf16>
    %c1_66 = arith.constant 1 : index
    %c0_67 = arith.constant 0 : index
    %c0_68 = arith.constant 0 : index
    %146 = vector.load %arg5[%c1_66, %c0_67, %c0_68] : memref<2x1x96xf32, #tpu.memory_space<vmem>>, vector<1x1x96xf32>
    %147 = vector.shape_cast %146 : vector<1x1x96xf32> to vector<1x96xf32>
    %c1_69 = arith.constant 1 : index
    %c0_70 = arith.constant 0 : index
    %c0_71 = arith.constant 0 : index
    %148 = vector.load %arg6[%c1_69, %c0_70, %c0_71] : memref<2x32x32xbf16, #tpu.memory_space<vmem>>, vector<1x32x32xbf16>
    %149 = vector.shape_cast %148 : vector<1x32x32xbf16> to vector<32x32xbf16>
    %c1_72 = arith.constant 1 : index
    %c0_73 = arith.constant 0 : index
    %c0_74 = arith.constant 0 : index
    %150 = vector.load %arg7[%c1_72, %c0_73, %c0_74] : memref<2x1x32xf32, #tpu.memory_space<vmem>>, vector<1x1x32xf32>
    %151 = vector.shape_cast %150 : vector<1x1x32xf32> to vector<1x32xf32>
    %c1_75 = arith.constant 1 : index
    %c0_76 = arith.constant 0 : index
    %c0_77 = arith.constant 0 : index
    %152 = vector.load %arg8[%c1_75, %c0_76, %c0_77] : memref<2x1x32xf32, #tpu.memory_space<vmem>>, vector<1x1x32xf32>
    %153 = vector.shape_cast %152 : vector<1x1x32xf32> to vector<1x32xf32>
    %c1_78 = arith.constant 1 : index
    %c0_79 = arith.constant 0 : index
    %c0_80 = arith.constant 0 : index
    %154 = vector.load %arg9[%c1_78, %c0_79, %c0_80] : memref<2x1x32xf32, #tpu.memory_space<vmem>>, vector<1x1x32xf32>
    %155 = vector.shape_cast %154 : vector<1x1x32xf32> to vector<1x32xf32>
    %c1_81 = arith.constant 1 : index
    %c0_82 = arith.constant 0 : index
    %c0_83 = arith.constant 0 : index
    %156 = vector.load %arg10[%c1_81, %c0_82, %c0_83] : memref<2x32x128xbf16, #tpu.memory_space<vmem>>, vector<1x32x128xbf16>
    %157 = vector.shape_cast %156 : vector<1x32x128xbf16> to vector<32x128xbf16>
    %c1_84 = arith.constant 1 : index
    %c0_85 = arith.constant 0 : index
    %c0_86 = arith.constant 0 : index
    %158 = vector.load %arg11[%c1_84, %c0_85, %c0_86] : memref<2x1x128xf32, #tpu.memory_space<vmem>>, vector<1x1x128xf32>
    %159 = vector.shape_cast %158 : vector<1x1x128xf32> to vector<1x128xf32>
    %c1_87 = arith.constant 1 : index
    %c0_88 = arith.constant 0 : index
    %c0_89 = arith.constant 0 : index
    %160 = vector.load %arg12[%c1_87, %c0_88, %c0_89] : memref<2x128x32xbf16, #tpu.memory_space<vmem>>, vector<1x128x32xbf16>
    %161 = vector.shape_cast %160 : vector<1x128x32xbf16> to vector<128x32xbf16>
    %c1_90 = arith.constant 1 : index
    %c0_91 = arith.constant 0 : index
    %c0_92 = arith.constant 0 : index
    %162 = vector.load %arg13[%c1_90, %c0_91, %c0_92] : memref<2x1x32xf32, #tpu.memory_space<vmem>>, vector<1x1x32xf32>
    %163 = vector.shape_cast %162 : vector<1x1x32xf32> to vector<1x32xf32>
    %cst_93 = arith.constant dense<0.000000e+00> : vector<32xf32>
    %164 = vector.multi_reduction <add>, %139, %cst_93 [1] : vector<32x32xf32> to vector<32xf32>
    %165 = vector.shape_cast %164 : vector<32xf32> to vector<32x1xf32>
    %cst_94 = arith.constant 3.200000e+01 : f32
    %166 = vector.broadcast %cst_94 : f32 to vector<32x1xf32>
    %167 = arith.divf %165, %166 : vector<32x1xf32>
    %168 = vector.broadcast %167 : vector<32x1xf32> to vector<32x32xf32>
    %169 = arith.subf %139, %168 : vector<32x32xf32>
    %170 = arith.mulf %169, %169 : vector<32x32xf32>
    %cst_95 = arith.constant dense<0.000000e+00> : vector<32xf32>
    %171 = vector.multi_reduction <add>, %170, %cst_95 [1] : vector<32x32xf32> to vector<32xf32>
    %172 = vector.shape_cast %171 : vector<32xf32> to vector<32x1xf32>
    %cst_96 = arith.constant 3.200000e+01 : f32
    %173 = vector.broadcast %cst_96 : f32 to vector<32x1xf32>
    %174 = arith.divf %172, %173 : vector<32x1xf32>
    %175 = vector.broadcast %167 : vector<32x1xf32> to vector<32x32xf32>
    %176 = arith.subf %139, %175 : vector<32x32xf32>
    %cst_97 = arith.constant 9.99999974E-6 : f32
    %177 = vector.broadcast %cst_97 : f32 to vector<32x1xf32>
    %178 = arith.addf %174, %177 : vector<32x1xf32>
    %179 = math.rsqrt %178 : vector<32x1xf32>
    %180 = vector.broadcast %179 : vector<32x1xf32> to vector<32x32xf32>
    %181 = arith.mulf %176, %180 : vector<32x32xf32>
    %182 = vector.broadcast %141 : vector<1x32xf32> to vector<32x32xf32>
    %183 = arith.mulf %181, %182 : vector<32x32xf32>
    %184 = vector.broadcast %143 : vector<1x32xf32> to vector<32x32xf32>
    %185 = arith.addf %183, %184 : vector<32x32xf32>
    %186 = arith.truncf %185 : vector<32x32xf32> to vector<32x32xbf16>
    %cst_98 = arith.constant dense<0.000000e+00> : vector<32x96xf32>
    %187 = tpu.matmul %186, %145, %cst_98 {dimension_numbers = #tpu.dot_dimension_numbers<[1], [0], [0], [1], [0, 0, 1, 1], [], []>} : vector<32x32xbf16>, vector<32x96xbf16>, vector<32x96xf32> -> vector<32x96xf32>
    %188 = vector.broadcast %147 : vector<1x96xf32> to vector<32x96xf32>
    %189 = arith.addf %187, %188 : vector<32x96xf32>
    %190 = vector.extract_strided_slice %189 {offsets = [0, 0], sizes = [32, 32], strides = [1, 1]} : vector<32x96xf32> to vector<32x32xf32>
    %191 = vector.shape_cast %190 : vector<32x32xf32> to vector<2x16x32xf32>
    %192 = vector.extract_strided_slice %189 {offsets = [0, 32], sizes = [32, 32], strides = [1, 1]} : vector<32x96xf32> to vector<32x32xf32>
    %193 = vector.shape_cast %192 : vector<32x32xf32> to vector<2x16x32xf32>
    %194 = vector.extract_strided_slice %189 {offsets = [0, 64], sizes = [32, 32], strides = [1, 1]} : vector<32x96xf32> to vector<32x32xf32>
    %195 = vector.shape_cast %194 : vector<32x32xf32> to vector<2x16x32xf32>
    %196 = vector.extract_strided_slice %191 {offsets = [0, 0, 0], sizes = [2, 16, 8], strides = [1, 1, 1]} : vector<2x16x32xf32> to vector<2x16x8xf32>
    %197 = vector.extract_strided_slice %191 {offsets = [0, 0, 8], sizes = [2, 16, 8], strides = [1, 1, 1]} : vector<2x16x32xf32> to vector<2x16x8xf32>
    %198 = vector.extract_strided_slice %191 {offsets = [0, 0, 16], sizes = [2, 16, 8], strides = [1, 1, 1]} : vector<2x16x32xf32> to vector<2x16x8xf32>
    %199 = vector.extract_strided_slice %191 {offsets = [0, 0, 24], sizes = [2, 16, 8], strides = [1, 1, 1]} : vector<2x16x32xf32> to vector<2x16x8xf32>
    %200 = tpu.concatenate %196, %197, %198, %199 in 0 : vector<2x16x8xf32>, vector<2x16x8xf32>, vector<2x16x8xf32>, vector<2x16x8xf32> -> vector<8x16x8xf32>
    %201 = arith.truncf %200 : vector<8x16x8xf32> to vector<8x16x8xbf16>
    %202 = vector.extract_strided_slice %193 {offsets = [0, 0, 0], sizes = [2, 16, 8], strides = [1, 1, 1]} : vector<2x16x32xf32> to vector<2x16x8xf32>
    %203 = vector.extract_strided_slice %193 {offsets = [0, 0, 8], sizes = [2, 16, 8], strides = [1, 1, 1]} : vector<2x16x32xf32> to vector<2x16x8xf32>
    %204 = vector.extract_strided_slice %193 {offsets = [0, 0, 16], sizes = [2, 16, 8], strides = [1, 1, 1]} : vector<2x16x32xf32> to vector<2x16x8xf32>
    %205 = vector.extract_strided_slice %193 {offsets = [0, 0, 24], sizes = [2, 16, 8], strides = [1, 1, 1]} : vector<2x16x32xf32> to vector<2x16x8xf32>
    %206 = tpu.concatenate %202, %203, %204, %205 in 0 : vector<2x16x8xf32>, vector<2x16x8xf32>, vector<2x16x8xf32>, vector<2x16x8xf32> -> vector<8x16x8xf32>
    %207 = arith.truncf %206 : vector<8x16x8xf32> to vector<8x16x8xbf16>
    %208 = vector.extract_strided_slice %195 {offsets = [0, 0, 0], sizes = [2, 16, 8], strides = [1, 1, 1]} : vector<2x16x32xf32> to vector<2x16x8xf32>
    %209 = vector.extract_strided_slice %195 {offsets = [0, 0, 8], sizes = [2, 16, 8], strides = [1, 1, 1]} : vector<2x16x32xf32> to vector<2x16x8xf32>
    %210 = vector.extract_strided_slice %195 {offsets = [0, 0, 16], sizes = [2, 16, 8], strides = [1, 1, 1]} : vector<2x16x32xf32> to vector<2x16x8xf32>
    %211 = vector.extract_strided_slice %195 {offsets = [0, 0, 24], sizes = [2, 16, 8], strides = [1, 1, 1]} : vector<2x16x32xf32> to vector<2x16x8xf32>
    %212 = tpu.concatenate %208, %209, %210, %211 in 0 : vector<2x16x8xf32>, vector<2x16x8xf32>, vector<2x16x8xf32>, vector<2x16x8xf32> -> vector<8x16x8xf32>
    %213 = arith.truncf %212 : vector<8x16x8xf32> to vector<8x16x8xbf16>
    "tpu.trace_start"() <{level = 10 : i32, message = "bqd,bkd->bqk"}> : () -> ()
    %cst_99 = arith.constant dense<0.000000e+00> : vector<8x16x16xf32>
    %214 = tpu.matmul %201, %207, %cst_99 {dimension_numbers = #tpu.dot_dimension_numbers<[2], [2], [1], [1], [0, 0, 0, 1, 1, 1], [0], [0]>} : vector<8x16x8xbf16>, vector<8x16x8xbf16>, vector<8x16x16xf32> -> vector<8x16x16xf32>
    "tpu.trace_stop"() : () -> ()
    %cst_100 = arith.constant dense<0xFF800000> : vector<8x16xf32>
    %215 = vector.multi_reduction <maximumf>, %214, %cst_100 [2] : vector<8x16x16xf32> to vector<8x16xf32>
    %216 = vector.shape_cast %215 : vector<8x16xf32> to vector<8x16x1xf32>
    %217 = vector.broadcast %216 : vector<8x16x1xf32> to vector<8x16x16xf32>
    %218 = arith.subf %214, %217 : vector<8x16x16xf32>
    %219 = math.exp %218 : vector<8x16x16xf32>
    %cst_101 = arith.constant dense<0.000000e+00> : vector<8x16xf32>
    %220 = vector.multi_reduction <add>, %219, %cst_101 [2] : vector<8x16x16xf32> to vector<8x16xf32>
    %221 = vector.shape_cast %220 : vector<8x16xf32> to vector<8x16x1xf32>
    %222 = vector.broadcast %221 : vector<8x16x1xf32> to vector<8x16x16xf32>
    %223 = arith.divf %219, %222 : vector<8x16x16xf32>
    %224 = arith.truncf %223 : vector<8x16x16xf32> to vector<8x16x16xbf16>
    "tpu.trace_start"() <{level = 10 : i32, message = "bqk,bkd->bqd"}> : () -> ()
    %cst_102 = arith.constant dense<0.000000e+00> : vector<8x16x8xf32>
    %225 = tpu.matmul %224, %213, %cst_102 {dimension_numbers = #tpu.dot_dimension_numbers<[2], [1], [1], [2], [0, 0, 0, 1, 1, 2], [0], [0]>} : vector<8x16x16xbf16>, vector<8x16x8xbf16>, vector<8x16x8xf32> -> vector<8x16x8xf32>
    "tpu.trace_stop"() : () -> ()
    %226 = vector.extract_strided_slice %225 {offsets = [0, 0, 0], sizes = [2, 16, 8], strides = [1, 1, 1]} : vector<8x16x8xf32> to vector<2x16x8xf32>
    %227 = vector.extract_strided_slice %225 {offsets = [2, 0, 0], sizes = [2, 16, 8], strides = [1, 1, 1]} : vector<8x16x8xf32> to vector<2x16x8xf32>
    %228 = vector.extract_strided_slice %225 {offsets = [4, 0, 0], sizes = [2, 16, 8], strides = [1, 1, 1]} : vector<8x16x8xf32> to vector<2x16x8xf32>
    %229 = vector.extract_strided_slice %225 {offsets = [6, 0, 0], sizes = [2, 16, 8], strides = [1, 1, 1]} : vector<8x16x8xf32> to vector<2x16x8xf32>
    %230 = tpu.concatenate %226, %227, %228, %229 in 2 : vector<2x16x8xf32>, vector<2x16x8xf32>, vector<2x16x8xf32>, vector<2x16x8xf32> -> vector<2x16x32xf32>
    %231 = vector.shape_cast %230 : vector<2x16x32xf32> to vector<32x32xf32>
    %232 = arith.truncf %231 : vector<32x32xf32> to vector<32x32xbf16>
    %cst_103 = arith.constant dense<0.000000e+00> : vector<32x32xf32>
    %233 = tpu.matmul %232, %149, %cst_103 {dimension_numbers = #tpu.dot_dimension_numbers<[1], [0], [0], [1], [0, 0, 1, 1], [], []>} : vector<32x32xbf16>, vector<32x32xbf16>, vector<32x32xf32> -> vector<32x32xf32>
    %234 = vector.broadcast %151 : vector<1x32xf32> to vector<32x32xf32>
    %235 = arith.addf %233, %234 : vector<32x32xf32>
    %236 = arith.addf %235, %139 : vector<32x32xf32>
    %cst_104 = arith.constant dense<0.000000e+00> : vector<32xf32>
    %237 = vector.multi_reduction <add>, %236, %cst_104 [1] : vector<32x32xf32> to vector<32xf32>
    %238 = vector.shape_cast %237 : vector<32xf32> to vector<32x1xf32>
    %cst_105 = arith.constant 3.200000e+01 : f32
    %239 = vector.broadcast %cst_105 : f32 to vector<32x1xf32>
    %240 = arith.divf %238, %239 : vector<32x1xf32>
    %241 = vector.broadcast %240 : vector<32x1xf32> to vector<32x32xf32>
    %242 = arith.subf %236, %241 : vector<32x32xf32>
    %243 = arith.mulf %242, %242 : vector<32x32xf32>
    %cst_106 = arith.constant dense<0.000000e+00> : vector<32xf32>
    %244 = vector.multi_reduction <add>, %243, %cst_106 [1] : vector<32x32xf32> to vector<32xf32>
    %245 = vector.shape_cast %244 : vector<32xf32> to vector<32x1xf32>
    %cst_107 = arith.constant 3.200000e+01 : f32
    %246 = vector.broadcast %cst_107 : f32 to vector<32x1xf32>
    %247 = arith.divf %245, %246 : vector<32x1xf32>
    %248 = vector.broadcast %240 : vector<32x1xf32> to vector<32x32xf32>
    %249 = arith.subf %236, %248 : vector<32x32xf32>
    %cst_108 = arith.constant 9.99999974E-6 : f32
    %250 = vector.broadcast %cst_108 : f32 to vector<32x1xf32>
    %251 = arith.addf %247, %250 : vector<32x1xf32>
    %252 = math.rsqrt %251 : vector<32x1xf32>
    %253 = vector.broadcast %252 : vector<32x1xf32> to vector<32x32xf32>
    %254 = arith.mulf %249, %253 : vector<32x32xf32>
    %255 = vector.broadcast %153 : vector<1x32xf32> to vector<32x32xf32>
    %256 = arith.mulf %254, %255 : vector<32x32xf32>
    %257 = vector.broadcast %155 : vector<1x32xf32> to vector<32x32xf32>
    %258 = arith.addf %256, %257 : vector<32x32xf32>
    %259 = arith.truncf %258 : vector<32x32xf32> to vector<32x32xbf16>
    %cst_109 = arith.constant dense<0.000000e+00> : vector<32x128xf32>
    %260 = tpu.matmul %259, %157, %cst_109 {dimension_numbers = #tpu.dot_dimension_numbers<[1], [0], [0], [1], [0, 0, 1, 1], [], []>} : vector<32x32xbf16>, vector<32x128xbf16>, vector<32x128xf32> -> vector<32x128xf32>
    %261 = vector.broadcast %159 : vector<1x128xf32> to vector<32x128xf32>
    %262 = arith.addf %260, %261 : vector<32x128xf32>
    %cst_110 = arith.constant 0.000000e+00 : f32
    %263 = vector.broadcast %cst_110 : f32 to vector<32x128xf32>
    %264 = arith.maximumf %262, %263 : vector<32x128xf32>
    %265 = arith.truncf %264 : vector<32x128xf32> to vector<32x128xbf16>
    %cst_111 = arith.constant dense<0.000000e+00> : vector<32x32xf32>
    %266 = tpu.matmul %265, %161, %cst_111 {dimension_numbers = #tpu.dot_dimension_numbers<[1], [0], [0], [1], [0, 0, 1, 1], [], []>} : vector<32x128xbf16>, vector<128x32xbf16>, vector<32x32xf32> -> vector<32x32xf32>
    %267 = vector.broadcast %163 : vector<1x32xf32> to vector<32x32xf32>
    %268 = arith.addf %266, %267 : vector<32x32xf32>
    %269 = arith.addf %268, %236 : vector<32x32xf32>
    %270 = vector.shape_cast %269 : vector<32x32xf32> to vector<2x16x32xf32>
    %271 = vector.shape_cast %270 : vector<2x16x32xf32> to vector<32x32xf32>
    %272 = vector.shape_cast %271 : vector<32x32xf32> to vector<4x2x4x32xf32>
    %273 = vector.extract_strided_slice %272 {offsets = [0, 0, 0, 0], sizes = [4, 1, 4, 32], strides = [1, 1, 1, 1]} : vector<4x2x4x32xf32> to vector<4x1x4x32xf32>
    %274 = vector.shape_cast %273 : vector<4x1x4x32xf32> to vector<4x4x32xf32>
    %275 = vector.shape_cast %274 : vector<4x4x32xf32> to vector<1x16x32xf32>
    %276 = vector.extract_strided_slice %272 {offsets = [0, 1, 0, 0], sizes = [4, 1, 4, 32], strides = [1, 1, 1, 1]} : vector<4x2x4x32xf32> to vector<4x1x4x32xf32>
    %277 = vector.shape_cast %276 : vector<4x1x4x32xf32> to vector<4x4x32xf32>
    %278 = vector.shape_cast %277 : vector<4x4x32xf32> to vector<1x16x32xf32>
    %279 = tpu.concatenate %275, %278 in 0 : vector<1x16x32xf32>, vector<1x16x32xf32> -> vector<2x16x32xf32>
    %cst_112 = arith.constant 2.000000e+00 : f32
    %280 = vector.broadcast %cst_112 : f32 to vector<2x16x32xf32>
    %281 = arith.mulf %280, %279 : vector<2x16x32xf32>
    %282 = vector.extract_strided_slice %0 {offsets = [0, 0], sizes = [2, 32], strides = [1, 1]} : vector<4x32xf32> to vector<2x32xf32>
    %283 = vector.shape_cast %282 : vector<2x32xf32> to vector<2x1x32xf32>
    %284 = vector.broadcast %283 : vector<2x1x32xf32> to vector<2x16x32xf32>
    %285 = arith.addf %281, %284 : vector<2x16x32xf32>
    %286 = vector.shape_cast %285 : vector<2x16x32xf32> to vector<32x32xf32>
    %c0_113 = arith.constant 0 : index
    %c0_114 = arith.constant 0 : index
    %c0_115 = arith.constant 0 : index
    %287 = vector.load %arg14[%c0_113, %c0_114, %c0_115] : memref<2x1x32xf32, #tpu.memory_space<vmem>>, vector<1x1x32xf32>
    %288 = vector.shape_cast %287 : vector<1x1x32xf32> to vector<1x32xf32>
    %c0_116 = arith.constant 0 : index
    %c0_117 = arith.constant 0 : index
    %c0_118 = arith.constant 0 : index
    %289 = vector.load %arg15[%c0_116, %c0_117, %c0_118] : memref<2x1x32xf32, #tpu.memory_space<vmem>>, vector<1x1x32xf32>
    %290 = vector.shape_cast %289 : vector<1x1x32xf32> to vector<1x32xf32>
    %c0_119 = arith.constant 0 : index
    %c0_120 = arith.constant 0 : index
    %c0_121 = arith.constant 0 : index
    %291 = vector.load %arg16[%c0_119, %c0_120, %c0_121] : memref<2x32x96xbf16, #tpu.memory_space<vmem>>, vector<1x32x96xbf16>
    %292 = vector.shape_cast %291 : vector<1x32x96xbf16> to vector<32x96xbf16>
    %c0_122 = arith.constant 0 : index
    %c0_123 = arith.constant 0 : index
    %c0_124 = arith.constant 0 : index
    %293 = vector.load %arg17[%c0_122, %c0_123, %c0_124] : memref<2x1x96xf32, #tpu.memory_space<vmem>>, vector<1x1x96xf32>
    %294 = vector.shape_cast %293 : vector<1x1x96xf32> to vector<1x96xf32>
    %c0_125 = arith.constant 0 : index
    %c0_126 = arith.constant 0 : index
    %c0_127 = arith.constant 0 : index
    %295 = vector.load %arg18[%c0_125, %c0_126, %c0_127] : memref<2x32x32xbf16, #tpu.memory_space<vmem>>, vector<1x32x32xbf16>
    %296 = vector.shape_cast %295 : vector<1x32x32xbf16> to vector<32x32xbf16>
    %c0_128 = arith.constant 0 : index
    %c0_129 = arith.constant 0 : index
    %c0_130 = arith.constant 0 : index
    %297 = vector.load %arg19[%c0_128, %c0_129, %c0_130] : memref<2x1x32xf32, #tpu.memory_space<vmem>>, vector<1x1x32xf32>
    %298 = vector.shape_cast %297 : vector<1x1x32xf32> to vector<1x32xf32>
    %c0_131 = arith.constant 0 : index
    %c0_132 = arith.constant 0 : index
    %c0_133 = arith.constant 0 : index
    %299 = vector.load %arg20[%c0_131, %c0_132, %c0_133] : memref<2x1x32xf32, #tpu.memory_space<vmem>>, vector<1x1x32xf32>
    %300 = vector.shape_cast %299 : vector<1x1x32xf32> to vector<1x32xf32>
    %c0_134 = arith.constant 0 : index
    %c0_135 = arith.constant 0 : index
    %c0_136 = arith.constant 0 : index
    %301 = vector.load %arg21[%c0_134, %c0_135, %c0_136] : memref<2x1x32xf32, #tpu.memory_space<vmem>>, vector<1x1x32xf32>
    %302 = vector.shape_cast %301 : vector<1x1x32xf32> to vector<1x32xf32>
    %c0_137 = arith.constant 0 : index
    %c0_138 = arith.constant 0 : index
    %c0_139 = arith.constant 0 : index
    %303 = vector.load %arg22[%c0_137, %c0_138, %c0_139] : memref<2x32x128xbf16, #tpu.memory_space<vmem>>, vector<1x32x128xbf16>
    %304 = vector.shape_cast %303 : vector<1x32x128xbf16> to vector<32x128xbf16>
    %c0_140 = arith.constant 0 : index
    %c0_141 = arith.constant 0 : index
    %c0_142 = arith.constant 0 : index
    %305 = vector.load %arg23[%c0_140, %c0_141, %c0_142] : memref<2x1x128xf32, #tpu.memory_space<vmem>>, vector<1x1x128xf32>
    %306 = vector.shape_cast %305 : vector<1x1x128xf32> to vector<1x128xf32>
    %c0_143 = arith.constant 0 : index
    %c0_144 = arith.constant 0 : index
    %c0_145 = arith.constant 0 : index
    %307 = vector.load %arg24[%c0_143, %c0_144, %c0_145] : memref<2x128x32xbf16, #tpu.memory_space<vmem>>, vector<1x128x32xbf16>
    %308 = vector.shape_cast %307 : vector<1x128x32xbf16> to vector<128x32xbf16>
    %c0_146 = arith.constant 0 : index
    %c0_147 = arith.constant 0 : index
    %c0_148 = arith.constant 0 : index
    %309 = vector.load %arg25[%c0_146, %c0_147, %c0_148] : memref<2x1x32xf32, #tpu.memory_space<vmem>>, vector<1x1x32xf32>
    %310 = vector.shape_cast %309 : vector<1x1x32xf32> to vector<1x32xf32>
    %cst_149 = arith.constant dense<0.000000e+00> : vector<32xf32>
    %311 = vector.multi_reduction <add>, %286, %cst_149 [1] : vector<32x32xf32> to vector<32xf32>
    %312 = vector.shape_cast %311 : vector<32xf32> to vector<32x1xf32>
    %cst_150 = arith.constant 3.200000e+01 : f32
    %313 = vector.broadcast %cst_150 : f32 to vector<32x1xf32>
    %314 = arith.divf %312, %313 : vector<32x1xf32>
    %315 = vector.broadcast %314 : vector<32x1xf32> to vector<32x32xf32>
    %316 = arith.subf %286, %315 : vector<32x32xf32>
    %317 = arith.mulf %316, %316 : vector<32x32xf32>
    %cst_151 = arith.constant dense<0.000000e+00> : vector<32xf32>
    %318 = vector.multi_reduction <add>, %317, %cst_151 [1] : vector<32x32xf32> to vector<32xf32>
    %319 = vector.shape_cast %318 : vector<32xf32> to vector<32x1xf32>
    %cst_152 = arith.constant 3.200000e+01 : f32
    %320 = vector.broadcast %cst_152 : f32 to vector<32x1xf32>
    %321 = arith.divf %319, %320 : vector<32x1xf32>
    %322 = vector.broadcast %314 : vector<32x1xf32> to vector<32x32xf32>
    %323 = arith.subf %286, %322 : vector<32x32xf32>
    %cst_153 = arith.constant 9.99999974E-6 : f32
    %324 = vector.broadcast %cst_153 : f32 to vector<32x1xf32>
    %325 = arith.addf %321, %324 : vector<32x1xf32>
    %326 = math.rsqrt %325 : vector<32x1xf32>
    %327 = vector.broadcast %326 : vector<32x1xf32> to vector<32x32xf32>
    %328 = arith.mulf %323, %327 : vector<32x32xf32>
    %329 = vector.broadcast %288 : vector<1x32xf32> to vector<32x32xf32>
    %330 = arith.mulf %328, %329 : vector<32x32xf32>
    %331 = vector.broadcast %290 : vector<1x32xf32> to vector<32x32xf32>
    %332 = arith.addf %330, %331 : vector<32x32xf32>
    %333 = arith.truncf %332 : vector<32x32xf32> to vector<32x32xbf16>
    %cst_154 = arith.constant dense<0.000000e+00> : vector<32x96xf32>
    %334 = tpu.matmul %333, %292, %cst_154 {dimension_numbers = #tpu.dot_dimension_numbers<[1], [0], [0], [1], [0, 0, 1, 1], [], []>} : vector<32x32xbf16>, vector<32x96xbf16>, vector<32x96xf32> -> vector<32x96xf32>
    %335 = vector.broadcast %294 : vector<1x96xf32> to vector<32x96xf32>
    %336 = arith.addf %334, %335 : vector<32x96xf32>
    %337 = vector.extract_strided_slice %336 {offsets = [0, 0], sizes = [32, 32], strides = [1, 1]} : vector<32x96xf32> to vector<32x32xf32>
    %338 = vector.shape_cast %337 : vector<32x32xf32> to vector<2x16x32xf32>
    %339 = vector.extract_strided_slice %336 {offsets = [0, 32], sizes = [32, 32], strides = [1, 1]} : vector<32x96xf32> to vector<32x32xf32>
    %340 = vector.shape_cast %339 : vector<32x32xf32> to vector<2x16x32xf32>
    %341 = vector.extract_strided_slice %336 {offsets = [0, 64], sizes = [32, 32], strides = [1, 1]} : vector<32x96xf32> to vector<32x32xf32>
    %342 = vector.shape_cast %341 : vector<32x32xf32> to vector<2x16x32xf32>
    %343 = vector.extract_strided_slice %338 {offsets = [0, 0, 0], sizes = [2, 16, 8], strides = [1, 1, 1]} : vector<2x16x32xf32> to vector<2x16x8xf32>
    %344 = vector.extract_strided_slice %338 {offsets = [0, 0, 8], sizes = [2, 16, 8], strides = [1, 1, 1]} : vector<2x16x32xf32> to vector<2x16x8xf32>
    %345 = vector.extract_strided_slice %338 {offsets = [0, 0, 16], sizes = [2, 16, 8], strides = [1, 1, 1]} : vector<2x16x32xf32> to vector<2x16x8xf32>
    %346 = vector.extract_strided_slice %338 {offsets = [0, 0, 24], sizes = [2, 16, 8], strides = [1, 1, 1]} : vector<2x16x32xf32> to vector<2x16x8xf32>
    %347 = tpu.concatenate %343, %344, %345, %346 in 0 : vector<2x16x8xf32>, vector<2x16x8xf32>, vector<2x16x8xf32>, vector<2x16x8xf32> -> vector<8x16x8xf32>
    %348 = arith.truncf %347 : vector<8x16x8xf32> to vector<8x16x8xbf16>
    %349 = vector.extract_strided_slice %340 {offsets = [0, 0, 0], sizes = [2, 16, 8], strides = [1, 1, 1]} : vector<2x16x32xf32> to vector<2x16x8xf32>
    %350 = vector.extract_strided_slice %340 {offsets = [0, 0, 8], sizes = [2, 16, 8], strides = [1, 1, 1]} : vector<2x16x32xf32> to vector<2x16x8xf32>
    %351 = vector.extract_strided_slice %340 {offsets = [0, 0, 16], sizes = [2, 16, 8], strides = [1, 1, 1]} : vector<2x16x32xf32> to vector<2x16x8xf32>
    %352 = vector.extract_strided_slice %340 {offsets = [0, 0, 24], sizes = [2, 16, 8], strides = [1, 1, 1]} : vector<2x16x32xf32> to vector<2x16x8xf32>
    %353 = tpu.concatenate %349, %350, %351, %352 in 0 : vector<2x16x8xf32>, vector<2x16x8xf32>, vector<2x16x8xf32>, vector<2x16x8xf32> -> vector<8x16x8xf32>
    %354 = arith.truncf %353 : vector<8x16x8xf32> to vector<8x16x8xbf16>
    %355 = vector.extract_strided_slice %342 {offsets = [0, 0, 0], sizes = [2, 16, 8], strides = [1, 1, 1]} : vector<2x16x32xf32> to vector<2x16x8xf32>
    %356 = vector.extract_strided_slice %342 {offsets = [0, 0, 8], sizes = [2, 16, 8], strides = [1, 1, 1]} : vector<2x16x32xf32> to vector<2x16x8xf32>
    %357 = vector.extract_strided_slice %342 {offsets = [0, 0, 16], sizes = [2, 16, 8], strides = [1, 1, 1]} : vector<2x16x32xf32> to vector<2x16x8xf32>
    %358 = vector.extract_strided_slice %342 {offsets = [0, 0, 24], sizes = [2, 16, 8], strides = [1, 1, 1]} : vector<2x16x32xf32> to vector<2x16x8xf32>
    %359 = tpu.concatenate %355, %356, %357, %358 in 0 : vector<2x16x8xf32>, vector<2x16x8xf32>, vector<2x16x8xf32>, vector<2x16x8xf32> -> vector<8x16x8xf32>
    %360 = arith.truncf %359 : vector<8x16x8xf32> to vector<8x16x8xbf16>
    "tpu.trace_start"() <{level = 10 : i32, message = "bqd,bkd->bqk"}> : () -> ()
    %cst_155 = arith.constant dense<0.000000e+00> : vector<8x16x16xf32>
    %361 = tpu.matmul %348, %354, %cst_155 {dimension_numbers = #tpu.dot_dimension_numbers<[2], [2], [1], [1], [0, 0, 0, 1, 1, 1], [0], [0]>} : vector<8x16x8xbf16>, vector<8x16x8xbf16>, vector<8x16x16xf32> -> vector<8x16x16xf32>
    "tpu.trace_stop"() : () -> ()
    %cst_156 = arith.constant dense<0xFF800000> : vector<8x16xf32>
    %362 = vector.multi_reduction <maximumf>, %361, %cst_156 [2] : vector<8x16x16xf32> to vector<8x16xf32>
    %363 = vector.shape_cast %362 : vector<8x16xf32> to vector<8x16x1xf32>
    %364 = vector.broadcast %363 : vector<8x16x1xf32> to vector<8x16x16xf32>
    %365 = arith.subf %361, %364 : vector<8x16x16xf32>
    %366 = math.exp %365 : vector<8x16x16xf32>
    %cst_157 = arith.constant dense<0.000000e+00> : vector<8x16xf32>
    %367 = vector.multi_reduction <add>, %366, %cst_157 [2] : vector<8x16x16xf32> to vector<8x16xf32>
    %368 = vector.shape_cast %367 : vector<8x16xf32> to vector<8x16x1xf32>
    %369 = vector.broadcast %368 : vector<8x16x1xf32> to vector<8x16x16xf32>
    %370 = arith.divf %366, %369 : vector<8x16x16xf32>
    %371 = arith.truncf %370 : vector<8x16x16xf32> to vector<8x16x16xbf16>
    "tpu.trace_start"() <{level = 10 : i32, message = "bqk,bkd->bqd"}> : () -> ()
    %cst_158 = arith.constant dense<0.000000e+00> : vector<8x16x8xf32>
    %372 = tpu.matmul %371, %360, %cst_158 {dimension_numbers = #tpu.dot_dimension_numbers<[2], [1], [1], [2], [0, 0, 0, 1, 1, 2], [0], [0]>} : vector<8x16x16xbf16>, vector<8x16x8xbf16>, vector<8x16x8xf32> -> vector<8x16x8xf32>
    "tpu.trace_stop"() : () -> ()
    %373 = vector.extract_strided_slice %372 {offsets = [0, 0, 0], sizes = [2, 16, 8], strides = [1, 1, 1]} : vector<8x16x8xf32> to vector<2x16x8xf32>
    %374 = vector.extract_strided_slice %372 {offsets = [2, 0, 0], sizes = [2, 16, 8], strides = [1, 1, 1]} : vector<8x16x8xf32> to vector<2x16x8xf32>
    %375 = vector.extract_strided_slice %372 {offsets = [4, 0, 0], sizes = [2, 16, 8], strides = [1, 1, 1]} : vector<8x16x8xf32> to vector<2x16x8xf32>
    %376 = vector.extract_strided_slice %372 {offsets = [6, 0, 0], sizes = [2, 16, 8], strides = [1, 1, 1]} : vector<8x16x8xf32> to vector<2x16x8xf32>
    %377 = tpu.concatenate %373, %374, %375, %376 in 2 : vector<2x16x8xf32>, vector<2x16x8xf32>, vector<2x16x8xf32>, vector<2x16x8xf32> -> vector<2x16x32xf32>
    %378 = vector.shape_cast %377 : vector<2x16x32xf32> to vector<32x32xf32>
    %379 = arith.truncf %378 : vector<32x32xf32> to vector<32x32xbf16>
    %cst_159 = arith.constant dense<0.000000e+00> : vector<32x32xf32>
    %380 = tpu.matmul %379, %296, %cst_159 {dimension_numbers = #tpu.dot_dimension_numbers<[1], [0], [0], [1], [0, 0, 1, 1], [], []>} : vector<32x32xbf16>, vector<32x32xbf16>, vector<32x32xf32> -> vector<32x32xf32>
    %381 = vector.broadcast %298 : vector<1x32xf32> to vector<32x32xf32>
    %382 = arith.addf %380, %381 : vector<32x32xf32>
    %383 = arith.addf %382, %286 : vector<32x32xf32>
    %cst_160 = arith.constant dense<0.000000e+00> : vector<32xf32>
    %384 = vector.multi_reduction <add>, %383, %cst_160 [1] : vector<32x32xf32> to vector<32xf32>
    %385 = vector.shape_cast %384 : vector<32xf32> to vector<32x1xf32>
    %cst_161 = arith.constant 3.200000e+01 : f32
    %386 = vector.broadcast %cst_161 : f32 to vector<32x1xf32>
    %387 = arith.divf %385, %386 : vector<32x1xf32>
    %388 = vector.broadcast %387 : vector<32x1xf32> to vector<32x32xf32>
    %389 = arith.subf %383, %388 : vector<32x32xf32>
    %390 = arith.mulf %389, %389 : vector<32x32xf32>
    %cst_162 = arith.constant dense<0.000000e+00> : vector<32xf32>
    %391 = vector.multi_reduction <add>, %390, %cst_162 [1] : vector<32x32xf32> to vector<32xf32>
    %392 = vector.shape_cast %391 : vector<32xf32> to vector<32x1xf32>
    %cst_163 = arith.constant 3.200000e+01 : f32
    %393 = vector.broadcast %cst_163 : f32 to vector<32x1xf32>
    %394 = arith.divf %392, %393 : vector<32x1xf32>
    %395 = vector.broadcast %387 : vector<32x1xf32> to vector<32x32xf32>
    %396 = arith.subf %383, %395 : vector<32x32xf32>
    %cst_164 = arith.constant 9.99999974E-6 : f32
    %397 = vector.broadcast %cst_164 : f32 to vector<32x1xf32>
    %398 = arith.addf %394, %397 : vector<32x1xf32>
    %399 = math.rsqrt %398 : vector<32x1xf32>
    %400 = vector.broadcast %399 : vector<32x1xf32> to vector<32x32xf32>
    %401 = arith.mulf %396, %400 : vector<32x32xf32>
    %402 = vector.broadcast %300 : vector<1x32xf32> to vector<32x32xf32>
    %403 = arith.mulf %401, %402 : vector<32x32xf32>
    %404 = vector.broadcast %302 : vector<1x32xf32> to vector<32x32xf32>
    %405 = arith.addf %403, %404 : vector<32x32xf32>
    %406 = arith.truncf %405 : vector<32x32xf32> to vector<32x32xbf16>
    %cst_165 = arith.constant dense<0.000000e+00> : vector<32x128xf32>
    %407 = tpu.matmul %406, %304, %cst_165 {dimension_numbers = #tpu.dot_dimension_numbers<[1], [0], [0], [1], [0, 0, 1, 1], [], []>} : vector<32x32xbf16>, vector<32x128xbf16>, vector<32x128xf32> -> vector<32x128xf32>
    %408 = vector.broadcast %306 : vector<1x128xf32> to vector<32x128xf32>
    %409 = arith.addf %407, %408 : vector<32x128xf32>
    %cst_166 = arith.constant 0.000000e+00 : f32
    %410 = vector.broadcast %cst_166 : f32 to vector<32x128xf32>
    %411 = arith.maximumf %409, %410 : vector<32x128xf32>
    %412 = arith.truncf %411 : vector<32x128xf32> to vector<32x128xbf16>
    %cst_167 = arith.constant dense<0.000000e+00> : vector<32x32xf32>
    %413 = tpu.matmul %412, %308, %cst_167 {dimension_numbers = #tpu.dot_dimension_numbers<[1], [0], [0], [1], [0, 0, 1, 1], [], []>} : vector<32x128xbf16>, vector<128x32xbf16>, vector<32x32xf32> -> vector<32x32xf32>
    %414 = vector.broadcast %310 : vector<1x32xf32> to vector<32x32xf32>
    %415 = arith.addf %413, %414 : vector<32x32xf32>
    %416 = arith.addf %415, %383 : vector<32x32xf32>
    %c1_168 = arith.constant 1 : index
    %c0_169 = arith.constant 0 : index
    %c0_170 = arith.constant 0 : index
    %417 = vector.load %arg14[%c1_168, %c0_169, %c0_170] : memref<2x1x32xf32, #tpu.memory_space<vmem>>, vector<1x1x32xf32>
    %418 = vector.shape_cast %417 : vector<1x1x32xf32> to vector<1x32xf32>
    %c1_171 = arith.constant 1 : index
    %c0_172 = arith.constant 0 : index
    %c0_173 = arith.constant 0 : index
    %419 = vector.load %arg15[%c1_171, %c0_172, %c0_173] : memref<2x1x32xf32, #tpu.memory_space<vmem>>, vector<1x1x32xf32>
    %420 = vector.shape_cast %419 : vector<1x1x32xf32> to vector<1x32xf32>
    %c1_174 = arith.constant 1 : index
    %c0_175 = arith.constant 0 : index
    %c0_176 = arith.constant 0 : index
    %421 = vector.load %arg16[%c1_174, %c0_175, %c0_176] : memref<2x32x96xbf16, #tpu.memory_space<vmem>>, vector<1x32x96xbf16>
    %422 = vector.shape_cast %421 : vector<1x32x96xbf16> to vector<32x96xbf16>
    %c1_177 = arith.constant 1 : index
    %c0_178 = arith.constant 0 : index
    %c0_179 = arith.constant 0 : index
    %423 = vector.load %arg17[%c1_177, %c0_178, %c0_179] : memref<2x1x96xf32, #tpu.memory_space<vmem>>, vector<1x1x96xf32>
    %424 = vector.shape_cast %423 : vector<1x1x96xf32> to vector<1x96xf32>
    %c1_180 = arith.constant 1 : index
    %c0_181 = arith.constant 0 : index
    %c0_182 = arith.constant 0 : index
    %425 = vector.load %arg18[%c1_180, %c0_181, %c0_182] : memref<2x32x32xbf16, #tpu.memory_space<vmem>>, vector<1x32x32xbf16>
    %426 = vector.shape_cast %425 : vector<1x32x32xbf16> to vector<32x32xbf16>
    %c1_183 = arith.constant 1 : index
    %c0_184 = arith.constant 0 : index
    %c0_185 = arith.constant 0 : index
    %427 = vector.load %arg19[%c1_183, %c0_184, %c0_185] : memref<2x1x32xf32, #tpu.memory_space<vmem>>, vector<1x1x32xf32>
    %428 = vector.shape_cast %427 : vector<1x1x32xf32> to vector<1x32xf32>
    %c1_186 = arith.constant 1 : index
    %c0_187 = arith.constant 0 : index
    %c0_188 = arith.constant 0 : index
    %429 = vector.load %arg20[%c1_186, %c0_187, %c0_188] : memref<2x1x32xf32, #tpu.memory_space<vmem>>, vector<1x1x32xf32>
    %430 = vector.shape_cast %429 : vector<1x1x32xf32> to vector<1x32xf32>
    %c1_189 = arith.constant 1 : index
    %c0_190 = arith.constant 0 : index
    %c0_191 = arith.constant 0 : index
    %431 = vector.load %arg21[%c1_189, %c0_190, %c0_191] : memref<2x1x32xf32, #tpu.memory_space<vmem>>, vector<1x1x32xf32>
    %432 = vector.shape_cast %431 : vector<1x1x32xf32> to vector<1x32xf32>
    %c1_192 = arith.constant 1 : index
    %c0_193 = arith.constant 0 : index
    %c0_194 = arith.constant 0 : index
    %433 = vector.load %arg22[%c1_192, %c0_193, %c0_194] : memref<2x32x128xbf16, #tpu.memory_space<vmem>>, vector<1x32x128xbf16>
    %434 = vector.shape_cast %433 : vector<1x32x128xbf16> to vector<32x128xbf16>
    %c1_195 = arith.constant 1 : index
    %c0_196 = arith.constant 0 : index
    %c0_197 = arith.constant 0 : index
    %435 = vector.load %arg23[%c1_195, %c0_196, %c0_197] : memref<2x1x128xf32, #tpu.memory_space<vmem>>, vector<1x1x128xf32>
    %436 = vector.shape_cast %435 : vector<1x1x128xf32> to vector<1x128xf32>
    %c1_198 = arith.constant 1 : index
    %c0_199 = arith.constant 0 : index
    %c0_200 = arith.constant 0 : index
    %437 = vector.load %arg24[%c1_198, %c0_199, %c0_200] : memref<2x128x32xbf16, #tpu.memory_space<vmem>>, vector<1x128x32xbf16>
    %438 = vector.shape_cast %437 : vector<1x128x32xbf16> to vector<128x32xbf16>
    %c1_201 = arith.constant 1 : index
    %c0_202 = arith.constant 0 : index
    %c0_203 = arith.constant 0 : index
    %439 = vector.load %arg25[%c1_201, %c0_202, %c0_203] : memref<2x1x32xf32, #tpu.memory_space<vmem>>, vector<1x1x32xf32>
    %440 = vector.shape_cast %439 : vector<1x1x32xf32> to vector<1x32xf32>
    %cst_204 = arith.constant dense<0.000000e+00> : vector<32xf32>
    %441 = vector.multi_reduction <add>, %416, %cst_204 [1] : vector<32x32xf32> to vector<32xf32>
    %442 = vector.shape_cast %441 : vector<32xf32> to vector<32x1xf32>
    %cst_205 = arith.constant 3.200000e+01 : f32
    %443 = vector.broadcast %cst_205 : f32 to vector<32x1xf32>
    %444 = arith.divf %442, %443 : vector<32x1xf32>
    %445 = vector.broadcast %444 : vector<32x1xf32> to vector<32x32xf32>
    %446 = arith.subf %416, %445 : vector<32x32xf32>
    %447 = arith.mulf %446, %446 : vector<32x32xf32>
    %cst_206 = arith.constant dense<0.000000e+00> : vector<32xf32>
    %448 = vector.multi_reduction <add>, %447, %cst_206 [1] : vector<32x32xf32> to vector<32xf32>
    %449 = vector.shape_cast %448 : vector<32xf32> to vector<32x1xf32>
    %cst_207 = arith.constant 3.200000e+01 : f32
    %450 = vector.broadcast %cst_207 : f32 to vector<32x1xf32>
    %451 = arith.divf %449, %450 : vector<32x1xf32>
    %452 = vector.broadcast %444 : vector<32x1xf32> to vector<32x32xf32>
    %453 = arith.subf %416, %452 : vector<32x32xf32>
    %cst_208 = arith.constant 9.99999974E-6 : f32
    %454 = vector.broadcast %cst_208 : f32 to vector<32x1xf32>
    %455 = arith.addf %451, %454 : vector<32x1xf32>
    %456 = math.rsqrt %455 : vector<32x1xf32>
    %457 = vector.broadcast %456 : vector<32x1xf32> to vector<32x32xf32>
    %458 = arith.mulf %453, %457 : vector<32x32xf32>
    %459 = vector.broadcast %418 : vector<1x32xf32> to vector<32x32xf32>
    %460 = arith.mulf %458, %459 : vector<32x32xf32>
    %461 = vector.broadcast %420 : vector<1x32xf32> to vector<32x32xf32>
    %462 = arith.addf %460, %461 : vector<32x32xf32>
    %463 = arith.truncf %462 : vector<32x32xf32> to vector<32x32xbf16>
    %cst_209 = arith.constant dense<0.000000e+00> : vector<32x96xf32>
    %464 = tpu.matmul %463, %422, %cst_209 {dimension_numbers = #tpu.dot_dimension_numbers<[1], [0], [0], [1], [0, 0, 1, 1], [], []>} : vector<32x32xbf16>, vector<32x96xbf16>, vector<32x96xf32> -> vector<32x96xf32>
    %465 = vector.broadcast %424 : vector<1x96xf32> to vector<32x96xf32>
    %466 = arith.addf %464, %465 : vector<32x96xf32>
    %467 = vector.extract_strided_slice %466 {offsets = [0, 0], sizes = [32, 32], strides = [1, 1]} : vector<32x96xf32> to vector<32x32xf32>
    %468 = vector.shape_cast %467 : vector<32x32xf32> to vector<2x16x32xf32>
    %469 = vector.extract_strided_slice %466 {offsets = [0, 32], sizes = [32, 32], strides = [1, 1]} : vector<32x96xf32> to vector<32x32xf32>
    %470 = vector.shape_cast %469 : vector<32x32xf32> to vector<2x16x32xf32>
    %471 = vector.extract_strided_slice %466 {offsets = [0, 64], sizes = [32, 32], strides = [1, 1]} : vector<32x96xf32> to vector<32x32xf32>
    %472 = vector.shape_cast %471 : vector<32x32xf32> to vector<2x16x32xf32>
    %473 = vector.extract_strided_slice %468 {offsets = [0, 0, 0], sizes = [2, 16, 8], strides = [1, 1, 1]} : vector<2x16x32xf32> to vector<2x16x8xf32>
    %474 = vector.extract_strided_slice %468 {offsets = [0, 0, 8], sizes = [2, 16, 8], strides = [1, 1, 1]} : vector<2x16x32xf32> to vector<2x16x8xf32>
    %475 = vector.extract_strided_slice %468 {offsets = [0, 0, 16], sizes = [2, 16, 8], strides = [1, 1, 1]} : vector<2x16x32xf32> to vector<2x16x8xf32>
    %476 = vector.extract_strided_slice %468 {offsets = [0, 0, 24], sizes = [2, 16, 8], strides = [1, 1, 1]} : vector<2x16x32xf32> to vector<2x16x8xf32>
    %477 = tpu.concatenate %473, %474, %475, %476 in 0 : vector<2x16x8xf32>, vector<2x16x8xf32>, vector<2x16x8xf32>, vector<2x16x8xf32> -> vector<8x16x8xf32>
    %478 = arith.truncf %477 : vector<8x16x8xf32> to vector<8x16x8xbf16>
    %479 = vector.extract_strided_slice %470 {offsets = [0, 0, 0], sizes = [2, 16, 8], strides = [1, 1, 1]} : vector<2x16x32xf32> to vector<2x16x8xf32>
    %480 = vector.extract_strided_slice %470 {offsets = [0, 0, 8], sizes = [2, 16, 8], strides = [1, 1, 1]} : vector<2x16x32xf32> to vector<2x16x8xf32>
    %481 = vector.extract_strided_slice %470 {offsets = [0, 0, 16], sizes = [2, 16, 8], strides = [1, 1, 1]} : vector<2x16x32xf32> to vector<2x16x8xf32>
    %482 = vector.extract_strided_slice %470 {offsets = [0, 0, 24], sizes = [2, 16, 8], strides = [1, 1, 1]} : vector<2x16x32xf32> to vector<2x16x8xf32>
    %483 = tpu.concatenate %479, %480, %481, %482 in 0 : vector<2x16x8xf32>, vector<2x16x8xf32>, vector<2x16x8xf32>, vector<2x16x8xf32> -> vector<8x16x8xf32>
    %484 = arith.truncf %483 : vector<8x16x8xf32> to vector<8x16x8xbf16>
    %485 = vector.extract_strided_slice %472 {offsets = [0, 0, 0], sizes = [2, 16, 8], strides = [1, 1, 1]} : vector<2x16x32xf32> to vector<2x16x8xf32>
    %486 = vector.extract_strided_slice %472 {offsets = [0, 0, 8], sizes = [2, 16, 8], strides = [1, 1, 1]} : vector<2x16x32xf32> to vector<2x16x8xf32>
    %487 = vector.extract_strided_slice %472 {offsets = [0, 0, 16], sizes = [2, 16, 8], strides = [1, 1, 1]} : vector<2x16x32xf32> to vector<2x16x8xf32>
    %488 = vector.extract_strided_slice %472 {offsets = [0, 0, 24], sizes = [2, 16, 8], strides = [1, 1, 1]} : vector<2x16x32xf32> to vector<2x16x8xf32>
    %489 = tpu.concatenate %485, %486, %487, %488 in 0 : vector<2x16x8xf32>, vector<2x16x8xf32>, vector<2x16x8xf32>, vector<2x16x8xf32> -> vector<8x16x8xf32>
    %490 = arith.truncf %489 : vector<8x16x8xf32> to vector<8x16x8xbf16>
    "tpu.trace_start"() <{level = 10 : i32, message = "bqd,bkd->bqk"}> : () -> ()
    %cst_210 = arith.constant dense<0.000000e+00> : vector<8x16x16xf32>
    %491 = tpu.matmul %478, %484, %cst_210 {dimension_numbers = #tpu.dot_dimension_numbers<[2], [2], [1], [1], [0, 0, 0, 1, 1, 1], [0], [0]>} : vector<8x16x8xbf16>, vector<8x16x8xbf16>, vector<8x16x16xf32> -> vector<8x16x16xf32>
    "tpu.trace_stop"() : () -> ()
    %cst_211 = arith.constant dense<0xFF800000> : vector<8x16xf32>
    %492 = vector.multi_reduction <maximumf>, %491, %cst_211 [2] : vector<8x16x16xf32> to vector<8x16xf32>
    %493 = vector.shape_cast %492 : vector<8x16xf32> to vector<8x16x1xf32>
    %494 = vector.broadcast %493 : vector<8x16x1xf32> to vector<8x16x16xf32>
    %495 = arith.subf %491, %494 : vector<8x16x16xf32>
    %496 = math.exp %495 : vector<8x16x16xf32>
    %cst_212 = arith.constant dense<0.000000e+00> : vector<8x16xf32>
    %497 = vector.multi_reduction <add>, %496, %cst_212 [2] : vector<8x16x16xf32> to vector<8x16xf32>
    %498 = vector.shape_cast %497 : vector<8x16xf32> to vector<8x16x1xf32>
    %499 = vector.broadcast %498 : vector<8x16x1xf32> to vector<8x16x16xf32>
    %500 = arith.divf %496, %499 : vector<8x16x16xf32>
    %501 = arith.truncf %500 : vector<8x16x16xf32> to vector<8x16x16xbf16>
    "tpu.trace_start"() <{level = 10 : i32, message = "bqk,bkd->bqd"}> : () -> ()
    %cst_213 = arith.constant dense<0.000000e+00> : vector<8x16x8xf32>
    %502 = tpu.matmul %501, %490, %cst_213 {dimension_numbers = #tpu.dot_dimension_numbers<[2], [1], [1], [2], [0, 0, 0, 1, 1, 2], [0], [0]>} : vector<8x16x16xbf16>, vector<8x16x8xbf16>, vector<8x16x8xf32> -> vector<8x16x8xf32>
    "tpu.trace_stop"() : () -> ()
    %503 = vector.extract_strided_slice %502 {offsets = [0, 0, 0], sizes = [2, 16, 8], strides = [1, 1, 1]} : vector<8x16x8xf32> to vector<2x16x8xf32>
    %504 = vector.extract_strided_slice %502 {offsets = [2, 0, 0], sizes = [2, 16, 8], strides = [1, 1, 1]} : vector<8x16x8xf32> to vector<2x16x8xf32>
    %505 = vector.extract_strided_slice %502 {offsets = [4, 0, 0], sizes = [2, 16, 8], strides = [1, 1, 1]} : vector<8x16x8xf32> to vector<2x16x8xf32>
    %506 = vector.extract_strided_slice %502 {offsets = [6, 0, 0], sizes = [2, 16, 8], strides = [1, 1, 1]} : vector<8x16x8xf32> to vector<2x16x8xf32>
    %507 = tpu.concatenate %503, %504, %505, %506 in 2 : vector<2x16x8xf32>, vector<2x16x8xf32>, vector<2x16x8xf32>, vector<2x16x8xf32> -> vector<2x16x32xf32>
    %508 = vector.shape_cast %507 : vector<2x16x32xf32> to vector<32x32xf32>
    %509 = arith.truncf %508 : vector<32x32xf32> to vector<32x32xbf16>
    %cst_214 = arith.constant dense<0.000000e+00> : vector<32x32xf32>
    %510 = tpu.matmul %509, %426, %cst_214 {dimension_numbers = #tpu.dot_dimension_numbers<[1], [0], [0], [1], [0, 0, 1, 1], [], []>} : vector<32x32xbf16>, vector<32x32xbf16>, vector<32x32xf32> -> vector<32x32xf32>
    %511 = vector.broadcast %428 : vector<1x32xf32> to vector<32x32xf32>
    %512 = arith.addf %510, %511 : vector<32x32xf32>
    %513 = arith.addf %512, %416 : vector<32x32xf32>
    %cst_215 = arith.constant dense<0.000000e+00> : vector<32xf32>
    %514 = vector.multi_reduction <add>, %513, %cst_215 [1] : vector<32x32xf32> to vector<32xf32>
    %515 = vector.shape_cast %514 : vector<32xf32> to vector<32x1xf32>
    %cst_216 = arith.constant 3.200000e+01 : f32
    %516 = vector.broadcast %cst_216 : f32 to vector<32x1xf32>
    %517 = arith.divf %515, %516 : vector<32x1xf32>
    %518 = vector.broadcast %517 : vector<32x1xf32> to vector<32x32xf32>
    %519 = arith.subf %513, %518 : vector<32x32xf32>
    %520 = arith.mulf %519, %519 : vector<32x32xf32>
    %cst_217 = arith.constant dense<0.000000e+00> : vector<32xf32>
    %521 = vector.multi_reduction <add>, %520, %cst_217 [1] : vector<32x32xf32> to vector<32xf32>
    %522 = vector.shape_cast %521 : vector<32xf32> to vector<32x1xf32>
    %cst_218 = arith.constant 3.200000e+01 : f32
    %523 = vector.broadcast %cst_218 : f32 to vector<32x1xf32>
    %524 = arith.divf %522, %523 : vector<32x1xf32>
    %525 = vector.broadcast %517 : vector<32x1xf32> to vector<32x32xf32>
    %526 = arith.subf %513, %525 : vector<32x32xf32>
    %cst_219 = arith.constant 9.99999974E-6 : f32
    %527 = vector.broadcast %cst_219 : f32 to vector<32x1xf32>
    %528 = arith.addf %524, %527 : vector<32x1xf32>
    %529 = math.rsqrt %528 : vector<32x1xf32>
    %530 = vector.broadcast %529 : vector<32x1xf32> to vector<32x32xf32>
    %531 = arith.mulf %526, %530 : vector<32x32xf32>
    %532 = vector.broadcast %430 : vector<1x32xf32> to vector<32x32xf32>
    %533 = arith.mulf %531, %532 : vector<32x32xf32>
    %534 = vector.broadcast %432 : vector<1x32xf32> to vector<32x32xf32>
    %535 = arith.addf %533, %534 : vector<32x32xf32>
    %536 = arith.truncf %535 : vector<32x32xf32> to vector<32x32xbf16>
    %cst_220 = arith.constant dense<0.000000e+00> : vector<32x128xf32>
    %537 = tpu.matmul %536, %434, %cst_220 {dimension_numbers = #tpu.dot_dimension_numbers<[1], [0], [0], [1], [0, 0, 1, 1], [], []>} : vector<32x32xbf16>, vector<32x128xbf16>, vector<32x128xf32> -> vector<32x128xf32>
    %538 = vector.broadcast %436 : vector<1x128xf32> to vector<32x128xf32>
    %539 = arith.addf %537, %538 : vector<32x128xf32>
    %cst_221 = arith.constant 0.000000e+00 : f32
    %540 = vector.broadcast %cst_221 : f32 to vector<32x128xf32>
    %541 = arith.maximumf %539, %540 : vector<32x128xf32>
    %542 = arith.truncf %541 : vector<32x128xf32> to vector<32x128xbf16>
    %cst_222 = arith.constant dense<0.000000e+00> : vector<32x32xf32>
    %543 = tpu.matmul %542, %438, %cst_222 {dimension_numbers = #tpu.dot_dimension_numbers<[1], [0], [0], [1], [0, 0, 1, 1], [], []>} : vector<32x128xbf16>, vector<128x32xbf16>, vector<32x32xf32> -> vector<32x32xf32>
    %544 = vector.broadcast %440 : vector<1x32xf32> to vector<32x32xf32>
    %545 = arith.addf %543, %544 : vector<32x32xf32>
    %546 = arith.addf %545, %513 : vector<32x32xf32>
    %547 = vector.shape_cast %546 : vector<32x32xf32> to vector<2x16x32xf32>
    %548 = vector.extract_strided_slice %547 {offsets = [0, 0, 0], sizes = [1, 16, 32], strides = [1, 1, 1]} : vector<2x16x32xf32> to vector<1x16x32xf32>
    %549 = vector.shape_cast %548 : vector<1x16x32xf32> to vector<16x32xf32>
    %550 = vector.shape_cast %549 : vector<16x32xf32> to vector<4x4x32xf32>
    %551 = vector.extract_strided_slice %547 {offsets = [1, 0, 0], sizes = [1, 16, 32], strides = [1, 1, 1]} : vector<2x16x32xf32> to vector<1x16x32xf32>
    %552 = vector.shape_cast %551 : vector<1x16x32xf32> to vector<16x32xf32>
    %553 = vector.shape_cast %552 : vector<16x32xf32> to vector<4x4x32xf32>
    %554 = vector.shape_cast %550 : vector<4x4x32xf32> to vector<4x1x4x32xf32>
    %555 = vector.shape_cast %553 : vector<4x4x32xf32> to vector<4x1x4x32xf32>
    %556 = tpu.concatenate %554, %555 in 1 : vector<4x1x4x32xf32>, vector<4x1x4x32xf32> -> vector<4x2x4x32xf32>
    %557 = vector.shape_cast %556 : vector<4x2x4x32xf32> to vector<32x32xf32>
    %558 = vector.shape_cast %557 : vector<32x32xf32> to vector<8x4x1x32xf32>
    %559 = vector.extract_strided_slice %558 {offsets = [0, 0, 0, 0], sizes = [8, 1, 1, 32], strides = [1, 1, 1, 1]} : vector<8x4x1x32xf32> to vector<8x1x1x32xf32>
    %560 = vector.shape_cast %559 : vector<8x1x1x32xf32> to vector<8x1x32xf32>
    %561 = vector.shape_cast %560 : vector<8x1x32xf32> to vector<1x8x32xf32>
    %562 = vector.extract_strided_slice %558 {offsets = [0, 1, 0, 0], sizes = [8, 1, 1, 32], strides = [1, 1, 1, 1]} : vector<8x4x1x32xf32> to vector<8x1x1x32xf32>
    %563 = vector.shape_cast %562 : vector<8x1x1x32xf32> to vector<8x1x32xf32>
    %564 = vector.shape_cast %563 : vector<8x1x32xf32> to vector<1x8x32xf32>
    %565 = vector.extract_strided_slice %558 {offsets = [0, 2, 0, 0], sizes = [8, 1, 1, 32], strides = [1, 1, 1, 1]} : vector<8x4x1x32xf32> to vector<8x1x1x32xf32>
    %566 = vector.shape_cast %565 : vector<8x1x1x32xf32> to vector<8x1x32xf32>
    %567 = vector.shape_cast %566 : vector<8x1x32xf32> to vector<1x8x32xf32>
    %568 = vector.extract_strided_slice %558 {offsets = [0, 3, 0, 0], sizes = [8, 1, 1, 32], strides = [1, 1, 1, 1]} : vector<8x4x1x32xf32> to vector<8x1x1x32xf32>
    %569 = vector.shape_cast %568 : vector<8x1x1x32xf32> to vector<8x1x32xf32>
    %570 = vector.shape_cast %569 : vector<8x1x32xf32> to vector<1x8x32xf32>
    %571 = tpu.concatenate %561, %564, %567, %570 in 0 : vector<1x8x32xf32>, vector<1x8x32xf32>, vector<1x8x32xf32>, vector<1x8x32xf32> -> vector<4x8x32xf32>
    %cst_223 = arith.constant 2.000000e+00 : f32
    %572 = vector.broadcast %cst_223 : f32 to vector<4x8x32xf32>
    %573 = arith.mulf %572, %571 : vector<4x8x32xf32>
    %574 = vector.shape_cast %0 : vector<4x32xf32> to vector<4x1x32xf32>
    %575 = vector.broadcast %574 : vector<4x1x32xf32> to vector<4x8x32xf32>
    %576 = arith.addf %573, %575 : vector<4x8x32xf32>
    %577 = vector.shape_cast %576 : vector<4x8x32xf32> to vector<32x32xf32>
    %c0_224 = arith.constant 0 : index
    %c0_225 = arith.constant 0 : index
    %c0_226 = arith.constant 0 : index
    %578 = vector.load %arg14[%c0_224, %c0_225, %c0_226] : memref<2x1x32xf32, #tpu.memory_space<vmem>>, vector<1x1x32xf32>
    %579 = vector.shape_cast %578 : vector<1x1x32xf32> to vector<1x32xf32>
    %c0_227 = arith.constant 0 : index
    %c0_228 = arith.constant 0 : index
    %c0_229 = arith.constant 0 : index
    %580 = vector.load %arg15[%c0_227, %c0_228, %c0_229] : memref<2x1x32xf32, #tpu.memory_space<vmem>>, vector<1x1x32xf32>
    %581 = vector.shape_cast %580 : vector<1x1x32xf32> to vector<1x32xf32>
    %c0_230 = arith.constant 0 : index
    %c0_231 = arith.constant 0 : index
    %c0_232 = arith.constant 0 : index
    %582 = vector.load %arg16[%c0_230, %c0_231, %c0_232] : memref<2x32x96xbf16, #tpu.memory_space<vmem>>, vector<1x32x96xbf16>
    %583 = vector.shape_cast %582 : vector<1x32x96xbf16> to vector<32x96xbf16>
    %c0_233 = arith.constant 0 : index
    %c0_234 = arith.constant 0 : index
    %c0_235 = arith.constant 0 : index
    %584 = vector.load %arg17[%c0_233, %c0_234, %c0_235] : memref<2x1x96xf32, #tpu.memory_space<vmem>>, vector<1x1x96xf32>
    %585 = vector.shape_cast %584 : vector<1x1x96xf32> to vector<1x96xf32>
    %c0_236 = arith.constant 0 : index
    %c0_237 = arith.constant 0 : index
    %c0_238 = arith.constant 0 : index
    %586 = vector.load %arg18[%c0_236, %c0_237, %c0_238] : memref<2x32x32xbf16, #tpu.memory_space<vmem>>, vector<1x32x32xbf16>
    %587 = vector.shape_cast %586 : vector<1x32x32xbf16> to vector<32x32xbf16>
    %c0_239 = arith.constant 0 : index
    %c0_240 = arith.constant 0 : index
    %c0_241 = arith.constant 0 : index
    %588 = vector.load %arg19[%c0_239, %c0_240, %c0_241] : memref<2x1x32xf32, #tpu.memory_space<vmem>>, vector<1x1x32xf32>
    %589 = vector.shape_cast %588 : vector<1x1x32xf32> to vector<1x32xf32>
    %c0_242 = arith.constant 0 : index
    %c0_243 = arith.constant 0 : index
    %c0_244 = arith.constant 0 : index
    %590 = vector.load %arg20[%c0_242, %c0_243, %c0_244] : memref<2x1x32xf32, #tpu.memory_space<vmem>>, vector<1x1x32xf32>
    %591 = vector.shape_cast %590 : vector<1x1x32xf32> to vector<1x32xf32>
    %c0_245 = arith.constant 0 : index
    %c0_246 = arith.constant 0 : index
    %c0_247 = arith.constant 0 : index
    %592 = vector.load %arg21[%c0_245, %c0_246, %c0_247] : memref<2x1x32xf32, #tpu.memory_space<vmem>>, vector<1x1x32xf32>
    %593 = vector.shape_cast %592 : vector<1x1x32xf32> to vector<1x32xf32>
    %c0_248 = arith.constant 0 : index
    %c0_249 = arith.constant 0 : index
    %c0_250 = arith.constant 0 : index
    %594 = vector.load %arg22[%c0_248, %c0_249, %c0_250] : memref<2x32x128xbf16, #tpu.memory_space<vmem>>, vector<1x32x128xbf16>
    %595 = vector.shape_cast %594 : vector<1x32x128xbf16> to vector<32x128xbf16>
    %c0_251 = arith.constant 0 : index
    %c0_252 = arith.constant 0 : index
    %c0_253 = arith.constant 0 : index
    %596 = vector.load %arg23[%c0_251, %c0_252, %c0_253] : memref<2x1x128xf32, #tpu.memory_space<vmem>>, vector<1x1x128xf32>
    %597 = vector.shape_cast %596 : vector<1x1x128xf32> to vector<1x128xf32>
    %c0_254 = arith.constant 0 : index
    %c0_255 = arith.constant 0 : index
    %c0_256 = arith.constant 0 : index
    %598 = vector.load %arg24[%c0_254, %c0_255, %c0_256] : memref<2x128x32xbf16, #tpu.memory_space<vmem>>, vector<1x128x32xbf16>
    %599 = vector.shape_cast %598 : vector<1x128x32xbf16> to vector<128x32xbf16>
    %c0_257 = arith.constant 0 : index
    %c0_258 = arith.constant 0 : index
    %c0_259 = arith.constant 0 : index
    %600 = vector.load %arg25[%c0_257, %c0_258, %c0_259] : memref<2x1x32xf32, #tpu.memory_space<vmem>>, vector<1x1x32xf32>
    %601 = vector.shape_cast %600 : vector<1x1x32xf32> to vector<1x32xf32>
    %cst_260 = arith.constant dense<0.000000e+00> : vector<32xf32>
    %602 = vector.multi_reduction <add>, %577, %cst_260 [1] : vector<32x32xf32> to vector<32xf32>
    %603 = vector.shape_cast %602 : vector<32xf32> to vector<32x1xf32>
    %cst_261 = arith.constant 3.200000e+01 : f32
    %604 = vector.broadcast %cst_261 : f32 to vector<32x1xf32>
    %605 = arith.divf %603, %604 : vector<32x1xf32>
    %606 = vector.broadcast %605 : vector<32x1xf32> to vector<32x32xf32>
    %607 = arith.subf %577, %606 : vector<32x32xf32>
    %608 = arith.mulf %607, %607 : vector<32x32xf32>
    %cst_262 = arith.constant dense<0.000000e+00> : vector<32xf32>
    %609 = vector.multi_reduction <add>, %608, %cst_262 [1] : vector<32x32xf32> to vector<32xf32>
    %610 = vector.shape_cast %609 : vector<32xf32> to vector<32x1xf32>
    %cst_263 = arith.constant 3.200000e+01 : f32
    %611 = vector.broadcast %cst_263 : f32 to vector<32x1xf32>
    %612 = arith.divf %610, %611 : vector<32x1xf32>
    %613 = vector.broadcast %605 : vector<32x1xf32> to vector<32x32xf32>
    %614 = arith.subf %577, %613 : vector<32x32xf32>
    %cst_264 = arith.constant 9.99999974E-6 : f32
    %615 = vector.broadcast %cst_264 : f32 to vector<32x1xf32>
    %616 = arith.addf %612, %615 : vector<32x1xf32>
    %617 = math.rsqrt %616 : vector<32x1xf32>
    %618 = vector.broadcast %617 : vector<32x1xf32> to vector<32x32xf32>
    %619 = arith.mulf %614, %618 : vector<32x32xf32>
    %620 = vector.broadcast %579 : vector<1x32xf32> to vector<32x32xf32>
    %621 = arith.mulf %619, %620 : vector<32x32xf32>
    %622 = vector.broadcast %581 : vector<1x32xf32> to vector<32x32xf32>
    %623 = arith.addf %621, %622 : vector<32x32xf32>
    %624 = arith.truncf %623 : vector<32x32xf32> to vector<32x32xbf16>
    %cst_265 = arith.constant dense<0.000000e+00> : vector<32x96xf32>
    %625 = tpu.matmul %624, %583, %cst_265 {dimension_numbers = #tpu.dot_dimension_numbers<[1], [0], [0], [1], [0, 0, 1, 1], [], []>} : vector<32x32xbf16>, vector<32x96xbf16>, vector<32x96xf32> -> vector<32x96xf32>
    %626 = vector.broadcast %585 : vector<1x96xf32> to vector<32x96xf32>
    %627 = arith.addf %625, %626 : vector<32x96xf32>
    %628 = vector.extract_strided_slice %627 {offsets = [0, 0], sizes = [32, 32], strides = [1, 1]} : vector<32x96xf32> to vector<32x32xf32>
    %629 = vector.shape_cast %628 : vector<32x32xf32> to vector<4x8x32xf32>
    %630 = vector.extract_strided_slice %627 {offsets = [0, 32], sizes = [32, 32], strides = [1, 1]} : vector<32x96xf32> to vector<32x32xf32>
    %631 = vector.shape_cast %630 : vector<32x32xf32> to vector<4x8x32xf32>
    %632 = vector.extract_strided_slice %627 {offsets = [0, 64], sizes = [32, 32], strides = [1, 1]} : vector<32x96xf32> to vector<32x32xf32>
    %633 = vector.shape_cast %632 : vector<32x32xf32> to vector<4x8x32xf32>
    %634 = vector.extract_strided_slice %629 {offsets = [0, 0, 0], sizes = [4, 8, 8], strides = [1, 1, 1]} : vector<4x8x32xf32> to vector<4x8x8xf32>
    %635 = vector.extract_strided_slice %629 {offsets = [0, 0, 8], sizes = [4, 8, 8], strides = [1, 1, 1]} : vector<4x8x32xf32> to vector<4x8x8xf32>
    %636 = vector.extract_strided_slice %629 {offsets = [0, 0, 16], sizes = [4, 8, 8], strides = [1, 1, 1]} : vector<4x8x32xf32> to vector<4x8x8xf32>
    %637 = vector.extract_strided_slice %629 {offsets = [0, 0, 24], sizes = [4, 8, 8], strides = [1, 1, 1]} : vector<4x8x32xf32> to vector<4x8x8xf32>
    %638 = tpu.concatenate %634, %635, %636, %637 in 0 : vector<4x8x8xf32>, vector<4x8x8xf32>, vector<4x8x8xf32>, vector<4x8x8xf32> -> vector<16x8x8xf32>
    %639 = arith.truncf %638 : vector<16x8x8xf32> to vector<16x8x8xbf16>
    %640 = vector.extract_strided_slice %631 {offsets = [0, 0, 0], sizes = [4, 8, 8], strides = [1, 1, 1]} : vector<4x8x32xf32> to vector<4x8x8xf32>
    %641 = vector.extract_strided_slice %631 {offsets = [0, 0, 8], sizes = [4, 8, 8], strides = [1, 1, 1]} : vector<4x8x32xf32> to vector<4x8x8xf32>
    %642 = vector.extract_strided_slice %631 {offsets = [0, 0, 16], sizes = [4, 8, 8], strides = [1, 1, 1]} : vector<4x8x32xf32> to vector<4x8x8xf32>
    %643 = vector.extract_strided_slice %631 {offsets = [0, 0, 24], sizes = [4, 8, 8], strides = [1, 1, 1]} : vector<4x8x32xf32> to vector<4x8x8xf32>
    %644 = tpu.concatenate %640, %641, %642, %643 in 0 : vector<4x8x8xf32>, vector<4x8x8xf32>, vector<4x8x8xf32>, vector<4x8x8xf32> -> vector<16x8x8xf32>
    %645 = arith.truncf %644 : vector<16x8x8xf32> to vector<16x8x8xbf16>
    %646 = vector.extract_strided_slice %633 {offsets = [0, 0, 0], sizes = [4, 8, 8], strides = [1, 1, 1]} : vector<4x8x32xf32> to vector<4x8x8xf32>
    %647 = vector.extract_strided_slice %633 {offsets = [0, 0, 8], sizes = [4, 8, 8], strides = [1, 1, 1]} : vector<4x8x32xf32> to vector<4x8x8xf32>
    %648 = vector.extract_strided_slice %633 {offsets = [0, 0, 16], sizes = [4, 8, 8], strides = [1, 1, 1]} : vector<4x8x32xf32> to vector<4x8x8xf32>
    %649 = vector.extract_strided_slice %633 {offsets = [0, 0, 24], sizes = [4, 8, 8], strides = [1, 1, 1]} : vector<4x8x32xf32> to vector<4x8x8xf32>
    %650 = tpu.concatenate %646, %647, %648, %649 in 0 : vector<4x8x8xf32>, vector<4x8x8xf32>, vector<4x8x8xf32>, vector<4x8x8xf32> -> vector<16x8x8xf32>
    %651 = arith.truncf %650 : vector<16x8x8xf32> to vector<16x8x8xbf16>
    "tpu.trace_start"() <{level = 10 : i32, message = "bqd,bkd->bqk"}> : () -> ()
    %cst_266 = arith.constant dense<0.000000e+00> : vector<16x8x8xf32>
    %652 = tpu.matmul %639, %645, %cst_266 {dimension_numbers = #tpu.dot_dimension_numbers<[2], [2], [1], [1], [0, 0, 0, 1, 1, 1], [0], [0]>} : vector<16x8x8xbf16>, vector<16x8x8xbf16>, vector<16x8x8xf32> -> vector<16x8x8xf32>
    "tpu.trace_stop"() : () -> ()
    %cst_267 = arith.constant dense<0xFF800000> : vector<16x8xf32>
    %653 = vector.multi_reduction <maximumf>, %652, %cst_267 [2] : vector<16x8x8xf32> to vector<16x8xf32>
    %654 = vector.shape_cast %653 : vector<16x8xf32> to vector<16x8x1xf32>
    %655 = vector.broadcast %654 : vector<16x8x1xf32> to vector<16x8x8xf32>
    %656 = arith.subf %652, %655 : vector<16x8x8xf32>
    %657 = math.exp %656 : vector<16x8x8xf32>
    %cst_268 = arith.constant dense<0.000000e+00> : vector<16x8xf32>
    %658 = vector.multi_reduction <add>, %657, %cst_268 [2] : vector<16x8x8xf32> to vector<16x8xf32>
    %659 = vector.shape_cast %658 : vector<16x8xf32> to vector<16x8x1xf32>
    %660 = vector.broadcast %659 : vector<16x8x1xf32> to vector<16x8x8xf32>
    %661 = arith.divf %657, %660 : vector<16x8x8xf32>
    %662 = arith.truncf %661 : vector<16x8x8xf32> to vector<16x8x8xbf16>
    "tpu.trace_start"() <{level = 10 : i32, message = "bqk,bkd->bqd"}> : () -> ()
    %cst_269 = arith.constant dense<0.000000e+00> : vector<16x8x8xf32>
    %663 = tpu.matmul %662, %651, %cst_269 {dimension_numbers = #tpu.dot_dimension_numbers<[2], [1], [1], [2], [0, 0, 0, 1, 1, 2], [0], [0]>} : vector<16x8x8xbf16>, vector<16x8x8xbf16>, vector<16x8x8xf32> -> vector<16x8x8xf32>
    "tpu.trace_stop"() : () -> ()
    %664 = vector.extract_strided_slice %663 {offsets = [0, 0, 0], sizes = [4, 8, 8], strides = [1, 1, 1]} : vector<16x8x8xf32> to vector<4x8x8xf32>
    %665 = vector.extract_strided_slice %663 {offsets = [4, 0, 0], sizes = [4, 8, 8], strides = [1, 1, 1]} : vector<16x8x8xf32> to vector<4x8x8xf32>
    %666 = vector.extract_strided_slice %663 {offsets = [8, 0, 0], sizes = [4, 8, 8], strides = [1, 1, 1]} : vector<16x8x8xf32> to vector<4x8x8xf32>
    %667 = vector.extract_strided_slice %663 {offsets = [12, 0, 0], sizes = [4, 8, 8], strides = [1, 1, 1]} : vector<16x8x8xf32> to vector<4x8x8xf32>
    %668 = tpu.concatenate %664, %665, %666, %667 in 2 : vector<4x8x8xf32>, vector<4x8x8xf32>, vector<4x8x8xf32>, vector<4x8x8xf32> -> vector<4x8x32xf32>
    %669 = vector.shape_cast %668 : vector<4x8x32xf32> to vector<32x32xf32>
    %670 = arith.truncf %669 : vector<32x32xf32> to vector<32x32xbf16>
    %cst_270 = arith.constant dense<0.000000e+00> : vector<32x32xf32>
    %671 = tpu.matmul %670, %587, %cst_270 {dimension_numbers = #tpu.dot_dimension_numbers<[1], [0], [0], [1], [0, 0, 1, 1], [], []>} : vector<32x32xbf16>, vector<32x32xbf16>, vector<32x32xf32> -> vector<32x32xf32>
    %672 = vector.broadcast %589 : vector<1x32xf32> to vector<32x32xf32>
    %673 = arith.addf %671, %672 : vector<32x32xf32>
    %674 = arith.addf %673, %577 : vector<32x32xf32>
    %cst_271 = arith.constant dense<0.000000e+00> : vector<32xf32>
    %675 = vector.multi_reduction <add>, %674, %cst_271 [1] : vector<32x32xf32> to vector<32xf32>
    %676 = vector.shape_cast %675 : vector<32xf32> to vector<32x1xf32>
    %cst_272 = arith.constant 3.200000e+01 : f32
    %677 = vector.broadcast %cst_272 : f32 to vector<32x1xf32>
    %678 = arith.divf %676, %677 : vector<32x1xf32>
    %679 = vector.broadcast %678 : vector<32x1xf32> to vector<32x32xf32>
    %680 = arith.subf %674, %679 : vector<32x32xf32>
    %681 = arith.mulf %680, %680 : vector<32x32xf32>
    %cst_273 = arith.constant dense<0.000000e+00> : vector<32xf32>
    %682 = vector.multi_reduction <add>, %681, %cst_273 [1] : vector<32x32xf32> to vector<32xf32>
    %683 = vector.shape_cast %682 : vector<32xf32> to vector<32x1xf32>
    %cst_274 = arith.constant 3.200000e+01 : f32
    %684 = vector.broadcast %cst_274 : f32 to vector<32x1xf32>
    %685 = arith.divf %683, %684 : vector<32x1xf32>
    %686 = vector.broadcast %678 : vector<32x1xf32> to vector<32x32xf32>
    %687 = arith.subf %674, %686 : vector<32x32xf32>
    %cst_275 = arith.constant 9.99999974E-6 : f32
    %688 = vector.broadcast %cst_275 : f32 to vector<32x1xf32>
    %689 = arith.addf %685, %688 : vector<32x1xf32>
    %690 = math.rsqrt %689 : vector<32x1xf32>
    %691 = vector.broadcast %690 : vector<32x1xf32> to vector<32x32xf32>
    %692 = arith.mulf %687, %691 : vector<32x32xf32>
    %693 = vector.broadcast %591 : vector<1x32xf32> to vector<32x32xf32>
    %694 = arith.mulf %692, %693 : vector<32x32xf32>
    %695 = vector.broadcast %593 : vector<1x32xf32> to vector<32x32xf32>
    %696 = arith.addf %694, %695 : vector<32x32xf32>
    %697 = arith.truncf %696 : vector<32x32xf32> to vector<32x32xbf16>
    %cst_276 = arith.constant dense<0.000000e+00> : vector<32x128xf32>
    %698 = tpu.matmul %697, %595, %cst_276 {dimension_numbers = #tpu.dot_dimension_numbers<[1], [0], [0], [1], [0, 0, 1, 1], [], []>} : vector<32x32xbf16>, vector<32x128xbf16>, vector<32x128xf32> -> vector<32x128xf32>
    %699 = vector.broadcast %597 : vector<1x128xf32> to vector<32x128xf32>
    %700 = arith.addf %698, %699 : vector<32x128xf32>
    %cst_277 = arith.constant 0.000000e+00 : f32
    %701 = vector.broadcast %cst_277 : f32 to vector<32x128xf32>
    %702 = arith.maximumf %700, %701 : vector<32x128xf32>
    %703 = arith.truncf %702 : vector<32x128xf32> to vector<32x128xbf16>
    %cst_278 = arith.constant dense<0.000000e+00> : vector<32x32xf32>
    %704 = tpu.matmul %703, %599, %cst_278 {dimension_numbers = #tpu.dot_dimension_numbers<[1], [0], [0], [1], [0, 0, 1, 1], [], []>} : vector<32x128xbf16>, vector<128x32xbf16>, vector<32x32xf32> -> vector<32x32xf32>
    %705 = vector.broadcast %601 : vector<1x32xf32> to vector<32x32xf32>
    %706 = arith.addf %704, %705 : vector<32x32xf32>
    %707 = arith.addf %706, %674 : vector<32x32xf32>
    %c1_279 = arith.constant 1 : index
    %c0_280 = arith.constant 0 : index
    %c0_281 = arith.constant 0 : index
    %708 = vector.load %arg14[%c1_279, %c0_280, %c0_281] : memref<2x1x32xf32, #tpu.memory_space<vmem>>, vector<1x1x32xf32>
    %709 = vector.shape_cast %708 : vector<1x1x32xf32> to vector<1x32xf32>
    %c1_282 = arith.constant 1 : index
    %c0_283 = arith.constant 0 : index
    %c0_284 = arith.constant 0 : index
    %710 = vector.load %arg15[%c1_282, %c0_283, %c0_284] : memref<2x1x32xf32, #tpu.memory_space<vmem>>, vector<1x1x32xf32>
    %711 = vector.shape_cast %710 : vector<1x1x32xf32> to vector<1x32xf32>
    %c1_285 = arith.constant 1 : index
    %c0_286 = arith.constant 0 : index
    %c0_287 = arith.constant 0 : index
    %712 = vector.load %arg16[%c1_285, %c0_286, %c0_287] : memref<2x32x96xbf16, #tpu.memory_space<vmem>>, vector<1x32x96xbf16>
    %713 = vector.shape_cast %712 : vector<1x32x96xbf16> to vector<32x96xbf16>
    %c1_288 = arith.constant 1 : index
    %c0_289 = arith.constant 0 : index
    %c0_290 = arith.constant 0 : index
    %714 = vector.load %arg17[%c1_288, %c0_289, %c0_290] : memref<2x1x96xf32, #tpu.memory_space<vmem>>, vector<1x1x96xf32>
    %715 = vector.shape_cast %714 : vector<1x1x96xf32> to vector<1x96xf32>
    %c1_291 = arith.constant 1 : index
    %c0_292 = arith.constant 0 : index
    %c0_293 = arith.constant 0 : index
    %716 = vector.load %arg18[%c1_291, %c0_292, %c0_293] : memref<2x32x32xbf16, #tpu.memory_space<vmem>>, vector<1x32x32xbf16>
    %717 = vector.shape_cast %716 : vector<1x32x32xbf16> to vector<32x32xbf16>
    %c1_294 = arith.constant 1 : index
    %c0_295 = arith.constant 0 : index
    %c0_296 = arith.constant 0 : index
    %718 = vector.load %arg19[%c1_294, %c0_295, %c0_296] : memref<2x1x32xf32, #tpu.memory_space<vmem>>, vector<1x1x32xf32>
    %719 = vector.shape_cast %718 : vector<1x1x32xf32> to vector<1x32xf32>
    %c1_297 = arith.constant 1 : index
    %c0_298 = arith.constant 0 : index
    %c0_299 = arith.constant 0 : index
    %720 = vector.load %arg20[%c1_297, %c0_298, %c0_299] : memref<2x1x32xf32, #tpu.memory_space<vmem>>, vector<1x1x32xf32>
    %721 = vector.shape_cast %720 : vector<1x1x32xf32> to vector<1x32xf32>
    %c1_300 = arith.constant 1 : index
    %c0_301 = arith.constant 0 : index
    %c0_302 = arith.constant 0 : index
    %722 = vector.load %arg21[%c1_300, %c0_301, %c0_302] : memref<2x1x32xf32, #tpu.memory_space<vmem>>, vector<1x1x32xf32>
    %723 = vector.shape_cast %722 : vector<1x1x32xf32> to vector<1x32xf32>
    %c1_303 = arith.constant 1 : index
    %c0_304 = arith.constant 0 : index
    %c0_305 = arith.constant 0 : index
    %724 = vector.load %arg22[%c1_303, %c0_304, %c0_305] : memref<2x32x128xbf16, #tpu.memory_space<vmem>>, vector<1x32x128xbf16>
    %725 = vector.shape_cast %724 : vector<1x32x128xbf16> to vector<32x128xbf16>
    %c1_306 = arith.constant 1 : index
    %c0_307 = arith.constant 0 : index
    %c0_308 = arith.constant 0 : index
    %726 = vector.load %arg23[%c1_306, %c0_307, %c0_308] : memref<2x1x128xf32, #tpu.memory_space<vmem>>, vector<1x1x128xf32>
    %727 = vector.shape_cast %726 : vector<1x1x128xf32> to vector<1x128xf32>
    %c1_309 = arith.constant 1 : index
    %c0_310 = arith.constant 0 : index
    %c0_311 = arith.constant 0 : index
    %728 = vector.load %arg24[%c1_309, %c0_310, %c0_311] : memref<2x128x32xbf16, #tpu.memory_space<vmem>>, vector<1x128x32xbf16>
    %729 = vector.shape_cast %728 : vector<1x128x32xbf16> to vector<128x32xbf16>
    %c1_312 = arith.constant 1 : index
    %c0_313 = arith.constant 0 : index
    %c0_314 = arith.constant 0 : index
    %730 = vector.load %arg25[%c1_312, %c0_313, %c0_314] : memref<2x1x32xf32, #tpu.memory_space<vmem>>, vector<1x1x32xf32>
    %731 = vector.shape_cast %730 : vector<1x1x32xf32> to vector<1x32xf32>
    %cst_315 = arith.constant dense<0.000000e+00> : vector<32xf32>
    %732 = vector.multi_reduction <add>, %707, %cst_315 [1] : vector<32x32xf32> to vector<32xf32>
    %733 = vector.shape_cast %732 : vector<32xf32> to vector<32x1xf32>
    %cst_316 = arith.constant 3.200000e+01 : f32
    %734 = vector.broadcast %cst_316 : f32 to vector<32x1xf32>
    %735 = arith.divf %733, %734 : vector<32x1xf32>
    %736 = vector.broadcast %735 : vector<32x1xf32> to vector<32x32xf32>
    %737 = arith.subf %707, %736 : vector<32x32xf32>
    %738 = arith.mulf %737, %737 : vector<32x32xf32>
    %cst_317 = arith.constant dense<0.000000e+00> : vector<32xf32>
    %739 = vector.multi_reduction <add>, %738, %cst_317 [1] : vector<32x32xf32> to vector<32xf32>
    %740 = vector.shape_cast %739 : vector<32xf32> to vector<32x1xf32>
    %cst_318 = arith.constant 3.200000e+01 : f32
    %741 = vector.broadcast %cst_318 : f32 to vector<32x1xf32>
    %742 = arith.divf %740, %741 : vector<32x1xf32>
    %743 = vector.broadcast %735 : vector<32x1xf32> to vector<32x32xf32>
    %744 = arith.subf %707, %743 : vector<32x32xf32>
    %cst_319 = arith.constant 9.99999974E-6 : f32
    %745 = vector.broadcast %cst_319 : f32 to vector<32x1xf32>
    %746 = arith.addf %742, %745 : vector<32x1xf32>
    %747 = math.rsqrt %746 : vector<32x1xf32>
    %748 = vector.broadcast %747 : vector<32x1xf32> to vector<32x32xf32>
    %749 = arith.mulf %744, %748 : vector<32x32xf32>
    %750 = vector.broadcast %709 : vector<1x32xf32> to vector<32x32xf32>
    %751 = arith.mulf %749, %750 : vector<32x32xf32>
    %752 = vector.broadcast %711 : vector<1x32xf32> to vector<32x32xf32>
    %753 = arith.addf %751, %752 : vector<32x32xf32>
    %754 = arith.truncf %753 : vector<32x32xf32> to vector<32x32xbf16>
    %cst_320 = arith.constant dense<0.000000e+00> : vector<32x96xf32>
    %755 = tpu.matmul %754, %713, %cst_320 {dimension_numbers = #tpu.dot_dimension_numbers<[1], [0], [0], [1], [0, 0, 1, 1], [], []>} : vector<32x32xbf16>, vector<32x96xbf16>, vector<32x96xf32> -> vector<32x96xf32>
    %756 = vector.broadcast %715 : vector<1x96xf32> to vector<32x96xf32>
    %757 = arith.addf %755, %756 : vector<32x96xf32>
    %758 = vector.extract_strided_slice %757 {offsets = [0, 0], sizes = [32, 32], strides = [1, 1]} : vector<32x96xf32> to vector<32x32xf32>
    %759 = vector.shape_cast %758 : vector<32x32xf32> to vector<4x8x32xf32>
    %760 = vector.extract_strided_slice %757 {offsets = [0, 32], sizes = [32, 32], strides = [1, 1]} : vector<32x96xf32> to vector<32x32xf32>
    %761 = vector.shape_cast %760 : vector<32x32xf32> to vector<4x8x32xf32>
    %762 = vector.extract_strided_slice %757 {offsets = [0, 64], sizes = [32, 32], strides = [1, 1]} : vector<32x96xf32> to vector<32x32xf32>
    %763 = vector.shape_cast %762 : vector<32x32xf32> to vector<4x8x32xf32>
    %764 = vector.extract_strided_slice %759 {offsets = [0, 0, 0], sizes = [4, 8, 8], strides = [1, 1, 1]} : vector<4x8x32xf32> to vector<4x8x8xf32>
    %765 = vector.extract_strided_slice %759 {offsets = [0, 0, 8], sizes = [4, 8, 8], strides = [1, 1, 1]} : vector<4x8x32xf32> to vector<4x8x8xf32>
    %766 = vector.extract_strided_slice %759 {offsets = [0, 0, 16], sizes = [4, 8, 8], strides = [1, 1, 1]} : vector<4x8x32xf32> to vector<4x8x8xf32>
    %767 = vector.extract_strided_slice %759 {offsets = [0, 0, 24], sizes = [4, 8, 8], strides = [1, 1, 1]} : vector<4x8x32xf32> to vector<4x8x8xf32>
    %768 = tpu.concatenate %764, %765, %766, %767 in 0 : vector<4x8x8xf32>, vector<4x8x8xf32>, vector<4x8x8xf32>, vector<4x8x8xf32> -> vector<16x8x8xf32>
    %769 = arith.truncf %768 : vector<16x8x8xf32> to vector<16x8x8xbf16>
    %770 = vector.extract_strided_slice %761 {offsets = [0, 0, 0], sizes = [4, 8, 8], strides = [1, 1, 1]} : vector<4x8x32xf32> to vector<4x8x8xf32>
    %771 = vector.extract_strided_slice %761 {offsets = [0, 0, 8], sizes = [4, 8, 8], strides = [1, 1, 1]} : vector<4x8x32xf32> to vector<4x8x8xf32>
    %772 = vector.extract_strided_slice %761 {offsets = [0, 0, 16], sizes = [4, 8, 8], strides = [1, 1, 1]} : vector<4x8x32xf32> to vector<4x8x8xf32>
    %773 = vector.extract_strided_slice %761 {offsets = [0, 0, 24], sizes = [4, 8, 8], strides = [1, 1, 1]} : vector<4x8x32xf32> to vector<4x8x8xf32>
    %774 = tpu.concatenate %770, %771, %772, %773 in 0 : vector<4x8x8xf32>, vector<4x8x8xf32>, vector<4x8x8xf32>, vector<4x8x8xf32> -> vector<16x8x8xf32>
    %775 = arith.truncf %774 : vector<16x8x8xf32> to vector<16x8x8xbf16>
    %776 = vector.extract_strided_slice %763 {offsets = [0, 0, 0], sizes = [4, 8, 8], strides = [1, 1, 1]} : vector<4x8x32xf32> to vector<4x8x8xf32>
    %777 = vector.extract_strided_slice %763 {offsets = [0, 0, 8], sizes = [4, 8, 8], strides = [1, 1, 1]} : vector<4x8x32xf32> to vector<4x8x8xf32>
    %778 = vector.extract_strided_slice %763 {offsets = [0, 0, 16], sizes = [4, 8, 8], strides = [1, 1, 1]} : vector<4x8x32xf32> to vector<4x8x8xf32>
    %779 = vector.extract_strided_slice %763 {offsets = [0, 0, 24], sizes = [4, 8, 8], strides = [1, 1, 1]} : vector<4x8x32xf32> to vector<4x8x8xf32>
    %780 = tpu.concatenate %776, %777, %778, %779 in 0 : vector<4x8x8xf32>, vector<4x8x8xf32>, vector<4x8x8xf32>, vector<4x8x8xf32> -> vector<16x8x8xf32>
    %781 = arith.truncf %780 : vector<16x8x8xf32> to vector<16x8x8xbf16>
    "tpu.trace_start"() <{level = 10 : i32, message = "bqd,bkd->bqk"}> : () -> ()
    %cst_321 = arith.constant dense<0.000000e+00> : vector<16x8x8xf32>
    %782 = tpu.matmul %769, %775, %cst_321 {dimension_numbers = #tpu.dot_dimension_numbers<[2], [2], [1], [1], [0, 0, 0, 1, 1, 1], [0], [0]>} : vector<16x8x8xbf16>, vector<16x8x8xbf16>, vector<16x8x8xf32> -> vector<16x8x8xf32>
    "tpu.trace_stop"() : () -> ()
    %cst_322 = arith.constant dense<0xFF800000> : vector<16x8xf32>
    %783 = vector.multi_reduction <maximumf>, %782, %cst_322 [2] : vector<16x8x8xf32> to vector<16x8xf32>
    %784 = vector.shape_cast %783 : vector<16x8xf32> to vector<16x8x1xf32>
    %785 = vector.broadcast %784 : vector<16x8x1xf32> to vector<16x8x8xf32>
    %786 = arith.subf %782, %785 : vector<16x8x8xf32>
    %787 = math.exp %786 : vector<16x8x8xf32>
    %cst_323 = arith.constant dense<0.000000e+00> : vector<16x8xf32>
    %788 = vector.multi_reduction <add>, %787, %cst_323 [2] : vector<16x8x8xf32> to vector<16x8xf32>
    %789 = vector.shape_cast %788 : vector<16x8xf32> to vector<16x8x1xf32>
    %790 = vector.broadcast %789 : vector<16x8x1xf32> to vector<16x8x8xf32>
    %791 = arith.divf %787, %790 : vector<16x8x8xf32>
    %792 = arith.truncf %791 : vector<16x8x8xf32> to vector<16x8x8xbf16>
    "tpu.trace_start"() <{level = 10 : i32, message = "bqk,bkd->bqd"}> : () -> ()
    %cst_324 = arith.constant dense<0.000000e+00> : vector<16x8x8xf32>
    %793 = tpu.matmul %792, %781, %cst_324 {dimension_numbers = #tpu.dot_dimension_numbers<[2], [1], [1], [2], [0, 0, 0, 1, 1, 2], [0], [0]>} : vector<16x8x8xbf16>, vector<16x8x8xbf16>, vector<16x8x8xf32> -> vector<16x8x8xf32>
    "tpu.trace_stop"() : () -> ()
    %794 = vector.extract_strided_slice %793 {offsets = [0, 0, 0], sizes = [4, 8, 8], strides = [1, 1, 1]} : vector<16x8x8xf32> to vector<4x8x8xf32>
    %795 = vector.extract_strided_slice %793 {offsets = [4, 0, 0], sizes = [4, 8, 8], strides = [1, 1, 1]} : vector<16x8x8xf32> to vector<4x8x8xf32>
    %796 = vector.extract_strided_slice %793 {offsets = [8, 0, 0], sizes = [4, 8, 8], strides = [1, 1, 1]} : vector<16x8x8xf32> to vector<4x8x8xf32>
    %797 = vector.extract_strided_slice %793 {offsets = [12, 0, 0], sizes = [4, 8, 8], strides = [1, 1, 1]} : vector<16x8x8xf32> to vector<4x8x8xf32>
    %798 = tpu.concatenate %794, %795, %796, %797 in 2 : vector<4x8x8xf32>, vector<4x8x8xf32>, vector<4x8x8xf32>, vector<4x8x8xf32> -> vector<4x8x32xf32>
    %799 = vector.shape_cast %798 : vector<4x8x32xf32> to vector<32x32xf32>
    %800 = arith.truncf %799 : vector<32x32xf32> to vector<32x32xbf16>
    %cst_325 = arith.constant dense<0.000000e+00> : vector<32x32xf32>
    %801 = tpu.matmul %800, %717, %cst_325 {dimension_numbers = #tpu.dot_dimension_numbers<[1], [0], [0], [1], [0, 0, 1, 1], [], []>} : vector<32x32xbf16>, vector<32x32xbf16>, vector<32x32xf32> -> vector<32x32xf32>
    %802 = vector.broadcast %719 : vector<1x32xf32> to vector<32x32xf32>
    %803 = arith.addf %801, %802 : vector<32x32xf32>
    %804 = arith.addf %803, %707 : vector<32x32xf32>
    %cst_326 = arith.constant dense<0.000000e+00> : vector<32xf32>
    %805 = vector.multi_reduction <add>, %804, %cst_326 [1] : vector<32x32xf32> to vector<32xf32>
    %806 = vector.shape_cast %805 : vector<32xf32> to vector<32x1xf32>
    %cst_327 = arith.constant 3.200000e+01 : f32
    %807 = vector.broadcast %cst_327 : f32 to vector<32x1xf32>
    %808 = arith.divf %806, %807 : vector<32x1xf32>
    %809 = vector.broadcast %808 : vector<32x1xf32> to vector<32x32xf32>
    %810 = arith.subf %804, %809 : vector<32x32xf32>
    %811 = arith.mulf %810, %810 : vector<32x32xf32>
    %cst_328 = arith.constant dense<0.000000e+00> : vector<32xf32>
    %812 = vector.multi_reduction <add>, %811, %cst_328 [1] : vector<32x32xf32> to vector<32xf32>
    %813 = vector.shape_cast %812 : vector<32xf32> to vector<32x1xf32>
    %cst_329 = arith.constant 3.200000e+01 : f32
    %814 = vector.broadcast %cst_329 : f32 to vector<32x1xf32>
    %815 = arith.divf %813, %814 : vector<32x1xf32>
    %816 = vector.broadcast %808 : vector<32x1xf32> to vector<32x32xf32>
    %817 = arith.subf %804, %816 : vector<32x32xf32>
    %cst_330 = arith.constant 9.99999974E-6 : f32
    %818 = vector.broadcast %cst_330 : f32 to vector<32x1xf32>
    %819 = arith.addf %815, %818 : vector<32x1xf32>
    %820 = math.rsqrt %819 : vector<32x1xf32>
    %821 = vector.broadcast %820 : vector<32x1xf32> to vector<32x32xf32>
    %822 = arith.mulf %817, %821 : vector<32x32xf32>
    %823 = vector.broadcast %721 : vector<1x32xf32> to vector<32x32xf32>
    %824 = arith.mulf %822, %823 : vector<32x32xf32>
    %825 = vector.broadcast %723 : vector<1x32xf32> to vector<32x32xf32>
    %826 = arith.addf %824, %825 : vector<32x32xf32>
    %827 = arith.truncf %826 : vector<32x32xf32> to vector<32x32xbf16>
    %cst_331 = arith.constant dense<0.000000e+00> : vector<32x128xf32>
    %828 = tpu.matmul %827, %725, %cst_331 {dimension_numbers = #tpu.dot_dimension_numbers<[1], [0], [0], [1], [0, 0, 1, 1], [], []>} : vector<32x32xbf16>, vector<32x128xbf16>, vector<32x128xf32> -> vector<32x128xf32>
    %829 = vector.broadcast %727 : vector<1x128xf32> to vector<32x128xf32>
    %830 = arith.addf %828, %829 : vector<32x128xf32>
    %cst_332 = arith.constant 0.000000e+00 : f32
    %831 = vector.broadcast %cst_332 : f32 to vector<32x128xf32>
    %832 = arith.maximumf %830, %831 : vector<32x128xf32>
    %833 = arith.truncf %832 : vector<32x128xf32> to vector<32x128xbf16>
    %cst_333 = arith.constant dense<0.000000e+00> : vector<32x32xf32>
    %834 = tpu.matmul %833, %729, %cst_333 {dimension_numbers = #tpu.dot_dimension_numbers<[1], [0], [0], [1], [0, 0, 1, 1], [], []>} : vector<32x128xbf16>, vector<128x32xbf16>, vector<32x32xf32> -> vector<32x32xf32>
    %835 = vector.broadcast %731 : vector<1x32xf32> to vector<32x32xf32>
    %836 = arith.addf %834, %835 : vector<32x32xf32>
    %837 = arith.addf %836, %804 : vector<32x32xf32>
    %838 = vector.shape_cast %837 : vector<32x32xf32> to vector<4x8x32xf32>
    %839 = vector.extract_strided_slice %838 {offsets = [0, 0, 0], sizes = [1, 8, 32], strides = [1, 1, 1]} : vector<4x8x32xf32> to vector<1x8x32xf32>
    %840 = vector.shape_cast %839 : vector<1x8x32xf32> to vector<8x32xf32>
    %841 = vector.shape_cast %840 : vector<8x32xf32> to vector<8x1x32xf32>
    %842 = vector.extract_strided_slice %838 {offsets = [1, 0, 0], sizes = [1, 8, 32], strides = [1, 1, 1]} : vector<4x8x32xf32> to vector<1x8x32xf32>
    %843 = vector.shape_cast %842 : vector<1x8x32xf32> to vector<8x32xf32>
    %844 = vector.shape_cast %843 : vector<8x32xf32> to vector<8x1x32xf32>
    %845 = vector.extract_strided_slice %838 {offsets = [2, 0, 0], sizes = [1, 8, 32], strides = [1, 1, 1]} : vector<4x8x32xf32> to vector<1x8x32xf32>
    %846 = vector.shape_cast %845 : vector<1x8x32xf32> to vector<8x32xf32>
    %847 = vector.shape_cast %846 : vector<8x32xf32> to vector<8x1x32xf32>
    %848 = vector.extract_strided_slice %838 {offsets = [3, 0, 0], sizes = [1, 8, 32], strides = [1, 1, 1]} : vector<4x8x32xf32> to vector<1x8x32xf32>
    %849 = vector.shape_cast %848 : vector<1x8x32xf32> to vector<8x32xf32>
    %850 = vector.shape_cast %849 : vector<8x32xf32> to vector<8x1x32xf32>
    %851 = vector.shape_cast %841 : vector<8x1x32xf32> to vector<8x1x1x32xf32>
    %852 = vector.shape_cast %844 : vector<8x1x32xf32> to vector<8x1x1x32xf32>
    %853 = vector.shape_cast %847 : vector<8x1x32xf32> to vector<8x1x1x32xf32>
    %854 = vector.shape_cast %850 : vector<8x1x32xf32> to vector<8x1x1x32xf32>
    %855 = tpu.concatenate %851, %852, %853, %854 in 1 : vector<8x1x1x32xf32>, vector<8x1x1x32xf32>, vector<8x1x1x32xf32>, vector<8x1x1x32xf32> -> vector<8x4x1x32xf32>
    %856 = vector.shape_cast %855 : vector<8x4x1x32xf32> to vector<32x32xf32>
    %c0_334 = arith.constant 0 : index
    %c0_335 = arith.constant 0 : index
    %857 = vector.load %arg26[%c0_334, %c0_335] : memref<32x32xf32, #tpu.memory_space<vmem>>, vector<32x32xf32>
    tpu.vector_store %arg26[%c0_334, %c0_335], %856 {strides = array<i32>} : memref<32x32xf32, #tpu.memory_space<vmem>>, vector<32x32xf32>,
    return
  }
}

</mosaic_0001>

<bundles_post_ra>
// kernel: ambi_mimo_forward.1
= control target key start
LH: loop header
LB: loop body
LE: loop exit
PB: predicated region body
PF: predicated region fallthrough
CT: control target
= control target key end

     0   :  { %v105_v0 = vlaneseq  ;;  %v16439_v1 = vmov 1966171168   ;;  %vm166_vm0 = vcmask 261120   ;;  %vm16443_vm1 = vmmov 0   ;;  %s20758_s27 = smov 96   ;;  %s20756_s28 = smov 16   ;;  %s20713_s0 = inlined_call_operand.vmem [shape: f32[32,32], index: 0, kind: input, shape index: {}]   ;;  %s20714_s1 = inlined_call_operand.vmem [shape: f32[4,32], index: 1, kind: input, shape index: {}]   ;;  %s20715_s4 = inlined_call_operand.vmem [shape: bf16[2,32,96], index: 4, kind: input, shape index: {}]   ;;  %s20716_s2 = inlined_call_operand.vmem [shape: f32[2,1,32], index: 2, kind: input, shape index: {}]   ;;  %s20717_s3 = inlined_call_operand.vmem [shape: f32[2,1,32], index: 3, kind: input, shape index: {}]   ;;  %s20718_s5 = inlined_call_operand.vmem [shape: f32[2,1,96], index: 5, kind: input, shape index: {}]   ;;  %s20719_s6 = inlined_call_operand.vmem [shape: bf16[2,32,32], index: 6, kind: input, shape index: {}]   ;;  %s20720_s7 = inlined_call_operand.vmem [shape: f32[2,1,32], index: 7, kind: input, shape index: {}]   ;;  %s20721_s10 = inlined_call_operand.vmem [shape: bf16[2,32,128], index: 10, kind: input, shape index: {}]   ;;  %s20722_s12 = inlined_call_operand.vmem [shape: bf16[2,128,32], index: 12, kind: input, shape index: {}]   ;;  %s20723_s8 = inlined_call_operand.vmem [shape: f32[2,1,32], index: 8, kind: input, shape index: {}]   ;;  %s20724_s9 = inlined_call_operand.vmem [shape: f32[2,1,32], index: 9, kind: input, shape index: {}]   ;;  %s20725_s11 = inlined_call_operand.vmem [shape: f32[2,1,128], index: 11, kind: input, shape index: {}]   ;;  %s20726_s13 = inlined_call_operand.vmem [shape: f32[2,1,32], index: 13, kind: input, shape index: {}]   ;;  %s20727_s16 = inlined_call_operand.vmem [shape: bf16[2,32,96], index: 16, kind: input, shape index: {}]   ;;  %s20728_s14 = inlined_call_operand.vmem [shape: f32[2,1,32], index: 14, kind: input, shape index: {}]   ;;  %s20729_s15 = inlined_call_operand.vmem [shape: f32[2,1,32], index: 15, kind: input, shape index: {}]   ;;  %s20730_s17 = inlined_call_operand.vmem [shape: f32[2,1,96], index: 17, kind: input, shape index: {}]   ;;  %s20731_s18 = inlined_call_operand.vmem [shape: bf16[2,32,32], index: 18, kind: input, shape index: {}]   ;;  %s20732_s19 = inlined_call_operand.vmem [shape: f32[2,1,32], index: 19, kind: input, shape index: {}]   ;;  %s20733_s22 = inlined_call_operand.vmem [shape: bf16[2,32,128], index: 22, kind: input, shape index: {}]   ;;  %s20734_s24 = inlined_call_operand.vmem [shape: bf16[2,128,32], index: 24, kind: input, shape index: {}]   ;;  %s20735_s20 = inlined_call_operand.vmem [shape: f32[2,1,32], index: 20, kind: input, shape index: {}]   ;;  %s20736_s21 = inlined_call_operand.vmem [shape: f32[2,1,32], index: 21, kind: input, shape index: {}]   ;;  %s20737_s23 = inlined_call_operand.vmem [shape: f32[2,1,128], index: 23, kind: input, shape index: {}]   ;;  %s20738_s25 = inlined_call_operand.vmem [shape: f32[2,1,32], index: 25, kind: input, shape index: {}]   ;;  %s20739_s26 = inlined_call_operand.vmem [shape: f32[32,32], index: 26, kind: output, shape index: {}]  }
   0x1   :  { %20792 = sst [smem:[#allocation21_spill]] %s20713_s0  ;;  %v103_v2 = vunpack.c.l.s4 %v16439_v1  ;;  %vm366_vm2 = vcmask 64512   ;;  %vm764_vm3 = vcmask 130048   ;;  %vm1381_vm4 = vcmask 195584  }
   0x2   :  { %20793 = sst [smem:[#allocation22_spill]] %s20714_s1  ;;  %v16590_v4 = vshrl.u32 %v105_v0, 7  ;;  %vm8546_vm5 = vcmask 1041409   ;;  %vm8549_vm6 = vcmask 1042434   ;;  %vm8552_vm7 = vcmask 1043459  }
   0x3   :  { %20794 = sst [smem:[#allocation23_spill]] %s20715_s4  ;;  %v104_v6 = vunpack.c.0.s8 %v103_v2  ;;  %vm8555_vm8 = vcmask 1044484   ;;  %vm8558_vm9 = vcmask 1045509   ;;  %vm8561_vm10 = vcmask 1046534  }
   0x4   :  { %20795 = sst [smem:[#allocation24_spill]] %s20716_s2  ;;  %v16608_v12 = vsub.s32 0, %v16590_v4  ;;  %s20810_s1 = sld [smem:[#allocation23_spill]]  ;;  %vm8564_vm11 = vcmask 1047559   ;;  %vm9714_vm12 = vcmask 1043456  }
   0x5   :  { %20796 = sst [smem:[#allocation25_spill]] %s20717_s3  ;;  %s20808_s3 = sld [smem:[#allocation21_spill]]  ;;  %v16605_v11 = vsub.s32 %v104_v6, %v16590_v4 }
   0x6   :  { %20797 = sst [smem:[#allocation26_spill]] %s20718_s5  ;;  %s20812_s0 = sld [smem:[#allocation25_spill]] }
   0x7   :  { %20798 = sst [smem:[#allocation27_spill]] %s20719_s6  ;;  %20809 = vst [vmem:[#allocation2_spill] sm:$0xff] %v16605_v11  ;;  %s20813_s4 = sld [smem:[#allocation26_spill]] }
   0x8   :  { %20799 = sst [smem:[#allocation28_spill]] %s20720_s7  ;;  %s20807_s7 = sld [smem:[#allocation22_spill]] }
   0x9   :  { %20800 = sst [smem:[#allocation29_spill]] %s20721_s10  ;;  %s20811_s10 = sld [smem:[#allocation24_spill]] }
   0xa   :  { %20801 = sst [smem:[#allocation30_spill]] %s20722_s12  ;;  %v15873_v49 = vld [vmem:[%s20810_s1] sm:$0xff]   ;;  %v15874_v50 = vld [vmem:[%s20810_s1 + $0x8] sm:$0xff]   ;;  %s20764_s5 = smov 120  }
   0xb   :  { %20802 = sst [smem:[#allocation31_spill]] %s20723_s8  ;;  %v85_v5 = vld [vmem:[%s20808_s3] sm:$0xff]  ;;  %v87_v7 = vld [vmem:[%s20808_s3 + $0x10] sm:$0xff]  ;;  %v86_v9 = vld [vmem:[%s20808_s3 + $0x8] sm:$0xff]  ;;  %14468 = vmatprep.subr.bf16.mxu1 %v15873_v49  ;;  %s20762_s8 = smov 112  }
   0xc   :  { %20803 = sst [smem:[#allocation32_spill]] %s20736_s21  ;;  %v88_v10 = vld [vmem:[%s20808_s3 + $0x18] sm:$0xff]  ;;  %v89_v13 = vmul.f32 2.0, %v85_v5  ;;  %v91_v14 = vmul.f32 2.0, %v87_v7  ;;  %v90_v17 = vmul.f32 2.0, %v86_v9  ;;  %14469 = vmatpush3.bf16.msra.mxu1 %v15873_v49  ;;  %s20760_s6 = smov 104  }
   0xd   :  { %20804 = sst [smem:[#allocation33_spill]] %s20737_s23  ;;  %v92_v18 = vmul.f32 2.0, %v88_v10  ;;  %14470 = vmatprep.subr.bf16.mxu1 %v15874_v50  ;;  %v13669_v7 = vld [vmem:[%s20812_s0] ss:$0 sm:$0xff]  ;;  %s20752_s2 = smov 64  }
   0xe   :  { %20805 = sst [smem:[#allocation34_spill]] %s20738_s25  ;;  %v13667_v3 = vld.sshfl [vmem:[%s20807_s7] sm:$0x33 pattern:$0x75316420]  ;;  %s20750_s7 = smov 8  }
   0xf   :  { %20806 = sst [smem:[#allocation35_spill]] %s20739_s26  ;;  %v101_v8 = vcombine.high %v13667_v3, %v13667_v3  ;;  %v16611_v15 = vrot.slane %v13667_v3, %v16605_v11  ;;  %v13668_v1 = vld [vmem:[%s20811_s10] ss:$0 sm:$0xff]  ;;  %s20815_s29 = sld [smem:[#allocation28_spill]] }
  0x10   :  { %14471 = vmatpush3.bf16.msra.mxu1 %v15874_v50  ;;  %s20814_s12 = sld [smem:[#allocation27_spill]]  ;;  %s20816_s3 = sld [smem:[#allocation29_spill]] }
  0x11   :  { %v16614_v16 = vrot.slane %v101_v8, %v16605_v11  ;;  %v16618_v19 = vrot.slane %v16611_v15, %v16608_v12  ;;  %s20818_s30 = sld [smem:[#allocation31_spill]]  ;;  %s20823_s26 = smov 64  }
  0x12   :  { %s20828_s23 = sld [smem:[#allocation33_spill]] }
  0x13   :  { %v16622_v20 = vrot.slane %v16614_v16, %v16608_v12  ;;  %v16625_v21 = vadd.f32 %v16618_v19, %v89_v13  ;;  %v16631_v23 = vadd.f32 %v16618_v19, %v90_v17 }
  0x15   :  { %v16628_v22 = vadd.f32 %v16622_v20, %v91_v14  ;;  %v16634_v24 = vadd.f32 %v16622_v20, %v92_v18  ;;  %v167_v25 = vsel %vm166_vm0, %v16625_v21, 0.0  ;;  %v170_v27 = vsel %vm166_vm0, %v16631_v23, 0.0 }
  0x16   :  { %168 = vadd.xlane.f32.xlu0 %v167_v25 }
  0x17   :  { %v173_v26 = vsel %vm166_vm0, %v16628_v22, 0.0  ;;  %v176_v28 = vsel %vm166_vm0, %v16634_v24, 0.0 }
  0x18   :  { %174 = vadd.xlane.f32.xlu1 %v173_v26 }
  0x1a   :  { %171 = vadd.xlane.f32.xlu0 %v170_v27 }
  0x1c   :  { %177 = vadd.xlane.f32.xlu1 %v176_v28 }
  0xa3   :  { %v169_v29 = vpop.xlane.xlu0 %168 }
  0xa4   :  { %v180_v31 = vmul.f32 0.03125, %v169_v29 }
  0xa5   :  { %v175_v30 = vpop.xlane.xlu1 %174 }
  0xa6   :  { %v182_v32 = vmul.f32 0.03125, %v175_v30  ;;  %v184_v33 = vsub.f32 %v16625_v21, %v180_v31  ;;  %v13670_v31 = vld [vmem:[%s20813_s4] ss:$0 sm:$0xff] }
  0xa7   :  { %v172_v35 = vpop.xlane.xlu0 %171 }
  0xa8   :  { %v186_v34 = vsub.f32 %v16628_v22, %v182_v32  ;;  %v181_v37 = vmul.f32 0.03125, %v172_v35  ;;  %v188_v39 = vmul.f32 %v184_v33, %v184_v33 }
  0xa9   :  { %v178_v36 = vpop.xlane.xlu1 %177 }
  0xaa   :  { %v183_v38 = vmul.f32 0.03125, %v178_v36  ;;  %v190_v40 = vmul.f32 %v186_v34, %v186_v34  ;;  %v185_v41 = vsub.f32 %v16631_v23, %v181_v37  ;;  %v192_v43 = vsel %vm166_vm0, %v188_v39, 0.0 }
  0xab   :  { %193 = vadd.xlane.f32.xlu0 %v192_v43  ;;  %v20770_v39 = vmov 0.0  }
  0xac   :  { %v187_v42 = vsub.f32 %v16634_v24, %v183_v38  ;;  %v198_v44 = vsel %vm166_vm0, %v190_v40, 0.0  ;;  %v189_v45 = vmul.f32 %v185_v41, %v185_v41  ;;  %14476 = vmatprep.subr.bf16.mxu1 %v20770_v39  ;;  %14494 = vmatprep.subr.bf16.mxu0 %v20770_v39 }
  0xad   :  { %14496 = vmatprep.mubr.msk.bf16.mxu0 %vm16443_vm1, %v20770_v39 }
  0xae   :  { %v191_v46 = vmul.f32 %v187_v42, %v187_v42  ;;  %v195_v47 = vsel %vm166_vm0, %v189_v45, 0.0 }
  0xaf   :  { %199 = vadd.xlane.f32.xlu0 %v198_v44  ;;  %196 = vadd.xlane.f32.xlu1 %v195_v47 }
  0xb0   :  { %v201_v48 = vsel %vm166_vm0, %v191_v46, 0.0 }
  0xb3   :  { %202 = vadd.xlane.f32.xlu1 %v201_v48 }
 0x138   :  { %v194_v51 = vpop.xlane.xlu0 %193 }
 0x139   :  { %v204_v52 = vmul.f32 0.03125, %v194_v51 }
 0x13b   :  { %v208_v53 = vadd.f32 1e-05, %v204_v52 }
 0x13c   :  { %v197_v54 = vpop.xlane.xlu1 %196  ;;  %v200_v55 = vpop.xlane.xlu0 %199 }
 0x13d   :  { %15957 = vrsqrt.f32 %v208_v53  ;;  %v205_v56 = vmul.f32 0.03125, %v197_v54  ;;  %v206_v57 = vmul.f32 0.03125, %v200_v55 }
 0x13f   :  { %v209_v58 = vadd.f32 1e-05, %v205_v56  ;;  %v210_v59 = vadd.f32 1e-05, %v206_v57 }
 0x140   :  { %v203_v60 = vpop.xlane.xlu1 %202 }
 0x141   :  { %15959 = vrsqrt.f32 %v209_v58  ;;  %v207_v61 = vmul.f32 0.03125, %v203_v60 }
 0x142   :  { %15961 = vrsqrt.f32 %v210_v59 }
 0x143   :  { %v211_v62 = vadd.f32 1e-05, %v207_v61 }
 0x145   :  { %15963 = vrsqrt.f32 %v211_v62 }
 0x147   :  { %v15958_v63 = vpop.eup %15957 }
 0x148   :  { %v216_v0 = vmul.f32 %v15958_v63, %v184_v33 }
 0x14a   :  { %v226_v6 = vmul.f32 %v13668_v1, %v216_v0 }
 0x14b   :  { %v15960_v2 = vpop.eup %15959 }
 0x14c   :  { %v15962_v3 = vpop.eup %15961  ;;  %v217_v5 = vmul.f32 %v15960_v2, %v185_v41  ;;  %v236_v13 = vadd.f32 %v13669_v7, %v226_v6 }
 0x14d   :  { %v218_v8 = vmul.f32 %v15962_v3, %v186_v34 }
 0x14e   :  { %v227_v9 = vmul.f32 %v13668_v1, %v217_v5 }
 0x14f   :  { %v15964_v10 = vpop.eup %15963  ;;  %v228_v18 = vmul.f32 %v13668_v1, %v218_v8 }
 0x150   :  { %v237_v14 = vadd.f32 %v13669_v7, %v227_v9  ;;  %v219_v17 = vmul.f32 %v15964_v10, %v187_v42 }
 0x151   :  { %v238_v27 = vadd.f32 %v13669_v7, %v228_v18 }
 0x152   :  { %v240_v25 = vpack.c.bf16 %v237_v14, %v236_v13  ;;  %v229_v26 = vmul.f32 %v13668_v1, %v219_v17 }
 0x154   :  { %14472 = vmatprep.mubr.msk.bf16.mxu1 %vm166_vm0, %v240_v25  ;;  %v239_v28 = vadd.f32 %v13669_v7, %v229_v26 }
 0x156   :  { %v241_v29 = vpack.c.bf16 %v239_v28, %v238_v27 }
 0x158   :  { %14473 = vmatmul.mubr.msk.bf16.vlgmr.msra.gmra.mrb[0].mxu1 %vm166_vm0, %v241_v29 }
 0x159   :  { %14478 = vmatprep.mubr.msk.bf16.mxu1 %vm16443_vm1, %v20770_v39 }
 0x22b   :  { %v14474_v30 = vpop.f32.mrb[0].mxu1 }
 0x22c   :  { %v300_v32 = vpop.f32.mrb[1].mxu1  ;;  %v309_v34 = vadd.f32 %v14474_v30, %v13670_v31 }
 0x22d   :  { %v14475_v33 = vpop.f32.mrb[2].mxu1  ;;  %v301_v37 = vadd.f32 %v13670_v31, %v300_v32 }
 0x22e   :  { %v312_v35 = vadd.f32 %v14475_v33, %v13670_v31  ;;  %v303_v36 = vpop.f32.mrb[3].mxu1 }
 0x22f   :  { %v304_v38 = vadd.f32 %v13670_v31, %v303_v36 }
 0x230   :  { %v15518_v40 = vpack.i.bf16 %v312_v35, %v309_v34  ;;  %v16671_v41 = vpack.c.bf16 %v312_v35, %v309_v34 }
 0x231   :  { %v15513_v42 = vpack.i.bf16 %v304_v38, %v301_v37  ;;  %v16673_v43 = vpack.c.bf16 %v304_v38, %v301_v37 }
 0x232   :  { %15519 = vrot.lane.b32.xlu1 %v15518_v40, %s20764_s5 }
 0x233   :  { %15514 = vrot.lane.b32.xlu0 %v15513_v42, %s20764_s5  ;;  %s20824_s5 = smov 8  }
 0x236   :  { %15524 = vrot.lane.b32.xlu1 %v15513_v42, %s20762_s8 }
 0x237   :  { %15534 = vrot.lane.b32.xlu0 %v15513_v42, %s20760_s6 }
 0x23a   :  { %15529 = vrot.lane.b32.xlu1 %v15518_v40, %s20762_s8  ;;  %s20817_s8 = sld [smem:[#allocation30_spill]] }
 0x23b   :  { %364 = vrot.lane.b32.xlu0 %v16673_v43, %s20758_s27 }
 0x23e   :  { %15539 = vrot.lane.b32.xlu1 %v15518_v40, %s20760_s6  ;;  %s20820_s6 = smov 112  }
 0x242   :  { %415 = vrot.lane.b32.xlu1 %v16671_v41, %s20758_s27 }
 0x2a4   :  { %v15520_v44 = vpop.permute.xlu1 %15519 }
 0x2a5   :  { %v15522_v45 = vunpack.i.h.bf16 %v15520_v44  ;;  %v15521_v46 = vunpack.i.l.bf16 %v15520_v44  ;;  %v15515_v47 = vpop.permute.xlu0 %15514 }
 0x2a6   :  { %v15517_v48 = vunpack.i.h.bf16 %v15515_v47  ;;  %v15516_v49 = vunpack.i.l.bf16 %v15515_v47 }
 0x2a7   :  { %v16689_v50 = vpack.c.bf16 %v15522_v45, %v15521_v46 }
 0x2a8   :  { %v15525_v51 = vpop.permute.xlu1 %15524  ;;  %v16691_v52 = vpack.c.bf16 %v15517_v48, %v15516_v49 }
 0x2a9   :  { %v15527_v53 = vunpack.i.h.bf16 %v15525_v51  ;;  %v15526_v54 = vunpack.i.l.bf16 %v15525_v51  ;;  %515 = vrot.lane.b32.xlu1 %v16689_v50, %s20758_s27  ;;  %v15535_v55 = vpop.permute.xlu0 %15534 }
 0x2aa   :  { %465 = vrot.lane.b32.xlu0 %v16691_v52, %s20758_s27  ;;  %v15537_v57 = vunpack.i.h.bf16 %v15535_v55  ;;  %v15536_v58 = vunpack.i.l.bf16 %v15535_v55 }
 0x2ab   :  { %v16697_v56 = vpack.c.bf16 %v15527_v53, %v15526_v54 }
 0x2ac   :  { %v15530_v59 = vpop.permute.xlu1 %15529  ;;  %v16704_v2 = vpack.c.bf16 %v15537_v57, %v15536_v58 }
 0x2ad   :  { %v15532_v60 = vunpack.i.h.bf16 %v15530_v59  ;;  %v15531_v61 = vunpack.i.l.bf16 %v15530_v59  ;;  %v365_v62 = vpop.permute.xlu0 %364 }
 0x2ae   :  { %v371_v63 = vsel %vm366_vm2, %v365_v62, 0  ;;  %565 = vrot.lane.b32.xlu0 %v16697_v56, %s20758_s27 }
 0x2af   :  { %14477 = vmatpush3.bf16.xpose.msra.mxu1 %v371_v63  ;;  %v16702_v0 = vpack.c.bf16 %v15532_v60, %v15531_v61 }
 0x2b0   :  { %v15540_v1 = vpop.permute.xlu1 %15539  ;;  %14482 = vmatprep.subr.bf16.mxu1 %v20770_v39 }
 0x2b1   :  { %v15542_v3 = vunpack.i.h.bf16 %v15540_v1  ;;  %v15541_v5 = vunpack.i.l.bf16 %v15540_v1  ;;  %615 = vrot.lane.b32.xlu1 %v16702_v0, %s20758_s27 }
 0x2b2   :  { %665 = vrot.lane.b32.xlu0 %v16704_v2, %s20758_s27 }
 0x2b3   :  { %v16711_v6 = vpack.c.bf16 %v15542_v3, %v15541_v5 }
 0x2b4   :  { %v416_v7 = vpop.permute.xlu1 %415 }
 0x2b5   :  { %v421_v8 = vsel %vm366_vm2, %v416_v7, 0  ;;  %715 = vrot.lane.b32.xlu1 %v16711_v6, %s20758_s27  ;;  %s20822_s27 = smov 96  }
 0x2b6   :  { %14479 = vmatmul.mubr.msk.bf16.vlgmr.msra.gmra.mrb[4].mxu1 %vm366_vm2, %v16673_v43 }
 0x2b7   :  { %14483 = vmatpush3.bf16.xpose.msra.mxu1 %v421_v8  ;;  %14484 = vmatprep.mubr.msk.bf16.mxu1 %vm16443_vm1, %v20770_v39 }
 0x2b8   :  { %14488 = vmatprep.subr.bf16.mxu1 %v20770_v39 }
 0x2be   :  { %14485 = vmatmul.mubr.msk.bf16.vlgmr.msra.gmra.mrb[8].mxu1 %vm366_vm2, %v16671_v41 }
 0x2bf   :  { %14490 = vmatprep.mubr.msk.bf16.mxu1 %vm16443_vm1, %v20770_v39 }
 0x31b   :  { %v516_v9 = vpop.permute.xlu1 %515 }
 0x31c   :  { %v466_v10 = vpop.permute.xlu0 %465  ;;  %v521_v13 = vsel %vm366_vm2, %v516_v9, 0 }
 0x31d   :  { %v471_v14 = vsel %vm366_vm2, %v466_v10, 0  ;;  %14495 = vmatpush3.bf16.xpose.msra.mxu0 %v521_v13 }
 0x31e   :  { %14489 = vmatpush3.bf16.xpose.msra.mxu1 %v471_v14  ;;  %14506 = vmatprep.subr.bf16.mxu0 %v20770_v39 }
 0x31f   :  { %14500 = vmatprep.subr.bf16.mxu1 %v20770_v39 }
 0x320   :  { %v566_v17 = vpop.permute.xlu0 %565 }
 0x321   :  { %v571_v26 = vsel %vm366_vm2, %v566_v17, 0 }
 0x323   :  { %v616_v18 = vpop.permute.xlu1 %615 }
 0x324   :  { %v621_v25 = vsel %vm366_vm2, %v616_v18, 0  ;;  %14497 = vmatmul.mubr.msk.bf16.vlgmr.msra.gmra.mrb[0].mxu0 %vm366_vm2, %v16689_v50  ;;  %v666_v28 = vpop.permute.xlu0 %665 }
 0x325   :  { %14491 = vmatmul.mubr.msk.bf16.vlgmr.msra.gmra.mrb[12].mxu1 %vm366_vm2, %v16691_v52  ;;  %14507 = vmatpush3.bf16.xpose.msra.mxu0 %v621_v25  ;;  %v671_v30 = vsel %vm366_vm2, %v666_v28, 0 }
 0x326   :  { %14501 = vmatpush3.bf16.xpose.msra.mxu1 %v571_v26  ;;  %14508 = vmatprep.mubr.msk.bf16.mxu0 %vm16443_vm1, %v20770_v39 }
 0x327   :  { %14502 = vmatprep.mubr.msk.bf16.mxu1 %vm16443_vm1, %v20770_v39  ;;  %14518 = vmatprep.subr.bf16.mxu0 %v20770_v39  ;;  %v716_v27 = vpop.permute.xlu1 %715 }
 0x328   :  { %14512 = vmatprep.subr.bf16.mxu1 %v20770_v39  ;;  %v721_v29 = vsel %vm366_vm2, %v716_v27, 0 }
 0x32c   :  { %14509 = vmatmul.mubr.msk.bf16.vlgmr.msra.gmra.mrb[4].mxu0 %vm366_vm2, %v16702_v0 }
 0x32d   :  { %14503 = vmatmul.mubr.msk.bf16.vlgmr.msra.gmra.mrb[16].mxu1 %vm366_vm2, %v16697_v56  ;;  %14519 = vmatpush3.bf16.xpose.msra.mxu0 %v721_v29 }
 0x32e   :  { %14513 = vmatpush3.bf16.xpose.msra.mxu1 %v671_v30  ;;  %14520 = vmatprep.mubr.msk.bf16.mxu0 %vm16443_vm1, %v20770_v39 }
 0x32f   :  { %14514 = vmatprep.mubr.msk.bf16.mxu1 %vm16443_vm1, %v20770_v39  ;;  %14530 = vmatprep.subr.bf16.mxu0 %v20770_v39 }
 0x330   :  { %14524 = vmatprep.subr.bf16.mxu1 %v20770_v39 }
 0x334   :  { %14521 = vmatmul.mubr.msk.bf16.vlgmr.msra.gmra.mrb[8].mxu0 %vm366_vm2, %v16711_v6 }
 0x335   :  { %14515 = vmatmul.mubr.msk.bf16.vlgmr.msra.gmra.mrb[20].mxu1 %vm366_vm2, %v16704_v2  ;;  %14532 = vmatprep.mubr.msk.bf16.mxu0 %vm16443_vm1, %v20770_v39 }
 0x336   :  { %14526 = vmatprep.mubr.msk.bf16.mxu1 %vm16443_vm1, %v20770_v39 }
 0x389   :  { %v16761_v31 = vpop.f32.mrb[4].mxu1 }
 0x38a   :  { %v14480_v32 = vpop.f32.mrb[5].mxu1  ;;  %v765_v33 = vsel %vm764_vm3, %v16761_v31, -inf }
 0x38b   :  { %766 = vmax.xlane.f32.xlu0 %v765_v33  ;;  %v16765_v34 = vpop.f32.mrb[6].mxu1 }
 0x38c   :  { %v14481_v35 = vpop.f32.mrb[7].mxu1  ;;  %v768_v36 = vsel %vm764_vm3, %v16765_v34, -inf }
 0x38d   :  { %769 = vmax.xlane.f32.xlu1 %v768_v36 }
 0x391   :  { %v16769_v37 = vpop.f32.mrb[8].mxu1 }
 0x392   :  { %v14486_v38 = vpop.f32.mrb[9].mxu1  ;;  %v771_v40 = vsel %vm764_vm3, %v16769_v37, -inf }
 0x393   :  { %772 = vmax.xlane.f32.xlu0 %v771_v40  ;;  %v16773_v42 = vpop.f32.mrb[10].mxu1 }
 0x394   :  { %v14487_v44 = vpop.f32.mrb[11].mxu1  ;;  %v774_v45 = vsel %vm764_vm3, %v16773_v42, -inf }
 0x397   :  { %775 = vmax.xlane.f32.xlu0 %v774_v45 }
 0x3f7   :  { %v16777_v46 = vpop.f32.mrb[0].mxu0 }
 0x3f8   :  { %v16779_v47 = vpop.f32.mrb[12].mxu1  ;;  %v14498_v48 = vpop.f32.mrb[1].mxu0  ;;  %v783_v49 = vsel %vm764_vm3, %v16777_v46, -inf }
 0x3f9   :  { %v16783_v51 = vpop.f32.mrb[2].mxu0  ;;  %784 = vmax.xlane.f32.xlu0 %v783_v49  ;;  %v14492_v53 = vpop.f32.mrb[13].mxu1  ;;  %v777_v59 = vsel %vm764_vm3, %v16779_v47, -inf }
 0x3fa   :  { %v16785_v54 = vpop.f32.mrb[14].mxu1  ;;  %v14499_v55 = vpop.f32.mrb[3].mxu0  ;;  %v786_v57 = vsel %vm764_vm3, %v16783_v51, -inf }
 0x3fb   :  { %787 = vmax.xlane.f32.xlu1 %v786_v57  ;;  %v14493_v58 = vpop.f32.mrb[15].mxu1  ;;  %v780_v60 = vsel %vm764_vm3, %v16785_v54, -inf }
 0x3fd   :  { %778 = vmax.xlane.f32.xlu0 %v777_v59 }
 0x3ff   :  { %v16793_v61 = vpop.f32.mrb[4].mxu0  ;;  %781 = vmax.xlane.f32.xlu1 %v780_v60 }
 0x400   :  { %v16795_v62 = vpop.f32.mrb[16].mxu1  ;;  %v14510_v63 = vpop.f32.mrb[5].mxu0  ;;  %v795_v1 = vsel %vm764_vm3, %v16793_v61, -inf }
 0x401   :  { %v16799_v3 = vpop.f32.mrb[6].mxu0  ;;  %796 = vmax.xlane.f32.xlu0 %v795_v1  ;;  %v14504_v5 = vpop.f32.mrb[17].mxu1  ;;  %v789_v13 = vsel %vm764_vm3, %v16795_v62, -inf }
 0x402   :  { %v16801_v7 = vpop.f32.mrb[18].mxu1  ;;  %v14511_v8 = vpop.f32.mrb[7].mxu0  ;;  %v798_v9 = vsel %vm764_vm3, %v16799_v3, -inf }
 0x403   :  { %799 = vmax.xlane.f32.xlu1 %v798_v9  ;;  %v14505_v10 = vpop.f32.mrb[19].mxu1  ;;  %v792_v14 = vsel %vm764_vm3, %v16801_v7, -inf }
 0x405   :  { %790 = vmax.xlane.f32.xlu0 %v789_v13 }
 0x407   :  { %v16809_v17 = vpop.f32.mrb[8].mxu0  ;;  %793 = vmax.xlane.f32.xlu1 %v792_v14 }
 0x408   :  { %v16811_v18 = vpop.f32.mrb[20].mxu1  ;;  %v14522_v25 = vpop.f32.mrb[9].mxu0  ;;  %v807_v26 = vsel %vm764_vm3, %v16809_v17, -inf }
 0x409   :  { %v16815_v27 = vpop.f32.mrb[10].mxu0  ;;  %808 = vmax.xlane.f32.xlu0 %v807_v26  ;;  %v14516_v28 = vpop.f32.mrb[21].mxu1  ;;  %v801_v33 = vsel %vm764_vm3, %v16811_v18, -inf }
 0x40a   :  { %v16817_v29 = vpop.f32.mrb[22].mxu1  ;;  %v14523_v30 = vpop.f32.mrb[11].mxu0 }
 0x40b   :  { %v14517_v32 = vpop.f32.mrb[23].mxu1 }
 0x40d   :  { %802 = vmax.xlane.f32.xlu0 %v801_v33 }
 0x418   :  { %996 = vrot.lane.b32.xlu1 %v16671_v41, %s20752_s2  ;;  %v767_v35 = vpop.xlane.xlu0 %766 }
 0x419   :  { %v813_v36 = vsub.f32 %v16761_v31, %v767_v35  ;;  %v804_v31 = vsel %vm764_vm3, %v16817_v29, -inf }
 0x41a   :  { %v770_v45 = vpop.xlane.xlu1 %769 }
 0x41b   :  { %v829_v40 = vmul.f32 1.442695, %v813_v36  ;;  %v814_v48 = vsub.f32 %v16765_v34, %v770_v45 }
 0x41c   :  { %1043 = vrot.lane.b32.xlu1 %v16691_v52, %s20752_s2 }
 0x41d   :  { %15965 = vpow2.f32 %v829_v40  ;;  %v831_v53 = vmul.f32 1.442695, %v814_v48 }
 0x420   :  { %1090 = vrot.lane.b32.xlu1 %v16689_v50, %s20752_s2  ;;  %v773_v38 = vpop.xlane.xlu0 %772  ;;  %v810_v50 = vsel %vm764_vm3, %v16815_v27, -inf }
 0x421   :  { %v815_v44 = vsub.f32 %v16769_v37, %v773_v38 }
 0x423   :  { %949 = vrot.lane.b32.xlu0 %v16673_v43, %s20752_s2  ;;  %v833_v41 = vmul.f32 1.442695, %v815_v44 }
 0x424   :  { %v776_v49 = vpop.xlane.xlu0 %775 }
 0x425   :  { %15967 = vpow2.f32 %v833_v41  ;;  %v816_v55 = vsub.f32 %v16773_v42, %v776_v49 }
 0x426   :  { %15969 = vpow2.f32 %v831_v53 }
 0x427   :  { %1137 = vrot.lane.b32.xlu0 %v16697_v56, %s20752_s2  ;;  %v16833_v52 = vpop.eup %15965  ;;  %v835_v57 = vmul.f32 1.442695, %v816_v55 }
 0x428   :  { %v861_v43 = vsel %vm764_vm3, %v16833_v52, 0.0 }
 0x429   :  { %15971 = vpow2.f32 %v835_v57 }
 0x42f   :  { %v16839_v56 = vpop.eup %15967 }
 0x430   :  { %v867_v37 = vsel %vm764_vm3, %v16839_v56, 0.0  ;;  %v16849_v58 = vpop.eup %15969 }
 0x431   :  { %v864_v59 = vsel %vm764_vm3, %v16849_v58, 0.0 }
 0x433   :  { %v16853_v60 = vpop.eup %15971 }
 0x444   :  { %811 = vmax.xlane.f32.xlu1 %v810_v50 }
 0x446   :  { %862 = vadd.xlane.f32.xlu0 %v861_v43 }
 0x448   :  { %805 = vmax.xlane.f32.xlu1 %v804_v31 }
 0x44a   :  { %868 = vadd.xlane.f32.xlu0 %v867_v37 }
 0x459   :  { %1184 = vrot.lane.b32.xlu1 %v16702_v0, %s20752_s2  ;;  %v870_v0 = vsel %vm764_vm3, %v16853_v60, 0.0 }
 0x47d   :  { %865 = vadd.xlane.f32.xlu1 %v864_v59 }
 0x481   :  { %871 = vadd.xlane.f32.xlu1 %v870_v0 }
 0x486   :  { %v785_v34 = vpop.xlane.xlu0 %784 }
 0x487   :  { %v819_v63 = vsub.f32 %v16777_v46, %v785_v34 }
 0x488   :  { %v788_v1 = vpop.xlane.xlu1 %787 }
 0x489   :  { %v841_v42 = vmul.f32 1.442695, %v819_v63  ;;  %v820_v5 = vsub.f32 %v16783_v51, %v788_v1 }
 0x48a   :  { %v779_v8 = vpop.xlane.xlu0 %778 }
 0x48b   :  { %15973 = vpow2.f32 %v841_v42  ;;  %v843_v9 = vmul.f32 1.442695, %v820_v5  ;;  %v817_v10 = vsub.f32 %v16779_v47, %v779_v8 }
 0x48c   :  { %v782_v13 = vpop.xlane.xlu1 %781 }
 0x48d   :  { %15975 = vpow2.f32 %v843_v9  ;;  %v837_v14 = vmul.f32 1.442695, %v817_v10  ;;  %v818_v25 = vsub.f32 %v16785_v54, %v782_v13 }
 0x48e   :  { %v797_v26 = vpop.xlane.xlu0 %796 }
 0x48f   :  { %15977 = vpow2.f32 %v837_v14  ;;  %v839_v28 = vmul.f32 1.442695, %v818_v25  ;;  %v823_v30 = vsub.f32 %v16793_v61, %v797_v26 }
 0x490   :  { %v800_v46 = vpop.xlane.xlu1 %799 }
 0x491   :  { %15979 = vpow2.f32 %v839_v28  ;;  %v849_v32 = vmul.f32 1.442695, %v823_v30  ;;  %v824_v51 = vsub.f32 %v16799_v3, %v800_v46 }
 0x492   :  { %v791_v33 = vpop.xlane.xlu0 %790 }
 0x493   :  { %15981 = vpow2.f32 %v849_v32  ;;  %v851_v35 = vmul.f32 1.442695, %v824_v51  ;;  %v821_v47 = vsub.f32 %v16795_v62, %v791_v33 }
 0x494   :  { %v794_v36 = vpop.xlane.xlu1 %793 }
 0x495   :  { %v16864_v38 = vpop.eup %15973  ;;  %15983 = vpow2.f32 %v851_v35  ;;  %v845_v54 = vmul.f32 1.442695, %v821_v47  ;;  %v822_v40 = vsub.f32 %v16801_v7, %v794_v36 }
 0x496   :  { %v809_v44 = vpop.xlane.xlu0 %808  ;;  %v879_v61 = vsel %vm764_vm3, %v16864_v38, 0.0 }
 0x497   :  { %v16869_v41 = vpop.eup %15975  ;;  %15985 = vpow2.f32 %v845_v54  ;;  %v847_v3 = vmul.f32 1.442695, %v822_v40  ;;  %v827_v50 = vsub.f32 %v16809_v17, %v809_v44  ;;  %880 = vadd.xlane.f32.xlu0 %v879_v61 }
 0x498   :  { %v997_v43 = vpop.permute.xlu1 %996  ;;  %v882_v62 = vsel %vm764_vm3, %v16869_v41, 0.0 }
 0x499   :  { %v16874_v31 = vpop.eup %15977  ;;  %15987 = vpow2.f32 %v847_v3  ;;  %v857_v37 = vmul.f32 1.442695, %v827_v50  ;;  %14531 = vmatpush3.bf16.msra.mxu0 %v997_v43  ;;  %883 = vadd.xlane.f32.xlu1 %v882_v62 }
 0x49a   :  { %v803_v7 = vpop.xlane.xlu0 %802  ;;  %v873_v45 = vsel %vm764_vm3, %v16874_v31, 0.0  ;;  %14542 = vmatprep.subr.bf16.mxu0 %v20770_v39 }
 0x49b   :  { %v16879_v48 = vpop.eup %15979  ;;  %15989 = vpow2.f32 %v857_v37  ;;  %v825_v17 = vsub.f32 %v16811_v18, %v803_v7  ;;  %874 = vadd.xlane.f32.xlu0 %v873_v45 }
 0x49c   :  { %v876_v49 = vsel %vm764_vm3, %v16879_v48, 0.0  ;;  %v1044_v13 = vpop.permute.xlu1 %1043 }
 0x49d   :  { %v16884_v53 = vpop.eup %15981  ;;  %v853_v55 = vmul.f32 1.442695, %v825_v17  ;;  %877 = vadd.xlane.f32.xlu1 %v876_v49 }
 0x49e   :  { %v950_v57 = vpop.permute.xlu0 %949  ;;  %v891_v59 = vsel %vm764_vm3, %v16884_v53, 0.0 }
 0x49f   :  { %v16888_v0 = vpop.eup %15983  ;;  %15991 = vpow2.f32 %v853_v55  ;;  %892 = vadd.xlane.f32.xlu0 %v891_v59  ;;  %14525 = vmatpush3.bf16.msra.mxu1 %v950_v57 }
 0x4a0   :  { %v894_v18 = vsel %vm764_vm3, %v16888_v0, 0.0  ;;  %14536 = vmatprep.subr.bf16.mxu1 %v20770_v39  ;;  %v1091_v14 = vpop.permute.xlu1 %1090 }
 0x4a1   :  { %v16893_v34 = vpop.eup %15985  ;;  %895 = vadd.xlane.f32.xlu1 %v894_v18 }
 0x4a2   :  { %v885_v63 = vsel %vm764_vm3, %v16893_v34, 0.0 }
 0x4a3   :  { %v16897_v1 = vpop.eup %15987  ;;  %886 = vadd.xlane.f32.xlu0 %v885_v63 }
 0x4a4   :  { %v888_v42 = vsel %vm764_vm3, %v16897_v1, 0.0 }
 0x4a5   :  { %v16901_v5 = vpop.eup %15989  ;;  %889 = vadd.xlane.f32.xlu1 %v888_v42 }
 0x4a6   :  { %v903_v8 = vsel %vm764_vm3, %v16901_v5, 0.0 }
 0x4a7   :  { %904 = vadd.xlane.f32.xlu0 %v903_v8 }
 0x4a9   :  { %v16905_v9 = vpop.eup %15991 }
 0x4aa   :  { %v897_v10 = vsel %vm764_vm3, %v16905_v9, 0.0 }
 0x4ab   :  { %898 = vadd.xlane.f32.xlu0 %v897_v10 }
 0x4c1   :  { %1231 = vrot.lane.b32.xlu0 %v16704_v2, %s20752_s2 }
 0x4d1   :  { %v812_v25 = vpop.xlane.xlu1 %811 }
 0x4d2   :  { %v828_v26 = vsub.f32 %v16815_v27, %v812_v25  ;;  %v16923_v27 = vpop.permute.xlu0 %1137 }
 0x4d4   :  { %v859_v28 = vmul.f32 1.442695, %v828_v26 }
 0x4d5   :  { %v806_v30 = vpop.xlane.xlu1 %805 }
 0x4d6   :  { %15993 = vpow2.f32 %v859_v28  ;;  %v826_v46 = vsub.f32 %v16817_v29, %v806_v30  ;;  %v863_v29 = vpop.xlane.xlu0 %862 }
 0x4d8   :  { %v855_v32 = vmul.f32 1.442695, %v826_v46 }
 0x4d9   :  { %v1185_v47 = vpop.permute.xlu1 %1184 }
 0x4da   :  { %15995 = vpow2.f32 %v855_v32  ;;  %v869_v36 = vpop.xlane.xlu0 %868 }
 0x4db   :  { %15997 = vrcp.f32 %v863_v29 }
 0x4e0   :  { %v16913_v51 = vpop.eup %15993 }
 0x4e1   :  { %v906_v33 = vsel %vm764_vm3, %v16913_v51, 0.0 }
 0x4e2   :  { %907 = vadd.xlane.f32.xlu1 %v906_v33 }
 0x4e4   :  { %v16917_v35 = vpop.eup %15995 }
 0x4e5   :  { %v900_v2 = vsel %vm764_vm3, %v16917_v35, 0.0  ;;  %v15998_v44 = vpop.eup %15997 }
 0x4e6   :  { %901 = vadd.xlane.f32.xlu1 %v900_v2  ;;  %v910_v3 = vmul.f32 %v15998_v44, %v16833_v52 }
 0x4f7   :  { %1278 = vrot.lane.b32.xlu1 %v16711_v6, %s20752_s2  ;;  %s20754_s2 = smov 24  }
 0x50a   :  { %v866_v54 = vpop.xlane.xlu1 %865 }
 0x50b   :  { %15999 = vrcp.f32 %v866_v54 }
 0x50c   :  { %16001 = vrcp.f32 %v869_v36 }
 0x50e   :  { %v872_v40 = vpop.xlane.xlu1 %871 }
 0x50f   :  { %16003 = vrcp.f32 %v872_v40 }
 0x515   :  { %v16000_v61 = vpop.eup %15999 }
 0x516   :  { %v912_v50 = vmul.f32 %v16000_v61, %v16849_v58  ;;  %v16002_v43 = vpop.eup %16001 }
 0x517   :  { %v914_v37 = vmul.f32 %v16002_v43, %v16839_v56 }
 0x518   :  { %v941_v62 = vpack.c.bf16 %v912_v50, %v910_v3 }
 0x519   :  { %v16004_v6 = vpop.eup %16003 }
 0x51a   :  { %v916_v7 = vmul.f32 %v16004_v6, %v16853_v60  ;;  %14527 = vmatmul.mubr.msk.bf16.vlgmr.msra.gmra.mrb[24].mxu1 %vm764_vm3, %v941_v62 }
 0x51b   :  { %14537 = vmatpush3.bf16.msra.mxu1 %v1044_v13  ;;  %14538 = vmatprep.mubr.msk.bf16.mxu1 %vm16443_vm1, %v20770_v39 }
 0x51c   :  { %v942_v45 = vpack.c.bf16 %v916_v7, %v914_v37  ;;  %14548 = vmatprep.subr.bf16.mxu1 %v20770_v39 }
 0x51e   :  { %14533 = vmatmul.mubr.msk.bf16.vlgmr.msra.gmra.mrb[12].mxu0 %vm764_vm3, %v942_v45 }
 0x51f   :  { %14543 = vmatpush3.bf16.msra.mxu0 %v1091_v14  ;;  %14544 = vmatprep.mubr.msk.bf16.mxu0 %vm16443_vm1, %v20770_v39 }
 0x520   :  { %14554 = vmatprep.subr.bf16.mxu0 %v20770_v39 }
 0x524   :  { %v881_v52 = vpop.xlane.xlu0 %880 }
 0x525   :  { %16005 = vrcp.f32 %v881_v52 }
 0x526   :  { %v884_v56 = vpop.xlane.xlu1 %883 }
 0x527   :  { %16007 = vrcp.f32 %v884_v56 }
 0x528   :  { %v875_v58 = vpop.xlane.xlu0 %874 }
 0x529   :  { %16009 = vrcp.f32 %v875_v58 }
 0x52a   :  { %v878_v60 = vpop.xlane.xlu1 %877 }
 0x52b   :  { %16011 = vrcp.f32 %v878_v60 }
 0x52c   :  { %v893_v17 = vpop.xlane.xlu0 %892 }
 0x52d   :  { %16013 = vrcp.f32 %v893_v17 }
 0x52e   :  { %v896_v49 = vpop.xlane.xlu1 %895 }
 0x52f   :  { %v16006_v55 = vpop.eup %16005  ;;  %16015 = vrcp.f32 %v896_v49 }
 0x530   :  { %v887_v57 = vpop.xlane.xlu0 %886  ;;  %v922_v18 = vmul.f32 %v16006_v55, %v16864_v38 }
 0x531   :  { %v16008_v59 = vpop.eup %16007  ;;  %16017 = vrcp.f32 %v887_v57 }
 0x532   :  { %v924_v63 = vmul.f32 %v16008_v59, %v16869_v41  ;;  %v890_v42 = vpop.xlane.xlu1 %889 }
 0x533   :  { %v16010_v8 = vpop.eup %16009  ;;  %16019 = vrcp.f32 %v890_v42 }
 0x534   :  { %v944_v10 = vpack.c.bf16 %v924_v63, %v922_v18  ;;  %v918_v14 = vmul.f32 %v16010_v8, %v16874_v31  ;;  %v905_v26 = vpop.xlane.xlu0 %904 }
 0x535   :  { %v16012_v13 = vpop.eup %16011  ;;  %16021 = vrcp.f32 %v905_v26 }
 0x536   :  { %v920_v25 = vmul.f32 %v16012_v13, %v16879_v48  ;;  %14545 = vmatmul.mubr.msk.bf16.vlgmr.msra.gmra.mrb[16].mxu0 %vm764_vm3, %v944_v10 }
 0x537   :  { %v16014_v28 = vpop.eup %16013  ;;  %14555 = vmatpush3.bf16.msra.mxu0 %v1185_v47  ;;  %14556 = vmatprep.mubr.msk.bf16.mxu0 %vm16443_vm1, %v20770_v39 }
 0x538   :  { %v943_v38 = vpack.c.bf16 %v920_v25, %v918_v14  ;;  %14566 = vmatprep.subr.bf16.mxu0 %v20770_v39  ;;  %v930_v30 = vmul.f32 %v16014_v28, %v16884_v53  ;;  %v899_v48 = vpop.xlane.xlu0 %898 }
 0x539   :  { %v16016_v41 = vpop.eup %16015 }
 0x53a   :  { %v932_v46 = vmul.f32 %v16016_v41, %v16888_v0  ;;  %14539 = vmatmul.mubr.msk.bf16.vlgmr.msra.gmra.mrb[28].mxu1 %vm764_vm3, %v943_v38  ;;  %v15875_v41 = vld [vmem:[%s20814_s12] sm:$0xff]  }
 0x53b   :  { %v16018_v31 = vpop.eup %16017  ;;  %14549 = vmatpush3.bf16.msra.mxu1 %v16923_v27  ;;  %14550 = vmatprep.mubr.msk.bf16.mxu1 %vm16443_vm1, %v20770_v39 }
 0x53c   :  { %v946_v32 = vpack.c.bf16 %v932_v46, %v930_v30  ;;  %14560 = vmatprep.subr.bf16.mxu1 %v20770_v39  ;;  %v926_v2 = vmul.f32 %v16018_v31, %v16893_v34  ;;  %v1232_v0 = vpop.permute.xlu0 %1231  ;;  %v15876_v30 = vld [vmem:[%s20814_s12 + $0x8] sm:$0xff]  }
 0x53d   :  { %v16020_v33 = vpop.eup %16019 }
 0x53e   :  { %v928_v29 = vmul.f32 %v16020_v33, %v16897_v1  ;;  %14557 = vmatmul.mubr.msk.bf16.vlgmr.msra.gmra.mrb[20].mxu0 %vm764_vm3, %v946_v32 }
 0x53f   :  { %14568 = vmatprep.mubr.msk.bf16.mxu0 %vm16443_vm1, %v20770_v39  ;;  %v16022_v47 = vpop.eup %16021 }
 0x540   :  { %v945_v53 = vpack.c.bf16 %v928_v29, %v926_v2  ;;  %v938_v54 = vmul.f32 %v16022_v47, %v16901_v5 }
 0x542   :  { %14551 = vmatmul.mubr.msk.bf16.vlgmr.msra.gmra.mrb[32].mxu1 %vm764_vm3, %v945_v53 }
 0x543   :  { %14561 = vmatpush3.bf16.msra.mxu1 %v1232_v0  ;;  %14562 = vmatprep.mubr.msk.bf16.mxu1 %vm16443_vm1, %v20770_v39 }
 0x544   :  { %14572 = vmatprep.subr.bf16.mxu1 %v15875_v41 }
 0x56f   :  { %v908_v27 = vpop.xlane.xlu1 %907 }
 0x570   :  { %16023 = vrcp.f32 %v908_v27 }
 0x571   :  { %16025 = vrcp.f32 %v899_v48 }
 0x573   :  { %v902_v34 = vpop.xlane.xlu1 %901 }
 0x574   :  { %16027 = vrcp.f32 %v902_v34 }
 0x577   :  { %v1279_v1 = vpop.permute.xlu1 %1278 }
 0x578   :  { %14567 = vmatpush3.bf16.msra.mxu0 %v1279_v1 }
 0x57a   :  { %v16024_v36 = vpop.eup %16023 }
 0x57b   :  { %v940_v40 = vmul.f32 %v16024_v36, %v16913_v51  ;;  %v16026_v44 = vpop.eup %16025 }
 0x57c   :  { %v934_v50 = vmul.f32 %v16026_v44, %v16905_v9 }
 0x57d   :  { %v948_v61 = vpack.c.bf16 %v940_v40, %v938_v54 }
 0x57e   :  { %v16028_v3 = vpop.eup %16027 }
 0x57f   :  { %v936_v43 = vmul.f32 %v16028_v3, %v16917_v35  ;;  %14569 = vmatmul.mubr.msk.bf16.vlgmr.msra.gmra.mrb[24].mxu0 %vm764_vm3, %v948_v61 }
 0x581   :  { %v947_v62 = vpack.c.bf16 %v936_v43, %v934_v50 }
 0x583   :  { %14563 = vmatmul.mubr.msk.bf16.vlgmr.msra.gmra.mrb[36].mxu1 %vm764_vm3, %v947_v62 }
 0x584   :  { %14573 = vmatpush3.bf16.msra.mxu1 %v15875_v41 }
 0x585   :  { %14574 = vmatprep.subr.bf16.mxu1 %v15876_v30 }
 0x588   :  { %14575 = vmatpush3.bf16.msra.mxu1 %v15876_v30 }
 0x5ed   :  { %v16966_v6 = vpop.f32.mrb[24].mxu1 }
 0x5ee   :  { %v14528_v37 = vpop.f32.mrb[25].mxu1 }
 0x5ef   :  { %v16968_v7 = vpop.f32.mrb[26].mxu1 }
 0x5f0   :  { %v14529_v5 = vpop.f32.mrb[27].mxu1 }
 0x5f1   :  { %v1036_v45 = vpop.f32.mrb[12].mxu0 }
 0x5f2   :  { %v14534_v51 = vpop.f32.mrb[13].mxu0 }
 0x5f3   :  { %v1039_v52 = vpop.f32.mrb[14].mxu0 }
 0x5f4   :  { %v14535_v56 = vpop.f32.mrb[15].mxu0 }
 0x609   :  { %v1130_v58 = vpop.f32.mrb[16].mxu0 }
 0x60a   :  { %v14546_v60 = vpop.f32.mrb[17].mxu0 }
 0x60b   :  { %v1133_v9 = vpop.f32.mrb[18].mxu0 }
 0x60c   :  { %v15543_v17 = vpack.i.bf16 %v1133_v9, %v1130_v58  ;;  %v14547_v35 = vpop.f32.mrb[19].mxu0 }
 0x60d   :  { %v1083_v49 = vpop.f32.mrb[28].mxu1 }
 0x60e   :  { %15544 = vrot.lane.b32.xlu1 %v15543_v17, %s20750_s7  ;;  %v14540_v55 = vpop.f32.mrb[29].mxu1 }
 0x60f   :  { %v1086_v57 = vpop.f32.mrb[30].mxu1 }
 0x610   :  { %v15548_v59 = vpack.i.bf16 %v1086_v57, %v1083_v49  ;;  %v14541_v18 = vpop.f32.mrb[31].mxu1 }
 0x611   :  { %v1224_v63 = vpop.f32.mrb[20].mxu0 }
 0x612   :  { %15549 = vrot.lane.b32.xlu0 %v15548_v59, %s20750_s7  ;;  %v14558_v42 = vpop.f32.mrb[21].mxu0 }
 0x613   :  { %v1227_v8 = vpop.f32.mrb[22].mxu0 }
 0x614   :  { %v15553_v10 = vpack.i.bf16 %v1227_v8, %v1224_v63  ;;  %v14559_v13 = vpop.f32.mrb[23].mxu0 }
 0x615   :  { %v1177_v14 = vpop.f32.mrb[32].mxu1 }
 0x616   :  { %15554 = vrot.lane.b32.xlu1 %v15553_v10, %s20756_s28  ;;  %v14552_v25 = vpop.f32.mrb[33].mxu1 }
 0x617   :  { %v1180_v26 = vpop.f32.mrb[34].mxu1 }
 0x618   :  { %v15558_v28 = vpack.i.bf16 %v1180_v26, %v1177_v14  ;;  %v14553_v38 = vpop.f32.mrb[35].mxu1 }
 0x61a   :  { %15559 = vrot.lane.b32.xlu0 %v15558_v28, %s20756_s28  ;;  %s20829_s28 = sld [smem:[#allocation34_spill]] }
 0x652   :  { %v1318_v46 = vpop.f32.mrb[24].mxu0 }
 0x653   :  { %v14570_v31 = vpop.f32.mrb[25].mxu0 }
 0x654   :  { %v1321_v48 = vpop.f32.mrb[26].mxu0 }
 0x655   :  { %v15568_v32 = vpack.i.bf16 %v1321_v48, %v1318_v46  ;;  %v14571_v33 = vpop.f32.mrb[27].mxu0 }
 0x656   :  { %v1271_v2 = vpop.f32.mrb[36].mxu1 }
 0x657   :  { %15569 = vrot.lane.b32.xlu1 %v15568_v32, %s20754_s2  ;;  %v14564_v29 = vpop.f32.mrb[37].mxu1 }
 0x658   :  { %v1274_v53 = vpop.f32.mrb[38].mxu1 }
 0x659   :  { %v15563_v0 = vpack.i.bf16 %v1274_v53, %v1271_v2  ;;  %v14565_v27 = vpop.f32.mrb[39].mxu1 }
 0x65b   :  { %15564 = vrot.lane.b32.xlu0 %v15563_v0, %s20754_s2  ;;  %s20819_s2 = smov 120  }
 0x680   :  { %v15545_v34 = vpop.permute.xlu1 %15544 }
 0x681   :  { %v15547_v36 = vunpack.i.h.bf16 %v15545_v34  ;;  %v15546_v54 = vunpack.i.l.bf16 %v15545_v34 }
 0x683   :  { %v1376_v3 = vsel %vm366_vm2, %v1039_v52, %v15547_v36  ;;  %v1375_v50 = vsel %vm366_vm2, %v1036_v45, %v15546_v54 }
 0x684   :  { %v15550_v1 = vpop.permute.xlu0 %15549 }
 0x685   :  { %v15552_v62 = vunpack.i.h.bf16 %v15550_v1  ;;  %v15551_v37 = vunpack.i.l.bf16 %v15550_v1 }
 0x687   :  { %v1374_v45 = vsel %vm366_vm2, %v16968_v7, %v15552_v62  ;;  %v1373_v55 = vsel %vm366_vm2, %v16966_v6, %v15551_v37  ;;  %v13691_v7 = vld [vmem:[%s20815_s29] ss:$0 sm:$0xff] }
 0x688   :  { %v15555_v47 = vpop.permute.xlu1 %15554 }
 0x689   :  { %v15557_v40 = vunpack.i.h.bf16 %v15555_v47  ;;  %v15556_v44 = vunpack.i.l.bf16 %v15555_v47 }
 0x68b   :  { %v1380_v56 = vsel %vm764_vm3, %v1376_v3, %v15557_v40  ;;  %v1379_v58 = vsel %vm764_vm3, %v1375_v50, %v15556_v44 }
 0x68c   :  { %v15560_v61 = vpop.permute.xlu0 %15559 }
 0x68d   :  { %v15562_v60 = vunpack.i.h.bf16 %v15560_v61  ;;  %v15561_v9 = vunpack.i.l.bf16 %v15560_v61 }
 0x68f   :  { %v1377_v18 = vsel %vm764_vm3, %v1373_v55, %v15561_v9  ;;  %v1378_v63 = vsel %vm764_vm3, %v1374_v45, %v15562_v60  ;;  %v15881_v60 = vld [vmem:[%s20817_s8 + $0x10] sm:$0xff]   ;;  %v15882_v9 = vld [vmem:[%s20817_s8 + $0x18] sm:$0xff]  }
 0x6c9   :  { %v15570_v43 = vpop.permute.xlu1 %15569 }
 0x6ca   :  { %v15572_v5 = vunpack.i.h.bf16 %v15570_v43  ;;  %v15571_v51 = vunpack.i.l.bf16 %v15570_v43 }
 0x6cc   :  { %v1385_v17 = vsel %vm1381_vm4, %v1380_v56, %v15572_v5  ;;  %v1384_v35 = vsel %vm1381_vm4, %v1379_v58, %v15571_v51  ;;  %v15877_v5 = vld [vmem:[%s20816_s3] sm:$0xff]   ;;  %v15878_v51 = vld [vmem:[%s20816_s3 + $0x8] sm:$0xff]  }
 0x6cd   :  { %v1387_v49 = vpack.c.bf16 %v1385_v17, %v1384_v35  ;;  %v15565_v52 = vpop.permute.xlu0 %15564  ;;  %14580 = vmatprep.subr.bf16.mxu0 %v15877_v5  ;;  %v15879_v56 = vld [vmem:[%s20817_s8] sm:$0xff]   ;;  %v15880_v58 = vld [vmem:[%s20817_s8 + $0x8] sm:$0xff]  }
 0x6ce   :  { %v15567_v57 = vunpack.i.h.bf16 %v15565_v52  ;;  %v15566_v59 = vunpack.i.l.bf16 %v15565_v52  ;;  %14581 = vmatpush3.bf16.msra.mxu0 %v15877_v5  ;;  %14588 = vmatprep.subr.bf16.mxu1 %v15879_v56  ;;  %v15883_v17 = vld [vmem:[%s20817_s8 + $0x20] sm:$0xff]   ;;  %v15884_v35 = vld [vmem:[%s20817_s8 + $0x28] sm:$0xff]  }
 0x6cf   :  { %14582 = vmatprep.subr.bf16.mxu0 %v15878_v51 }
 0x6d0   :  { %v1382_v42 = vsel %vm1381_vm4, %v1377_v18, %v15566_v59  ;;  %v1383_v8 = vsel %vm1381_vm4, %v1378_v63, %v15567_v57 }
 0x6d1   :  { %v1386_v10 = vpack.c.bf16 %v1383_v8, %v1382_v42 }
 0x6d2   :  { %14583 = vmatpush3.bf16.msra.mxu0 %v15878_v51 }
 0x6d3   :  { %14576 = vmatprep.mubr.msk.bf16.mxu1 %vm166_vm0, %v1386_v10 }
 0x6d4   :  { %14577 = vmatmul.mubr.msk.bf16.vlgmr.msra.gmra.mrb[40].mxu1 %vm166_vm0, %v1387_v49 }
 0x6d5   :  { %14589 = vmatpush3.bf16.msra.mxu1 %v15879_v56 }
 0x6d6   :  { %14590 = vmatprep.subr.bf16.mxu1 %v15880_v58 }
 0x6d9   :  { %14591 = vmatpush3.bf16.msra.mxu1 %v15880_v58 }
 0x6da   :  { %14592 = vmatprep.subr.bf16.mxu1 %v15881_v60 }
 0x6dd   :  { %14593 = vmatpush3.bf16.msra.mxu1 %v15881_v60 }
 0x6de   :  { %14594 = vmatprep.subr.bf16.mxu1 %v15882_v9 }
 0x6e1   :  { %14595 = vmatpush3.bf16.msra.mxu1 %v15882_v9  ;;  %v13703_v9 = vld [vmem:[%s20726_s13] ss:$0 sm:$0xff] }
 0x6e2   :  { %14596 = vmatprep.subr.bf16.mxu1 %v15883_v17 }
 0x6e5   :  { %14597 = vmatpush3.bf16.msra.mxu1 %v15883_v17 }
 0x6e6   :  { %14598 = vmatprep.subr.bf16.mxu1 %v15884_v35 }
 0x6e9   :  { %14599 = vmatpush3.bf16.msra.mxu1 %v15884_v35 }
 0x7a7   :  { %v14578_v6 = vpop.f32.mrb[40].mxu1 }
 0x7a8   :  { %v1446_v13 = vpop.f32.mrb[41].mxu1  ;;  %v1455_v14 = vadd.f32 %v14578_v6, %v13691_v7 }
 0x7a9   :  { %v1447_v25 = vadd.f32 %v13691_v7, %v1446_v13  ;;  %v14579_v26 = vpop.f32.mrb[42].mxu1  ;;  %v13696_v13 = vld [vmem:[%s20818_s30] ss:$0 sm:$0xff] }
 0x7aa   :  { %v1449_v28 = vpop.f32.mrb[43].mxu1  ;;  %v1458_v30 = vadd.f32 %v14579_v26, %v13691_v7  ;;  %v17010_v48 = vadd.f32 %v1455_v14, %v16628_v22 }
 0x7ab   :  { %v1450_v38 = vadd.f32 %v13691_v7, %v1449_v28  ;;  %v17002_v41 = vadd.f32 %v1447_v25, %v16625_v21 }
 0x7ac   :  { %v1471_v33 = vsel %vm166_vm0, %v17010_v48, 0.0  ;;  %v17017_v21 = vadd.f32 %v1458_v30, %v16634_v24  ;;  %v13697_v30 = vld [vmem:[%s20724_s9] ss:$0 sm:$0xff] }
 0x7ad   :  { %v1465_v46 = vsel %vm166_vm0, %v17002_v41, 0.0  ;;  %v17007_v31 = vadd.f32 %v1450_v38, %v16631_v23 }
 0x7ae   :  { %1466 = vadd.xlane.f32.xlu0 %v1465_v46  ;;  %v1474_v2 = vsel %vm166_vm0, %v17017_v21, 0.0 }
 0x7af   :  { %v1468_v32 = vsel %vm166_vm0, %v17007_v31, 0.0 }
 0x7b0   :  { %1469 = vadd.xlane.f32.xlu1 %v1468_v32 }
 0x7b2   :  { %1472 = vadd.xlane.f32.xlu0 %v1471_v33 }
 0x7b6   :  { %1475 = vadd.xlane.f32.xlu0 %v1474_v2 }
 0x83b   :  { %v1467_v23 = vpop.xlane.xlu0 %1466 }
 0x83c   :  { %v1477_v29 = vmul.f32 0.03125, %v1467_v23 }
 0x83d   :  { %v1470_v22 = vpop.xlane.xlu1 %1469 }
 0x83e   :  { %v17022_v53 = vsub.f32 %v17002_v41, %v1477_v29  ;;  %v1478_v0 = vmul.f32 0.03125, %v1470_v22 }
 0x83f   :  { %v1473_v27 = vpop.xlane.xlu0 %1472 }
 0x840   :  { %v17025_v34 = vsub.f32 %v17007_v31, %v1478_v0  ;;  %v1479_v1 = vmul.f32 0.03125, %v1473_v27  ;;  %v1485_v24 = vmul.f32 %v17022_v53, %v17022_v53 }
 0x842   :  { %v17030_v47 = vsub.f32 %v17010_v48, %v1479_v1  ;;  %v1489_v36 = vsel %vm166_vm0, %v1485_v24, 0.0  ;;  %v1486_v54 = vmul.f32 %v17025_v34, %v17025_v34  ;;  %v15885_v24 = vld [vmem:[%s20817_s8 + $0x30] sm:$0xff]  }
 0x843   :  { %1490 = vadd.xlane.f32.xlu0 %v1489_v36  ;;  %v1476_v40 = vpop.xlane.xlu0 %1475  ;;  %14600 = vmatprep.subr.bf16.mxu1 %v15885_v24  ;;  %v13698_v36 = vld [vmem:[%s20725_s11] ss:$0 sm:$0xff] }
 0x844   :  { %v1480_v44 = vmul.f32 0.03125, %v1476_v40  ;;  %v1492_v61 = vsel %vm166_vm0, %v1486_v54, 0.0  ;;  %v1487_v3 = vmul.f32 %v17030_v47, %v17030_v47  ;;  %14601 = vmatpush3.bf16.msra.mxu1 %v15885_v24 }
 0x845   :  { %1493 = vadd.xlane.f32.xlu1 %v1492_v61 }
 0x846   :  { %v17039_v50 = vsub.f32 %v17017_v21, %v1480_v44  ;;  %v1495_v43 = vsel %vm166_vm0, %v1487_v3, 0.0 }
 0x847   :  { %1496 = vadd.xlane.f32.xlu0 %v1495_v43 }
 0x848   :  { %v1488_v62 = vmul.f32 %v17039_v50, %v17039_v50 }
 0x84a   :  { %v1498_v37 = vsel %vm166_vm0, %v1488_v62, 0.0 }
 0x84b   :  { %1499 = vadd.xlane.f32.xlu1 %v1498_v37 }
 0x8d0   :  { %v1491_v49 = vpop.xlane.xlu0 %1490 }
 0x8d1   :  { %v1501_v52 = vmul.f32 0.03125, %v1491_v49 }
 0x8d2   :  { %v1494_v45 = vpop.xlane.xlu1 %1493 }
 0x8d3   :  { %v1505_v55 = vadd.f32 1e-05, %v1501_v52  ;;  %v1502_v57 = vmul.f32 0.03125, %v1494_v45 }
 0x8d4   :  { %v1497_v59 = vpop.xlane.xlu0 %1496 }
 0x8d5   :  { %16029 = vrsqrt.f32 %v1505_v55  ;;  %v1506_v18 = vadd.f32 1e-05, %v1502_v57  ;;  %v1503_v63 = vmul.f32 0.03125, %v1497_v59 }
 0x8d7   :  { %16031 = vrsqrt.f32 %v1506_v18  ;;  %v1507_v42 = vadd.f32 1e-05, %v1503_v63 }
 0x8d8   :  { %v1500_v8 = vpop.xlane.xlu1 %1499 }
 0x8d9   :  { %16033 = vrsqrt.f32 %v1507_v42  ;;  %v1504_v10 = vmul.f32 0.03125, %v1500_v8 }
 0x8db   :  { %v1508_v7 = vadd.f32 1e-05, %v1504_v10 }
 0x8dd   :  { %16035 = vrsqrt.f32 %v1508_v7 }
 0x8df   :  { %v16030_v6 = vpop.eup %16029 }
 0x8e0   :  { %v1513_v14 = vmul.f32 %v16030_v6, %v17022_v53 }
 0x8e1   :  { %v16032_v25 = vpop.eup %16031 }
 0x8e2   :  { %v1514_v26 = vmul.f32 %v16032_v25, %v17025_v34  ;;  %v1523_v28 = vmul.f32 %v13696_v13, %v1513_v14 }
 0x8e3   :  { %v16034_v38 = vpop.eup %16033 }
 0x8e4   :  { %v1515_v46 = vmul.f32 %v16034_v38, %v17030_v47  ;;  %v1524_v32 = vmul.f32 %v13696_v13, %v1514_v26  ;;  %v1533_v33 = vadd.f32 %v13697_v30, %v1523_v28  ;;  %v15886_v47 = vld [vmem:[%s20817_s8 + $0x38] sm:$0xff]  }
 0x8e5   :  { %14602 = vmatprep.subr.bf16.mxu1 %v15886_v47 }
 0x8e6   :  { %v1534_v2 = vadd.f32 %v13697_v30, %v1524_v32  ;;  %v1525_v0 = vmul.f32 %v13696_v13, %v1515_v46  ;;  %14603 = vmatpush3.bf16.msra.mxu1 %v15886_v47 }
 0x8e7   :  { %v16036_v23 = vpop.eup %16035  ;;  %14634 = vmatprep.subr.bf16.mxu1 %v20770_v39 }
 0x8e8   :  { %v1516_v29 = vmul.f32 %v16036_v23, %v17039_v50  ;;  %v1537_v22 = vpack.c.bf16 %v1534_v2, %v1533_v33  ;;  %v1535_v27 = vadd.f32 %v13697_v30, %v1525_v0 }
 0x8ea   :  { %14584 = vmatprep.mubr.msk.bf16.mxu0 %vm166_vm0, %v1537_v22  ;;  %v1526_v53 = vmul.f32 %v13696_v13, %v1516_v29 }
 0x8ec   :  { %v1536_v34 = vadd.f32 %v13697_v30, %v1526_v53 }
 0x8ee   :  { %v1538_v1 = vpack.c.bf16 %v1536_v34, %v1535_v27  ;;  %v15887_v34 = vld [vmem:[%s20810_s1 + $0x10] sm:$0xff]  }
 0x8ef   :  { %14608 = vmatprep.subr.bf16.mxu0 %v15887_v34 }
 0x8f0   :  { %14585 = vmatmul.mubr.msk.bf16.vlgmr.msra.gmra.mrb[28].mxu0 %vm166_vm0, %v1538_v1  ;;  %v15888_v1 = vld [vmem:[%s20810_s1 + $0x18] sm:$0xff]   ;;  %s20825_s1 = smov 16  }
 0x8f1   :  { %14609 = vmatpush3.bf16.msra.mxu0 %v15887_v34 }
 0x8f2   :  { %14610 = vmatprep.subr.bf16.mxu0 %v15888_v1 }
 0x8f5   :  { %14611 = vmatpush3.bf16.msra.mxu0 %v15888_v1 }
 0x8f6   :  { %14616 = vmatprep.subr.bf16.mxu0 %v20770_v39 }
 0x9c3   :  { %v14586_v54 = vpop.f32.mrb[28].mxu0 }
 0x9c4   :  { %v1606_v40 = vadd.f32 %v14586_v54, %v13698_v36  ;;  %v1597_v44 = vpop.f32.mrb[29].mxu0 }
 0x9c5   :  { %v1598_v61 = vadd.f32 %v13698_v36, %v1597_v44  ;;  %v14587_v3 = vpop.f32.mrb[30].mxu0 }
 0x9c6   :  { %v1609_v50 = vadd.f32 %v14587_v3, %v13698_v36  ;;  %v1600_v43 = vpop.f32.mrb[31].mxu0  ;;  %v1614_v37 = vmax.f32 %v1606_v40, 0.0 }
 0x9c7   :  { %v1601_v62 = vadd.f32 %v13698_v36, %v1600_v43  ;;  %v1612_v51 = vmax.f32 %v1598_v61, 0.0 }
 0x9c8   :  { %v1615_v5 = vmax.f32 %v1609_v50, 0.0 }
 0x9c9   :  { %v1613_v56 = vmax.f32 %v1601_v62, 0.0 }
 0x9ca   :  { %v1617_v58 = vpack.c.bf16 %v1615_v5, %v1614_v37 }
 0x9cb   :  { %v1616_v60 = vpack.c.bf16 %v1613_v56, %v1612_v51  ;;  %v13748_v51 = vld [vmem:[%s20811_s10 + $0x1] ss:$0 sm:$0xff] }
 0x9cd   :  { %14604 = vmatprep.mubr.bf16.mxu1 %v1616_v60  ;;  %v13749_v60 = vld [vmem:[%s20812_s0 + $0x1] ss:$0 sm:$0xff]  ;;  %s20826_s0 = smov 24  }
 0x9ce   :  { %14605 = vmatmul.mubr.bf16.vlgmr.msra.gmra.mrb[44].mxu1 %v1617_v58 }
 0x9cf   :  { %14636 = vmatprep.mubr.msk.bf16.mxu1 %vm16443_vm1, %v20770_v39 }
 0xaa1   :  { %v14606_v17 = vpop.f32.mrb[44].mxu1 }
 0xaa2   :  { %v1706_v35 = vpop.f32.mrb[45].mxu1  ;;  %v1715_v49 = vadd.f32 %v14606_v17, %v13703_v9 }
 0xaa3   :  { %v1707_v52 = vadd.f32 %v13703_v9, %v1706_v35  ;;  %v14607_v45 = vpop.f32.mrb[46].mxu1 }
 0xaa4   :  { %v1709_v55 = vpop.f32.mrb[47].mxu1  ;;  %v1718_v57 = vadd.f32 %v14607_v45, %v13703_v9  ;;  %v17105_v8 = vadd.f32 %v1715_v49, %v17010_v48 }
 0xaa5   :  { %v1710_v59 = vadd.f32 %v13703_v9, %v1709_v55  ;;  %v17097_v18 = vadd.f32 %v1707_v52, %v17002_v41 }
 0xaa6   :  { %v17110_v7 = vadd.f32 %v1718_v57, %v17017_v21  ;;  %v1779_v41 = vsel %vm166_vm0, %v17105_v8, 0.0 }
 0xaa7   :  { %v1773_v63 = vsel %vm166_vm0, %v17097_v18, 0.0  ;;  %v17102_v42 = vadd.f32 %v1710_v59, %v17007_v31 }
 0xaa8   :  { %1774 = vadd.xlane.f32.xlu0 %v1773_v63  ;;  %v1782_v6 = vsel %vm166_vm0, %v17110_v7, 0.0 }
 0xaa9   :  { %v1776_v10 = vsel %vm166_vm0, %v17102_v42, 0.0 }
 0xaaa   :  { %1777 = vadd.xlane.f32.xlu1 %v1776_v10 }
 0xaac   :  { %1780 = vadd.xlane.f32.xlu0 %v1779_v41 }
 0xaae   :  { %1783 = vadd.xlane.f32.xlu1 %v1782_v6 }
 0xb35   :  { %v1775_v31 = vpop.xlane.xlu0 %1774 }
 0xb36   :  { %v1785_v13 = vmul.f32 0.03125, %v1775_v31 }
 0xb37   :  { %v1778_v48 = vpop.xlane.xlu1 %1777 }
 0xb38   :  { %v1789_v14 = vsub.f32 %v17097_v18, %v1785_v13  ;;  %v1786_v25 = vmul.f32 0.03125, %v1778_v48 }
 0xb39   :  { %v1781_v26 = vpop.xlane.xlu0 %1780 }
 0xb3a   :  { %v1790_v28 = vsub.f32 %v17102_v42, %v1786_v25  ;;  %v1787_v21 = vmul.f32 0.03125, %v1781_v26  ;;  %v1793_v38 = vmul.f32 %v1789_v14, %v1789_v14 }
 0xb3b   :  { %v1784_v30 = vpop.xlane.xlu1 %1783 }
 0xb3c   :  { %v1791_v46 = vsub.f32 %v17105_v8, %v1787_v21  ;;  %v1788_v32 = vmul.f32 0.03125, %v1784_v30  ;;  %v1797_v33 = vsel %vm166_vm0, %v1793_v38, 0.0  ;;  %v1794_v2 = vmul.f32 %v1790_v28, %v1790_v28 }
 0xb3d   :  { %1798 = vadd.xlane.f32.xlu0 %v1797_v33 }
 0xb3e   :  { %v1792_v23 = vsub.f32 %v17110_v7, %v1788_v32  ;;  %v1800_v29 = vsel %vm166_vm0, %v1794_v2, 0.0  ;;  %v1795_v22 = vmul.f32 %v1791_v46, %v1791_v46 }
 0xb3f   :  { %1801 = vadd.xlane.f32.xlu1 %v1800_v29 }
 0xb40   :  { %v1803_v0 = vsel %vm166_vm0, %v1795_v22, 0.0  ;;  %v1796_v53 = vmul.f32 %v1792_v23, %v1792_v23 }
 0xb41   :  { %1804 = vadd.xlane.f32.xlu0 %v1803_v0 }
 0xb42   :  { %v1806_v27 = vsel %vm166_vm0, %v1796_v53, 0.0 }
 0xb43   :  { %1807 = vadd.xlane.f32.xlu1 %v1806_v27 }
 0xbca   :  { %v1799_v24 = vpop.xlane.xlu0 %1798 }
 0xbcb   :  { %v1809_v47 = vmul.f32 0.03125, %v1799_v24 }
 0xbcc   :  { %v1802_v36 = vpop.xlane.xlu1 %1801 }
 0xbcd   :  { %v1813_v54 = vadd.f32 1e-05, %v1809_v47  ;;  %v1810_v40 = vmul.f32 0.03125, %v1802_v36 }
 0xbce   :  { %v1805_v44 = vpop.xlane.xlu0 %1804 }
 0xbcf   :  { %16037 = vrsqrt.f32 %v1813_v54  ;;  %v1814_v61 = vadd.f32 1e-05, %v1810_v40  ;;  %v1811_v3 = vmul.f32 0.03125, %v1805_v44 }
 0xbd0   :  { %v1808_v50 = vpop.xlane.xlu1 %1807 }
 0xbd1   :  { %16039 = vrsqrt.f32 %v1814_v61  ;;  %v1815_v43 = vadd.f32 1e-05, %v1811_v3  ;;  %v1812_v62 = vmul.f32 0.03125, %v1808_v50 }
 0xbd3   :  { %16041 = vrsqrt.f32 %v1815_v43  ;;  %v1816_v37 = vadd.f32 1e-05, %v1812_v62 }
 0xbd5   :  { %16043 = vrsqrt.f32 %v1816_v37 }
 0xbd9   :  { %v16038_v5 = vpop.eup %16037 }
 0xbda   :  { %v1821_v56 = vmul.f32 %v16038_v5, %v1789_v14  ;;  %v13750_v14 = vld [vmem:[%s20813_s4 + $0x1] ss:$0 sm:$0xff]  ;;  %s20821_s4 = smov 104  }
 0xbdb   :  { %v16040_v58 = vpop.eup %16039 }
 0xbdc   :  { %v1822_v9 = vmul.f32 %v16040_v58, %v1790_v28  ;;  %v1831_v17 = vmul.f32 %v13748_v51, %v1821_v56 }
 0xbdd   :  { %v16042_v35 = vpop.eup %16041 }
 0xbde   :  { %v1823_v49 = vmul.f32 %v16042_v35, %v1791_v46  ;;  %v1832_v52 = vmul.f32 %v13748_v51, %v1822_v9  ;;  %v1841_v45 = vadd.f32 %v13749_v60, %v1831_v17 }
 0xbdf   :  { %v16044_v55 = vpop.eup %16043 }
 0xbe0   :  { %v1833_v57 = vmul.f32 %v13748_v51, %v1823_v49  ;;  %v1824_v59 = vmul.f32 %v16044_v55, %v1792_v23  ;;  %v1842_v63 = vadd.f32 %v13749_v60, %v1832_v52 }
 0xbe2   :  { %v1834_v10 = vmul.f32 %v13748_v51, %v1824_v59  ;;  %v1845_v41 = vpack.c.bf16 %v1842_v63, %v1841_v45  ;;  %v1843_v6 = vadd.f32 %v13749_v60, %v1833_v57 }
 0xbe4   :  { %14612 = vmatprep.mubr.msk.bf16.mxu0 %vm166_vm0, %v1845_v41  ;;  %v1844_v31 = vadd.f32 %v13749_v60, %v1834_v10 }
 0xbe6   :  { %v1846_v13 = vpack.c.bf16 %v1844_v31, %v1843_v6 }
 0xbe8   :  { %14613 = vmatmul.mubr.msk.bf16.vlgmr.msra.gmra.mrb[32].mxu0 %vm166_vm0, %v1846_v13 }
 0xbe9   :  { %14618 = vmatprep.mubr.msk.bf16.mxu0 %vm16443_vm1, %v20770_v39 }
 0xcbb   :  { %v14614_v48 = vpop.f32.mrb[32].mxu0 }
 0xcbc   :  { %v1905_v25 = vpop.f32.mrb[33].mxu0  ;;  %v1914_v28 = vadd.f32 %v14614_v48, %v13750_v14 }
 0xcbd   :  { %v14615_v26 = vpop.f32.mrb[34].mxu0  ;;  %v1906_v30 = vadd.f32 %v13750_v14, %v1905_v25 }
 0xcbe   :  { %v1917_v21 = vadd.f32 %v14615_v26, %v13750_v14  ;;  %v1908_v38 = vpop.f32.mrb[35].mxu0 }
 0xcbf   :  { %v1909_v46 = vadd.f32 %v13750_v14, %v1908_v38 }
 0xcc0   :  { %v15578_v32 = vpack.i.bf16 %v1917_v21, %v1914_v28  ;;  %v17144_v33 = vpack.c.bf16 %v1917_v21, %v1914_v28 }
 0xcc1   :  { %v15573_v2 = vpack.i.bf16 %v1909_v46, %v1906_v30  ;;  %v17146_v23 = vpack.c.bf16 %v1909_v46, %v1906_v30 }
 0xcc2   :  { %15579 = vrot.lane.b32.xlu1 %v15578_v32, %s20819_s2 }
 0xcc3   :  { %15574 = vrot.lane.b32.xlu0 %v15573_v2, %s20819_s2 }
 0xcc6   :  { %15584 = vrot.lane.b32.xlu1 %v15573_v2, %s20820_s6 }
 0xcc7   :  { %15594 = vrot.lane.b32.xlu0 %v15573_v2, %s20821_s4 }
 0xcca   :  { %15589 = vrot.lane.b32.xlu1 %v15578_v32, %s20820_s6 }
 0xccb   :  { %1969 = vrot.lane.b32.xlu0 %v17146_v23, %s20822_s27 }
 0xcce   :  { %15599 = vrot.lane.b32.xlu1 %v15578_v32, %s20821_s4 }
 0xcd2   :  { %2019 = vrot.lane.b32.xlu1 %v17144_v33, %s20822_s27 }
 0xd34   :  { %v15580_v29 = vpop.permute.xlu1 %15579 }
 0xd35   :  { %v15582_v22 = vunpack.i.h.bf16 %v15580_v29  ;;  %v15581_v0 = vunpack.i.l.bf16 %v15580_v29  ;;  %v15575_v53 = vpop.permute.xlu0 %15574 }
 0xd36   :  { %v15577_v27 = vunpack.i.h.bf16 %v15575_v53  ;;  %v15576_v34 = vunpack.i.l.bf16 %v15575_v53 }
 0xd37   :  { %v17158_v1 = vpack.c.bf16 %v15582_v22, %v15581_v0 }
 0xd38   :  { %v15585_v24 = vpop.permute.xlu1 %15584  ;;  %v17160_v47 = vpack.c.bf16 %v15577_v27, %v15576_v34 }
 0xd39   :  { %v15587_v36 = vunpack.i.h.bf16 %v15585_v24  ;;  %v15586_v54 = vunpack.i.l.bf16 %v15585_v24  ;;  %2119 = vrot.lane.b32.xlu1 %v17158_v1, %s20822_s27  ;;  %v15595_v40 = vpop.permute.xlu0 %15594 }
 0xd3a   :  { %2069 = vrot.lane.b32.xlu0 %v17160_v47, %s20822_s27  ;;  %v15597_v61 = vunpack.i.h.bf16 %v15595_v40  ;;  %v15596_v3 = vunpack.i.l.bf16 %v15595_v40 }
 0xd3b   :  { %v17166_v44 = vpack.c.bf16 %v15587_v36, %v15586_v54 }
 0xd3c   :  { %v15590_v50 = vpop.permute.xlu1 %15589  ;;  %v17173_v58 = vpack.c.bf16 %v15597_v61, %v15596_v3 }
 0xd3d   :  { %v15592_v43 = vunpack.i.h.bf16 %v15590_v50  ;;  %v15591_v62 = vunpack.i.l.bf16 %v15590_v50  ;;  %v1970_v37 = vpop.permute.xlu0 %1969 }
 0xd3e   :  { %v1975_v5 = vsel %vm366_vm2, %v1970_v37, 0  ;;  %2169 = vrot.lane.b32.xlu0 %v17166_v44, %s20822_s27 }
 0xd3f   :  { %14617 = vmatpush3.bf16.xpose.msra.mxu0 %v1975_v5  ;;  %v17171_v51 = vpack.c.bf16 %v15592_v43, %v15591_v62 }
 0xd40   :  { %v15600_v56 = vpop.permute.xlu1 %15599  ;;  %14622 = vmatprep.subr.bf16.mxu0 %v20770_v39 }
 0xd41   :  { %v15602_v60 = vunpack.i.h.bf16 %v15600_v56  ;;  %v15601_v9 = vunpack.i.l.bf16 %v15600_v56  ;;  %2219 = vrot.lane.b32.xlu1 %v17171_v51, %s20822_s27 }
 0xd42   :  { %2269 = vrot.lane.b32.xlu0 %v17173_v58, %s20822_s27 }
 0xd43   :  { %v17180_v17 = vpack.c.bf16 %v15602_v60, %v15601_v9 }
 0xd44   :  { %v2020_v35 = vpop.permute.xlu1 %2019 }
 0xd45   :  { %v2025_v49 = vsel %vm366_vm2, %v2020_v35, 0  ;;  %2319 = vrot.lane.b32.xlu1 %v17180_v17, %s20822_s27 }
 0xd46   :  { %14619 = vmatmul.mubr.msk.bf16.vlgmr.msra.gmra.mrb[36].mxu0 %vm366_vm2, %v17146_v23 }
 0xd47   :  { %14623 = vmatpush3.bf16.xpose.msra.mxu0 %v2025_v49  ;;  %14624 = vmatprep.mubr.msk.bf16.mxu0 %vm16443_vm1, %v20770_v39 }
 0xd48   :  { %14628 = vmatprep.subr.bf16.mxu0 %v20770_v39 }
 0xd4e   :  { %14625 = vmatmul.mubr.msk.bf16.vlgmr.msra.gmra.mrb[40].mxu0 %vm366_vm2, %v17144_v33 }
 0xd4f   :  { %14630 = vmatprep.mubr.msk.bf16.mxu0 %vm16443_vm1, %v20770_v39 }
 0xdab   :  { %v2120_v52 = vpop.permute.xlu1 %2119 }
 0xdac   :  { %v2125_v45 = vsel %vm366_vm2, %v2120_v52, 0  ;;  %v2070_v55 = vpop.permute.xlu0 %2069 }
 0xdad   :  { %v2075_v57 = vsel %vm366_vm2, %v2070_v55, 0  ;;  %14635 = vmatpush3.bf16.xpose.msra.mxu1 %v2125_v45 }
 0xdae   :  { %14629 = vmatpush3.bf16.xpose.msra.mxu0 %v2075_v57  ;;  %14646 = vmatprep.subr.bf16.mxu1 %v20770_v39 }
 0xdaf   :  { %14640 = vmatprep.subr.bf16.mxu0 %v20770_v39 }
 0xdb0   :  { %v2170_v59 = vpop.permute.xlu0 %2169 }
 0xdb1   :  { %v2175_v41 = vsel %vm366_vm2, %v2170_v59, 0 }
 0xdb3   :  { %v2220_v63 = vpop.permute.xlu1 %2219 }
 0xdb4   :  { %v2225_v10 = vsel %vm366_vm2, %v2220_v63, 0  ;;  %14637 = vmatmul.mubr.msk.bf16.vlgmr.msra.gmra.mrb[48].mxu1 %vm366_vm2, %v17158_v1  ;;  %v2270_v31 = vpop.permute.xlu0 %2269 }
 0xdb5   :  { %14631 = vmatmul.mubr.msk.bf16.vlgmr.msra.gmra.mrb[44].mxu0 %vm366_vm2, %v17160_v47  ;;  %14647 = vmatpush3.bf16.xpose.msra.mxu1 %v2225_v10  ;;  %v2275_v48 = vsel %vm366_vm2, %v2270_v31, 0 }
 0xdb6   :  { %14641 = vmatpush3.bf16.xpose.msra.mxu0 %v2175_v41  ;;  %14648 = vmatprep.mubr.msk.bf16.mxu1 %vm16443_vm1, %v20770_v39 }
 0xdb7   :  { %14642 = vmatprep.mubr.msk.bf16.mxu0 %vm16443_vm1, %v20770_v39  ;;  %14658 = vmatprep.subr.bf16.mxu1 %v20770_v39  ;;  %v2320_v6 = vpop.permute.xlu1 %2319 }
 0xdb8   :  { %14652 = vmatprep.subr.bf16.mxu0 %v20770_v39  ;;  %v2325_v13 = vsel %vm366_vm2, %v2320_v6, 0 }
 0xdbc   :  { %14649 = vmatmul.mubr.msk.bf16.vlgmr.msra.gmra.mrb[52].mxu1 %vm366_vm2, %v17171_v51 }
 0xdbd   :  { %14643 = vmatmul.mubr.msk.bf16.vlgmr.msra.gmra.mrb[48].mxu0 %vm366_vm2, %v17166_v44  ;;  %14659 = vmatpush3.bf16.xpose.msra.mxu1 %v2325_v13 }
 0xdbe   :  { %14653 = vmatpush3.bf16.xpose.msra.mxu0 %v2275_v48  ;;  %14660 = vmatprep.mubr.msk.bf16.mxu1 %vm16443_vm1, %v20770_v39 }
 0xdbf   :  { %14654 = vmatprep.mubr.msk.bf16.mxu0 %vm16443_vm1, %v20770_v39  ;;  %14670 = vmatprep.subr.bf16.mxu1 %v20770_v39 }
 0xdc0   :  { %14664 = vmatprep.subr.bf16.mxu0 %v20770_v39 }
 0xdc4   :  { %14661 = vmatmul.mubr.msk.bf16.vlgmr.msra.gmra.mrb[56].mxu1 %vm366_vm2, %v17180_v17 }
 0xdc5   :  { %14655 = vmatmul.mubr.msk.bf16.vlgmr.msra.gmra.mrb[52].mxu0 %vm366_vm2, %v17173_v58  ;;  %14672 = vmatprep.mubr.msk.bf16.mxu1 %vm16443_vm1, %v20770_v39 }
 0xdc6   :  { %14666 = vmatprep.mubr.msk.bf16.mxu0 %vm16443_vm1, %v20770_v39 }
 0xe19   :  { %v17230_v14 = vpop.f32.mrb[36].mxu0 }
 0xe1a   :  { %v14620_v25 = vpop.f32.mrb[37].mxu0  ;;  %v2368_v26 = vsel %vm764_vm3, %v17230_v14, -inf }
 0xe1b   :  { %2369 = vmax.xlane.f32.xlu0 %v2368_v26  ;;  %v17234_v28 = vpop.f32.mrb[38].mxu0 }
 0xe1c   :  { %v14621_v21 = vpop.f32.mrb[39].mxu0  ;;  %v2371_v38 = vsel %vm764_vm3, %v17234_v28, -inf }
 0xe1d   :  { %2372 = vmax.xlane.f32.xlu1 %v2371_v38 }
 0xe21   :  { %v17238_v30 = vpop.f32.mrb[40].mxu0 }
 0xe22   :  { %v14626_v46 = vpop.f32.mrb[41].mxu0  ;;  %v2374_v32 = vsel %vm764_vm3, %v17238_v30, -inf }
 0xe23   :  { %2375 = vmax.xlane.f32.xlu0 %v2374_v32  ;;  %v17242_v2 = vpop.f32.mrb[42].mxu0 }
 0xe24   :  { %v14627_v29 = vpop.f32.mrb[43].mxu0  ;;  %v2377_v22 = vsel %vm764_vm3, %v17242_v2, -inf }
 0xe27   :  { %2378 = vmax.xlane.f32.xlu0 %v2377_v22 }
 0xe87   :  { %v17246_v0 = vpop.f32.mrb[48].mxu1 }
 0xe88   :  { %v17248_v53 = vpop.f32.mrb[44].mxu0  ;;  %v14638_v27 = vpop.f32.mrb[49].mxu1  ;;  %v2386_v34 = vsel %vm764_vm3, %v17246_v0, -inf }
 0xe89   :  { %v17252_v24 = vpop.f32.mrb[50].mxu1  ;;  %2387 = vmax.xlane.f32.xlu0 %v2386_v34  ;;  %v14632_v36 = vpop.f32.mrb[45].mxu0  ;;  %v2380_v50 = vsel %vm764_vm3, %v17248_v53, -inf }
 0xe8a   :  { %v17254_v54 = vpop.f32.mrb[46].mxu0  ;;  %v14639_v40 = vpop.f32.mrb[51].mxu1  ;;  %v2389_v61 = vsel %vm764_vm3, %v17252_v24, -inf }
 0xe8b   :  { %2390 = vmax.xlane.f32.xlu1 %v2389_v61  ;;  %v14633_v3 = vpop.f32.mrb[47].mxu0  ;;  %v2383_v43 = vsel %vm764_vm3, %v17254_v54, -inf }
 0xe8d   :  { %2381 = vmax.xlane.f32.xlu0 %v2380_v50 }
 0xe8f   :  { %v17262_v62 = vpop.f32.mrb[52].mxu1  ;;  %2384 = vmax.xlane.f32.xlu1 %v2383_v43 }
 0xe90   :  { %v17264_v37 = vpop.f32.mrb[48].mxu0  ;;  %v14650_v5 = vpop.f32.mrb[53].mxu1  ;;  %v2398_v56 = vsel %vm764_vm3, %v17262_v62, -inf }
 0xe91   :  { %v17268_v60 = vpop.f32.mrb[54].mxu1  ;;  %2399 = vmax.xlane.f32.xlu0 %v2398_v56  ;;  %v14644_v9 = vpop.f32.mrb[49].mxu0  ;;  %v2392_v55 = vsel %vm764_vm3, %v17264_v37, -inf }
 0xe92   :  { %v17270_v35 = vpop.f32.mrb[50].mxu0  ;;  %v14651_v49 = vpop.f32.mrb[55].mxu1  ;;  %v2401_v52 = vsel %vm764_vm3, %v17268_v60, -inf }
 0xe93   :  { %2402 = vmax.xlane.f32.xlu1 %v2401_v52  ;;  %v14645_v45 = vpop.f32.mrb[51].mxu0  ;;  %v2395_v57 = vsel %vm764_vm3, %v17270_v35, -inf }
 0xe95   :  { %2393 = vmax.xlane.f32.xlu0 %v2392_v55 }
 0xe97   :  { %v17278_v59 = vpop.f32.mrb[56].mxu1  ;;  %2396 = vmax.xlane.f32.xlu1 %v2395_v57 }
 0xe98   :  { %v17280_v63 = vpop.f32.mrb[52].mxu0  ;;  %v14662_v10 = vpop.f32.mrb[57].mxu1  ;;  %v2410_v41 = vsel %vm764_vm3, %v17278_v59, -inf }
 0xe99   :  { %v17284_v6 = vpop.f32.mrb[58].mxu1  ;;  %2411 = vmax.xlane.f32.xlu0 %v2410_v41  ;;  %v14656_v31 = vpop.f32.mrb[53].mxu0  ;;  %v2404_v26 = vsel %vm764_vm3, %v17280_v63, -inf }
 0xe9a   :  { %v17286_v13 = vpop.f32.mrb[54].mxu0  ;;  %v14663_v48 = vpop.f32.mrb[59].mxu1 }
 0xe9b   :  { %v14657_v25 = vpop.f32.mrb[55].mxu0 }
 0xe9d   :  { %2405 = vmax.xlane.f32.xlu0 %v2404_v26 }
 0xea8   :  { %2599 = vrot.lane.b32.xlu1 %v17144_v33, %s20823_s26  ;;  %v2370_v21 = vpop.xlane.xlu0 %2369 }
 0xea9   :  { %v2416_v38 = vsub.f32 %v17230_v14, %v2370_v21  ;;  %v2407_v14 = vsel %vm764_vm3, %v17286_v13, -inf }
 0xeaa   :  { %v2373_v22 = vpop.xlane.xlu1 %2372 }
 0xeab   :  { %v2432_v32 = vmul.f32 1.442695, %v2416_v38  ;;  %v2417_v27 = vsub.f32 %v17234_v28, %v2373_v22 }
 0xeac   :  { %2646 = vrot.lane.b32.xlu1 %v17160_v47, %s20823_s26 }
 0xead   :  { %16045 = vpow2.f32 %v2432_v32  ;;  %v2434_v36 = vmul.f32 1.442695, %v2417_v27 }
 0xeb0   :  { %2693 = vrot.lane.b32.xlu1 %v17158_v1, %s20823_s26  ;;  %v2376_v46 = vpop.xlane.xlu0 %2375  ;;  %v2413_v1 = vsel %vm764_vm3, %v17284_v6, -inf }
 0xeb1   :  { %v2418_v29 = vsub.f32 %v17238_v30, %v2376_v46 }
 0xeb3   :  { %2552 = vrot.lane.b32.xlu0 %v17146_v23, %s20823_s26  ;;  %v2436_v33 = vmul.f32 1.442695, %v2418_v29 }
 0xeb4   :  { %v2379_v34 = vpop.xlane.xlu0 %2378 }
 0xeb5   :  { %16047 = vpow2.f32 %v2436_v33  ;;  %v2419_v40 = vsub.f32 %v17242_v2, %v2379_v34 }
 0xeb6   :  { %16049 = vpow2.f32 %v2434_v36 }
 0xeb7   :  { %2740 = vrot.lane.b32.xlu0 %v17166_v44, %s20823_s26  ;;  %v17302_v47 = vpop.eup %16045  ;;  %v2438_v61 = vmul.f32 1.442695, %v2419_v40 }
 0xeb8   :  { %v2464_v23 = vsel %vm764_vm3, %v17302_v47, 0.0 }
 0xeb9   :  { %16051 = vpow2.f32 %v2438_v61 }
 0xebf   :  { %v17308_v44 = vpop.eup %16047 }
 0xec0   :  { %v2470_v30 = vsel %vm764_vm3, %v17308_v44, 0.0  ;;  %v17318_v3 = vpop.eup %16049 }
 0xec1   :  { %v2467_v50 = vsel %vm764_vm3, %v17318_v3, 0.0 }
 0xec3   :  { %v17322_v43 = vpop.eup %16051 }
 0xed4   :  { %2414 = vmax.xlane.f32.xlu1 %v2413_v1 }
 0xed6   :  { %2465 = vadd.xlane.f32.xlu0 %v2464_v23 }
 0xed8   :  { %2408 = vmax.xlane.f32.xlu1 %v2407_v14 }
 0xeda   :  { %2471 = vadd.xlane.f32.xlu0 %v2470_v30 }
 0xee9   :  { %2787 = vrot.lane.b32.xlu1 %v17171_v51, %s20823_s26  ;;  %v2473_v51 = vsel %vm764_vm3, %v17322_v43, 0.0 }
 0xf0d   :  { %2468 = vadd.xlane.f32.xlu1 %v2467_v50 }
 0xf11   :  { %2474 = vadd.xlane.f32.xlu1 %v2473_v51 }
 0xf16   :  { %v2388_v28 = vpop.xlane.xlu0 %2387 }
 0xf17   :  { %v2422_v5 = vsub.f32 %v17246_v0, %v2388_v28 }
 0xf18   :  { %v2391_v56 = vpop.xlane.xlu1 %2390 }
 0xf19   :  { %v2444_v2 = vmul.f32 1.442695, %v2422_v5  ;;  %v2423_v9 = vsub.f32 %v17252_v24, %v2391_v56 }
 0xf1a   :  { %v2382_v49 = vpop.xlane.xlu0 %2381 }
 0xf1b   :  { %16053 = vpow2.f32 %v2444_v2  ;;  %v2446_v52 = vmul.f32 1.442695, %v2423_v9  ;;  %v2420_v45 = vsub.f32 %v17248_v53, %v2382_v49 }
 0xf1c   :  { %v2385_v55 = vpop.xlane.xlu1 %2384 }
 0xf1d   :  { %16055 = vpow2.f32 %v2446_v52  ;;  %v2440_v57 = vmul.f32 1.442695, %v2420_v45  ;;  %v2421_v10 = vsub.f32 %v17254_v54, %v2385_v55 }
 0xf1e   :  { %v2400_v41 = vpop.xlane.xlu0 %2399 }
 0xf1f   :  { %16057 = vpow2.f32 %v2440_v57  ;;  %v2442_v31 = vmul.f32 1.442695, %v2421_v10  ;;  %v2426_v48 = vsub.f32 %v17262_v62, %v2400_v41 }
 0xf20   :  { %v2403_v0 = vpop.xlane.xlu1 %2402 }
 0xf21   :  { %16059 = vpow2.f32 %v2442_v31  ;;  %v2452_v25 = vmul.f32 1.442695, %v2426_v48  ;;  %v2427_v24 = vsub.f32 %v17268_v60, %v2403_v0 }
 0xf22   :  { %v2394_v26 = vpop.xlane.xlu0 %2393 }
 0xf23   :  { %16061 = vpow2.f32 %v2452_v25  ;;  %v2454_v21 = vmul.f32 1.442695, %v2427_v24  ;;  %v2424_v53 = vsub.f32 %v17264_v37, %v2394_v26 }
 0xf24   :  { %v2397_v38 = vpop.xlane.xlu1 %2396 }
 0xf25   :  { %v17333_v46 = vpop.eup %16053  ;;  %16063 = vpow2.f32 %v2454_v21  ;;  %v2448_v54 = vmul.f32 1.442695, %v2424_v53  ;;  %v2425_v32 = vsub.f32 %v17270_v35, %v2397_v38 }
 0xf26   :  { %v2412_v29 = vpop.xlane.xlu0 %2411  ;;  %v2482_v62 = vsel %vm764_vm3, %v17333_v46, 0.0 }
 0xf27   :  { %v17338_v33 = vpop.eup %16055  ;;  %16065 = vpow2.f32 %v2448_v54  ;;  %v2450_v60 = vmul.f32 1.442695, %v2425_v32  ;;  %v2430_v1 = vsub.f32 %v17278_v59, %v2412_v29  ;;  %2483 = vadd.xlane.f32.xlu0 %v2482_v62 }
 0xf28   :  { %v2600_v23 = vpop.permute.xlu1 %2599  ;;  %v2485_v37 = vsel %vm764_vm3, %v17338_v33, 0.0 }
 0xf29   :  { %v17343_v14 = vpop.eup %16057  ;;  %16067 = vpow2.f32 %v2450_v60  ;;  %v2460_v30 = vmul.f32 1.442695, %v2430_v1  ;;  %14671 = vmatpush3.bf16.msra.mxu1 %v2600_v23  ;;  %2486 = vadd.xlane.f32.xlu1 %v2485_v37 }
 0xf2a   :  { %v2406_v35 = vpop.xlane.xlu0 %2405  ;;  %v2476_v22 = vsel %vm764_vm3, %v17343_v14, 0.0  ;;  %14682 = vmatprep.subr.bf16.mxu1 %v20770_v39 }
 0xf2b   :  { %v17348_v27 = vpop.eup %16059  ;;  %16069 = vpow2.f32 %v2460_v30  ;;  %v2428_v59 = vsub.f32 %v17280_v63, %v2406_v35  ;;  %2477 = vadd.xlane.f32.xlu0 %v2476_v22 }
 0xf2c   :  { %v2479_v34 = vsel %vm764_vm3, %v17348_v27, 0.0  ;;  %v2647_v55 = vpop.permute.xlu1 %2646 }
 0xf2d   :  { %v17353_v36 = vpop.eup %16061  ;;  %v2456_v40 = vmul.f32 1.442695, %v2428_v59  ;;  %2480 = vadd.xlane.f32.xlu1 %v2479_v34 }
 0xf2e   :  { %v2553_v61 = vpop.permute.xlu0 %2552  ;;  %v2494_v50 = vsel %vm764_vm3, %v17353_v36, 0.0 }
 0xf2f   :  { %v17357_v51 = vpop.eup %16063  ;;  %16071 = vpow2.f32 %v2456_v40  ;;  %2495 = vadd.xlane.f32.xlu0 %v2494_v50  ;;  %14665 = vmatpush3.bf16.msra.mxu0 %v2553_v61 }
 0xf30   :  { %v2497_v63 = vsel %vm764_vm3, %v17357_v51, 0.0  ;;  %14676 = vmatprep.subr.bf16.mxu0 %v20770_v39  ;;  %v2694_v57 = vpop.permute.xlu1 %2693 }
 0xf31   :  { %v17362_v28 = vpop.eup %16065  ;;  %2498 = vadd.xlane.f32.xlu1 %v2497_v63 }
 0xf32   :  { %v2488_v5 = vsel %vm764_vm3, %v17362_v28, 0.0 }
 0xf33   :  { %v17366_v56 = vpop.eup %16067  ;;  %2489 = vadd.xlane.f32.xlu0 %v2488_v5 }
 0xf34   :  { %v2491_v2 = vsel %vm764_vm3, %v17366_v56, 0.0 }
 0xf35   :  { %v17370_v9 = vpop.eup %16069  ;;  %2492 = vadd.xlane.f32.xlu1 %v2491_v2 }
 0xf36   :  { %v2506_v49 = vsel %vm764_vm3, %v17370_v9, 0.0 }
 0xf37   :  { %2507 = vadd.xlane.f32.xlu0 %v2506_v49 }
 0xf39   :  { %v17374_v52 = vpop.eup %16071 }
 0xf3a   :  { %v2500_v45 = vsel %vm764_vm3, %v17374_v52, 0.0 }
 0xf3b   :  { %2501 = vadd.xlane.f32.xlu0 %v2500_v45 }
 0xf51   :  { %2834 = vrot.lane.b32.xlu0 %v17173_v58, %s20823_s26 }
 0xf61   :  { %v2415_v10 = vpop.xlane.xlu1 %2414 }
 0xf62   :  { %v2431_v41 = vsub.f32 %v17284_v6, %v2415_v10  ;;  %v17392_v6 = vpop.permute.xlu0 %2740 }
 0xf64   :  { %v2462_v31 = vmul.f32 1.442695, %v2431_v41 }
 0xf65   :  { %v2409_v48 = vpop.xlane.xlu1 %2408 }
 0xf66   :  { %16073 = vpow2.f32 %v2462_v31  ;;  %v2429_v0 = vsub.f32 %v17286_v13, %v2409_v48  ;;  %v2466_v13 = vpop.xlane.xlu0 %2465 }
 0xf68   :  { %v2458_v25 = vmul.f32 1.442695, %v2429_v0 }
 0xf69   :  { %v2788_v53 = vpop.permute.xlu1 %2787 }
 0xf6a   :  { %16075 = vpow2.f32 %v2458_v25  ;;  %v2472_v38 = vpop.xlane.xlu0 %2471 }
 0xf6b   :  { %16077 = vrcp.f32 %v2466_v13 }
 0xf70   :  { %v17382_v24 = vpop.eup %16073 }
 0xf71   :  { %v2509_v26 = vsel %vm764_vm3, %v17382_v24, 0.0 }
 0xf72   :  { %2510 = vadd.xlane.f32.xlu1 %v2509_v26 }
 0xf74   :  { %v17386_v21 = vpop.eup %16075 }
 0xf75   :  { %v2503_v58 = vsel %vm764_vm3, %v17386_v21, 0.0  ;;  %v16078_v29 = vpop.eup %16077 }
 0xf76   :  { %2504 = vadd.xlane.f32.xlu1 %v2503_v58  ;;  %v2513_v60 = vmul.f32 %v16078_v29, %v17302_v47 }
 0xf87   :  { %2881 = vrot.lane.b32.xlu1 %v17180_v17, %s20823_s26 }
 0xf9a   :  { %v2469_v54 = vpop.xlane.xlu1 %2468 }
 0xf9b   :  { %16079 = vrcp.f32 %v2469_v54 }
 0xf9c   :  { %16081 = vrcp.f32 %v2472_v38 }
 0xf9e   :  { %v2475_v32 = vpop.xlane.xlu1 %2474 }
 0xf9f   :  { %16083 = vrcp.f32 %v2475_v32 }
 0xfa5   :  { %v16080_v62 = vpop.eup %16079 }
 0xfa6   :  { %v2515_v1 = vmul.f32 %v16080_v62, %v17318_v3  ;;  %v16082_v23 = vpop.eup %16081 }
 0xfa7   :  { %v2517_v30 = vmul.f32 %v16082_v23, %v17308_v44 }
 0xfa8   :  { %v2544_v37 = vpack.c.bf16 %v2515_v1, %v2513_v60 }
 0xfa9   :  { %v16084_v17 = vpop.eup %16083 }
 0xfaa   :  { %v2519_v35 = vmul.f32 %v16084_v17, %v17322_v43  ;;  %14667 = vmatmul.mubr.msk.bf16.vlgmr.msra.gmra.mrb[56].mxu0 %vm764_vm3, %v2544_v37 }
 0xfab   :  { %14677 = vmatpush3.bf16.msra.mxu0 %v2647_v55  ;;  %14678 = vmatprep.mubr.msk.bf16.mxu0 %vm16443_vm1, %v20770_v39 }
 0xfac   :  { %v2545_v22 = vpack.c.bf16 %v2519_v35, %v2517_v30  ;;  %14688 = vmatprep.subr.bf16.mxu0 %v20770_v39 }
 0xfae   :  { %14673 = vmatmul.mubr.msk.bf16.vlgmr.msra.gmra.mrb[60].mxu1 %vm764_vm3, %v2545_v22 }
 0xfaf   :  { %14683 = vmatpush3.bf16.msra.mxu1 %v2694_v57  ;;  %14684 = vmatprep.mubr.msk.bf16.mxu1 %vm16443_vm1, %v20770_v39 }
 0xfb0   :  { %14694 = vmatprep.subr.bf16.mxu1 %v20770_v39 }
 0xfb4   :  { %v2484_v47 = vpop.xlane.xlu0 %2483 }
 0xfb5   :  { %16085 = vrcp.f32 %v2484_v47 }
 0xfb6   :  { %v2487_v44 = vpop.xlane.xlu1 %2486 }
 0xfb7   :  { %16087 = vrcp.f32 %v2487_v44 }
 0xfb8   :  { %v2478_v3 = vpop.xlane.xlu0 %2477 }
 0xfb9   :  { %16089 = vrcp.f32 %v2478_v3 }
 0xfba   :  { %v2481_v43 = vpop.xlane.xlu1 %2480 }
 0xfbb   :  { %16091 = vrcp.f32 %v2481_v43 }
 0xfbc   :  { %v2496_v59 = vpop.xlane.xlu0 %2495 }
 0xfbd   :  { %16093 = vrcp.f32 %v2496_v59 }
 0xfbe   :  { %v2499_v34 = vpop.xlane.xlu1 %2498 }
 0xfbf   :  { %v16086_v40 = vpop.eup %16085  ;;  %16095 = vrcp.f32 %v2499_v34 }
 0xfc0   :  { %v2490_v61 = vpop.xlane.xlu0 %2489  ;;  %v2525_v63 = vmul.f32 %v16086_v40, %v17333_v46 }
 0xfc1   :  { %v16088_v50 = vpop.eup %16087  ;;  %16097 = vrcp.f32 %v2490_v61 }
 0xfc2   :  { %v2527_v5 = vmul.f32 %v16088_v50, %v17338_v33  ;;  %v2493_v2 = vpop.xlane.xlu1 %2492 }
 0xfc3   :  { %v16090_v49 = vpop.eup %16089  ;;  %16099 = vrcp.f32 %v2493_v2 }
 0xfc4   :  { %v2547_v45 = vpack.c.bf16 %v2527_v5, %v2525_v63  ;;  %v2521_v57 = vmul.f32 %v16090_v49, %v17343_v14  ;;  %v2508_v41 = vpop.xlane.xlu0 %2507 }
 0xfc5   :  { %v16092_v55 = vpop.eup %16091  ;;  %16101 = vrcp.f32 %v2508_v41 }
 0xfc6   :  { %v2523_v10 = vmul.f32 %v16092_v55, %v17348_v27  ;;  %14685 = vmatmul.mubr.msk.bf16.vlgmr.msra.gmra.mrb[64].mxu1 %vm764_vm3, %v2547_v45 }
 0xfc7   :  { %v16094_v31 = vpop.eup %16093  ;;  %14695 = vmatpush3.bf16.msra.mxu1 %v2788_v53  ;;  %14696 = vmatprep.mubr.msk.bf16.mxu1 %vm16443_vm1, %v20770_v39 }
 0xfc8   :  { %v2546_v46 = vpack.c.bf16 %v2523_v10, %v2521_v57  ;;  %14706 = vmatprep.subr.bf16.mxu1 %v20770_v39  ;;  %v2533_v48 = vmul.f32 %v16094_v31, %v17353_v36  ;;  %v2502_v27 = vpop.xlane.xlu0 %2501 }
 0xfc9   :  { %v16096_v33 = vpop.eup %16095 }
 0xfca   :  { %v2535_v0 = vmul.f32 %v16096_v33, %v17357_v51  ;;  %14679 = vmatmul.mubr.msk.bf16.vlgmr.msra.gmra.mrb[60].mxu0 %vm764_vm3, %v2546_v46  ;;  %v15889_v33 = vld [vmem:[%s20814_s12 + $0x10] sm:$0xff]  }
 0xfcb   :  { %v16098_v14 = vpop.eup %16097  ;;  %14689 = vmatpush3.bf16.msra.mxu0 %v17392_v6  ;;  %14690 = vmatprep.mubr.msk.bf16.mxu0 %vm16443_vm1, %v20770_v39 }
 0xfcc   :  { %v2549_v25 = vpack.c.bf16 %v2535_v0, %v2533_v48  ;;  %14700 = vmatprep.subr.bf16.mxu0 %v20770_v39  ;;  %v2529_v58 = vmul.f32 %v16098_v14, %v17362_v28  ;;  %v2835_v51 = vpop.permute.xlu0 %2834  ;;  %v15890_v48 = vld [vmem:[%s20814_s12 + $0x18] sm:$0xff]  }
 0xfcd   :  { %v16100_v26 = vpop.eup %16099 }
 0xfce   :  { %v2531_v13 = vmul.f32 %v16100_v26, %v17366_v56  ;;  %14697 = vmatmul.mubr.msk.bf16.vlgmr.msra.gmra.mrb[68].mxu1 %vm764_vm3, %v2549_v25 }
 0xfcf   :  { %14708 = vmatprep.mubr.msk.bf16.mxu1 %vm16443_vm1, %v20770_v39  ;;  %v16102_v53 = vpop.eup %16101 }
 0xfd0   :  { %v2548_v36 = vpack.c.bf16 %v2531_v13, %v2529_v58  ;;  %v2541_v54 = vmul.f32 %v16102_v53, %v17370_v9 }
 0xfd2   :  { %14691 = vmatmul.mubr.msk.bf16.vlgmr.msra.gmra.mrb[64].mxu0 %vm764_vm3, %v2548_v36 }
 0xfd3   :  { %14701 = vmatpush3.bf16.msra.mxu0 %v2835_v51  ;;  %14702 = vmatprep.mubr.msk.bf16.mxu0 %vm16443_vm1, %v20770_v39 }
 0xfd4   :  { %14712 = vmatprep.subr.bf16.mxu0 %v15889_v33 }
 0xfff   :  { %v2511_v6 = vpop.xlane.xlu1 %2510 }
0x1000   :  { %16103 = vrcp.f32 %v2511_v6 }
0x1001   :  { %16105 = vrcp.f32 %v2502_v27 }
0x1003   :  { %v2505_v28 = vpop.xlane.xlu1 %2504 }
0x1004   :  { %16107 = vrcp.f32 %v2505_v28 }
0x1007   :  { %v2882_v56 = vpop.permute.xlu1 %2881 }
0x1008   :  { %14707 = vmatpush3.bf16.msra.mxu1 %v2882_v56 }
0x100a   :  { %v16104_v38 = vpop.eup %16103 }
0x100b   :  { %v2543_v32 = vmul.f32 %v16104_v38, %v17382_v24  ;;  %v16106_v29 = vpop.eup %16105 }
0x100c   :  { %v2537_v1 = vmul.f32 %v16106_v29, %v17374_v52 }
0x100d   :  { %v2551_v62 = vpack.c.bf16 %v2543_v32, %v2541_v54 }
0x100e   :  { %v16108_v60 = vpop.eup %16107 }
0x100f   :  { %v2539_v23 = vmul.f32 %v16108_v60, %v17386_v21  ;;  %14709 = vmatmul.mubr.msk.bf16.vlgmr.msra.gmra.mrb[72].mxu1 %vm764_vm3, %v2551_v62 }
0x1011   :  { %v2550_v37 = vpack.c.bf16 %v2539_v23, %v2537_v1 }
0x1013   :  { %14703 = vmatmul.mubr.msk.bf16.vlgmr.msra.gmra.mrb[68].mxu0 %vm764_vm3, %v2550_v37 }
0x1014   :  { %14713 = vmatpush3.bf16.msra.mxu0 %v15889_v33 }
0x1015   :  { %14714 = vmatprep.subr.bf16.mxu0 %v15890_v48 }
0x1018   :  { %14715 = vmatpush3.bf16.msra.mxu0 %v15890_v48 }
0x107d   :  { %v17435_v17 = vpop.f32.mrb[56].mxu0 }
0x107e   :  { %v14668_v30 = vpop.f32.mrb[57].mxu0 }
0x107f   :  { %v17437_v35 = vpop.f32.mrb[58].mxu0 }
0x1080   :  { %v14669_v9 = vpop.f32.mrb[59].mxu0 }
0x1081   :  { %v2639_v22 = vpop.f32.mrb[60].mxu1 }
0x1082   :  { %v14674_v24 = vpop.f32.mrb[61].mxu1 }
0x1083   :  { %v2642_v47 = vpop.f32.mrb[62].mxu1 }
0x1084   :  { %v14675_v44 = vpop.f32.mrb[63].mxu1 }
0x1099   :  { %v2733_v3 = vpop.f32.mrb[64].mxu1 }
0x109a   :  { %v14686_v43 = vpop.f32.mrb[65].mxu1 }
0x109b   :  { %v2736_v52 = vpop.f32.mrb[66].mxu1 }
0x109c   :  { %v15603_v59 = vpack.i.bf16 %v2736_v52, %v2733_v3  ;;  %v14687_v21 = vpop.f32.mrb[67].mxu1 }
0x109d   :  { %v2686_v34 = vpop.f32.mrb[60].mxu0 }
0x109e   :  { %15604 = vrot.lane.b32.xlu1 %v15603_v59, %s20824_s5  ;;  %v14680_v40 = vpop.f32.mrb[61].mxu0 }
0x109f   :  { %v2689_v61 = vpop.f32.mrb[62].mxu0 }
0x10a0   :  { %v15608_v50 = vpack.i.bf16 %v2689_v61, %v2686_v34  ;;  %v14681_v63 = vpop.f32.mrb[63].mxu0 }
0x10a1   :  { %v2827_v5 = vpop.f32.mrb[68].mxu1 }
0x10a2   :  { %15609 = vrot.lane.b32.xlu0 %v15608_v50, %s20824_s5  ;;  %v14698_v2 = vpop.f32.mrb[69].mxu1 }
0x10a3   :  { %v2830_v49 = vpop.f32.mrb[70].mxu1 }
0x10a4   :  { %v15613_v45 = vpack.i.bf16 %v2830_v49, %v2827_v5  ;;  %v14699_v55 = vpop.f32.mrb[71].mxu1 }
0x10a5   :  { %v2780_v57 = vpop.f32.mrb[64].mxu0 }
0x10a6   :  { %15614 = vrot.lane.b32.xlu1 %v15613_v45, %s20825_s1  ;;  %v14692_v10 = vpop.f32.mrb[65].mxu0 }
0x10a7   :  { %v2783_v41 = vpop.f32.mrb[66].mxu0 }
0x10a8   :  { %v15618_v31 = vpack.i.bf16 %v2783_v41, %v2780_v57  ;;  %v14693_v46 = vpop.f32.mrb[67].mxu0 }
0x10aa   :  { %15619 = vrot.lane.b32.xlu0 %v15618_v31, %s20825_s1 }
0x10e2   :  { %v2921_v0 = vpop.f32.mrb[72].mxu1 }
0x10e3   :  { %v14710_v14 = vpop.f32.mrb[73].mxu1 }
0x10e4   :  { %v2924_v27 = vpop.f32.mrb[74].mxu1 }
0x10e5   :  { %v15628_v25 = vpack.i.bf16 %v2924_v27, %v2921_v0  ;;  %v14711_v26 = vpop.f32.mrb[75].mxu1 }
0x10e6   :  { %v2874_v58 = vpop.f32.mrb[68].mxu0 }
0x10e7   :  { %15629 = vrot.lane.b32.xlu1 %v15628_v25, %s20826_s0  ;;  %v14704_v13 = vpop.f32.mrb[69].mxu0 }
0x10e8   :  { %v2877_v36 = vpop.f32.mrb[70].mxu0 }
0x10e9   :  { %v15623_v51 = vpack.i.bf16 %v2877_v36, %v2874_v58  ;;  %v14705_v6 = vpop.f32.mrb[71].mxu0 }
0x10eb   :  { %15624 = vrot.lane.b32.xlu0 %v15623_v51, %s20826_s0 }
0x1110   :  { %v15605_v28 = vpop.permute.xlu1 %15604 }
0x1111   :  { %v15607_v38 = vunpack.i.h.bf16 %v15605_v28  ;;  %v15606_v54 = vunpack.i.l.bf16 %v15605_v28 }
0x1113   :  { %v2979_v60 = vsel %vm366_vm2, %v2642_v47, %v15607_v38  ;;  %v2978_v1 = vsel %vm366_vm2, %v2639_v22, %v15606_v54 }
0x1114   :  { %v15610_v56 = vpop.permute.xlu0 %15609 }
0x1115   :  { %v15612_v37 = vunpack.i.h.bf16 %v15610_v56  ;;  %v15611_v30 = vunpack.i.l.bf16 %v15610_v56 }
0x1117   :  { %v2977_v22 = vsel %vm366_vm2, %v17437_v35, %v15612_v37  ;;  %v2976_v47 = vsel %vm366_vm2, %v17435_v17, %v15611_v30  ;;  %v13771_v35 = vld [vmem:[%s20815_s29 + $0x1] ss:$0 sm:$0xff] }
0x1118   :  { %v15615_v53 = vpop.permute.xlu1 %15614 }
0x1119   :  { %v15617_v32 = vunpack.i.h.bf16 %v15615_v53  ;;  %v15616_v29 = vunpack.i.l.bf16 %v15615_v53 }
0x111b   :  { %v2983_v44 = vsel %vm764_vm3, %v2979_v60, %v15617_v32  ;;  %v2982_v3 = vsel %vm764_vm3, %v2978_v1, %v15616_v29 }
0x111c   :  { %v15620_v62 = vpop.permute.xlu0 %15619 }
0x111d   :  { %v15622_v43 = vunpack.i.h.bf16 %v15620_v62  ;;  %v15621_v52 = vunpack.i.l.bf16 %v15620_v62 }
0x111f   :  { %v2980_v63 = vsel %vm764_vm3, %v2976_v47, %v15621_v52  ;;  %v2981_v5 = vsel %vm764_vm3, %v2977_v22, %v15622_v43  ;;  %v15895_v43 = vld [vmem:[%s20817_s8 + $0x50] sm:$0xff]   ;;  %v15896_v52 = vld [vmem:[%s20817_s8 + $0x58] sm:$0xff]  }
0x1159   :  { %v15630_v23 = vpop.permute.xlu1 %15629 }
0x115a   :  { %v15632_v9 = vunpack.i.h.bf16 %v15630_v23  ;;  %v15631_v24 = vunpack.i.l.bf16 %v15630_v23 }
0x115c   :  { %v2987_v59 = vsel %vm1381_vm4, %v2983_v44, %v15632_v9  ;;  %v2986_v21 = vsel %vm1381_vm4, %v2982_v3, %v15631_v24  ;;  %v15891_v9 = vld [vmem:[%s20816_s3 + $0x10] sm:$0xff]   ;;  %v15892_v24 = vld [vmem:[%s20816_s3 + $0x18] sm:$0xff]   ;;  %v15893_v44 = vld [vmem:[%s20817_s8 + $0x40] sm:$0xff]  }
0x115d   :  { %v2989_v34 = vpack.c.bf16 %v2987_v59, %v2986_v21  ;;  %v15625_v40 = vpop.permute.xlu0 %15624  ;;  %14720 = vmatprep.subr.bf16.mxu1 %v15891_v9  ;;  %v15894_v3 = vld [vmem:[%s20817_s8 + $0x48] sm:$0xff]   ;;  %14728 = vmatprep.subr.bf16.mxu0 %v15893_v44  ;;  %v15897_v59 = vld [vmem:[%s20817_s8 + $0x60] sm:$0xff]  }
0x115e   :  { %v15627_v61 = vunpack.i.h.bf16 %v15625_v40  ;;  %v15626_v50 = vunpack.i.l.bf16 %v15625_v40  ;;  %14721 = vmatpush3.bf16.msra.mxu1 %v15891_v9  ;;  %v15898_v21 = vld [vmem:[%s20817_s8 + $0x68] sm:$0xff]  }
0x115f   :  { %14722 = vmatprep.subr.bf16.mxu1 %v15892_v24 }
0x1160   :  { %v2984_v2 = vsel %vm1381_vm4, %v2980_v63, %v15626_v50  ;;  %v2985_v49 = vsel %vm1381_vm4, %v2981_v5, %v15627_v61 }
0x1161   :  { %v2988_v45 = vpack.c.bf16 %v2985_v49, %v2984_v2 }
0x1162   :  { %14723 = vmatpush3.bf16.msra.mxu1 %v15892_v24 }
0x1163   :  { %14716 = vmatprep.mubr.msk.bf16.mxu0 %vm166_vm0, %v2988_v45 }
0x1164   :  { %14717 = vmatmul.mubr.msk.bf16.vlgmr.msra.gmra.mrb[72].mxu0 %vm166_vm0, %v2989_v34 }
0x1165   :  { %14729 = vmatpush3.bf16.msra.mxu0 %v15893_v44 }
0x1166   :  { %14730 = vmatprep.subr.bf16.mxu0 %v15894_v3 }
0x1169   :  { %14731 = vmatpush3.bf16.msra.mxu0 %v15894_v3 }
0x116a   :  { %14732 = vmatprep.subr.bf16.mxu0 %v15895_v43 }
0x116d   :  { %14733 = vmatpush3.bf16.msra.mxu0 %v15895_v43 }
0x116e   :  { %14734 = vmatprep.subr.bf16.mxu0 %v15896_v52 }
0x1171   :  { %14735 = vmatpush3.bf16.msra.mxu0 %v15896_v52  ;;  %v13783_v52 = vld [vmem:[%s20726_s13 + $0x1] ss:$0 sm:$0xff] }
0x1172   :  { %14736 = vmatprep.subr.bf16.mxu0 %v15897_v59 }
0x1175   :  { %14737 = vmatpush3.bf16.msra.mxu0 %v15897_v59 }
0x1176   :  { %14738 = vmatprep.subr.bf16.mxu0 %v15898_v21 }
0x1179   :  { %14739 = vmatpush3.bf16.msra.mxu0 %v15898_v21 }
0x1237   :  { %v14718_v17 = vpop.f32.mrb[72].mxu0 }
0x1238   :  { %v3048_v55 = vpop.f32.mrb[73].mxu0  ;;  %v3057_v57 = vadd.f32 %v14718_v17, %v13771_v35 }
0x1239   :  { %v3049_v10 = vadd.f32 %v13771_v35, %v3048_v55  ;;  %v14719_v41 = vpop.f32.mrb[74].mxu0  ;;  %v13776_v55 = vld [vmem:[%s20818_s30 + $0x1] ss:$0 sm:$0xff] }
0x123a   :  { %v3051_v31 = vpop.f32.mrb[75].mxu0  ;;  %v17474_v48 = vadd.f32 %v3057_v57, %v17105_v8  ;;  %v3060_v0 = vadd.f32 %v14719_v41, %v13771_v35 }
0x123b   :  { %v17471_v46 = vadd.f32 %v3049_v10, %v17097_v18  ;;  %v3052_v33 = vadd.f32 %v13771_v35, %v3051_v31 }
0x123c   :  { %v17484_v26 = vadd.f32 %v3060_v0, %v17110_v7  ;;  %v3073_v18 = vsel %vm166_vm0, %v17474_v48, 0.0  ;;  %v13777_v0 = vld [vmem:[%s20724_s9 + $0x1] ss:$0 sm:$0xff]  ;;  %s20827_s9 = sld [smem:[#allocation32_spill]] }
0x123d   :  { %v17477_v14 = vadd.f32 %v3052_v33, %v17102_v42  ;;  %v3067_v27 = vsel %vm166_vm0, %v17471_v46, 0.0 }
0x123e   :  { %3068 = vadd.xlane.f32.xlu0 %v3067_v27  ;;  %v3076_v8 = vsel %vm166_vm0, %v17484_v26, 0.0 }
0x123f   :  { %v3070_v25 = vsel %vm166_vm0, %v17477_v14, 0.0 }
0x1240   :  { %3071 = vadd.xlane.f32.xlu1 %v3070_v25 }
0x1242   :  { %3074 = vadd.xlane.f32.xlu0 %v3073_v18 }
0x1246   :  { %3077 = vadd.xlane.f32.xlu0 %v3076_v8 }
0x12cb   :  { %v3069_v42 = vpop.xlane.xlu0 %3068 }
0x12cc   :  { %v3079_v58 = vmul.f32 0.03125, %v3069_v42 }
0x12cd   :  { %v3072_v13 = vpop.xlane.xlu1 %3071 }
0x12ce   :  { %v17491_v36 = vsub.f32 %v17471_v46, %v3079_v58  ;;  %v3080_v51 = vmul.f32 0.03125, %v3072_v13 }
0x12cf   :  { %v3075_v6 = vpop.xlane.xlu0 %3074 }
0x12d0   :  { %v3084_v28 = vsub.f32 %v17477_v14, %v3080_v51  ;;  %v3081_v7 = vmul.f32 0.03125, %v3075_v6  ;;  %v3087_v56 = vmul.f32 %v17491_v36, %v17491_v36 }
0x12d2   :  { %v17497_v53 = vsub.f32 %v17474_v48, %v3081_v7  ;;  %v3091_v38 = vsel %vm166_vm0, %v3087_v56, 0.0  ;;  %v3088_v54 = vmul.f32 %v3084_v28, %v3084_v28  ;;  %v15899_v56 = vld [vmem:[%s20817_s8 + $0x70] sm:$0xff]  }
0x12d3   :  { %3092 = vadd.xlane.f32.xlu0 %v3091_v38  ;;  %v3078_v32 = vpop.xlane.xlu0 %3077  ;;  %14740 = vmatprep.subr.bf16.mxu0 %v15899_v56  ;;  %v13778_v38 = vld [vmem:[%s20725_s11 + $0x1] ss:$0 sm:$0xff] }
0x12d4   :  { %v3082_v29 = vmul.f32 0.03125, %v3078_v32  ;;  %v3094_v62 = vsel %vm166_vm0, %v3088_v54, 0.0  ;;  %v3089_v60 = vmul.f32 %v17497_v53, %v17497_v53  ;;  %14741 = vmatpush3.bf16.msra.mxu0 %v15899_v56 }
0x12d5   :  { %3095 = vadd.xlane.f32.xlu1 %v3094_v62 }
0x12d6   :  { %v3086_v1 = vsub.f32 %v17484_v26, %v3082_v29  ;;  %v3097_v23 = vsel %vm166_vm0, %v3089_v60, 0.0 }
0x12d7   :  { %3098 = vadd.xlane.f32.xlu0 %v3097_v23 }
0x12d8   :  { %v3090_v37 = vmul.f32 %v3086_v1, %v3086_v1 }
0x12da   :  { %v3100_v30 = vsel %vm166_vm0, %v3090_v37, 0.0 }
0x12db   :  { %3101 = vadd.xlane.f32.xlu1 %v3100_v30 }
0x1360   :  { %v3093_v34 = vpop.xlane.xlu0 %3092 }
0x1361   :  { %v3103_v40 = vmul.f32 0.03125, %v3093_v34 }
0x1362   :  { %v3096_v22 = vpop.xlane.xlu1 %3095 }
0x1363   :  { %v3107_v47 = vadd.f32 1e-05, %v3103_v40  ;;  %v3104_v61 = vmul.f32 0.03125, %v3096_v22 }
0x1364   :  { %v3099_v50 = vpop.xlane.xlu0 %3098 }
0x1365   :  { %16109 = vrsqrt.f32 %v3107_v47  ;;  %v3108_v63 = vadd.f32 1e-05, %v3104_v61  ;;  %v3105_v5 = vmul.f32 0.03125, %v3099_v50 }
0x1367   :  { %16111 = vrsqrt.f32 %v3108_v63  ;;  %v3109_v2 = vadd.f32 1e-05, %v3105_v5 }
0x1368   :  { %v3102_v49 = vpop.xlane.xlu1 %3101 }
0x1369   :  { %16113 = vrsqrt.f32 %v3109_v2  ;;  %v3106_v45 = vmul.f32 0.03125, %v3102_v49 }
0x136b   :  { %v3110_v35 = vadd.f32 1e-05, %v3106_v45 }
0x136d   :  { %16115 = vrsqrt.f32 %v3110_v35  ;;  %v17560_v35 = vcombine.high %v16618_v19, %v16618_v19 }
0x136f   :  { %v16110_v17 = vpop.eup %16109 }
0x1370   :  { %v3115_v57 = vmul.f32 %v16110_v17, %v17491_v36 }
0x1371   :  { %v16112_v10 = vpop.eup %16111 }
0x1372   :  { %v3116_v41 = vmul.f32 %v16112_v10, %v3084_v28  ;;  %v3125_v31 = vmul.f32 %v13776_v55, %v3115_v57 }
0x1373   :  { %v16114_v33 = vpop.eup %16113 }
0x1374   :  { %v3117_v27 = vmul.f32 %v16114_v33, %v17497_v53  ;;  %v3126_v25 = vmul.f32 %v13776_v55, %v3116_v41  ;;  %v3135_v18 = vadd.f32 %v13777_v0, %v3125_v31  ;;  %v15900_v53 = vld [vmem:[%s20817_s8 + $0x78] sm:$0xff]   ;;  %v17565_v31 = vcombine.high %v16622_v20, %v16622_v20 }
0x1375   :  { %14742 = vmatprep.subr.bf16.mxu0 %v15900_v53 }
0x1376   :  { %v3136_v8 = vadd.f32 %v13777_v0, %v3126_v25  ;;  %v3127_v51 = vmul.f32 %v13776_v55, %v3117_v27  ;;  %14743 = vmatpush3.bf16.msra.mxu0 %v15900_v53 }
0x1377   :  { %v16116_v42 = vpop.eup %16115  ;;  %14774 = vmatprep.subr.bf16.mxu0 %v20770_v39 }
0x1378   :  { %v3118_v58 = vmul.f32 %v16116_v42, %v3086_v1  ;;  %v3139_v13 = vpack.c.bf16 %v3136_v8, %v3135_v18  ;;  %v3137_v6 = vadd.f32 %v13777_v0, %v3127_v51 }
0x137a   :  { %14724 = vmatprep.mubr.msk.bf16.mxu1 %vm166_vm0, %v3139_v13  ;;  %v3128_v36 = vmul.f32 %v13776_v55, %v3118_v58 }
0x137c   :  { %v3138_v28 = vadd.f32 %v13777_v0, %v3128_v36 }
0x137e   :  { %v3140_v7 = vpack.c.bf16 %v3138_v28, %v3137_v6 }
0x1380   :  { %14725 = vmatmul.mubr.msk.bf16.vlgmr.msra.gmra.mrb[76].mxu1 %vm166_vm0, %v3140_v7 }
0x1453   :  { %v14726_v54 = vpop.f32.mrb[76].mxu1 }
0x1454   :  { %v3208_v32 = vadd.f32 %v14726_v54, %v13778_v38  ;;  %v3199_v29 = vpop.f32.mrb[77].mxu1 }
0x1455   :  { %v3200_v62 = vadd.f32 %v13778_v38, %v3199_v29  ;;  %v14727_v60 = vpop.f32.mrb[78].mxu1 }
0x1456   :  { %v3211_v1 = vadd.f32 %v14727_v60, %v13778_v38  ;;  %v3202_v23 = vpop.f32.mrb[79].mxu1  ;;  %v3216_v30 = vmax.f32 %v3208_v32, 0.0  ;;  %v16450_v32 = vmov 839922192  }
0x1457   :  { %v3203_v37 = vadd.f32 %v13778_v38, %v3202_v23  ;;  %v3214_v24 = vmax.f32 %v3200_v62, 0.0  ;;  %v3432_v29 = vunpack.c.l.s4 %v16450_v32  ;;  %v16451_v62 = vmov 1985246804  }
0x1458   :  { %v3217_v9 = vmax.f32 %v3211_v1, 0.0  ;;  %v3439_v60 = vunpack.c.l.s4 %v16451_v62 }
0x1459   :  { %v3215_v44 = vmax.f32 %v3203_v37, 0.0  ;;  %v3433_v1 = vunpack.c.0.s8 %v3432_v29 }
0x145a   :  { %v3219_v3 = vpack.c.bf16 %v3217_v9, %v3216_v30  ;;  %v3440_v23 = vunpack.c.0.s8 %v3439_v60 }
0x145b   :  { %v3218_v43 = vpack.c.bf16 %v3215_v44, %v3214_v24  ;;  %v17592_v37 = vsub.s32 %v3433_v1, %v16590_v4 }
0x145c   :  { %v17595_v30 = vsub.s32 %v3440_v23, %v16590_v4 }
0x145d   :  { %14744 = vmatprep.mubr.bf16.mxu0 %v3218_v43 }
0x145e   :  { %14745 = vmatmul.mubr.bf16.vlgmr.msra.gmra.mrb[76].mxu0 %v3219_v3 }
0x145f   :  { %14776 = vmatprep.mubr.msk.bf16.mxu0 %vm16443_vm1, %v20770_v39 }
0x1531   :  { %v14746_v59 = vpop.f32.mrb[76].mxu0 }
0x1532   :  { %v3317_v21 = vadd.f32 %v14746_v59, %v13783_v52  ;;  %v3308_v34 = vpop.f32.mrb[77].mxu0 }
0x1533   :  { %v3309_v40 = vadd.f32 %v13783_v52, %v3308_v34  ;;  %v14747_v22 = vpop.f32.mrb[78].mxu0 }
0x1534   :  { %v3325_v47 = vadd.f32 %v3317_v21, %v17474_v48  ;;  %v3320_v61 = vadd.f32 %v14747_v22, %v13783_v52  ;;  %v3311_v50 = vpop.f32.mrb[79].mxu0 }
0x1535   :  { %v3323_v63 = vadd.f32 %v3309_v40, %v17471_v46  ;;  %v3312_v5 = vadd.f32 %v13783_v52, %v3311_v50 }
0x1536   :  { %v3333_v2 = vcombine.high %v3325_v47, %v3325_v47  ;;  %v3341_v49 = vmul.f32 2.0, %v3325_v47  ;;  %v3326_v45 = vadd.f32 %v3320_v61, %v17484_v26 }
0x1537   :  { %v3331_v17 = vcombine.high %v3323_v63, %v3323_v63  ;;  %v3339_v55 = vmul.f32 2.0, %v3323_v63  ;;  %v3324_v57 = vadd.f32 %v3312_v5, %v17477_v14 }
0x1538   :  { %v3345_v10 = vmul.f32 2.0, %v3333_v2  ;;  %v3334_v41 = vcombine.high %v3326_v45, %v3326_v45  ;;  %v3342_v48 = vmul.f32 2.0, %v3326_v45  ;;  %v3353_v26 = vadd.f32 %v3341_v49, %v16618_v19 }
0x1539   :  { %v3343_v46 = vmul.f32 2.0, %v3331_v17  ;;  %v3332_v33 = vcombine.high %v3324_v57, %v3324_v57  ;;  %v3340_v0 = vmul.f32 2.0, %v3324_v57  ;;  %v3351_v8 = vadd.f32 %v3339_v55, %v16618_v19 }
0x153a   :  { %v3346_v27 = vmul.f32 2.0, %v3334_v41  ;;  %v3354_v25 = vadd.f32 %v17560_v35, %v3342_v48  ;;  %v3357_v58 = vadd.f32 %v3345_v10, %v16622_v20 }
0x153b   :  { %v3344_v18 = vmul.f32 2.0, %v3332_v33  ;;  %v3352_v14 = vadd.f32 %v17560_v35, %v3340_v0  ;;  %v3355_v36 = vadd.f32 %v3343_v46, %v16622_v20 }
0x153c   :  { %v17571_v42 = vcombine.low %v3353_v26, %v3354_v25  ;;  %v3358_v13 = vadd.f32 %v17565_v31, %v3346_v27 }
0x153d   :  { %v17575_v51 = vcombine.low %v3351_v8, %v3352_v14  ;;  %v3356_v6 = vadd.f32 %v17565_v31, %v3344_v18 }
0x153e   :  { %v3414_v28 = vsel %vm166_vm0, %v17571_v42, 0.0  ;;  %v17581_v7 = vcombine.low %v3357_v58, %v3358_v13 }
0x153f   :  { %3415 = vadd.xlane.f32.xlu1 %v3414_v28  ;;  %v3411_v56 = vsel %vm166_vm0, %v17575_v51, 0.0  ;;  %v17585_v53 = vcombine.low %v3355_v36, %v3356_v6 }
0x1540   :  { %3412 = vadd.xlane.f32.xlu0 %v3411_v56  ;;  %v3420_v38 = vsel %vm166_vm0, %v17581_v7, 0.0 }
0x1541   :  { %v3417_v54 = vsel %vm166_vm0, %v17585_v53, 0.0 }
0x1543   :  { %3421 = vadd.xlane.f32.xlu1 %v3420_v38  ;;  %v15901_v38 = vld [vmem:[%s20727_s16] sm:$0xff]  }
0x1544   :  { %3418 = vadd.xlane.f32.xlu0 %v3417_v54  ;;  %v15902_v54 = vld [vmem:[%s20727_s16 + $0x8] sm:$0xff]   ;;  %14748 = vmatprep.subr.bf16.mxu1 %v15901_v38 }
0x1545   :  { %14749 = vmatpush3.bf16.msra.mxu1 %v15901_v38 }
0x1546   :  { %14750 = vmatprep.subr.bf16.mxu1 %v15902_v54 }
0x1549   :  { %14751 = vmatpush3.bf16.msra.mxu1 %v15902_v54 }
0x154a   :  { %14756 = vmatprep.subr.bf16.mxu1 %v20770_v39 }
0x15cc   :  { %v3416_v9 = vpop.xlane.xlu1 %3415 }
0x15cd   :  { %v3424_v24 = vmul.f32 0.03125, %v3416_v9  ;;  %v3413_v44 = vpop.xlane.xlu0 %3412 }
0x15ce   :  { %v3423_v3 = vmul.f32 0.03125, %v3413_v44 }
0x15cf   :  { %v3451_v43 = vrot.slane %v3424_v24, %v17592_v37  ;;  %v3458_v52 = vrot.slane %v3424_v24, %v17595_v30 }
0x15d0   :  { %v3437_v59 = vrot.slane %v3423_v3, %v17592_v37  ;;  %v3444_v21 = vrot.slane %v3423_v3, %v17595_v30  ;;  %v3422_v34 = vpop.xlane.xlu1 %3421 }
0x15d1   :  { %v17601_v40 = vsub.f32 %v3353_v26, %v3451_v43  ;;  %v17603_v22 = vsub.f32 %v3354_v25, %v3458_v52  ;;  %v3426_v47 = vmul.f32 0.03125, %v3422_v34  ;;  %v3419_v61 = vpop.xlane.xlu0 %3418  ;;  %v13793_v34 = vld [vmem:[%s20729_s15] ss:$0 sm:$0xff] }
0x15d2   :  { %v17605_v50 = vsub.f32 %v3351_v8, %v3437_v59  ;;  %v17607_v63 = vsub.f32 %v3352_v14, %v3444_v21  ;;  %v3425_v5 = vmul.f32 0.03125, %v3419_v61  ;;  %v13792_v59 = vld [vmem:[%s20728_s14] ss:$0 sm:$0xff] }
0x15d3   :  { %v3479_v2 = vrot.slane %v3426_v47, %v17592_v37  ;;  %v3486_v49 = vrot.slane %v3426_v47, %v17595_v30  ;;  %v3505_v45 = vmul.f32 %v17601_v40, %v17601_v40  ;;  %v3506_v17 = vmul.f32 %v17603_v22, %v17603_v22 }
0x15d4   :  { %v3465_v55 = vrot.slane %v3425_v5, %v17592_v37  ;;  %v3472_v57 = vrot.slane %v3425_v5, %v17595_v30  ;;  %v3503_v10 = vmul.f32 %v17605_v50, %v17605_v50  ;;  %v3504_v41 = vmul.f32 %v17607_v63, %v17607_v63 }
0x15d5   :  { %v17621_v48 = vsub.f32 %v3357_v58, %v3479_v2  ;;  %v17623_v46 = vsub.f32 %v3358_v13, %v3486_v49  ;;  %v3520_v33 = vcombine.low %v3505_v45, %v3506_v17  ;;  %v17656_v2 = vcombine.high %v13792_v59, %v13792_v59 }
0x15d6   :  { %v17625_v0 = vsub.f32 %v3355_v36, %v3465_v55  ;;  %v17627_v27 = vsub.f32 %v3356_v6, %v3472_v57  ;;  %v3519_v26 = vcombine.low %v3503_v10, %v3504_v41  ;;  %v17662_v57 = vcombine.high %v13793_v34, %v13793_v34 }
0x15d7   :  { %v3530_v25 = vsel %vm166_vm0, %v3520_v33, 0.0  ;;  %v3509_v18 = vmul.f32 %v17621_v48, %v17621_v48  ;;  %v3510_v8 = vmul.f32 %v17623_v46, %v17623_v46 }
0x15d8   :  { %3531 = vadd.xlane.f32.xlu1 %v3530_v25  ;;  %v3527_v14 = vsel %vm166_vm0, %v3519_v26, 0.0  ;;  %v3507_v58 = vmul.f32 %v17625_v0, %v17625_v0  ;;  %v3508_v13 = vmul.f32 %v17627_v27, %v17627_v27 }
0x15d9   :  { %3528 = vadd.xlane.f32.xlu0 %v3527_v14  ;;  %v3522_v36 = vcombine.low %v3509_v18, %v3510_v8 }
0x15da   :  { %v3521_v6 = vcombine.low %v3507_v58, %v3508_v13 }
0x15db   :  { %v3536_v28 = vsel %vm166_vm0, %v3522_v36, 0.0 }
0x15dc   :  { %3537 = vadd.xlane.f32.xlu1 %v3536_v28  ;;  %v3533_v56 = vsel %vm166_vm0, %v3521_v6, 0.0 }
0x15dd   :  { %3534 = vadd.xlane.f32.xlu0 %v3533_v56 }
0x1665   :  { %v3532_v32 = vpop.xlane.xlu1 %3531 }
0x1666   :  { %v3540_v29 = vmul.f32 0.03125, %v3532_v32  ;;  %v3529_v62 = vpop.xlane.xlu0 %3528 }
0x1667   :  { %v3539_v60 = vmul.f32 0.03125, %v3529_v62 }
0x1668   :  { %v3544_v1 = vadd.f32 1e-05, %v3540_v29 }
0x1669   :  { %v3543_v23 = vadd.f32 1e-05, %v3539_v60  ;;  %v3538_v9 = vpop.xlane.xlu1 %3537 }
0x166a   :  { %16117 = vrsqrt.f32 %v3544_v1  ;;  %v3542_v24 = vmul.f32 0.03125, %v3538_v9  ;;  %v3535_v44 = vpop.xlane.xlu0 %3534 }
0x166b   :  { %16119 = vrsqrt.f32 %v3543_v23  ;;  %v3541_v3 = vmul.f32 0.03125, %v3535_v44 }
0x166c   :  { %v3546_v43 = vadd.f32 1e-05, %v3542_v24 }
0x166d   :  { %v3545_v52 = vadd.f32 1e-05, %v3541_v3  ;;  %v13794_v3 = vld [vmem:[%s20730_s17] ss:$0 sm:$0xff] }
0x166e   :  { %16121 = vrsqrt.f32 %v3546_v43 }
0x166f   :  { %16123 = vrsqrt.f32 %v3545_v52 }
0x1674   :  { %v16118_v21 = vpop.eup %16117 }
0x1675   :  { %v16120_v47 = vpop.eup %16119  ;;  %v3575_v61 = vrot.slane %v16118_v21, %v17592_v37  ;;  %v3582_v5 = vrot.slane %v16118_v21, %v17595_v30 }
0x1676   :  { %v3561_v49 = vrot.slane %v16120_v47, %v17592_v37  ;;  %v3568_v45 = vrot.slane %v16120_v47, %v17595_v30 }
0x1677   :  { %v3621_v17 = vmul.f32 %v3575_v61, %v17601_v40  ;;  %v3622_v55 = vmul.f32 %v3582_v5, %v17603_v22 }
0x1678   :  { %v16122_v10 = vpop.eup %16121  ;;  %v3619_v41 = vmul.f32 %v3561_v49, %v17605_v50  ;;  %v3620_v33 = vmul.f32 %v3568_v45, %v17607_v63 }
0x1679   :  { %v16124_v26 = vpop.eup %16123  ;;  %v3603_v25 = vrot.slane %v16122_v10, %v17592_v37  ;;  %v3610_v18 = vrot.slane %v16122_v10, %v17595_v30  ;;  %v3637_v8 = vmul.f32 %v13792_v59, %v3621_v17  ;;  %v3638_v14 = vmul.f32 %v17656_v2, %v3622_v55 }
0x167a   :  { %v3589_v58 = vrot.slane %v16124_v26, %v17592_v37  ;;  %v3596_v40 = vrot.slane %v16124_v26, %v17595_v30  ;;  %v3635_v22 = vmul.f32 %v13792_v59, %v3619_v41  ;;  %v3636_v13 = vmul.f32 %v17656_v2, %v3620_v33 }
0x167b   :  { %v3625_v36 = vmul.f32 %v3603_v25, %v17621_v48  ;;  %v3626_v50 = vmul.f32 %v3610_v18, %v17623_v46  ;;  %v3653_v63 = vadd.f32 %v13793_v34, %v3637_v8  ;;  %v3654_v6 = vadd.f32 %v17662_v57, %v3638_v14 }
0x167c   :  { %v3623_v28 = vmul.f32 %v3589_v58, %v17625_v0  ;;  %v3624_v56 = vmul.f32 %v3596_v40, %v17627_v27  ;;  %v3651_v38 = vadd.f32 %v13793_v34, %v3635_v22  ;;  %v3652_v54 = vadd.f32 %v17662_v57, %v3636_v13 }
0x167d   :  { %v3641_v37 = vmul.f32 %v13792_v59, %v3625_v36  ;;  %v3642_v30 = vmul.f32 %v17656_v2, %v3626_v50  ;;  %v3668_v32 = vcombine.low %v3653_v63, %v3654_v6 }
0x167e   :  { %v3639_v29 = vmul.f32 %v13792_v59, %v3623_v28  ;;  %v3640_v62 = vmul.f32 %v17656_v2, %v3624_v56  ;;  %v3667_v48 = vcombine.low %v3651_v38, %v3652_v54 }
0x167f   :  { %v3657_v60 = vadd.f32 %v13793_v34, %v3641_v37  ;;  %v3658_v46 = vadd.f32 %v17662_v57, %v3642_v30 }
0x1680   :  { %v3675_v1 = vpack.c.bf16 %v3668_v32, %v3667_v48  ;;  %v3655_v23 = vadd.f32 %v13793_v34, %v3639_v29  ;;  %v3656_v0 = vadd.f32 %v17662_v57, %v3640_v62 }
0x1681   :  { %v3670_v9 = vcombine.low %v3657_v60, %v3658_v46 }
0x1682   :  { %14752 = vmatprep.mubr.msk.bf16.mxu1 %vm166_vm0, %v3675_v1  ;;  %v3669_v27 = vcombine.low %v3655_v23, %v3656_v0 }
0x1684   :  { %v3676_v24 = vpack.c.bf16 %v3670_v9, %v3669_v27 }
0x1686   :  { %14753 = vmatmul.mubr.msk.bf16.vlgmr.msra.gmra.mrb[80].mxu1 %vm166_vm0, %v3676_v24 }
0x1687   :  { %14758 = vmatprep.mubr.msk.bf16.mxu1 %vm16443_vm1, %v20770_v39 }
0x1759   :  { %v14754_v44 = vpop.f32.mrb[80].mxu1 }
0x175a   :  { %v3735_v43 = vpop.f32.mrb[81].mxu1  ;;  %v3744_v59 = vadd.f32 %v14754_v44, %v13794_v3 }
0x175b   :  { %v14755_v52 = vpop.f32.mrb[82].mxu1  ;;  %v3736_v47 = vadd.f32 %v13794_v3, %v3735_v43 }
0x175c   :  { %v3747_v21 = vadd.f32 %v14755_v52, %v13794_v3  ;;  %v3738_v34 = vpop.f32.mrb[83].mxu1 }
0x175d   :  { %v3739_v61 = vadd.f32 %v13794_v3, %v3738_v34 }
0x175e   :  { %v15638_v5 = vpack.i.bf16 %v3747_v21, %v3744_v59  ;;  %v17689_v49 = vpack.c.bf16 %v3747_v21, %v3744_v59 }
0x175f   :  { %v15633_v45 = vpack.i.bf16 %v3739_v61, %v3736_v47  ;;  %v17691_v17 = vpack.c.bf16 %v3739_v61, %v3736_v47 }
0x1760   :  { %15639 = vrot.lane.b32.xlu1 %v15638_v5, %s20819_s2 }
0x1761   :  { %15634 = vrot.lane.b32.xlu0 %v15633_v45, %s20819_s2 }
0x1764   :  { %15644 = vrot.lane.b32.xlu1 %v15633_v45, %s20820_s6 }
0x1765   :  { %15654 = vrot.lane.b32.xlu0 %v15633_v45, %s20821_s4 }
0x1768   :  { %15649 = vrot.lane.b32.xlu1 %v15638_v5, %s20820_s6 }
0x1769   :  { %3799 = vrot.lane.b32.xlu0 %v17691_v17, %s20822_s27 }
0x176c   :  { %15659 = vrot.lane.b32.xlu1 %v15638_v5, %s20821_s4 }
0x1770   :  { %3849 = vrot.lane.b32.xlu1 %v17689_v49, %s20822_s27 }
0x17d2   :  { %v15640_v55 = vpop.permute.xlu1 %15639 }
0x17d3   :  { %v15642_v10 = vunpack.i.h.bf16 %v15640_v55  ;;  %v15641_v41 = vunpack.i.l.bf16 %v15640_v55  ;;  %v15635_v33 = vpop.permute.xlu0 %15634 }
0x17d4   :  { %v15637_v26 = vunpack.i.h.bf16 %v15635_v33  ;;  %v15636_v25 = vunpack.i.l.bf16 %v15635_v33 }
0x17d5   :  { %v17703_v18 = vpack.c.bf16 %v15642_v10, %v15641_v41 }
0x17d6   :  { %v17705_v8 = vpack.c.bf16 %v15637_v26, %v15636_v25  ;;  %v15645_v14 = vpop.permute.xlu1 %15644 }
0x17d7   :  { %v15647_v58 = vunpack.i.h.bf16 %v15645_v14  ;;  %v15646_v40 = vunpack.i.l.bf16 %v15645_v14  ;;  %3949 = vrot.lane.b32.xlu1 %v17703_v18, %s20822_s27  ;;  %v15655_v22 = vpop.permute.xlu0 %15654 }
0x17d8   :  { %3899 = vrot.lane.b32.xlu0 %v17705_v8, %s20822_s27  ;;  %v15657_v36 = vunpack.i.h.bf16 %v15655_v22  ;;  %v15656_v50 = vunpack.i.l.bf16 %v15655_v22 }
0x17d9   :  { %v17711_v13 = vpack.c.bf16 %v15647_v58, %v15646_v40 }
0x17da   :  { %v15650_v63 = vpop.permute.xlu1 %15649  ;;  %v17718_v37 = vpack.c.bf16 %v15657_v36, %v15656_v50 }
0x17db   :  { %v15652_v6 = vunpack.i.h.bf16 %v15650_v63  ;;  %v15651_v28 = vunpack.i.l.bf16 %v15650_v63  ;;  %v3800_v56 = vpop.permute.xlu0 %3799 }
0x17dc   :  { %v3805_v38 = vsel %vm366_vm2, %v3800_v56, 0  ;;  %3999 = vrot.lane.b32.xlu0 %v17711_v13, %s20822_s27 }
0x17dd   :  { %v17716_v54 = vpack.c.bf16 %v15652_v6, %v15651_v28  ;;  %14757 = vmatpush3.bf16.xpose.msra.mxu1 %v3805_v38 }
0x17de   :  { %v15660_v30 = vpop.permute.xlu1 %15659  ;;  %14762 = vmatprep.subr.bf16.mxu1 %v20770_v39 }
0x17df   :  { %v15662_v32 = vunpack.i.h.bf16 %v15660_v30  ;;  %v15661_v29 = vunpack.i.l.bf16 %v15660_v30  ;;  %4049 = vrot.lane.b32.xlu1 %v17716_v54, %s20822_s27 }
0x17e0   :  { %4099 = vrot.lane.b32.xlu0 %v17718_v37, %s20822_s27 }
0x17e1   :  { %v17725_v62 = vpack.c.bf16 %v15662_v32, %v15661_v29 }
0x17e2   :  { %v3850_v48 = vpop.permute.xlu1 %3849 }
0x17e3   :  { %v3855_v60 = vsel %vm366_vm2, %v3850_v48, 0  ;;  %4149 = vrot.lane.b32.xlu1 %v17725_v62, %s20822_s27 }
0x17e4   :  { %14759 = vmatmul.mubr.msk.bf16.vlgmr.msra.gmra.mrb[84].mxu1 %vm366_vm2, %v17691_v17 }
0x17e5   :  { %14763 = vmatpush3.bf16.xpose.msra.mxu1 %v3855_v60  ;;  %14764 = vmatprep.mubr.msk.bf16.mxu1 %vm16443_vm1, %v20770_v39 }
0x17e6   :  { %14768 = vmatprep.subr.bf16.mxu1 %v20770_v39 }
0x17ec   :  { %14765 = vmatmul.mubr.msk.bf16.vlgmr.msra.gmra.mrb[88].mxu1 %vm366_vm2, %v17689_v49 }
0x17ed   :  { %14770 = vmatprep.mubr.msk.bf16.mxu1 %vm16443_vm1, %v20770_v39 }
0x1849   :  { %v3950_v46 = vpop.permute.xlu1 %3949 }
0x184a   :  { %v3955_v1 = vsel %vm366_vm2, %v3950_v46, 0  ;;  %v3900_v23 = vpop.permute.xlu0 %3899 }
0x184b   :  { %v3905_v0 = vsel %vm366_vm2, %v3900_v23, 0  ;;  %14775 = vmatpush3.bf16.xpose.msra.mxu0 %v3955_v1 }
0x184c   :  { %14769 = vmatpush3.bf16.xpose.msra.mxu1 %v3905_v0  ;;  %14786 = vmatprep.subr.bf16.mxu0 %v20770_v39 }
0x184d   :  { %14780 = vmatprep.subr.bf16.mxu1 %v20770_v39 }
0x184e   :  { %v4000_v9 = vpop.permute.xlu0 %3999 }
0x184f   :  { %v4005_v44 = vsel %vm366_vm2, %v4000_v9, 0 }
0x1851   :  { %v4050_v27 = vpop.permute.xlu1 %4049 }
0x1852   :  { %v4055_v24 = vsel %vm366_vm2, %v4050_v27, 0  ;;  %14777 = vmatmul.mubr.msk.bf16.vlgmr.msra.gmra.mrb[80].mxu0 %vm366_vm2, %v17703_v18  ;;  %v4100_v43 = vpop.permute.xlu0 %4099 }
0x1853   :  { %14771 = vmatmul.mubr.msk.bf16.vlgmr.msra.gmra.mrb[92].mxu1 %vm366_vm2, %v17705_v8  ;;  %14787 = vmatpush3.bf16.xpose.msra.mxu0 %v4055_v24  ;;  %v4105_v59 = vsel %vm366_vm2, %v4100_v43, 0 }
0x1854   :  { %14781 = vmatpush3.bf16.xpose.msra.mxu1 %v4005_v44  ;;  %14788 = vmatprep.mubr.msk.bf16.mxu0 %vm16443_vm1, %v20770_v39 }
0x1855   :  { %14782 = vmatprep.mubr.msk.bf16.mxu1 %vm16443_vm1, %v20770_v39  ;;  %14798 = vmatprep.subr.bf16.mxu0 %v20770_v39  ;;  %v4150_v3 = vpop.permute.xlu1 %4149 }
0x1856   :  { %14792 = vmatprep.subr.bf16.mxu1 %v20770_v39  ;;  %v4155_v52 = vsel %vm366_vm2, %v4150_v3, 0 }
0x185a   :  { %14789 = vmatmul.mubr.msk.bf16.vlgmr.msra.gmra.mrb[84].mxu0 %vm366_vm2, %v17716_v54 }
0x185b   :  { %14783 = vmatmul.mubr.msk.bf16.vlgmr.msra.gmra.mrb[96].mxu1 %vm366_vm2, %v17711_v13  ;;  %14799 = vmatpush3.bf16.xpose.msra.mxu0 %v4155_v52 }
0x185c   :  { %14793 = vmatpush3.bf16.xpose.msra.mxu1 %v4105_v59  ;;  %14800 = vmatprep.mubr.msk.bf16.mxu0 %vm16443_vm1, %v20770_v39 }
0x185d   :  { %14794 = vmatprep.mubr.msk.bf16.mxu1 %vm16443_vm1, %v20770_v39  ;;  %14810 = vmatprep.subr.bf16.mxu0 %v20770_v39 }
0x185e   :  { %14804 = vmatprep.subr.bf16.mxu1 %v20770_v39 }
0x1862   :  { %14801 = vmatmul.mubr.msk.bf16.vlgmr.msra.gmra.mrb[88].mxu0 %vm366_vm2, %v17725_v62 }
0x1863   :  { %14795 = vmatmul.mubr.msk.bf16.vlgmr.msra.gmra.mrb[100].mxu1 %vm366_vm2, %v17718_v37  ;;  %14812 = vmatprep.mubr.msk.bf16.mxu0 %vm16443_vm1, %v20770_v39 }
0x1864   :  { %14806 = vmatprep.mubr.msk.bf16.mxu1 %vm16443_vm1, %v20770_v39 }
0x18b7   :  { %v17775_v21 = vpop.f32.mrb[84].mxu1 }
0x18b8   :  { %v14760_v34 = vpop.f32.mrb[85].mxu1  ;;  %v4198_v47 = vsel %vm764_vm3, %v17775_v21, -inf }
0x18b9   :  { %4199 = vmax.xlane.f32.xlu0 %v4198_v47  ;;  %v17779_v61 = vpop.f32.mrb[86].mxu1 }
0x18ba   :  { %v14761_v5 = vpop.f32.mrb[87].mxu1  ;;  %v4201_v45 = vsel %vm764_vm3, %v17779_v61, -inf }
0x18bb   :  { %4202 = vmax.xlane.f32.xlu1 %v4201_v45 }
0x18bf   :  { %v17783_v55 = vpop.f32.mrb[88].mxu1 }
0x18c0   :  { %v14766_v10 = vpop.f32.mrb[89].mxu1  ;;  %v4204_v41 = vsel %vm764_vm3, %v17783_v55, -inf }
0x18c1   :  { %4205 = vmax.xlane.f32.xlu0 %v4204_v41  ;;  %v17787_v33 = vpop.f32.mrb[90].mxu1 }
0x18c2   :  { %v14767_v26 = vpop.f32.mrb[91].mxu1  ;;  %v4207_v25 = vsel %vm764_vm3, %v17787_v33, -inf }
0x18c5   :  { %4208 = vmax.xlane.f32.xlu0 %v4207_v25 }
0x1925   :  { %v17791_v14 = vpop.f32.mrb[80].mxu0 }
0x1926   :  { %v17793_v58 = vpop.f32.mrb[92].mxu1  ;;  %v14778_v40 = vpop.f32.mrb[81].mxu0  ;;  %v4216_v22 = vsel %vm764_vm3, %v17791_v14, -inf }
0x1927   :  { %v17797_v36 = vpop.f32.mrb[82].mxu0  ;;  %4217 = vmax.xlane.f32.xlu0 %v4216_v22  ;;  %v14772_v50 = vpop.f32.mrb[93].mxu1  ;;  %v4210_v38 = vsel %vm764_vm3, %v17793_v58, -inf }
0x1928   :  { %v17799_v63 = vpop.f32.mrb[94].mxu1  ;;  %v14779_v6 = vpop.f32.mrb[83].mxu0  ;;  %v4219_v28 = vsel %vm764_vm3, %v17797_v36, -inf }
0x1929   :  { %4220 = vmax.xlane.f32.xlu1 %v4219_v28  ;;  %v14773_v56 = vpop.f32.mrb[95].mxu1  ;;  %v4213_v30 = vsel %vm764_vm3, %v17799_v63, -inf }
0x192b   :  { %4211 = vmax.xlane.f32.xlu0 %v4210_v38 }
0x192d   :  { %v17807_v32 = vpop.f32.mrb[84].mxu0  ;;  %4214 = vmax.xlane.f32.xlu1 %v4213_v30 }
0x192e   :  { %v17809_v29 = vpop.f32.mrb[96].mxu1  ;;  %v14790_v48 = vpop.f32.mrb[85].mxu0  ;;  %v4228_v60 = vsel %vm764_vm3, %v17807_v32, -inf }
0x192f   :  { %v17813_v46 = vpop.f32.mrb[86].mxu0  ;;  %4229 = vmax.xlane.f32.xlu0 %v4228_v60  ;;  %v14784_v1 = vpop.f32.mrb[97].mxu1  ;;  %v4222_v24 = vsel %vm764_vm3, %v17809_v29, -inf }
0x1930   :  { %v17815_v23 = vpop.f32.mrb[98].mxu1  ;;  %v14791_v0 = vpop.f32.mrb[87].mxu0  ;;  %v4231_v9 = vsel %vm764_vm3, %v17813_v46, -inf }
0x1931   :  { %4232 = vmax.xlane.f32.xlu1 %v4231_v9  ;;  %v14785_v27 = vpop.f32.mrb[99].mxu1  ;;  %v4225_v44 = vsel %vm764_vm3, %v17815_v23, -inf }
0x1933   :  { %4223 = vmax.xlane.f32.xlu0 %v4222_v24 }
0x1935   :  { %v17823_v3 = vpop.f32.mrb[88].mxu0  ;;  %4226 = vmax.xlane.f32.xlu1 %v4225_v44 }
0x1936   :  { %v17825_v43 = vpop.f32.mrb[100].mxu1  ;;  %v14802_v52 = vpop.f32.mrb[89].mxu0  ;;  %v4240_v59 = vsel %vm764_vm3, %v17823_v3, -inf }
0x1937   :  { %v17829_v34 = vpop.f32.mrb[90].mxu0  ;;  %4241 = vmax.xlane.f32.xlu0 %v4240_v59  ;;  %v14796_v47 = vpop.f32.mrb[101].mxu1  ;;  %v4234_v41 = vsel %vm764_vm3, %v17825_v43, -inf }
0x1938   :  { %v17831_v5 = vpop.f32.mrb[102].mxu1  ;;  %v14803_v45 = vpop.f32.mrb[91].mxu0 }
0x1939   :  { %v14797_v10 = vpop.f32.mrb[103].mxu1 }
0x193b   :  { %4235 = vmax.xlane.f32.xlu0 %v4234_v41 }
0x1946   :  { %4429 = vrot.lane.b32.xlu1 %v17689_v49, %s20823_s26  ;;  %v4200_v26 = vpop.xlane.xlu0 %4199 }
0x1947   :  { %v4246_v25 = vsub.f32 %v17775_v21, %v4200_v26  ;;  %v4237_v21 = vsel %vm764_vm3, %v17831_v5, -inf }
0x1948   :  { %v4203_v6 = vpop.xlane.xlu1 %4202 }
0x1949   :  { %v4262_v22 = vmul.f32 1.442695, %v4246_v25  ;;  %v4247_v28 = vsub.f32 %v17779_v61, %v4203_v6 }
0x194a   :  { %4476 = vrot.lane.b32.xlu1 %v17705_v8, %s20823_s26 }
0x194b   :  { %16125 = vpow2.f32 %v4262_v22  ;;  %v4264_v38 = vmul.f32 1.442695, %v4247_v28 }
0x194e   :  { %4523 = vrot.lane.b32.xlu1 %v17703_v18, %s20823_s26  ;;  %v4206_v40 = vpop.xlane.xlu0 %4205  ;;  %v4243_v18 = vsel %vm764_vm3, %v17829_v34, -inf }
0x194f   :  { %v4248_v50 = vsub.f32 %v17783_v55, %v4206_v40 }
0x1951   :  { %4382 = vrot.lane.b32.xlu0 %v17691_v17, %s20823_s26  ;;  %v4266_v49 = vmul.f32 1.442695, %v4248_v50 }
0x1952   :  { %v4209_v56 = vpop.xlane.xlu0 %4208 }
0x1953   :  { %16127 = vpow2.f32 %v4266_v49  ;;  %v4249_v30 = vsub.f32 %v17787_v33, %v4209_v56 }
0x1954   :  { %16129 = vpow2.f32 %v4264_v38 }
0x1955   :  { %4570 = vrot.lane.b32.xlu0 %v17711_v13, %s20823_s26  ;;  %v17847_v8 = vpop.eup %16125  ;;  %v4268_v48 = vmul.f32 1.442695, %v4249_v30 }
0x1956   :  { %v4294_v17 = vsel %vm764_vm3, %v17847_v8, 0.0 }
0x1957   :  { %16131 = vpow2.f32 %v4268_v48 }
0x195d   :  { %v17853_v13 = vpop.eup %16127 }
0x195e   :  { %v4300_v55 = vsel %vm764_vm3, %v17853_v13, 0.0  ;;  %v17863_v60 = vpop.eup %16129 }
0x195f   :  { %v4297_v1 = vsel %vm764_vm3, %v17863_v60, 0.0 }
0x1961   :  { %v17867_v0 = vpop.eup %16131 }
0x1972   :  { %4244 = vmax.xlane.f32.xlu1 %v4243_v18 }
0x1974   :  { %4295 = vadd.xlane.f32.xlu0 %v4294_v17 }
0x1976   :  { %4238 = vmax.xlane.f32.xlu1 %v4237_v21 }
0x1978   :  { %4301 = vadd.xlane.f32.xlu0 %v4300_v55 }
0x1987   :  { %4617 = vrot.lane.b32.xlu1 %v17716_v54, %s20823_s26  ;;  %v4303_v54 = vsel %vm764_vm3, %v17867_v0, 0.0 }
0x19ab   :  { %4298 = vadd.xlane.f32.xlu1 %v4297_v1 }
0x19af   :  { %4304 = vadd.xlane.f32.xlu1 %v4303_v54 }
0x19b4   :  { %v4218_v61 = vpop.xlane.xlu0 %4217 }
0x19b5   :  { %v4252_v9 = vsub.f32 %v17791_v14, %v4218_v61 }
0x19b6   :  { %v4221_v27 = vpop.xlane.xlu1 %4220 }
0x19b7   :  { %v4274_v33 = vmul.f32 1.442695, %v4252_v9  ;;  %v4253_v24 = vsub.f32 %v17797_v36, %v4221_v27 }
0x19b8   :  { %v4212_v44 = vpop.xlane.xlu0 %4211 }
0x19b9   :  { %16133 = vpow2.f32 %v4274_v33  ;;  %v4276_v52 = vmul.f32 1.442695, %v4253_v24  ;;  %v4250_v59 = vsub.f32 %v17793_v58, %v4212_v44 }
0x19ba   :  { %v4215_v47 = vpop.xlane.xlu1 %4214 }
0x19bb   :  { %16135 = vpow2.f32 %v4276_v52  ;;  %v4270_v45 = vmul.f32 1.442695, %v4250_v59  ;;  %v4251_v10 = vsub.f32 %v17799_v63, %v4215_v47 }
0x19bc   :  { %v4230_v41 = vpop.xlane.xlu0 %4229 }
0x19bd   :  { %16137 = vpow2.f32 %v4270_v45  ;;  %v4272_v26 = vmul.f32 1.442695, %v4251_v10  ;;  %v4256_v25 = vsub.f32 %v17807_v32, %v4230_v41 }
0x19be   :  { %v4233_v14 = vpop.xlane.xlu1 %4232 }
0x19bf   :  { %16139 = vpow2.f32 %v4272_v26  ;;  %v4282_v40 = vmul.f32 1.442695, %v4256_v25  ;;  %v4257_v36 = vsub.f32 %v17813_v46, %v4233_v14 }
0x19c0   :  { %v4224_v22 = vpop.xlane.xlu0 %4223 }
0x19c1   :  { %16141 = vpow2.f32 %v4282_v40  ;;  %v4284_v50 = vmul.f32 1.442695, %v4257_v36  ;;  %v4254_v58 = vsub.f32 %v17809_v29, %v4224_v22 }
0x19c2   :  { %v4227_v49 = vpop.xlane.xlu1 %4226 }
0x19c3   :  { %v17878_v18 = vpop.eup %16133  ;;  %16143 = vpow2.f32 %v4284_v50  ;;  %v4278_v63 = vmul.f32 1.442695, %v4254_v58  ;;  %v4255_v17 = vsub.f32 %v17815_v23, %v4227_v49 }
0x19c4   :  { %v4242_v21 = vpop.xlane.xlu0 %4241  ;;  %v4312_v32 = vsel %vm764_vm3, %v17878_v18, 0.0 }
0x19c5   :  { %v17883_v55 = vpop.eup %16135  ;;  %16145 = vpow2.f32 %v4278_v63  ;;  %v4280_v46 = vmul.f32 1.442695, %v4255_v17  ;;  %v4260_v6 = vsub.f32 %v17823_v3, %v4242_v21  ;;  %4313 = vadd.xlane.f32.xlu0 %v4312_v32 }
0x19c6   :  { %v4430_v28 = vpop.permute.xlu1 %4429  ;;  %v4315_v29 = vsel %vm764_vm3, %v17883_v55, 0.0 }
0x19c7   :  { %v17888_v56 = vpop.eup %16137  ;;  %16147 = vpow2.f32 %v4280_v46  ;;  %v4290_v38 = vmul.f32 1.442695, %v4260_v6  ;;  %14811 = vmatpush3.bf16.msra.mxu0 %v4430_v28  ;;  %4316 = vadd.xlane.f32.xlu1 %v4315_v29 }
0x19c8   :  { %v4236_v23 = vpop.xlane.xlu0 %4235  ;;  %v4306_v30 = vsel %vm764_vm3, %v17888_v56, 0.0  ;;  %14822 = vmatprep.subr.bf16.mxu0 %v20770_v39 }
0x19c9   :  { %v17893_v48 = vpop.eup %16139  ;;  %16149 = vpow2.f32 %v4290_v38  ;;  %v4258_v3 = vsub.f32 %v17825_v43, %v4236_v23  ;;  %4307 = vadd.xlane.f32.xlu0 %v4306_v30 }
0x19ca   :  { %v4309_v1 = vsel %vm764_vm3, %v17893_v48, 0.0  ;;  %v4477_v26 = vpop.permute.xlu1 %4476 }
0x19cb   :  { %v17898_v54 = vpop.eup %16141  ;;  %v4286_v61 = vmul.f32 1.442695, %v4258_v3  ;;  %4310 = vadd.xlane.f32.xlu1 %v4309_v1 }
0x19cc   :  { %v4383_v9 = vpop.permute.xlu0 %4382  ;;  %v4324_v27 = vsel %vm764_vm3, %v17898_v54, 0.0 }
0x19cd   :  { %v17902_v33 = vpop.eup %16143  ;;  %16151 = vpow2.f32 %v4286_v61  ;;  %4325 = vadd.xlane.f32.xlu0 %v4324_v27  ;;  %14805 = vmatpush3.bf16.msra.mxu1 %v4383_v9 }
0x19ce   :  { %v4327_v43 = vsel %vm764_vm3, %v17902_v33, 0.0  ;;  %14816 = vmatprep.subr.bf16.mxu1 %v20770_v39  ;;  %v4524_v25 = vpop.permute.xlu1 %4523 }
0x19cf   :  { %v17907_v24 = vpop.eup %16145  ;;  %4328 = vadd.xlane.f32.xlu1 %v4327_v43 }
0x19d0   :  { %v4318_v44 = vsel %vm764_vm3, %v17907_v24, 0.0 }
0x19d1   :  { %v17911_v52 = vpop.eup %16147  ;;  %4319 = vadd.xlane.f32.xlu0 %v4318_v44 }
0x19d2   :  { %v4321_v59 = vsel %vm764_vm3, %v17911_v52, 0.0 }
0x19d3   :  { %v17915_v47 = vpop.eup %16149  ;;  %4322 = vadd.xlane.f32.xlu1 %v4321_v59 }
0x19d4   :  { %v4336_v45 = vsel %vm764_vm3, %v17915_v47, 0.0 }
0x19d5   :  { %4337 = vadd.xlane.f32.xlu0 %v4336_v45 }
0x19d7   :  { %v17919_v10 = vpop.eup %16151 }
0x19d8   :  { %v4330_v41 = vsel %vm764_vm3, %v17919_v10, 0.0 }
0x19d9   :  { %4331 = vadd.xlane.f32.xlu0 %v4330_v41 }
0x19ef   :  { %4664 = vrot.lane.b32.xlu0 %v17718_v37, %s20823_s26 }
0x19ff   :  { %v4245_v14 = vpop.xlane.xlu1 %4244 }
0x1a00   :  { %v4261_v40 = vsub.f32 %v17829_v34, %v4245_v14  ;;  %v17937_v34 = vpop.permute.xlu0 %4570 }
0x1a02   :  { %v4292_v36 = vmul.f32 1.442695, %v4261_v40 }
0x1a03   :  { %v4239_v22 = vpop.xlane.xlu1 %4238 }
0x1a04   :  { %16153 = vpow2.f32 %v4292_v36  ;;  %v4259_v50 = vsub.f32 %v17831_v5, %v4239_v22  ;;  %v4296_v5 = vpop.xlane.xlu0 %4295 }
0x1a06   :  { %v4288_v58 = vmul.f32 1.442695, %v4259_v50 }
0x1a07   :  { %v4618_v21 = vpop.permute.xlu1 %4617 }
0x1a08   :  { %16155 = vpow2.f32 %v4288_v58  ;;  %v4302_v32 = vpop.xlane.xlu0 %4301 }
0x1a09   :  { %16157 = vrcp.f32 %v4296_v5 }
0x1a0e   :  { %v17927_v49 = vpop.eup %16153 }
0x1a0f   :  { %v4339_v63 = vsel %vm764_vm3, %v17927_v49, 0.0 }
0x1a10   :  { %4340 = vadd.xlane.f32.xlu1 %v4339_v63 }
0x1a12   :  { %v17931_v17 = vpop.eup %16155 }
0x1a13   :  { %v4333_v37 = vsel %vm764_vm3, %v17931_v17, 0.0  ;;  %v16158_v28 = vpop.eup %16157 }
0x1a14   :  { %4334 = vadd.xlane.f32.xlu1 %v4333_v37  ;;  %v4343_v38 = vmul.f32 %v16158_v28, %v17847_v8 }
0x1a25   :  { %4711 = vrot.lane.b32.xlu1 %v17725_v62, %s20823_s26 }
0x1a38   :  { %v4299_v46 = vpop.xlane.xlu1 %4298 }
0x1a39   :  { %16159 = vrcp.f32 %v4299_v46 }
0x1a3a   :  { %16161 = vrcp.f32 %v4302_v32 }
0x1a3c   :  { %v4305_v6 = vpop.xlane.xlu1 %4304 }
0x1a3d   :  { %16163 = vrcp.f32 %v4305_v6 }
0x1a43   :  { %v16160_v29 = vpop.eup %16159 }
0x1a44   :  { %v4345_v23 = vmul.f32 %v16160_v29, %v17863_v60  ;;  %v16162_v30 = vpop.eup %16161 }
0x1a45   :  { %v4347_v1 = vmul.f32 %v16162_v30, %v17853_v13 }
0x1a46   :  { %v4374_v3 = vpack.c.bf16 %v4345_v23, %v4343_v38 }
0x1a47   :  { %v16164_v62 = vpop.eup %16163 }
0x1a48   :  { %v4349_v61 = vmul.f32 %v16164_v62, %v17867_v0  ;;  %14807 = vmatmul.mubr.msk.bf16.vlgmr.msra.gmra.mrb[104].mxu1 %vm764_vm3, %v4374_v3 }
0x1a49   :  { %14817 = vmatpush3.bf16.msra.mxu1 %v4477_v26  ;;  %14818 = vmatprep.mubr.msk.bf16.mxu1 %vm16443_vm1, %v20770_v39 }
0x1a4a   :  { %v4375_v9 = vpack.c.bf16 %v4349_v61, %v4347_v1  ;;  %14828 = vmatprep.subr.bf16.mxu1 %v20770_v39 }
0x1a4c   :  { %14813 = vmatmul.mubr.msk.bf16.vlgmr.msra.gmra.mrb[92].mxu0 %vm764_vm3, %v4375_v9 }
0x1a4d   :  { %14823 = vmatpush3.bf16.msra.mxu0 %v4524_v25  ;;  %14824 = vmatprep.mubr.msk.bf16.mxu0 %vm16443_vm1, %v20770_v39 }
0x1a4e   :  { %14834 = vmatprep.subr.bf16.mxu0 %v20770_v39 }
0x1a52   :  { %v4314_v8 = vpop.xlane.xlu0 %4313 }
0x1a53   :  { %16165 = vrcp.f32 %v4314_v8 }
0x1a54   :  { %v4317_v13 = vpop.xlane.xlu1 %4316 }
0x1a55   :  { %16167 = vrcp.f32 %v4317_v13 }
0x1a56   :  { %v4308_v60 = vpop.xlane.xlu0 %4307 }
0x1a57   :  { %16169 = vrcp.f32 %v4308_v60 }
0x1a58   :  { %v4311_v0 = vpop.xlane.xlu1 %4310 }
0x1a59   :  { %16171 = vrcp.f32 %v4311_v0 }
0x1a5a   :  { %v4326_v27 = vpop.xlane.xlu0 %4325 }
0x1a5b   :  { %16173 = vrcp.f32 %v4326_v27 }
0x1a5c   :  { %v4329_v43 = vpop.xlane.xlu1 %4328 }
0x1a5d   :  { %v16166_v44 = vpop.eup %16165  ;;  %16175 = vrcp.f32 %v4329_v43 }
0x1a5e   :  { %v4320_v59 = vpop.xlane.xlu0 %4319  ;;  %v4355_v41 = vmul.f32 %v16166_v44, %v17878_v18 }
0x1a5f   :  { %v16168_v45 = vpop.eup %16167  ;;  %16177 = vrcp.f32 %v4320_v59 }
0x1a60   :  { %v4357_v26 = vmul.f32 %v16168_v45, %v17883_v55  ;;  %v4323_v25 = vpop.xlane.xlu1 %4322 }
0x1a61   :  { %v16170_v14 = vpop.eup %16169  ;;  %16179 = vrcp.f32 %v4323_v25 }
0x1a62   :  { %v4377_v40 = vpack.c.bf16 %v4357_v26, %v4355_v41  ;;  %v4351_v22 = vmul.f32 %v16170_v14, %v17888_v56  ;;  %v4338_v58 = vpop.xlane.xlu0 %4337 }
0x1a63   :  { %v16172_v36 = vpop.eup %16171  ;;  %16181 = vrcp.f32 %v4338_v58 }
0x1a64   :  { %v4353_v50 = vmul.f32 %v16172_v36, %v17893_v48  ;;  %14825 = vmatmul.mubr.msk.bf16.vlgmr.msra.gmra.mrb[96].mxu0 %vm764_vm3, %v4377_v40 }
0x1a65   :  { %v16174_v63 = vpop.eup %16173  ;;  %14835 = vmatpush3.bf16.msra.mxu0 %v4618_v21  ;;  %14836 = vmatprep.mubr.msk.bf16.mxu0 %vm16443_vm1, %v20770_v39 }
0x1a66   :  { %v4376_v18 = vpack.c.bf16 %v4353_v50, %v4351_v22  ;;  %14846 = vmatprep.subr.bf16.mxu0 %v20770_v39  ;;  %v4363_v37 = vmul.f32 %v16174_v63, %v17898_v54  ;;  %v4332_v48 = vpop.xlane.xlu0 %4331 }
0x1a67   :  { %v16176_v55 = vpop.eup %16175 }
0x1a68   :  { %v4365_v5 = vmul.f32 %v16176_v55, %v17902_v33  ;;  %14819 = vmatmul.mubr.msk.bf16.vlgmr.msra.gmra.mrb[108].mxu1 %vm764_vm3, %v4376_v18 }
0x1a69   :  { %v16178_v56 = vpop.eup %16177  ;;  %14829 = vmatpush3.bf16.msra.mxu1 %v17937_v34  ;;  %14830 = vmatprep.mubr.msk.bf16.mxu1 %vm16443_vm1, %v20770_v39 }
0x1a6a   :  { %v4379_v21 = vpack.c.bf16 %v4365_v5, %v4363_v37  ;;  %14840 = vmatprep.subr.bf16.mxu1 %v20770_v39  ;;  %v4359_v46 = vmul.f32 %v16178_v56, %v17907_v24  ;;  %v4665_v33 = vpop.permute.xlu0 %4664 }
0x1a6b   :  { %v16180_v32 = vpop.eup %16179 }
0x1a6c   :  { %v4361_v6 = vmul.f32 %v16180_v32, %v17911_v52  ;;  %14837 = vmatmul.mubr.msk.bf16.vlgmr.msra.gmra.mrb[100].mxu0 %vm764_vm3, %v4379_v21  ;;  %v15904_v21 = vld [vmem:[%s20731_s18 + $0x8] sm:$0xff]  }
0x1a6d   :  { %14848 = vmatprep.mubr.msk.bf16.mxu0 %vm16443_vm1, %v20770_v39  ;;  %v16182_v28 = vpop.eup %16181 }
0x1a6e   :  { %v4378_v54 = vpack.c.bf16 %v4361_v6, %v4359_v46  ;;  %v4371_v38 = vmul.f32 %v16182_v28, %v17915_v47 }
0x1a70   :  { %14831 = vmatmul.mubr.msk.bf16.vlgmr.msra.gmra.mrb[112].mxu1 %vm764_vm3, %v4378_v54 }
0x1a71   :  { %14841 = vmatpush3.bf16.msra.mxu1 %v4665_v33  ;;  %14842 = vmatprep.mubr.msk.bf16.mxu1 %vm16443_vm1, %v20770_v39 }
0x1a9d   :  { %v4341_v34 = vpop.xlane.xlu1 %4340 }
0x1a9e   :  { %16183 = vrcp.f32 %v4341_v34 }
0x1a9f   :  { %16185 = vrcp.f32 %v4332_v48  ;;  %v15903_v48 = vld [vmem:[%s20731_s18] sm:$0xff]  }
0x1aa0   :  { %14852 = vmatprep.subr.bf16.mxu1 %v15903_v48 }
0x1aa1   :  { %v4335_v24 = vpop.xlane.xlu1 %4334 }
0x1aa2   :  { %16187 = vrcp.f32 %v4335_v24 }
0x1aa5   :  { %v4712_v52 = vpop.permute.xlu1 %4711 }
0x1aa6   :  { %14847 = vmatpush3.bf16.msra.mxu0 %v4712_v52 }
0x1aa8   :  { %v16184_v29 = vpop.eup %16183 }
0x1aa9   :  { %v4373_v23 = vmul.f32 %v16184_v29, %v17927_v49  ;;  %v16186_v30 = vpop.eup %16185 }
0x1aaa   :  { %v4367_v1 = vmul.f32 %v16186_v30, %v17919_v10 }
0x1aab   :  { %v4381_v3 = vpack.c.bf16 %v4373_v23, %v4371_v38 }
0x1aac   :  { %v16188_v62 = vpop.eup %16187 }
0x1aad   :  { %v4369_v61 = vmul.f32 %v16188_v62, %v17931_v17  ;;  %14849 = vmatmul.mubr.msk.bf16.vlgmr.msra.gmra.mrb[104].mxu0 %vm764_vm3, %v4381_v3 }
0x1aaf   :  { %v4380_v9 = vpack.c.bf16 %v4369_v61, %v4367_v1 }
0x1ab1   :  { %14843 = vmatmul.mubr.msk.bf16.vlgmr.msra.gmra.mrb[116].mxu1 %vm764_vm3, %v4380_v9 }
0x1ab2   :  { %14853 = vmatpush3.bf16.msra.mxu1 %v15903_v48 }
0x1ab3   :  { %14854 = vmatprep.subr.bf16.mxu1 %v15904_v21 }
0x1ab6   :  { %14855 = vmatpush3.bf16.msra.mxu1 %v15904_v21 }
0x1b1b   :  { %v17980_v8 = vpop.f32.mrb[104].mxu1 }
0x1b1c   :  { %v14808_v13 = vpop.f32.mrb[105].mxu1 }
0x1b1d   :  { %v17982_v60 = vpop.f32.mrb[106].mxu1 }
0x1b1e   :  { %v14809_v47 = vpop.f32.mrb[107].mxu1 }
0x1b1f   :  { %v4469_v0 = vpop.f32.mrb[92].mxu0 }
0x1b20   :  { %v14814_v49 = vpop.f32.mrb[93].mxu0 }
0x1b21   :  { %v4472_v27 = vpop.f32.mrb[94].mxu0 }
0x1b22   :  { %v14815_v43 = vpop.f32.mrb[95].mxu0 }
0x1b37   :  { %v4563_v44 = vpop.f32.mrb[96].mxu0 }
0x1b38   :  { %v14826_v59 = vpop.f32.mrb[97].mxu0 }
0x1b39   :  { %v4566_v10 = vpop.f32.mrb[98].mxu0 }
0x1b3a   :  { %v15663_v45 = vpack.i.bf16 %v4566_v10, %v4563_v44  ;;  %v14827_v17 = vpop.f32.mrb[99].mxu0 }
0x1b3b   :  { %v4516_v41 = vpop.f32.mrb[108].mxu1 }
0x1b3c   :  { %15664 = vrot.lane.b32.xlu1 %v15663_v45, %s20824_s5  ;;  %v14820_v26 = vpop.f32.mrb[109].mxu1 }
0x1b3d   :  { %v4519_v25 = vpop.f32.mrb[110].mxu1 }
0x1b3e   :  { %v15668_v14 = vpack.i.bf16 %v4519_v25, %v4516_v41  ;;  %v14821_v40 = vpop.f32.mrb[111].mxu1 }
0x1b3f   :  { %v4657_v36 = vpop.f32.mrb[100].mxu0 }
0x1b40   :  { %15669 = vrot.lane.b32.xlu0 %v15668_v14, %s20824_s5  ;;  %v14838_v22 = vpop.f32.mrb[101].mxu0 }
0x1b41   :  { %v4660_v50 = vpop.f32.mrb[102].mxu0 }
0x1b42   :  { %v15673_v58 = vpack.i.bf16 %v4660_v50, %v4657_v36  ;;  %v14839_v63 = vpop.f32.mrb[103].mxu0 }
0x1b43   :  { %v4610_v18 = vpop.f32.mrb[112].mxu1 }
0x1b44   :  { %15674 = vrot.lane.b32.xlu1 %v15673_v58, %s20825_s1  ;;  %v14832_v55 = vpop.f32.mrb[113].mxu1 }
0x1b45   :  { %v4613_v37 = vpop.f32.mrb[114].mxu1 }
0x1b46   :  { %v15678_v5 = vpack.i.bf16 %v4613_v37, %v4610_v18  ;;  %v14833_v56 = vpop.f32.mrb[115].mxu1 }
0x1b48   :  { %15679 = vrot.lane.b32.xlu0 %v15678_v5, %s20825_s1 }
0x1b80   :  { %v4751_v32 = vpop.f32.mrb[104].mxu0 }
0x1b81   :  { %v14850_v46 = vpop.f32.mrb[105].mxu0 }
0x1b82   :  { %v4754_v6 = vpop.f32.mrb[106].mxu0 }
0x1b83   :  { %v15688_v54 = vpack.i.bf16 %v4754_v6, %v4751_v32  ;;  %v14851_v33 = vpop.f32.mrb[107].mxu0 }
0x1b84   :  { %v4704_v34 = vpop.f32.mrb[116].mxu1 }
0x1b85   :  { %15689 = vrot.lane.b32.xlu1 %v15688_v54, %s20826_s0  ;;  %v14844_v24 = vpop.f32.mrb[117].mxu1 }
0x1b86   :  { %v4707_v52 = vpop.f32.mrb[118].mxu1 }
0x1b87   :  { %v15683_v28 = vpack.i.bf16 %v4707_v52, %v4704_v34  ;;  %v14845_v29 = vpop.f32.mrb[119].mxu1 }
0x1b89   :  { %15684 = vrot.lane.b32.xlu0 %v15683_v28, %s20826_s0 }
0x1bae   :  { %v15665_v38 = vpop.permute.xlu1 %15664 }
0x1baf   :  { %v15667_v3 = vunpack.i.h.bf16 %v15665_v38  ;;  %v15666_v62 = vunpack.i.l.bf16 %v15665_v38 }
0x1bb1   :  { %v4809_v13 = vsel %vm366_vm2, %v4472_v27, %v15667_v3  ;;  %v4808_v47 = vsel %vm366_vm2, %v4469_v0, %v15666_v62 }
0x1bb2   :  { %v15670_v23 = vpop.permute.xlu0 %15669 }
0x1bb3   :  { %v15672_v43 = vunpack.i.h.bf16 %v15670_v23  ;;  %v15671_v44 = vunpack.i.l.bf16 %v15670_v23 }
0x1bb5   :  { %v4807_v0 = vsel %vm366_vm2, %v17982_v60, %v15672_v43  ;;  %v4806_v27 = vsel %vm366_vm2, %v17980_v8, %v15671_v44  ;;  %v13815_v60 = vld [vmem:[%s20732_s19] ss:$0 sm:$0xff] }
0x1bb6   :  { %v15675_v30 = vpop.permute.xlu1 %15674 }
0x1bb7   :  { %v15677_v1 = vunpack.i.h.bf16 %v15675_v30  ;;  %v15676_v61 = vunpack.i.l.bf16 %v15675_v30 }
0x1bb9   :  { %v4813_v45 = vsel %vm764_vm3, %v4809_v13, %v15677_v1  ;;  %v4812_v17 = vsel %vm764_vm3, %v4808_v47, %v15676_v61 }
0x1bba   :  { %v15680_v9 = vpop.permute.xlu0 %15679 }
0x1bbb   :  { %v15682_v41 = vunpack.i.h.bf16 %v15680_v9  ;;  %v15681_v26 = vunpack.i.l.bf16 %v15680_v9 }
0x1bbd   :  { %v4810_v58 = vsel %vm764_vm3, %v4806_v27, %v15681_v26  ;;  %v4811_v63 = vsel %vm764_vm3, %v4807_v0, %v15682_v41  ;;  %v15905_v41 = vld [vmem:[%s20733_s22] sm:$0xff]   ;;  %v15906_v26 = vld [vmem:[%s20733_s22 + $0x8] sm:$0xff]  }
0x1bbe   :  { %14860 = vmatprep.subr.bf16.mxu0 %v15905_v41  ;;  %v15911_v0 = vld [vmem:[%s20734_s24 + $0x20] sm:$0xff]   ;;  %v15912_v27 = vld [vmem:[%s20734_s24 + $0x28] sm:$0xff]  }
0x1bbf   :  { %14861 = vmatpush3.bf16.msra.mxu0 %v15905_v41 }
0x1bc0   :  { %14862 = vmatprep.subr.bf16.mxu0 %v15906_v26 }
0x1bc3   :  { %14863 = vmatpush3.bf16.msra.mxu0 %v15906_v26 }
0x1bf7   :  { %v15690_v49 = vpop.permute.xlu1 %15689 }
0x1bf8   :  { %v15692_v59 = vunpack.i.h.bf16 %v15690_v49  ;;  %v15691_v10 = vunpack.i.l.bf16 %v15690_v49 }
0x1bfa   :  { %v4817_v25 = vsel %vm1381_vm4, %v4813_v45, %v15692_v59  ;;  %v4816_v14 = vsel %vm1381_vm4, %v4812_v17, %v15691_v10 }
0x1bfb   :  { %v4819_v40 = vpack.c.bf16 %v4817_v25, %v4816_v14  ;;  %v15685_v36 = vpop.permute.xlu0 %15684  ;;  %v15907_v25 = vld [vmem:[%s20734_s24] sm:$0xff]   ;;  %v15908_v14 = vld [vmem:[%s20734_s24 + $0x8] sm:$0xff]  }
0x1bfc   :  { %v15687_v22 = vunpack.i.h.bf16 %v15685_v36  ;;  %v15686_v50 = vunpack.i.l.bf16 %v15685_v36  ;;  %14868 = vmatprep.subr.bf16.mxu1 %v15907_v25  ;;  %v15910_v36 = vld [vmem:[%s20734_s24 + $0x18] sm:$0xff]  }
0x1bfe   :  { %v4814_v18 = vsel %vm1381_vm4, %v4810_v58, %v15686_v50  ;;  %v4815_v55 = vsel %vm1381_vm4, %v4811_v63, %v15687_v22 }
0x1bff   :  { %v4818_v37 = vpack.c.bf16 %v4815_v55, %v4814_v18 }
0x1c01   :  { %14856 = vmatprep.mubr.msk.bf16.mxu1 %vm166_vm0, %v4818_v37 }
0x1c02   :  { %14857 = vmatmul.mubr.msk.bf16.vlgmr.msra.gmra.mrb[120].mxu1 %vm166_vm0, %v4819_v40  ;;  %v15909_v40 = vld [vmem:[%s20734_s24 + $0x10] sm:$0xff]  }
0x1c03   :  { %14869 = vmatpush3.bf16.msra.mxu1 %v15907_v25 }
0x1c04   :  { %14870 = vmatprep.subr.bf16.mxu1 %v15908_v14 }
0x1c07   :  { %14871 = vmatpush3.bf16.msra.mxu1 %v15908_v14 }
0x1c08   :  { %14872 = vmatprep.subr.bf16.mxu1 %v15909_v40 }
0x1c0b   :  { %14873 = vmatpush3.bf16.msra.mxu1 %v15909_v40 }
0x1c0c   :  { %14874 = vmatprep.subr.bf16.mxu1 %v15910_v36 }
0x1c0f   :  { %14875 = vmatpush3.bf16.msra.mxu1 %v15910_v36 }
0x1c10   :  { %14876 = vmatprep.subr.bf16.mxu1 %v15911_v0 }
0x1c13   :  { %14877 = vmatpush3.bf16.msra.mxu1 %v15911_v0 }
0x1c14   :  { %14878 = vmatprep.subr.bf16.mxu1 %v15912_v27 }
0x1c17   :  { %14879 = vmatpush3.bf16.msra.mxu1 %v15912_v27 }
0x1cd5   :  { %v14858_v8 = vpop.f32.mrb[120].mxu1 }
0x1cd6   :  { %v4878_v5 = vpop.f32.mrb[121].mxu1  ;;  %v4887_v56 = vadd.f32 %v14858_v8, %v13815_v60 }
0x1cd7   :  { %v4879_v48 = vadd.f32 %v13815_v60, %v4878_v5  ;;  %v14859_v21 = vpop.f32.mrb[122].mxu1 }
0x1cd8   :  { %v4881_v32 = vpop.f32.mrb[123].mxu1  ;;  %v18019_v54 = vadd.f32 %v4887_v56, %v17585_v53  ;;  %v4890_v33 = vadd.f32 %v14859_v21, %v13815_v60 }
0x1cd9   :  { %v18016_v46 = vadd.f32 %v4879_v48, %v17575_v51  ;;  %v4882_v6 = vadd.f32 %v13815_v60, %v4881_v32  ;;  %v13820_v32 = vld [vmem:[%s20735_s20] ss:$0 sm:$0xff] }
0x1cda   :  { %v18029_v28 = vadd.f32 %v4890_v33, %v17581_v7  ;;  %v4903_v51 = vsel %vm166_vm0, %v18019_v54, 0.0 }
0x1cdb   :  { %v18022_v34 = vadd.f32 %v4882_v6, %v17571_v42  ;;  %v4897_v24 = vsel %vm166_vm0, %v18016_v46, 0.0 }
0x1cdc   :  { %4898 = vadd.xlane.f32.xlu0 %v4897_v24  ;;  %v4906_v53 = vsel %vm166_vm0, %v18029_v28, 0.0 }
0x1cdd   :  { %v4900_v52 = vsel %vm166_vm0, %v18022_v34, 0.0 }
0x1cde   :  { %4901 = vadd.xlane.f32.xlu1 %v4900_v52 }
0x1ce0   :  { %4904 = vadd.xlane.f32.xlu0 %v4903_v51 }
0x1ce4   :  { %4907 = vadd.xlane.f32.xlu0 %v4906_v53  ;;  %v13821_v53 = vld [vmem:[%s20827_s9] ss:$0 sm:$0xff] }
0x1d69   :  { %v4899_v42 = vpop.xlane.xlu0 %4898 }
0x1d6a   :  { %v4909_v29 = vmul.f32 0.03125, %v4899_v42 }
0x1d6b   :  { %v4902_v38 = vpop.xlane.xlu1 %4901 }
0x1d6c   :  { %v18036_v23 = vsub.f32 %v18016_v46, %v4909_v29  ;;  %v4910_v30 = vmul.f32 0.03125, %v4902_v38 }
0x1d6d   :  { %v4905_v3 = vpop.xlane.xlu0 %4904 }
0x1d6e   :  { %v18039_v62 = vsub.f32 %v18022_v34, %v4910_v30  ;;  %v4911_v7 = vmul.f32 0.03125, %v4905_v3  ;;  %v4917_v1 = vmul.f32 %v18036_v23, %v18036_v23 }
0x1d70   :  { %v18044_v61 = vsub.f32 %v18019_v54, %v4911_v7  ;;  %v4921_v9 = vsel %vm166_vm0, %v4917_v1, 0.0  ;;  %v4918_v13 = vmul.f32 %v18039_v62, %v18039_v62 }
0x1d71   :  { %4922 = vadd.xlane.f32.xlu0 %v4921_v9  ;;  %v4908_v47 = vpop.xlane.xlu0 %4907 }
0x1d72   :  { %v4912_v49 = vmul.f32 0.03125, %v4908_v47  ;;  %v4924_v43 = vsel %vm166_vm0, %v4918_v13, 0.0  ;;  %v4919_v44 = vmul.f32 %v18044_v61, %v18044_v61 }
0x1d73   :  { %4925 = vadd.xlane.f32.xlu1 %v4924_v43  ;;  %v13822_v43 = vld [vmem:[%s20828_s23] ss:$0 sm:$0xff] }
0x1d74   :  { %v18053_v59 = vsub.f32 %v18029_v28, %v4912_v49  ;;  %v4927_v10 = vsel %vm166_vm0, %v4919_v44, 0.0  ;;  %v15914_v49 = vld [vmem:[%s20734_s24 + $0x38] sm:$0xff]  }
0x1d75   :  { %4928 = vadd.xlane.f32.xlu0 %v4927_v10 }
0x1d76   :  { %v4920_v45 = vmul.f32 %v18053_v59, %v18053_v59 }
0x1d78   :  { %v4930_v17 = vsel %vm166_vm0, %v4920_v45, 0.0 }
0x1d79   :  { %4931 = vadd.xlane.f32.xlu1 %v4930_v17 }
0x1dfe   :  { %v4923_v22 = vpop.xlane.xlu0 %4922 }
0x1dff   :  { %v4933_v50 = vmul.f32 0.03125, %v4923_v22 }
0x1e00   :  { %v4926_v58 = vpop.xlane.xlu1 %4925 }
0x1e01   :  { %v4937_v63 = vadd.f32 1e-05, %v4933_v50  ;;  %v4934_v18 = vmul.f32 0.03125, %v4926_v58  ;;  %v13827_v50 = vld [vmem:[%s20829_s28] ss:$0 sm:$0xff] }
0x1e02   :  { %v4929_v55 = vpop.xlane.xlu0 %4928 }
0x1e03   :  { %16189 = vrsqrt.f32 %v4937_v63  ;;  %v4938_v37 = vadd.f32 1e-05, %v4934_v18  ;;  %v4935_v60 = vmul.f32 0.03125, %v4929_v55 }
0x1e05   :  { %16191 = vrsqrt.f32 %v4938_v37  ;;  %v4939_v8 = vadd.f32 1e-05, %v4935_v60 }
0x1e06   :  { %v4932_v5 = vpop.xlane.xlu1 %4931 }
0x1e07   :  { %16193 = vrsqrt.f32 %v4939_v8  ;;  %v4936_v56 = vmul.f32 0.03125, %v4932_v5 }
0x1e09   :  { %v4940_v48 = vadd.f32 1e-05, %v4936_v56 }
0x1e0b   :  { %16195 = vrsqrt.f32 %v4940_v48 }
0x1e0d   :  { %v16190_v21 = vpop.eup %16189 }
0x1e0e   :  { %v4945_v6 = vmul.f32 %v16190_v21, %v18036_v23 }
0x1e0f   :  { %v16192_v33 = vpop.eup %16191 }
0x1e10   :  { %v4946_v24 = vmul.f32 %v16192_v33, %v18039_v62  ;;  %v4955_v52 = vmul.f32 %v13820_v32, %v4945_v6 }
0x1e11   :  { %v16194_v51 = vpop.eup %16193 }
0x1e12   :  { %v4947_v42 = vmul.f32 %v16194_v51, %v18044_v61  ;;  %v4956_v29 = vmul.f32 %v13820_v32, %v4946_v24  ;;  %v4965_v38 = vadd.f32 %v13821_v53, %v4955_v52  ;;  %v15913_v61 = vld [vmem:[%s20734_s24 + $0x30] sm:$0xff]  }
0x1e13   :  { %14880 = vmatprep.subr.bf16.mxu1 %v15913_v61 }
0x1e14   :  { %v4966_v30 = vadd.f32 %v13821_v53, %v4956_v29  ;;  %v4957_v9 = vmul.f32 %v13820_v32, %v4947_v42  ;;  %14881 = vmatpush3.bf16.msra.mxu1 %v15913_v61 }
0x1e15   :  { %v16196_v3 = vpop.eup %16195  ;;  %14882 = vmatprep.subr.bf16.mxu1 %v15914_v49 }
0x1e16   :  { %v4948_v7 = vmul.f32 %v16196_v3, %v18053_v59  ;;  %v4969_v1 = vpack.c.bf16 %v4966_v30, %v4965_v38  ;;  %v4967_v62 = vadd.f32 %v13821_v53, %v4957_v9 }
0x1e18   :  { %14864 = vmatprep.mubr.msk.bf16.mxu0 %vm166_vm0, %v4969_v1  ;;  %v4958_v23 = vmul.f32 %v13820_v32, %v4948_v7  ;;  %14883 = vmatpush3.bf16.msra.mxu1 %v15914_v49 }
0x1e19   :  { %14914 = vmatprep.subr.bf16.mxu1 %v20770_v39 }
0x1e1a   :  { %v4968_v13 = vadd.f32 %v13821_v53, %v4958_v23 }
0x1e1c   :  { %v4970_v47 = vpack.c.bf16 %v4968_v13, %v4967_v62 }
0x1e1e   :  { %14865 = vmatmul.mubr.msk.bf16.vlgmr.msra.gmra.mrb[108].mxu0 %vm166_vm0, %v4970_v47 }
0x1ef1   :  { %v14866_v44 = vpop.f32.mrb[108].mxu0 }
0x1ef2   :  { %v5038_v59 = vadd.f32 %v14866_v44, %v13822_v43  ;;  %v5029_v10 = vpop.f32.mrb[109].mxu0  ;;  %v15916_v44 = vld [vmem:[%s20727_s16 + $0x18] sm:$0xff]  }
0x1ef3   :  { %v5030_v45 = vadd.f32 %v13822_v43, %v5029_v10  ;;  %v14867_v17 = vpop.f32.mrb[110].mxu0 }
0x1ef4   :  { %v5041_v41 = vadd.f32 %v14867_v17, %v13822_v43  ;;  %v5032_v26 = vpop.f32.mrb[111].mxu0  ;;  %v5046_v14 = vmax.f32 %v5038_v59, 0.0 }
0x1ef5   :  { %v5033_v25 = vadd.f32 %v13822_v43, %v5032_v26  ;;  %v5044_v36 = vmax.f32 %v5030_v45, 0.0  ;;  %v15915_v43 = vld [vmem:[%s20727_s16 + $0x10] sm:$0xff]  }
0x1ef6   :  { %v5047_v40 = vmax.f32 %v5041_v41, 0.0  ;;  %14888 = vmatprep.subr.bf16.mxu0 %v15915_v43 }
0x1ef7   :  { %v5045_v0 = vmax.f32 %v5033_v25, 0.0  ;;  %14889 = vmatpush3.bf16.msra.mxu0 %v15915_v43 }
0x1ef8   :  { %v5049_v27 = vpack.c.bf16 %v5047_v40, %v5046_v14  ;;  %14890 = vmatprep.subr.bf16.mxu0 %v15916_v44 }
0x1ef9   :  { %v5048_v22 = vpack.c.bf16 %v5045_v0, %v5044_v36 }
0x1efb   :  { %14884 = vmatprep.mubr.bf16.mxu1 %v5048_v22  ;;  %14891 = vmatpush3.bf16.msra.mxu0 %v15916_v44 }
0x1efc   :  { %14885 = vmatmul.mubr.bf16.vlgmr.msra.gmra.mrb[124].mxu1 %v5049_v27  ;;  %14896 = vmatprep.subr.bf16.mxu0 %v20770_v39 }
0x1efd   :  { %14916 = vmatprep.mubr.msk.bf16.mxu1 %vm16443_vm1, %v20770_v39 }
0x1fcf   :  { %v14886_v58 = vpop.f32.mrb[124].mxu1 }
0x1fd0   :  { %v5138_v63 = vpop.f32.mrb[125].mxu1  ;;  %v5147_v18 = vadd.f32 %v14886_v58, %v13827_v50 }
0x1fd1   :  { %v5139_v55 = vadd.f32 %v13827_v50, %v5138_v63  ;;  %v14887_v37 = vpop.f32.mrb[126].mxu1 }
0x1fd2   :  { %v5141_v60 = vpop.f32.mrb[127].mxu1  ;;  %v5150_v5 = vadd.f32 %v14887_v37, %v13827_v50  ;;  %v18114_v48 = vadd.f32 %v5147_v18, %v18019_v54 }
0x1fd3   :  { %v18111_v8 = vadd.f32 %v5139_v55, %v18016_v46  ;;  %v5142_v56 = vadd.f32 %v13827_v50, %v5141_v60  ;;  %v13872_v50 = vld [vmem:[%s20728_s14 + $0x1] ss:$0 sm:$0xff] }
0x1fd4   :  { %v18122_v6 = vadd.f32 %v5150_v5, %v18029_v28  ;;  %v5211_v46 = vsel %vm166_vm0, %v18114_v48, 0.0  ;;  %v13873_v60 = vld [vmem:[%s20729_s15 + $0x1] ss:$0 sm:$0xff] }
0x1fd5   :  { %v18117_v21 = vadd.f32 %v5142_v56, %v18022_v34  ;;  %v5205_v32 = vsel %vm166_vm0, %v18111_v8, 0.0 }
0x1fd6   :  { %5206 = vadd.xlane.f32.xlu0 %v5205_v32  ;;  %v5214_v54 = vsel %vm166_vm0, %v18122_v6, 0.0 }
0x1fd7   :  { %v5208_v33 = vsel %vm166_vm0, %v18117_v21, 0.0 }
0x1fd8   :  { %5209 = vadd.xlane.f32.xlu1 %v5208_v33 }
0x1fda   :  { %5212 = vadd.xlane.f32.xlu0 %v5211_v46 }
0x1fdc   :  { %5215 = vadd.xlane.f32.xlu1 %v5214_v54 }
0x2063   :  { %v5207_v34 = vpop.xlane.xlu0 %5206 }
0x2064   :  { %v5217_v24 = vmul.f32 0.03125, %v5207_v34 }
0x2065   :  { %v5210_v52 = vpop.xlane.xlu1 %5209 }
0x2066   :  { %v5221_v51 = vsub.f32 %v18111_v8, %v5217_v24  ;;  %v5218_v53 = vmul.f32 0.03125, %v5210_v52 }
0x2067   :  { %v5213_v28 = vpop.xlane.xlu0 %5212 }
0x2068   :  { %v5222_v42 = vsub.f32 %v18117_v21, %v5218_v53  ;;  %v5219_v29 = vmul.f32 0.03125, %v5213_v28  ;;  %v5225_v38 = vmul.f32 %v5221_v51, %v5221_v51 }
0x2069   :  { %v5216_v30 = vpop.xlane.xlu1 %5215 }
0x206a   :  { %v5223_v3 = vsub.f32 %v18114_v48, %v5219_v29  ;;  %v5220_v7 = vmul.f32 0.03125, %v5216_v30  ;;  %v5229_v1 = vsel %vm166_vm0, %v5225_v38, 0.0  ;;  %v5226_v9 = vmul.f32 %v5222_v42, %v5222_v42  ;;  %v13874_v29 = vld [vmem:[%s20730_s17 + $0x1] ss:$0 sm:$0xff] }
0x206b   :  { %5230 = vadd.xlane.f32.xlu0 %v5229_v1 }
0x206c   :  { %v5224_v23 = vsub.f32 %v18122_v6, %v5220_v7  ;;  %v5232_v62 = vsel %vm166_vm0, %v5226_v9, 0.0  ;;  %v5227_v13 = vmul.f32 %v5223_v3, %v5223_v3 }
0x206d   :  { %5233 = vadd.xlane.f32.xlu1 %v5232_v62 }
0x206e   :  { %v5235_v47 = vsel %vm166_vm0, %v5227_v13, 0.0  ;;  %v5228_v61 = vmul.f32 %v5224_v23, %v5224_v23 }
0x206f   :  { %5236 = vadd.xlane.f32.xlu0 %v5235_v47 }
0x2070   :  { %v5238_v49 = vsel %vm166_vm0, %v5228_v61, 0.0 }
0x2071   :  { %5239 = vadd.xlane.f32.xlu1 %v5238_v49 }
0x20f8   :  { %v5231_v59 = vpop.xlane.xlu0 %5230 }
0x20f9   :  { %v5241_v10 = vmul.f32 0.03125, %v5231_v59 }
0x20fa   :  { %v5234_v45 = vpop.xlane.xlu1 %5233 }
0x20fb   :  { %v5245_v17 = vadd.f32 1e-05, %v5241_v10  ;;  %v5242_v41 = vmul.f32 0.03125, %v5234_v45 }
0x20fc   :  { %v5237_v26 = vpop.xlane.xlu0 %5236 }
0x20fd   :  { %16197 = vrsqrt.f32 %v5245_v17  ;;  %v5246_v25 = vadd.f32 1e-05, %v5242_v41  ;;  %v5243_v14 = vmul.f32 0.03125, %v5237_v26 }
0x20fe   :  { %v5240_v40 = vpop.xlane.xlu1 %5239 }
0x20ff   :  { %16199 = vrsqrt.f32 %v5246_v25  ;;  %v5247_v36 = vadd.f32 1e-05, %v5243_v14  ;;  %v5244_v0 = vmul.f32 0.03125, %v5240_v40 }
0x2101   :  { %16201 = vrsqrt.f32 %v5247_v36  ;;  %v5248_v27 = vadd.f32 1e-05, %v5244_v0 }
0x2103   :  { %16203 = vrsqrt.f32 %v5248_v27 }
0x2107   :  { %v16198_v22 = vpop.eup %16197 }
0x2108   :  { %v5253_v58 = vmul.f32 %v16198_v22, %v5221_v51 }
0x2109   :  { %v16200_v63 = vpop.eup %16199 }
0x210a   :  { %v5254_v18 = vmul.f32 %v16200_v63, %v5222_v42  ;;  %v5263_v55 = vmul.f32 %v13872_v50, %v5253_v58 }
0x210b   :  { %v16202_v37 = vpop.eup %16201 }
0x210c   :  { %v5255_v5 = vmul.f32 %v16202_v37, %v5223_v3  ;;  %v5264_v56 = vmul.f32 %v13872_v50, %v5254_v18  ;;  %v5273_v46 = vadd.f32 %v13873_v60, %v5263_v55 }
0x210d   :  { %v16204_v32 = vpop.eup %16203 }
0x210e   :  { %v5256_v33 = vmul.f32 %v16204_v32, %v5224_v23  ;;  %v5274_v54 = vadd.f32 %v13873_v60, %v5264_v56  ;;  %v5265_v34 = vmul.f32 %v13872_v50, %v5255_v5 }
0x2110   :  { %v5277_v24 = vpack.c.bf16 %v5274_v54, %v5273_v46  ;;  %v5266_v52 = vmul.f32 %v13872_v50, %v5256_v33  ;;  %v5275_v51 = vadd.f32 %v13873_v60, %v5265_v34 }
0x2112   :  { %14892 = vmatprep.mubr.msk.bf16.mxu0 %vm166_vm0, %v5277_v24  ;;  %v5276_v53 = vadd.f32 %v13873_v60, %v5266_v52 }
0x2114   :  { %v5278_v28 = vpack.c.bf16 %v5276_v53, %v5275_v51 }
0x2116   :  { %14893 = vmatmul.mubr.msk.bf16.vlgmr.msra.gmra.mrb[112].mxu0 %vm166_vm0, %v5278_v28 }
0x2117   :  { %14898 = vmatprep.mubr.msk.bf16.mxu0 %vm16443_vm1, %v20770_v39 }
0x21e9   :  { %v14894_v42 = vpop.f32.mrb[112].mxu0 }
0x21ea   :  { %v5337_v38 = vpop.f32.mrb[113].mxu0  ;;  %v5346_v3 = vadd.f32 %v14894_v42, %v13874_v29 }
0x21eb   :  { %v14895_v30 = vpop.f32.mrb[114].mxu0  ;;  %v5338_v9 = vadd.f32 %v13874_v29, %v5337_v38 }
0x21ec   :  { %v5349_v7 = vadd.f32 %v14895_v30, %v13874_v29  ;;  %v5340_v1 = vpop.f32.mrb[115].mxu0 }
0x21ed   :  { %v5341_v23 = vadd.f32 %v13874_v29, %v5340_v1 }
0x21ee   :  { %v15698_v62 = vpack.i.bf16 %v5349_v7, %v5346_v3  ;;  %v18158_v13 = vpack.c.bf16 %v5349_v7, %v5346_v3 }
0x21ef   :  { %v15693_v47 = vpack.i.bf16 %v5341_v23, %v5338_v9  ;;  %v18160_v61 = vpack.c.bf16 %v5341_v23, %v5338_v9 }
0x21f0   :  { %15699 = vrot.lane.b32.xlu1 %v15698_v62, %s20819_s2 }
0x21f1   :  { %15694 = vrot.lane.b32.xlu0 %v15693_v47, %s20819_s2 }
0x21f4   :  { %15704 = vrot.lane.b32.xlu1 %v15693_v47, %s20820_s6 }
0x21f5   :  { %15714 = vrot.lane.b32.xlu0 %v15693_v47, %s20821_s4 }
0x21f8   :  { %15709 = vrot.lane.b32.xlu1 %v15698_v62, %s20820_s6 }
0x21f9   :  { %5401 = vrot.lane.b32.xlu0 %v18160_v61, %s20822_s27 }
0x21fc   :  { %15719 = vrot.lane.b32.xlu1 %v15698_v62, %s20821_s4 }
0x2200   :  { %5451 = vrot.lane.b32.xlu1 %v18158_v13, %s20822_s27 }
0x2262   :  { %v15700_v49 = vpop.permute.xlu1 %15699 }
0x2263   :  { %v15702_v43 = vunpack.i.h.bf16 %v15700_v49  ;;  %v15701_v44 = vunpack.i.l.bf16 %v15700_v49  ;;  %v15695_v59 = vpop.permute.xlu0 %15694 }
0x2264   :  { %v15697_v10 = vunpack.i.h.bf16 %v15695_v59  ;;  %v15696_v45 = vunpack.i.l.bf16 %v15695_v59 }
0x2265   :  { %v18172_v17 = vpack.c.bf16 %v15702_v43, %v15701_v44 }
0x2266   :  { %v18174_v41 = vpack.c.bf16 %v15697_v10, %v15696_v45  ;;  %v15705_v26 = vpop.permute.xlu1 %15704 }
0x2267   :  { %v15707_v25 = vunpack.i.h.bf16 %v15705_v26  ;;  %v15706_v14 = vunpack.i.l.bf16 %v15705_v26  ;;  %5551 = vrot.lane.b32.xlu1 %v18172_v17, %s20822_s27  ;;  %v15715_v40 = vpop.permute.xlu0 %15714 }
0x2268   :  { %5501 = vrot.lane.b32.xlu0 %v18174_v41, %s20822_s27  ;;  %v15717_v0 = vunpack.i.h.bf16 %v15715_v40  ;;  %v15716_v27 = vunpack.i.l.bf16 %v15715_v40 }
0x2269   :  { %v18180_v36 = vpack.c.bf16 %v15707_v25, %v15706_v14 }
0x226a   :  { %v15710_v22 = vpop.permute.xlu1 %15709  ;;  %v18187_v37 = vpack.c.bf16 %v15717_v0, %v15716_v27 }
0x226b   :  { %v15712_v50 = vunpack.i.h.bf16 %v15710_v22  ;;  %v15711_v58 = vunpack.i.l.bf16 %v15710_v22  ;;  %v5402_v63 = vpop.permute.xlu0 %5401 }
0x226c   :  { %v5407_v18 = vsel %vm366_vm2, %v5402_v63, 0  ;;  %5601 = vrot.lane.b32.xlu0 %v18180_v36, %s20822_s27 }
0x226d   :  { %v18185_v55 = vpack.c.bf16 %v15712_v50, %v15711_v58  ;;  %14897 = vmatpush3.bf16.xpose.msra.mxu0 %v5407_v18 }
0x226e   :  { %v15720_v60 = vpop.permute.xlu1 %15719  ;;  %14902 = vmatprep.subr.bf16.mxu0 %v20770_v39 }
0x226f   :  { %v15722_v5 = vunpack.i.h.bf16 %v15720_v60  ;;  %v15721_v56 = vunpack.i.l.bf16 %v15720_v60  ;;  %5651 = vrot.lane.b32.xlu1 %v18185_v55, %s20822_s27 }
0x2270   :  { %5701 = vrot.lane.b32.xlu0 %v18187_v37, %s20822_s27 }
0x2271   :  { %v18194_v32 = vpack.c.bf16 %v15722_v5, %v15721_v56 }
0x2272   :  { %v5452_v33 = vpop.permute.xlu1 %5451 }
0x2273   :  { %v5457_v46 = vsel %vm366_vm2, %v5452_v33, 0  ;;  %5751 = vrot.lane.b32.xlu1 %v18194_v32, %s20822_s27 }
0x2274   :  { %14899 = vmatmul.mubr.msk.bf16.vlgmr.msra.gmra.mrb[116].mxu0 %vm366_vm2, %v18160_v61 }
0x2275   :  { %14903 = vmatpush3.bf16.xpose.msra.mxu0 %v5457_v46  ;;  %14904 = vmatprep.mubr.msk.bf16.mxu0 %vm16443_vm1, %v20770_v39 }
0x2276   :  { %14908 = vmatprep.subr.bf16.mxu0 %v20770_v39 }
0x227c   :  { %14905 = vmatmul.mubr.msk.bf16.vlgmr.msra.gmra.mrb[120].mxu0 %vm366_vm2, %v18158_v13 }
0x227d   :  { %14910 = vmatprep.mubr.msk.bf16.mxu0 %vm16443_vm1, %v20770_v39 }
0x22d9   :  { %v5552_v54 = vpop.permute.xlu1 %5551 }
0x22da   :  { %v5557_v34 = vsel %vm366_vm2, %v5552_v54, 0  ;;  %v5502_v24 = vpop.permute.xlu0 %5501 }
0x22db   :  { %v5507_v52 = vsel %vm366_vm2, %v5502_v24, 0  ;;  %14915 = vmatpush3.bf16.xpose.msra.mxu1 %v5557_v34 }
0x22dc   :  { %14909 = vmatpush3.bf16.xpose.msra.mxu0 %v5507_v52  ;;  %14926 = vmatprep.subr.bf16.mxu1 %v20770_v39 }
0x22dd   :  { %14920 = vmatprep.subr.bf16.mxu0 %v20770_v39 }
0x22de   :  { %v5602_v51 = vpop.permute.xlu0 %5601 }
0x22df   :  { %v5607_v42 = vsel %vm366_vm2, %v5602_v51, 0 }
0x22e1   :  { %v5652_v53 = vpop.permute.xlu1 %5651 }
0x22e2   :  { %v5657_v28 = vsel %vm366_vm2, %v5652_v53, 0  ;;  %14917 = vmatmul.mubr.msk.bf16.vlgmr.msra.gmra.mrb[128].mxu1 %vm366_vm2, %v18172_v17  ;;  %v5702_v38 = vpop.permute.xlu0 %5701 }
0x22e3   :  { %14911 = vmatmul.mubr.msk.bf16.vlgmr.msra.gmra.mrb[124].mxu0 %vm366_vm2, %v18174_v41  ;;  %14927 = vmatpush3.bf16.xpose.msra.mxu1 %v5657_v28  ;;  %v5707_v3 = vsel %vm366_vm2, %v5702_v38, 0 }
0x22e4   :  { %14921 = vmatpush3.bf16.xpose.msra.mxu0 %v5607_v42  ;;  %14928 = vmatprep.mubr.msk.bf16.mxu1 %vm16443_vm1, %v20770_v39 }
0x22e5   :  { %14922 = vmatprep.mubr.msk.bf16.mxu0 %vm16443_vm1, %v20770_v39  ;;  %14938 = vmatprep.subr.bf16.mxu1 %v20770_v39  ;;  %v5752_v29 = vpop.permute.xlu1 %5751 }
0x22e6   :  { %14932 = vmatprep.subr.bf16.mxu0 %v20770_v39  ;;  %v5757_v30 = vsel %vm366_vm2, %v5752_v29, 0 }
0x22ea   :  { %14929 = vmatmul.mubr.msk.bf16.vlgmr.msra.gmra.mrb[132].mxu1 %vm366_vm2, %v18185_v55 }
0x22eb   :  { %14923 = vmatmul.mubr.msk.bf16.vlgmr.msra.gmra.mrb[128].mxu0 %vm366_vm2, %v18180_v36  ;;  %14939 = vmatpush3.bf16.xpose.msra.mxu1 %v5757_v30 }
0x22ec   :  { %14933 = vmatpush3.bf16.xpose.msra.mxu0 %v5707_v3  ;;  %14940 = vmatprep.mubr.msk.bf16.mxu1 %vm16443_vm1, %v20770_v39 }
0x22ed   :  { %14934 = vmatprep.mubr.msk.bf16.mxu0 %vm16443_vm1, %v20770_v39  ;;  %14950 = vmatprep.subr.bf16.mxu1 %v20770_v39 }
0x22ee   :  { %14944 = vmatprep.subr.bf16.mxu0 %v20770_v39 }
0x22f2   :  { %14941 = vmatmul.mubr.msk.bf16.vlgmr.msra.gmra.mrb[136].mxu1 %vm366_vm2, %v18194_v32 }
0x22f3   :  { %14935 = vmatmul.mubr.msk.bf16.vlgmr.msra.gmra.mrb[132].mxu0 %vm366_vm2, %v18187_v37  ;;  %14952 = vmatprep.mubr.msk.bf16.mxu1 %vm16443_vm1, %v20770_v39 }
0x22f4   :  { %14946 = vmatprep.mubr.msk.bf16.mxu0 %vm16443_vm1, %v20770_v39 }
0x2347   :  { %v18244_v7 = vpop.f32.mrb[116].mxu0 }
0x2348   :  { %v14900_v1 = vpop.f32.mrb[117].mxu0  ;;  %v5800_v9 = vsel %vm764_vm3, %v18244_v7, -inf }
0x2349   :  { %5801 = vmax.xlane.f32.xlu0 %v5800_v9  ;;  %v18248_v23 = vpop.f32.mrb[118].mxu0 }
0x234a   :  { %v14901_v62 = vpop.f32.mrb[119].mxu0  ;;  %v5803_v47 = vsel %vm764_vm3, %v18248_v23, -inf }
0x234b   :  { %5804 = vmax.xlane.f32.xlu1 %v5803_v47 }
0x234f   :  { %v18252_v49 = vpop.f32.mrb[120].mxu0 }
0x2350   :  { %v14906_v43 = vpop.f32.mrb[121].mxu0  ;;  %v5806_v44 = vsel %vm764_vm3, %v18252_v49, -inf }
0x2351   :  { %5807 = vmax.xlane.f32.xlu0 %v5806_v44  ;;  %v18256_v59 = vpop.f32.mrb[122].mxu0 }
0x2352   :  { %v14907_v10 = vpop.f32.mrb[123].mxu0  ;;  %v5809_v45 = vsel %vm764_vm3, %v18256_v59, -inf }
0x2355   :  { %5810 = vmax.xlane.f32.xlu0 %v5809_v45 }
0x23b5   :  { %v18260_v26 = vpop.f32.mrb[128].mxu1 }
0x23b6   :  { %v18262_v25 = vpop.f32.mrb[124].mxu0  ;;  %v14918_v14 = vpop.f32.mrb[129].mxu1  ;;  %v5818_v40 = vsel %vm764_vm3, %v18260_v26, -inf }
0x23b7   :  { %v18266_v0 = vpop.f32.mrb[130].mxu1  ;;  %5819 = vmax.xlane.f32.xlu0 %v5818_v40  ;;  %v14912_v27 = vpop.f32.mrb[125].mxu0  ;;  %v5812_v18 = vsel %vm764_vm3, %v18262_v25, -inf }
0x23b8   :  { %v18268_v22 = vpop.f32.mrb[126].mxu0  ;;  %v14919_v50 = vpop.f32.mrb[131].mxu1  ;;  %v5821_v58 = vsel %vm764_vm3, %v18266_v0, -inf }
0x23b9   :  { %5822 = vmax.xlane.f32.xlu1 %v5821_v58  ;;  %v14913_v63 = vpop.f32.mrb[127].mxu0  ;;  %v5815_v60 = vsel %vm764_vm3, %v18268_v22, -inf }
0x23bb   :  { %5813 = vmax.xlane.f32.xlu0 %v5812_v18 }
0x23bd   :  { %v18276_v5 = vpop.f32.mrb[132].mxu1  ;;  %5816 = vmax.xlane.f32.xlu1 %v5815_v60 }
0x23be   :  { %v18278_v56 = vpop.f32.mrb[128].mxu0  ;;  %v14930_v33 = vpop.f32.mrb[133].mxu1  ;;  %v5830_v46 = vsel %vm764_vm3, %v18276_v5, -inf }
0x23bf   :  { %v18282_v54 = vpop.f32.mrb[134].mxu1  ;;  %5831 = vmax.xlane.f32.xlu0 %v5830_v46  ;;  %v14924_v34 = vpop.f32.mrb[129].mxu0  ;;  %v5824_v28 = vsel %vm764_vm3, %v18278_v56, -inf }
0x23c0   :  { %v18284_v24 = vpop.f32.mrb[130].mxu0  ;;  %v14931_v52 = vpop.f32.mrb[135].mxu1  ;;  %v5833_v51 = vsel %vm764_vm3, %v18282_v54, -inf }
0x23c1   :  { %5834 = vmax.xlane.f32.xlu1 %v5833_v51  ;;  %v14925_v53 = vpop.f32.mrb[131].mxu0  ;;  %v5827_v42 = vsel %vm764_vm3, %v18284_v24, -inf }
0x23c3   :  { %5825 = vmax.xlane.f32.xlu0 %v5824_v28 }
0x23c5   :  { %v18292_v29 = vpop.f32.mrb[136].mxu1  ;;  %5828 = vmax.xlane.f32.xlu1 %v5827_v42 }
0x23c6   :  { %v18294_v38 = vpop.f32.mrb[132].mxu0  ;;  %v14942_v30 = vpop.f32.mrb[137].mxu1  ;;  %v5842_v3 = vsel %vm764_vm3, %v18292_v29, -inf }
0x23c7   :  { %v18298_v1 = vpop.f32.mrb[138].mxu1  ;;  %5843 = vmax.xlane.f32.xlu0 %v5842_v3  ;;  %v14936_v9 = vpop.f32.mrb[133].mxu0  ;;  %v5836_v44 = vsel %vm764_vm3, %v18294_v38, -inf }
0x23c8   :  { %v18300_v62 = vpop.f32.mrb[134].mxu0  ;;  %v14943_v47 = vpop.f32.mrb[139].mxu1 }
0x23c9   :  { %v14937_v43 = vpop.f32.mrb[135].mxu0 }
0x23cb   :  { %5837 = vmax.xlane.f32.xlu0 %v5836_v44 }
0x23d6   :  { %6031 = vrot.lane.b32.xlu1 %v18158_v13, %s20823_s26  ;;  %v5802_v10 = vpop.xlane.xlu0 %5801 }
0x23d7   :  { %v5848_v45 = vsub.f32 %v18244_v7, %v5802_v10  ;;  %v5839_v7 = vsel %vm764_vm3, %v18300_v62, -inf }
0x23d8   :  { %v5805_v50 = vpop.xlane.xlu1 %5804 }
0x23d9   :  { %v5864_v40 = vmul.f32 1.442695, %v5848_v45  ;;  %v5849_v58 = vsub.f32 %v18248_v23, %v5805_v50 }
0x23da   :  { %6078 = vrot.lane.b32.xlu1 %v18174_v41, %s20823_s26 }
0x23db   :  { %16205 = vpow2.f32 %v5864_v40  ;;  %v5866_v18 = vmul.f32 1.442695, %v5849_v58 }
0x23de   :  { %6125 = vrot.lane.b32.xlu1 %v18172_v17, %s20823_s26  ;;  %v5808_v14 = vpop.xlane.xlu0 %5807  ;;  %v5845_v17 = vsel %vm764_vm3, %v18298_v1, -inf }
0x23df   :  { %v5850_v27 = vsub.f32 %v18252_v49, %v5808_v14 }
0x23e1   :  { %5984 = vrot.lane.b32.xlu0 %v18160_v61, %s20823_s26  ;;  %v5868_v13 = vmul.f32 1.442695, %v5850_v27 }
0x23e2   :  { %v5811_v63 = vpop.xlane.xlu0 %5810 }
0x23e3   :  { %16207 = vpow2.f32 %v5868_v13  ;;  %v5851_v60 = vsub.f32 %v18256_v59, %v5811_v63 }
0x23e4   :  { %16209 = vpow2.f32 %v5866_v18 }
0x23e5   :  { %6172 = vrot.lane.b32.xlu0 %v18180_v36, %s20823_s26  ;;  %v18316_v41 = vpop.eup %16205  ;;  %v5870_v33 = vmul.f32 1.442695, %v5851_v60 }
0x23e6   :  { %v5896_v61 = vsel %vm764_vm3, %v18316_v41, 0.0 }
0x23e7   :  { %16211 = vpow2.f32 %v5870_v33 }
0x23ed   :  { %v18322_v36 = vpop.eup %16207 }
0x23ee   :  { %v5902_v49 = vsel %vm764_vm3, %v18322_v36, 0.0  ;;  %v18332_v46 = vpop.eup %16209 }
0x23ef   :  { %v5899_v34 = vsel %vm764_vm3, %v18332_v46, 0.0 }
0x23f1   :  { %v18336_v52 = vpop.eup %16211 }
0x2402   :  { %5846 = vmax.xlane.f32.xlu1 %v5845_v17 }
0x2404   :  { %5897 = vadd.xlane.f32.xlu0 %v5896_v61 }
0x2406   :  { %5840 = vmax.xlane.f32.xlu1 %v5839_v7 }
0x2408   :  { %5903 = vadd.xlane.f32.xlu0 %v5902_v49 }
0x2417   :  { %6219 = vrot.lane.b32.xlu1 %v18185_v55, %s20823_s26  ;;  %v5905_v55 = vsel %vm764_vm3, %v18336_v52, 0.0 }
0x243b   :  { %5900 = vadd.xlane.f32.xlu1 %v5899_v34 }
0x243f   :  { %5906 = vadd.xlane.f32.xlu1 %v5905_v55 }
0x2444   :  { %v5820_v23 = vpop.xlane.xlu0 %5819 }
0x2445   :  { %v5854_v51 = vsub.f32 %v18260_v26, %v5820_v23 }
0x2446   :  { %v5823_v53 = vpop.xlane.xlu1 %5822 }
0x2447   :  { %v5876_v59 = vmul.f32 1.442695, %v5854_v51  ;;  %v5855_v28 = vsub.f32 %v18266_v0, %v5823_v53 }
0x2448   :  { %v5814_v42 = vpop.xlane.xlu0 %5813 }
0x2449   :  { %16213 = vpow2.f32 %v5876_v59  ;;  %v5878_v30 = vmul.f32 1.442695, %v5855_v28  ;;  %v5852_v3 = vsub.f32 %v18262_v25, %v5814_v42 }
0x244a   :  { %v5817_v9 = vpop.xlane.xlu1 %5816 }
0x244b   :  { %16215 = vpow2.f32 %v5878_v30  ;;  %v5872_v47 = vmul.f32 1.442695, %v5852_v3  ;;  %v5853_v43 = vsub.f32 %v18268_v22, %v5817_v9 }
0x244c   :  { %v5832_v44 = vpop.xlane.xlu0 %5831 }
0x244d   :  { %16217 = vpow2.f32 %v5872_v47  ;;  %v5874_v10 = vmul.f32 1.442695, %v5853_v43  ;;  %v5858_v45 = vsub.f32 %v18276_v5, %v5832_v44 }
0x244e   :  { %v5835_v26 = vpop.xlane.xlu1 %5834 }
0x244f   :  { %16219 = vpow2.f32 %v5874_v10  ;;  %v5884_v14 = vmul.f32 1.442695, %v5858_v45  ;;  %v5859_v0 = vsub.f32 %v18282_v54, %v5835_v26 }
0x2450   :  { %v5826_v40 = vpop.xlane.xlu0 %5825 }
0x2451   :  { %16221 = vpow2.f32 %v5884_v14  ;;  %v5886_v27 = vmul.f32 1.442695, %v5859_v0  ;;  %v5856_v25 = vsub.f32 %v18278_v56, %v5826_v40 }
0x2452   :  { %v5829_v13 = vpop.xlane.xlu1 %5828 }
0x2453   :  { %v18347_v17 = vpop.eup %16213  ;;  %16223 = vpow2.f32 %v5886_v27  ;;  %v5880_v22 = vmul.f32 1.442695, %v5856_v25  ;;  %v5857_v61 = vsub.f32 %v18284_v24, %v5829_v13 }
0x2454   :  { %v5844_v7 = vpop.xlane.xlu0 %5843  ;;  %v5914_v5 = vsel %vm764_vm3, %v18347_v17, 0.0 }
0x2455   :  { %v18352_v49 = vpop.eup %16215  ;;  %16225 = vpow2.f32 %v5880_v22  ;;  %v5882_v54 = vmul.f32 1.442695, %v5857_v61  ;;  %v5862_v50 = vsub.f32 %v18292_v29, %v5844_v7  ;;  %5915 = vadd.xlane.f32.xlu0 %v5914_v5 }
0x2456   :  { %v6032_v58 = vpop.permute.xlu1 %6031  ;;  %v5917_v56 = vsel %vm764_vm3, %v18352_v49, 0.0 }
0x2457   :  { %v18357_v63 = vpop.eup %16217  ;;  %16227 = vpow2.f32 %v5882_v54  ;;  %v5892_v18 = vmul.f32 1.442695, %v5862_v50  ;;  %14951 = vmatpush3.bf16.msra.mxu1 %v6032_v58  ;;  %5918 = vadd.xlane.f32.xlu1 %v5917_v56 }
0x2458   :  { %v5838_v24 = vpop.xlane.xlu0 %5837  ;;  %v5908_v60 = vsel %vm764_vm3, %v18357_v63, 0.0  ;;  %14962 = vmatprep.subr.bf16.mxu1 %v20770_v39 }
0x2459   :  { %v18362_v33 = vpop.eup %16219  ;;  %16229 = vpow2.f32 %v5892_v18  ;;  %v5860_v29 = vsub.f32 %v18294_v38, %v5838_v24  ;;  %5909 = vadd.xlane.f32.xlu0 %v5908_v60 }
0x245a   :  { %v5911_v34 = vsel %vm764_vm3, %v18362_v33, 0.0  ;;  %v6079_v10 = vpop.permute.xlu1 %6078 }
0x245b   :  { %v18367_v55 = vpop.eup %16221  ;;  %v5888_v23 = vmul.f32 1.442695, %v5860_v29  ;;  %5912 = vadd.xlane.f32.xlu1 %v5911_v34 }
0x245c   :  { %v5985_v51 = vpop.permute.xlu0 %5984  ;;  %v5926_v53 = vsel %vm764_vm3, %v18367_v55, 0.0 }
0x245d   :  { %v18371_v59 = vpop.eup %16223  ;;  %16231 = vpow2.f32 %v5888_v23  ;;  %5927 = vadd.xlane.f32.xlu0 %v5926_v53  ;;  %14945 = vmatpush3.bf16.msra.mxu0 %v5985_v51 }
0x245e   :  { %v5929_v38 = vsel %vm764_vm3, %v18371_v59, 0.0  ;;  %14956 = vmatprep.subr.bf16.mxu0 %v20770_v39  ;;  %v6126_v45 = vpop.permute.xlu1 %6125 }
0x245f   :  { %v18376_v28 = vpop.eup %16225  ;;  %5930 = vadd.xlane.f32.xlu1 %v5929_v38 }
0x2460   :  { %v5920_v42 = vsel %vm764_vm3, %v18376_v28, 0.0 }
0x2461   :  { %v18380_v30 = vpop.eup %16227  ;;  %5921 = vadd.xlane.f32.xlu0 %v5920_v42 }
0x2462   :  { %v5923_v3 = vsel %vm764_vm3, %v18380_v30, 0.0 }
0x2463   :  { %v18384_v9 = vpop.eup %16229  ;;  %5924 = vadd.xlane.f32.xlu1 %v5923_v3 }
0x2464   :  { %v5938_v47 = vsel %vm764_vm3, %v18384_v9, 0.0 }
0x2465   :  { %5939 = vadd.xlane.f32.xlu0 %v5938_v47 }
0x2467   :  { %v18388_v43 = vpop.eup %16231 }
0x2468   :  { %v5932_v44 = vsel %vm764_vm3, %v18388_v43, 0.0 }
0x2469   :  { %5933 = vadd.xlane.f32.xlu0 %v5932_v44 }
0x247f   :  { %6266 = vrot.lane.b32.xlu0 %v18187_v37, %s20823_s26 }
0x248f   :  { %v5847_v26 = vpop.xlane.xlu1 %5846 }
0x2490   :  { %v5863_v14 = vsub.f32 %v18298_v1, %v5847_v26  ;;  %v18406_v1 = vpop.permute.xlu0 %6172 }
0x2492   :  { %v5894_v0 = vmul.f32 1.442695, %v5863_v14 }
0x2493   :  { %v5841_v40 = vpop.xlane.xlu1 %5840 }
0x2494   :  { %16233 = vpow2.f32 %v5894_v0  ;;  %v5861_v27 = vsub.f32 %v18300_v62, %v5841_v40  ;;  %v5898_v62 = vpop.xlane.xlu0 %5897 }
0x2496   :  { %v5890_v25 = vmul.f32 1.442695, %v5861_v27 }
0x2497   :  { %v6220_v7 = vpop.permute.xlu1 %6219 }
0x2498   :  { %16235 = vpow2.f32 %v5890_v25  ;;  %v5904_v5 = vpop.xlane.xlu0 %5903 }
0x2499   :  { %16237 = vrcp.f32 %v5898_v62 }
0x249e   :  { %v18396_v13 = vpop.eup %16233 }
0x249f   :  { %v5941_v22 = vsel %vm764_vm3, %v18396_v13, 0.0 }
0x24a0   :  { %5942 = vadd.xlane.f32.xlu1 %v5941_v22 }
0x24a2   :  { %v18400_v61 = vpop.eup %16235 }
0x24a3   :  { %v5935_v37 = vsel %vm764_vm3, %v18400_v61, 0.0  ;;  %v16238_v58 = vpop.eup %16237 }
0x24a4   :  { %5936 = vadd.xlane.f32.xlu1 %v5935_v37  ;;  %v5945_v18 = vmul.f32 %v16238_v58, %v18316_v41 }
0x24b5   :  { %6313 = vrot.lane.b32.xlu1 %v18194_v32, %s20823_s26 }
0x24c8   :  { %v5901_v54 = vpop.xlane.xlu1 %5900 }
0x24c9   :  { %16239 = vrcp.f32 %v5901_v54 }
0x24ca   :  { %16241 = vrcp.f32 %v5904_v5 }
0x24cc   :  { %v5907_v50 = vpop.xlane.xlu1 %5906 }
0x24cd   :  { %16243 = vrcp.f32 %v5907_v50 }
0x24d3   :  { %v16240_v56 = vpop.eup %16239 }
0x24d4   :  { %v5947_v24 = vmul.f32 %v16240_v56, %v18332_v46  ;;  %v16242_v60 = vpop.eup %16241 }
0x24d5   :  { %v5949_v34 = vmul.f32 %v16242_v60, %v18322_v36 }
0x24d6   :  { %v5976_v29 = vpack.c.bf16 %v5947_v24, %v5945_v18 }
0x24d7   :  { %v16244_v32 = vpop.eup %16243 }
0x24d8   :  { %v5951_v23 = vmul.f32 %v16244_v32, %v18336_v52  ;;  %14947 = vmatmul.mubr.msk.bf16.vlgmr.msra.gmra.mrb[136].mxu0 %vm764_vm3, %v5976_v29 }
0x24d9   :  { %14957 = vmatpush3.bf16.msra.mxu0 %v6079_v10  ;;  %14958 = vmatprep.mubr.msk.bf16.mxu0 %vm16443_vm1, %v20770_v39 }
0x24da   :  { %v5977_v51 = vpack.c.bf16 %v5951_v23, %v5949_v34  ;;  %14968 = vmatprep.subr.bf16.mxu0 %v20770_v39 }
0x24dc   :  { %14953 = vmatmul.mubr.msk.bf16.vlgmr.msra.gmra.mrb[140].mxu1 %vm764_vm3, %v5977_v51 }
0x24dd   :  { %14963 = vmatpush3.bf16.msra.mxu1 %v6126_v45  ;;  %14964 = vmatprep.mubr.msk.bf16.mxu1 %vm16443_vm1, %v20770_v39 }
0x24de   :  { %14974 = vmatprep.subr.bf16.mxu1 %v20770_v39 }
0x24e2   :  { %v5916_v41 = vpop.xlane.xlu0 %5915 }
0x24e3   :  { %16245 = vrcp.f32 %v5916_v41 }
0x24e4   :  { %v5919_v36 = vpop.xlane.xlu1 %5918 }
0x24e5   :  { %16247 = vrcp.f32 %v5919_v36 }
0x24e6   :  { %v5910_v46 = vpop.xlane.xlu0 %5909 }
0x24e7   :  { %16249 = vrcp.f32 %v5910_v46 }
0x24e8   :  { %v5913_v52 = vpop.xlane.xlu1 %5912 }
0x24e9   :  { %16251 = vrcp.f32 %v5913_v52 }
0x24ea   :  { %v5928_v53 = vpop.xlane.xlu0 %5927 }
0x24eb   :  { %16253 = vrcp.f32 %v5928_v53 }
0x24ec   :  { %v5931_v38 = vpop.xlane.xlu1 %5930 }
0x24ed   :  { %v16246_v42 = vpop.eup %16245  ;;  %16255 = vrcp.f32 %v5931_v38 }
0x24ee   :  { %v5922_v3 = vpop.xlane.xlu0 %5921  ;;  %v5957_v44 = vmul.f32 %v16246_v42, %v18347_v17 }
0x24ef   :  { %v16248_v47 = vpop.eup %16247  ;;  %16257 = vrcp.f32 %v5922_v3 }
0x24f0   :  { %v5959_v10 = vmul.f32 %v16248_v47, %v18352_v49  ;;  %v5925_v45 = vpop.xlane.xlu1 %5924 }
0x24f1   :  { %v16250_v26 = vpop.eup %16249  ;;  %16259 = vrcp.f32 %v5925_v45 }
0x24f2   :  { %v5979_v14 = vpack.c.bf16 %v5959_v10, %v5957_v44  ;;  %v5953_v40 = vmul.f32 %v16250_v26, %v18357_v63  ;;  %v5940_v25 = vpop.xlane.xlu0 %5939 }
0x24f3   :  { %v16252_v0 = vpop.eup %16251  ;;  %16261 = vrcp.f32 %v5940_v25 }
0x24f4   :  { %v5955_v27 = vmul.f32 %v16252_v0, %v18362_v33  ;;  %14965 = vmatmul.mubr.msk.bf16.vlgmr.msra.gmra.mrb[144].mxu1 %vm764_vm3, %v5979_v14 }
0x24f5   :  { %v16254_v22 = vpop.eup %16253  ;;  %14975 = vmatpush3.bf16.msra.mxu1 %v6220_v7  ;;  %14976 = vmatprep.mubr.msk.bf16.mxu1 %vm16443_vm1, %v20770_v39 }
0x24f6   :  { %v5978_v17 = vpack.c.bf16 %v5955_v27, %v5953_v40  ;;  %14986 = vmatprep.subr.bf16.mxu1 %v20770_v39  ;;  %v5965_v37 = vmul.f32 %v16254_v22, %v18367_v55  ;;  %v5934_v33 = vpop.xlane.xlu0 %5933 }
0x24f7   :  { %v16256_v49 = vpop.eup %16255 }
0x24f8   :  { %v5967_v62 = vmul.f32 %v16256_v49, %v18371_v59  ;;  %14959 = vmatmul.mubr.msk.bf16.vlgmr.msra.gmra.mrb[140].mxu0 %vm764_vm3, %v5978_v17 }
0x24f9   :  { %v16258_v63 = vpop.eup %16257  ;;  %14969 = vmatpush3.bf16.msra.mxu0 %v18406_v1  ;;  %14970 = vmatprep.mubr.msk.bf16.mxu0 %vm16443_vm1, %v20770_v39 }
0x24fa   :  { %v5981_v7 = vpack.c.bf16 %v5967_v62, %v5965_v37  ;;  %14980 = vmatprep.subr.bf16.mxu0 %v20770_v39  ;;  %v5961_v54 = vmul.f32 %v16258_v63, %v18376_v28  ;;  %v6267_v59 = vpop.permute.xlu0 %6266 }
0x24fb   :  { %v16260_v5 = vpop.eup %16259 }
0x24fc   :  { %v5963_v50 = vmul.f32 %v16260_v5, %v18380_v30  ;;  %14977 = vmatmul.mubr.msk.bf16.vlgmr.msra.gmra.mrb[148].mxu1 %vm764_vm3, %v5981_v7  ;;  %v15918_v7 = vld [vmem:[%s20731_s18 + $0x18] sm:$0xff]  }
0x24fd   :  { %14988 = vmatprep.mubr.msk.bf16.mxu1 %vm16443_vm1, %v20770_v39  ;;  %v16262_v58 = vpop.eup %16261 }
0x24fe   :  { %v5980_v55 = vpack.c.bf16 %v5963_v50, %v5961_v54  ;;  %v5973_v18 = vmul.f32 %v16262_v58, %v18384_v9 }
0x2500   :  { %14971 = vmatmul.mubr.msk.bf16.vlgmr.msra.gmra.mrb[144].mxu0 %vm764_vm3, %v5980_v55 }
0x2501   :  { %14981 = vmatpush3.bf16.msra.mxu0 %v6267_v59  ;;  %14982 = vmatprep.mubr.msk.bf16.mxu0 %vm16443_vm1, %v20770_v39 }
0x252d   :  { %v5943_v1 = vpop.xlane.xlu1 %5942 }
0x252e   :  { %16263 = vrcp.f32 %v5943_v1 }
0x252f   :  { %16265 = vrcp.f32 %v5934_v33  ;;  %v15917_v33 = vld [vmem:[%s20731_s18 + $0x10] sm:$0xff]  }
0x2530   :  { %14992 = vmatprep.subr.bf16.mxu0 %v15917_v33 }
0x2531   :  { %v5937_v28 = vpop.xlane.xlu1 %5936 }
0x2532   :  { %16267 = vrcp.f32 %v5937_v28 }
0x2535   :  { %v6314_v30 = vpop.permute.xlu1 %6313 }
0x2536   :  { %14987 = vmatpush3.bf16.msra.mxu1 %v6314_v30 }
0x2538   :  { %v16264_v56 = vpop.eup %16263 }
0x2539   :  { %v5975_v24 = vmul.f32 %v16264_v56, %v18396_v13  ;;  %v16266_v60 = vpop.eup %16265 }
0x253a   :  { %v5969_v34 = vmul.f32 %v16266_v60, %v18388_v43 }
0x253b   :  { %v5983_v29 = vpack.c.bf16 %v5975_v24, %v5973_v18 }
0x253c   :  { %v16268_v32 = vpop.eup %16267 }
0x253d   :  { %v5971_v23 = vmul.f32 %v16268_v32, %v18400_v61  ;;  %14989 = vmatmul.mubr.msk.bf16.vlgmr.msra.gmra.mrb[152].mxu1 %vm764_vm3, %v5983_v29 }
0x253f   :  { %v5982_v51 = vpack.c.bf16 %v5971_v23, %v5969_v34 }
0x2541   :  { %14983 = vmatmul.mubr.msk.bf16.vlgmr.msra.gmra.mrb[148].mxu0 %vm764_vm3, %v5982_v51 }
0x2542   :  { %14993 = vmatpush3.bf16.msra.mxu0 %v15917_v33 }
0x2543   :  { %14994 = vmatprep.subr.bf16.mxu0 %v15918_v7 }
0x2546   :  { %14995 = vmatpush3.bf16.msra.mxu0 %v15918_v7 }
0x25ab   :  { %v18449_v41 = vpop.f32.mrb[136].mxu0 }
0x25ac   :  { %v14948_v36 = vpop.f32.mrb[137].mxu0 }
0x25ad   :  { %v18451_v46 = vpop.f32.mrb[138].mxu0 }
0x25ae   :  { %v14949_v9 = vpop.f32.mrb[139].mxu0 }
0x25af   :  { %v6071_v52 = vpop.f32.mrb[140].mxu1 }
0x25b0   :  { %v14954_v13 = vpop.f32.mrb[141].mxu1 }
0x25b1   :  { %v6074_v53 = vpop.f32.mrb[142].mxu1 }
0x25b2   :  { %v14955_v38 = vpop.f32.mrb[143].mxu1 }
0x25c7   :  { %v6165_v42 = vpop.f32.mrb[144].mxu1 }
0x25c8   :  { %v14966_v3 = vpop.f32.mrb[145].mxu1 }
0x25c9   :  { %v6168_v43 = vpop.f32.mrb[146].mxu1 }
0x25ca   :  { %v15723_v47 = vpack.i.bf16 %v6168_v43, %v6165_v42  ;;  %v14967_v61 = vpop.f32.mrb[147].mxu1 }
0x25cb   :  { %v6118_v44 = vpop.f32.mrb[140].mxu0 }
0x25cc   :  { %15724 = vrot.lane.b32.xlu1 %v15723_v47, %s20824_s5  ;;  %v14960_v10 = vpop.f32.mrb[141].mxu0 }
0x25cd   :  { %v6121_v45 = vpop.f32.mrb[142].mxu0 }
0x25ce   :  { %v15728_v26 = vpack.i.bf16 %v6121_v45, %v6118_v44  ;;  %v14961_v14 = vpop.f32.mrb[143].mxu0 }
0x25cf   :  { %v6259_v0 = vpop.f32.mrb[148].mxu1 }
0x25d0   :  { %15729 = vrot.lane.b32.xlu0 %v15728_v26, %s20824_s5  ;;  %v14978_v40 = vpop.f32.mrb[149].mxu1 }
0x25d1   :  { %v6262_v27 = vpop.f32.mrb[150].mxu1 }
0x25d2   :  { %v15733_v25 = vpack.i.bf16 %v6262_v27, %v6259_v0  ;;  %v14979_v22 = vpop.f32.mrb[151].mxu1 }
0x25d3   :  { %v6212_v17 = vpop.f32.mrb[144].mxu0 }
0x25d4   :  { %15734 = vrot.lane.b32.xlu1 %v15733_v25, %s20825_s1  ;;  %v14972_v49 = vpop.f32.mrb[145].mxu0 }
0x25d5   :  { %v6215_v37 = vpop.f32.mrb[146].mxu0 }
0x25d6   :  { %v15738_v62 = vpack.i.bf16 %v6215_v37, %v6212_v17  ;;  %v14973_v63 = vpop.f32.mrb[147].mxu0 }
0x25d8   :  { %15739 = vrot.lane.b32.xlu0 %v15738_v62, %s20825_s1 }
0x2610   :  { %v6353_v5 = vpop.f32.mrb[152].mxu1 }
0x2611   :  { %v14990_v54 = vpop.f32.mrb[153].mxu1 }
0x2612   :  { %v6356_v50 = vpop.f32.mrb[154].mxu1 }
0x2613   :  { %v15748_v55 = vpack.i.bf16 %v6356_v50, %v6353_v5  ;;  %v14991_v59 = vpop.f32.mrb[155].mxu1 }
0x2614   :  { %v6306_v1 = vpop.f32.mrb[148].mxu0 }
0x2615   :  { %15749 = vrot.lane.b32.xlu1 %v15748_v55, %s20826_s0  ;;  %v14984_v28 = vpop.f32.mrb[149].mxu0 }
0x2616   :  { %v6309_v30 = vpop.f32.mrb[150].mxu0 }
0x2617   :  { %v15743_v58 = vpack.i.bf16 %v6309_v30, %v6306_v1  ;;  %v14985_v56 = vpop.f32.mrb[151].mxu0 }
0x2619   :  { %15744 = vrot.lane.b32.xlu0 %v15743_v58, %s20826_s0 }
0x263e   :  { %v15725_v18 = vpop.permute.xlu1 %15724 }
0x263f   :  { %v15727_v29 = vunpack.i.h.bf16 %v15725_v18  ;;  %v15726_v32 = vunpack.i.l.bf16 %v15725_v18 }
0x2641   :  { %v6411_v36 = vsel %vm366_vm2, %v6074_v53, %v15727_v29  ;;  %v6410_v9 = vsel %vm366_vm2, %v6071_v52, %v15726_v32 }
0x2642   :  { %v15730_v24 = vpop.permute.xlu0 %15729 }
0x2643   :  { %v15732_v38 = vunpack.i.h.bf16 %v15730_v24  ;;  %v15731_v42 = vunpack.i.l.bf16 %v15730_v24 }
0x2645   :  { %v6409_v52 = vsel %vm366_vm2, %v18451_v46, %v15732_v38  ;;  %v6408_v53 = vsel %vm366_vm2, %v18449_v41, %v15731_v42  ;;  %v13895_v46 = vld [vmem:[%s20732_s19 + $0x1] ss:$0 sm:$0xff] }
0x2646   :  { %v15735_v60 = vpop.permute.xlu1 %15734 }
0x2647   :  { %v15737_v34 = vunpack.i.h.bf16 %v15735_v60  ;;  %v15736_v23 = vunpack.i.l.bf16 %v15735_v60 }
0x2649   :  { %v6415_v47 = vsel %vm764_vm3, %v6411_v36, %v15737_v34  ;;  %v6414_v61 = vsel %vm764_vm3, %v6410_v9, %v15736_v23 }
0x264a   :  { %v15740_v51 = vpop.permute.xlu0 %15739 }
0x264b   :  { %v15742_v44 = vunpack.i.h.bf16 %v15740_v51  ;;  %v15741_v10 = vunpack.i.l.bf16 %v15740_v51 }
0x264d   :  { %v6412_v25 = vsel %vm764_vm3, %v6408_v53, %v15741_v10  ;;  %v6413_v22 = vsel %vm764_vm3, %v6409_v52, %v15742_v44  ;;  %v15919_v44 = vld [vmem:[%s20733_s22 + $0x10] sm:$0xff]   ;;  %v15920_v10 = vld [vmem:[%s20733_s22 + $0x18] sm:$0xff]   ;;  %v15925_v52 = vld [vmem:[%s20734_s24 + $0x60] sm:$0xff]  }
0x264e   :  { %15000 = vmatprep.subr.bf16.mxu1 %v15919_v44  ;;  %v15926_v53 = vld [vmem:[%s20734_s24 + $0x68] sm:$0xff]  }
0x264f   :  { %15001 = vmatpush3.bf16.msra.mxu1 %v15919_v44 }
0x2650   :  { %15002 = vmatprep.subr.bf16.mxu1 %v15920_v10 }
0x2653   :  { %15003 = vmatpush3.bf16.msra.mxu1 %v15920_v10 }
0x2687   :  { %v15750_v13 = vpop.permute.xlu1 %15749 }
0x2688   :  { %v15752_v3 = vunpack.i.h.bf16 %v15750_v13  ;;  %v15751_v43 = vunpack.i.l.bf16 %v15750_v13 }
0x268a   :  { %v6419_v45 = vsel %vm1381_vm4, %v6415_v47, %v15752_v3  ;;  %v6418_v26 = vsel %vm1381_vm4, %v6414_v61, %v15751_v43 }
0x268b   :  { %v6421_v14 = vpack.c.bf16 %v6419_v45, %v6418_v26  ;;  %v15745_v0 = vpop.permute.xlu0 %15744  ;;  %v15921_v45 = vld [vmem:[%s20734_s24 + $0x40] sm:$0xff]   ;;  %v15922_v26 = vld [vmem:[%s20734_s24 + $0x48] sm:$0xff]  }
0x268c   :  { %v15747_v40 = vunpack.i.h.bf16 %v15745_v0  ;;  %v15746_v27 = vunpack.i.l.bf16 %v15745_v0  ;;  %15008 = vmatprep.subr.bf16.mxu0 %v15921_v45  ;;  %v15924_v0 = vld [vmem:[%s20734_s24 + $0x58] sm:$0xff]  }
0x268e   :  { %v6416_v17 = vsel %vm1381_vm4, %v6412_v25, %v15746_v27  ;;  %v6417_v49 = vsel %vm1381_vm4, %v6413_v22, %v15747_v40 }
0x268f   :  { %v6420_v37 = vpack.c.bf16 %v6417_v49, %v6416_v17 }
0x2691   :  { %14996 = vmatprep.mubr.msk.bf16.mxu0 %vm166_vm0, %v6420_v37 }
0x2692   :  { %14997 = vmatmul.mubr.msk.bf16.vlgmr.msra.gmra.mrb[152].mxu0 %vm166_vm0, %v6421_v14  ;;  %v15923_v14 = vld [vmem:[%s20734_s24 + $0x50] sm:$0xff]  }
0x2693   :  { %15009 = vmatpush3.bf16.msra.mxu0 %v15921_v45 }
0x2694   :  { %15010 = vmatprep.subr.bf16.mxu0 %v15922_v26 }
0x2697   :  { %15011 = vmatpush3.bf16.msra.mxu0 %v15922_v26 }
0x2698   :  { %15012 = vmatprep.subr.bf16.mxu0 %v15923_v14 }
0x269b   :  { %15013 = vmatpush3.bf16.msra.mxu0 %v15923_v14 }
0x269c   :  { %15014 = vmatprep.subr.bf16.mxu0 %v15924_v0 }
0x269f   :  { %15015 = vmatpush3.bf16.msra.mxu0 %v15924_v0 }
0x26a0   :  { %15016 = vmatprep.subr.bf16.mxu0 %v15925_v52 }
0x26a3   :  { %15017 = vmatpush3.bf16.msra.mxu0 %v15925_v52 }
0x26a4   :  { %15018 = vmatprep.subr.bf16.mxu0 %v15926_v53 }
0x26a7   :  { %15019 = vmatpush3.bf16.msra.mxu0 %v15926_v53 }
0x2765   :  { %v14998_v41 = vpop.f32.mrb[152].mxu0 }
0x2766   :  { %v6480_v62 = vpop.f32.mrb[153].mxu0  ;;  %v6489_v63 = vadd.f32 %v14998_v41, %v13895_v46 }
0x2767   :  { %v6481_v33 = vadd.f32 %v13895_v46, %v6480_v62  ;;  %v14999_v7 = vpop.f32.mrb[154].mxu0 }
0x2768   :  { %v6483_v5 = vpop.f32.mrb[155].mxu0  ;;  %v18488_v55 = vadd.f32 %v6489_v63, %v18114_v48  ;;  %v6492_v59 = vadd.f32 %v14999_v7, %v13895_v46 }
0x2769   :  { %v18485_v54 = vadd.f32 %v6481_v33, %v18111_v8  ;;  %v6484_v50 = vadd.f32 %v13895_v46, %v6483_v5  ;;  %v13900_v5 = vld [vmem:[%s20735_s20 + $0x1] ss:$0 sm:$0xff] }
0x276a   :  { %v18498_v58 = vadd.f32 %v6492_v59, %v18122_v6  ;;  %v6505_v8 = vsel %vm166_vm0, %v18488_v55, 0.0 }
0x276b   :  { %v18491_v1 = vadd.f32 %v6484_v50, %v18117_v21  ;;  %v6499_v28 = vsel %vm166_vm0, %v18485_v54, 0.0 }
0x276c   :  { %6500 = vadd.xlane.f32.xlu0 %v6499_v28  ;;  %v6508_v48 = vsel %vm166_vm0, %v18498_v58, 0.0 }
0x276d   :  { %v6502_v30 = vsel %vm166_vm0, %v18491_v1, 0.0 }
0x276e   :  { %6503 = vadd.xlane.f32.xlu1 %v6502_v30 }
0x2770   :  { %6506 = vadd.xlane.f32.xlu0 %v6505_v8 }
0x2774   :  { %6509 = vadd.xlane.f32.xlu0 %v6508_v48  ;;  %v13901_v48 = vld [vmem:[%s20827_s9 + $0x1] ss:$0 sm:$0xff] }
0x27f9   :  { %v6501_v21 = vpop.xlane.xlu0 %6500 }
0x27fa   :  { %v6511_v56 = vmul.f32 0.03125, %v6501_v21 }
0x27fb   :  { %v6504_v18 = vpop.xlane.xlu1 %6503 }
0x27fc   :  { %v18505_v24 = vsub.f32 %v18485_v54, %v6511_v56  ;;  %v6512_v60 = vmul.f32 0.03125, %v6504_v18 }
0x27fd   :  { %v6507_v29 = vpop.xlane.xlu0 %6506 }
0x27fe   :  { %v6516_v32 = vsub.f32 %v18491_v1, %v6512_v60  ;;  %v6513_v6 = vmul.f32 0.03125, %v6507_v29  ;;  %v6519_v34 = vmul.f32 %v18505_v24, %v18505_v24 }
0x2800   :  { %v18511_v23 = vsub.f32 %v18488_v55, %v6513_v6  ;;  %v6523_v51 = vsel %vm166_vm0, %v6519_v34, 0.0  ;;  %v6520_v36 = vmul.f32 %v6516_v32, %v6516_v32 }
0x2801   :  { %6524 = vadd.xlane.f32.xlu0 %v6523_v51  ;;  %v6510_v9 = vpop.xlane.xlu0 %6509 }
0x2802   :  { %v6514_v13 = vmul.f32 0.03125, %v6510_v9  ;;  %v6526_v38 = vsel %vm166_vm0, %v6520_v36, 0.0  ;;  %v6521_v42 = vmul.f32 %v18511_v23, %v18511_v23 }
0x2803   :  { %6527 = vadd.xlane.f32.xlu1 %v6526_v38  ;;  %v13902_v38 = vld [vmem:[%s20828_s23 + $0x1] ss:$0 sm:$0xff] }
0x2804   :  { %v6518_v3 = vsub.f32 %v18498_v58, %v6514_v13  ;;  %v6529_v43 = vsel %vm166_vm0, %v6521_v42, 0.0  ;;  %v15927_v13 = vld [vmem:[%s20734_s24 + $0x70] sm:$0xff]  }
0x2805   :  { %6530 = vadd.xlane.f32.xlu0 %v6529_v43  ;;  %15020 = vmatprep.subr.bf16.mxu0 %v15927_v13 }
0x2806   :  { %v6522_v47 = vmul.f32 %v6518_v3, %v6518_v3  ;;  %15021 = vmatpush3.bf16.msra.mxu0 %v15927_v13 }
0x2808   :  { %v6532_v61 = vsel %vm166_vm0, %v6522_v47, 0.0 }
0x2809   :  { %6533 = vadd.xlane.f32.xlu1 %v6532_v61 }
0x288e   :  { %v6525_v40 = vpop.xlane.xlu0 %6524 }
0x288f   :  { %v6535_v27 = vmul.f32 0.03125, %v6525_v40 }
0x2890   :  { %v6528_v25 = vpop.xlane.xlu1 %6527 }
0x2891   :  { %v6539_v22 = vadd.f32 1e-05, %v6535_v27  ;;  %v6536_v17 = vmul.f32 0.03125, %v6528_v25  ;;  %v7023_v27 = vcombine.high %v16611_v15, %v16611_v15  ;;  %v7024_v25 = vcombine.high %v16614_v16, %v16614_v16 }
0x2892   :  { %v6531_v49 = vpop.xlane.xlu0 %6530 }
0x2893   :  { %16269 = vrsqrt.f32 %v6539_v22  ;;  %v6540_v37 = vadd.f32 1e-05, %v6536_v17  ;;  %v6537_v46 = vmul.f32 0.03125, %v6531_v49  ;;  %v7028_v22 = vrot.slane %v7023_v27, %v16608_v12 }
0x2894   :  { %v7032_v17 = vrot.slane %v7024_v25, %v16608_v12 }
0x2895   :  { %16271 = vrsqrt.f32 %v6540_v37  ;;  %v6541_v41 = vadd.f32 1e-05, %v6537_v46  ;;  %v7129_v49 = vcombine.high %v7028_v22, %v7028_v22  ;;  %v7039_v37 = vrot.slane %v16618_v19, %v16605_v11 }
0x2896   :  { %v6534_v62 = vpop.xlane.xlu1 %6533  ;;  %v7136_v46 = vrot.slane %v7028_v22, %v16605_v11 }
0x2897   :  { %16273 = vrsqrt.f32 %v6541_v41  ;;  %v6538_v63 = vmul.f32 0.03125, %v6534_v62  ;;  %v7046_v41 = vrot.slane %v17560_v35, %v16605_v11  ;;  %v7087_v62 = vrot.slane %v16622_v20, %v16605_v11 }
0x2898   :  { %v7143_v15 = vrot.slane %v7129_v49, %v16605_v11  ;;  %v7047_v16 = vcombine.high %v7039_v37, %v7039_v37 }
0x2899   :  { %v6542_v33 = vadd.f32 1e-05, %v6538_v63  ;;  %v7178_v63 = vcombine.high %v7032_v17, %v7032_v17  ;;  %v7095_v19 = vcombine.high %v7087_v62, %v7087_v62 }
0x289a   :  { %v18585_v35 = vrot.slane %v7047_v16, %v16605_v11  ;;  %v18627_v13 = vrot.slane %v7143_v15, %v16605_v11 }
0x289b   :  { %16275 = vrsqrt.f32 %v6542_v33  ;;  %v7144_v33 = vcombine.high %v7136_v46, %v7136_v46 }
0x289c   :  { %v7175_v22 = vcombine.high %v18627_v13, %v18627_v13 }
0x289d   :  { %v16270_v7 = vpop.eup %16269  ;;  %v18588_v20 = vrot.slane %v7144_v33, %v16605_v11 }
0x289e   :  { %v6547_v50 = vmul.f32 %v16270_v7, %v18505_v24  ;;  %v7094_v7 = vrot.slane %v17565_v31, %v16605_v11  ;;  %v18594_v31 = vrot.slane %v7136_v46, %v16605_v11 }
0x289f   :  { %v16272_v59 = vpop.eup %16271 }
0x28a0   :  { %v6548_v28 = vmul.f32 %v16272_v59, %v6516_v32  ;;  %v6557_v30 = vmul.f32 %v13900_v5, %v6547_v50  ;;  %v7048_v50 = vcombine.high %v7046_v41, %v7046_v41  ;;  %v7145_v59 = vcombine.high %v7143_v15, %v7143_v15 }
0x28a1   :  { %v16274_v8 = vpop.eup %16273 }
0x28a2   :  { %v6549_v21 = vmul.f32 %v16274_v8, %v18511_v23  ;;  %v6558_v56 = vmul.f32 %v13900_v5, %v6548_v28  ;;  %v6567_v18 = vadd.f32 %v13901_v48, %v6557_v30  ;;  %v15928_v23 = vld [vmem:[%s20734_s24 + $0x78] sm:$0xff]   ;;  %v7192_v28 = vrot.slane %v7178_v63, %v16605_v11 }
0x28a3   :  { %15022 = vmatprep.subr.bf16.mxu0 %v15928_v23  ;;  %v18591_v8 = vrot.slane %v7039_v37, %v16605_v11 }
0x28a4   :  { %v6568_v60 = vadd.f32 %v13901_v48, %v6558_v56  ;;  %v6559_v51 = vmul.f32 %v13900_v5, %v6549_v21  ;;  %15023 = vmatpush3.bf16.msra.mxu0 %v15928_v23  ;;  %v18597_v21 = vrot.slane %v7048_v50, %v16605_v11  ;;  %v18600_v56 = vrot.slane %v7095_v19, %v16605_v11 }
0x28a5   :  { %v16276_v29 = vpop.eup %16275  ;;  %15054 = vmatprep.subr.bf16.mxu0 %v20770_v39 }
0x28a6   :  { %v6550_v6 = vmul.f32 %v16276_v29, %v6518_v3  ;;  %v6571_v34 = vpack.c.bf16 %v6568_v60, %v6567_v18  ;;  %v6569_v36 = vadd.f32 %v13901_v48, %v6559_v51  ;;  %v18603_v18 = vrot.slane %v7145_v59, %v16605_v11  ;;  %v13907_v29 = vld [vmem:[%s20829_s28 + $0x1] ss:$0 sm:$0xff] }
0x28a7   :  { %v7194_v60 = vcombine.high %v7192_v28, %v7192_v28  ;;  %v18613_v51 = vrot.slane %v7087_v62, %v16605_v11 }
0x28a8   :  { %15004 = vmatprep.mubr.msk.bf16.mxu1 %vm166_vm0, %v6571_v34  ;;  %v6560_v24 = vmul.f32 %v13900_v5, %v6550_v6  ;;  %v7185_v5 = vrot.slane %v7032_v17, %v16605_v11  ;;  %v7079_v6 = vcombine.high %v18585_v35, %v18585_v35  ;;  %v7176_v34 = vcombine.high %v18588_v20, %v18588_v20 }
0x28aa   :  { %v6570_v32 = vadd.f32 %v13901_v48, %v6560_v24  ;;  %v7193_v30 = vcombine.high %v7185_v5, %v7185_v5  ;;  %v7096_v48 = vcombine.high %v7094_v7, %v7094_v7  ;;  %v18616_v24 = vrot.slane %v7046_v41, %v16605_v11 }
0x28ac   :  { %v6572_v9 = vpack.c.bf16 %v6570_v32, %v6569_v36  ;;  %v18619_v36 = vrot.slane %v7193_v30, %v16605_v11  ;;  %v7077_v32 = vcombine.high %v18591_v8, %v18591_v8 }
0x28ae   :  { %15005 = vmatmul.mubr.msk.bf16.vlgmr.msra.gmra.mrb[156].mxu1 %vm166_vm0, %v6572_v9  ;;  %v18624_v9 = vrot.slane %v7096_v48, %v16605_v11 }
0x28b0   :  { %v7128_v17 = vcombine.high %v18624_v9, %v18624_v9 }
0x2981   :  { %v15006_v42 = vpop.f32.mrb[156].mxu1 }
0x2982   :  { %v6640_v3 = vadd.f32 %v15006_v42, %v13902_v38  ;;  %v6631_v43 = vpop.f32.mrb[157].mxu1  ;;  %v18632_v42 = vrot.slane %v7185_v5, %v16605_v11 }
0x2983   :  { %v6632_v47 = vadd.f32 %v13902_v38, %v6631_v43  ;;  %v15007_v61 = vpop.f32.mrb[158].mxu1  ;;  %v18637_v43 = vrot.slane %v7094_v7, %v16605_v11 }
0x2984   :  { %v6643_v44 = vadd.f32 %v15007_v61, %v13902_v38  ;;  %v6634_v10 = vpop.f32.mrb[159].mxu1  ;;  %v6648_v26 = vmax.f32 %v6640_v3, 0.0  ;;  %v7080_v3 = vcombine.high %v18597_v21, %v18597_v21 }
0x2985   :  { %v6635_v45 = vadd.f32 %v13902_v38, %v6634_v10  ;;  %v6646_v0 = vmax.f32 %v6632_v47, 0.0  ;;  %v7174_v38 = vcombine.high %v18594_v31, %v18594_v31  ;;  %v18642_v10 = vrot.slane %v7194_v60, %v16605_v11 }
0x2986   :  { %v6649_v14 = vmax.f32 %v6643_v44, 0.0  ;;  %v7177_v44 = vcombine.high %v18603_v18, %v18603_v18 }
0x2987   :  { %v6647_v52 = vmax.f32 %v6635_v45, 0.0  ;;  %v7127_v45 = vcombine.high %v18600_v56, %v18600_v56 }
0x2988   :  { %v6651_v53 = vpack.c.bf16 %v6649_v14, %v6648_v26 }
0x2989   :  { %v6650_v40 = vpack.c.bf16 %v6647_v52, %v6646_v0  ;;  %v7078_v0 = vcombine.high %v18616_v24, %v18616_v24  ;;  %v18649_v52 = vrot.slane %v7192_v28, %v16605_v11 }
0x298b   :  { %15024 = vmatprep.mubr.bf16.mxu0 %v6650_v40 }
0x298c   :  { %15025 = vmatmul.mubr.bf16.vlgmr.msra.gmra.mrb[156].mxu0 %v6651_v53  ;;  %v7125_v53 = vcombine.high %v18613_v51, %v18613_v51 }
0x298d   :  { %15056 = vmatprep.mubr.msk.bf16.mxu0 %vm16443_vm1, %v20770_v39 }
0x2a5f   :  { %v15026_v23 = vpop.f32.mrb[156].mxu0 }
0x2a60   :  { %v6749_v47 = vadd.f32 %v15026_v23, %v13907_v29  ;;  %v6740_v61 = vpop.f32.mrb[157].mxu0 }
0x2a61   :  { %v6741_v26 = vadd.f32 %v13907_v29, %v6740_v61  ;;  %v15027_v14 = vpop.f32.mrb[158].mxu0 }
0x2a62   :  { %v6757_v40 = vadd.f32 %v6749_v47, %v18488_v55  ;;  %v6752_v27 = vadd.f32 %v15027_v14, %v13907_v29  ;;  %v6743_v25 = vpop.f32.mrb[159].mxu0 }
0x2a63   :  { %v6755_v49 = vadd.f32 %v6741_v26, %v18485_v54  ;;  %v6744_v37 = vadd.f32 %v13907_v29, %v6743_v25 }
0x2a64   :  { %v6765_v62 = vcombine.high %v6757_v40, %v6757_v40  ;;  %v6797_v55 = vrot.slane %v6757_v40, %v16605_v11  ;;  %v6758_v15 = vadd.f32 %v6752_v27, %v18498_v58 }
0x2a65   :  { %v6761_v16 = vcombine.high %v6755_v49, %v6755_v49  ;;  %v6773_v33 = vrot.slane %v6755_v49, %v16605_v11  ;;  %v18675_v59 = vadd.f32 %v6744_v37, %v18491_v1 }
0x2a66   :  { %v6798_v5 = vcombine.high %v6797_v55, %v6797_v55  ;;  %v6805_v50 = vrot.slane %v6797_v55, %v16605_v11  ;;  %v6845_v19 = vrot.slane %v6765_v62, %v16605_v11  ;;  %v6766_v48 = vcombine.high %v6758_v15, %v6758_v15 }
0x2a67   :  { %v6774_v58 = vcombine.high %v6773_v33, %v6773_v33  ;;  %v6781_v28 = vrot.slane %v6773_v33, %v16605_v11  ;;  %v6821_v30 = vrot.slane %v6761_v16, %v16605_v11  ;;  %v6893_v40 = vrot.slane %v6758_v15, %v16605_v11 }
0x2a68   :  { %v6812_v60 = vrot.slane %v6798_v5, %v16605_v11  ;;  %v6813_v29 = vcombine.high %v6805_v50, %v6805_v50  ;;  %v6846_v23 = vcombine.high %v6845_v19, %v6845_v19  ;;  %v6853_v47 = vrot.slane %v6845_v19, %v16605_v11 }
0x2a69   :  { %v6992_v61 = vmul.f32 2.0, %v6805_v50  ;;  %v6788_v26 = vrot.slane %v6774_v58, %v16605_v11  ;;  %v6822_v14 = vcombine.high %v6821_v30, %v6821_v30  ;;  %v6789_v16 = vcombine.high %v6781_v28, %v6781_v28 }
0x2a6a   :  { %v6814_v1 = vcombine.high %v6812_v60, %v6812_v60  ;;  %v6860_v27 = vrot.slane %v6846_v23, %v16605_v11  ;;  %v6861_v25 = vcombine.high %v6853_v47, %v6853_v47  ;;  %v6994_v49 = vmul.f32 2.0, %v6853_v47 }
0x2a6b   :  { %v7000_v37 = vmul.f32 2.0, %v6812_v60  ;;  %v7008_v62 = vmul.f32 2.0, %v6813_v29  ;;  %v18685_v55 = vadd.f32 %v18585_v35, %v6992_v61  ;;  %v6790_v50 = vcombine.high %v6788_v26, %v6788_v26 }
0x2a6c   :  { %v6862_v33 = vcombine.high %v6860_v27, %v6860_v27  ;;  %v7010_v5 = vmul.f32 2.0, %v6861_v25  ;;  %v7016_v19 = vmul.f32 2.0, %v6814_v1  ;;  %v18687_v39 = vmul.f32 2.0, %v6860_v27 }
0x2a6d   :  { %v18692_v15 = vadd.f32 %v7079_v6, %v6994_v49  ;;  %v18695_v58 = vadd.f32 %v18600_v56, %v7000_v37  ;;  %v6829_v60 = vrot.slane %v6821_v30, %v16605_v11  ;;  %v18701_v23 = vadd.f32 %v18588_v20, %v7008_v62 }
0x2a6e   :  { %v18698_v29 = vmul.f32 2.0, %v6862_v33  ;;  %v18706_v47 = vadd.f32 %v7176_v34, %v7010_v5  ;;  %v6836_v61 = vrot.slane %v6822_v14, %v16605_v11  ;;  %v6991_v6 = vmul.f32 2.0, %v6781_v28 }
0x2a6f   :  { %v6837_v35 = vcombine.high %v6829_v60, %v6829_v60  ;;  %v6993_v1 = vmul.f32 2.0, %v6829_v60  ;;  %v6999_v27 = vmul.f32 2.0, %v6788_v26  ;;  %v18710_v25 = vadd.f32 %v18619_v36, %v7016_v19 }
0x2a70   :  { %v6838_v30 = vcombine.high %v6836_v61, %v6836_v61  ;;  %v7007_v49 = vmul.f32 2.0, %v6789_v16  ;;  %v7015_v37 = vmul.f32 2.0, %v6790_v50  ;;  %v7001_v33 = vmul.f32 2.0, %v6836_v61 }
0x2a71   :  { %v7009_v62 = vmul.f32 2.0, %v6837_v35  ;;  %v18713_v7 = vadd.f32 %v18591_v8, %v6991_v6  ;;  %v18718_v20 = vadd.f32 %v7077_v32, %v6993_v1  ;;  %v18723_v28 = vadd.f32 %v18613_v51, %v6999_v27 }
0x2a72   :  { %v18720_v34 = vmul.f32 2.0, %v6838_v30  ;;  %v18726_v26 = vadd.f32 %v18594_v31, %v7007_v49  ;;  %v6894_v14 = vcombine.high %v6893_v40, %v6893_v40  ;;  %v18734_v5 = vadd.f32 %v18632_v42, %v7015_v37 }
0x2a73   :  { %v18731_v16 = vadd.f32 %v7174_v38, %v7009_v62  ;;  %v6901_v8 = vrot.slane %v6893_v40, %v16605_v11  ;;  %v6941_v32 = vrot.slane %v6766_v48, %v16605_v11  ;;  %v6762_v50 = vcombine.high %v18675_v59, %v18675_v59 }
0x2a74   :  { %v6908_v19 = vrot.slane %v6894_v14, %v16605_v11  ;;  %v6869_v60 = vrot.slane %v18675_v59, %v16605_v11  ;;  %v7359_v31 = vcombine.low %v18713_v7, %v18685_v55 }
0x2a75   :  { %v6909_v38 = vcombine.high %v6901_v8, %v6901_v8  ;;  %v6942_v61 = vcombine.high %v6941_v32, %v6941_v32  ;;  %v6949_v35 = vrot.slane %v6941_v32, %v16605_v11  ;;  %v6996_v6 = vmul.f32 2.0, %v6901_v8 }
0x2a76   :  { %v6910_v1 = vcombine.high %v6908_v19, %v6908_v19  ;;  %v7004_v40 = vmul.f32 2.0, %v6908_v19  ;;  %v6870_v27 = vcombine.high %v6869_v60, %v6869_v60  ;;  %v6877_v48 = vrot.slane %v6869_v60, %v16605_v11 }
0x2a77   :  { %v6956_v30 = vrot.slane %v6942_v61, %v16605_v11  ;;  %v6957_v49 = vcombine.high %v6949_v35, %v6949_v35  ;;  %v6998_v37 = vmul.f32 2.0, %v6949_v35  ;;  %v7012_v62 = vmul.f32 2.0, %v6909_v38 }
0x2a78   :  { %v7020_v14 = vmul.f32 2.0, %v6910_v1  ;;  %v18749_v59 = vadd.f32 %v18597_v21, %v6996_v6  ;;  %v6884_v54 = vrot.slane %v6870_v27, %v16605_v11  ;;  %v7360_v32 = vcombine.low %v18718_v20, %v18692_v15 }
0x2a79   :  { %v6958_v8 = vcombine.high %v6956_v30, %v6956_v30  ;;  %v7006_v41 = vmul.f32 2.0, %v6956_v30  ;;  %v7014_v19 = vmul.f32 2.0, %v6957_v49  ;;  %v18755_v63 = vadd.f32 %v18624_v9, %v7004_v40 }
0x2a7a   :  { %v18760_v60 = vadd.f32 %v7080_v3, %v6998_v37  ;;  %v18763_v38 = vadd.f32 %v18603_v18, %v7012_v62  ;;  %v6885_v61 = vcombine.high %v6877_v48, %v6877_v48  ;;  %v6886_v35 = vcombine.high %v6884_v54, %v6884_v54 }
0x2a7b   :  { %v7022_v6 = vmul.f32 2.0, %v6958_v8  ;;  %v18766_v1 = vadd.f32 %v18642_v10, %v7020_v14  ;;  %v6917_v27 = vrot.slane %v6762_v50, %v16605_v11  ;;  %v6995_v30 = vmul.f32 2.0, %v6877_v48 }
0x2a7c   :  { %v18772_v40 = vadd.f32 %v7177_v44, %v7014_v19  ;;  %v7003_v21 = vmul.f32 2.0, %v6884_v54  ;;  %v7011_v3 = vmul.f32 2.0, %v6885_v61  ;;  %v7019_v49 = vmul.f32 2.0, %v6886_v35 }
0x2a7d   :  { %v6918_v37 = vcombine.high %v6917_v27, %v6917_v27  ;;  %v6925_v62 = vrot.slane %v6917_v27, %v16605_v11  ;;  %v18776_v46 = vadd.f32 %v18616_v24, %v6995_v30  ;;  %v7376_v14 = vrot.slane %v7360_v32, %v16605_v11 }
0x2a7e   :  { %v18780_v8 = vadd.f32 %v18637_v43, %v7003_v21  ;;  %v18783_v50 = vadd.f32 %v18627_v13, %v7011_v3  ;;  %v7369_v18 = vrot.slane %v7359_v31, %v16605_v11  ;;  %v18789_v44 = vadd.f32 %v7125_v53, %v7001_v33 }
0x2a7f   :  { %v6932_v54 = vrot.slane %v6918_v37, %v16605_v11  ;;  %v6933_v48 = vcombine.high %v6925_v62, %v6925_v62  ;;  %v6997_v19 = vmul.f32 2.0, %v6925_v62  ;;  %v7361_v32 = vcombine.low %v18776_v46, %v18749_v59 }
0x2a80   :  { %v7391_v61 = vcombine.low %v7369_v18, %v7376_v14  ;;  %v18798_v35 = vadd.f32 %v7127_v45, %v18687_v39  ;;  %v18803_v51 = vadd.f32 %v7128_v17, %v7006_v41  ;;  %v7408_v53 = vcombine.low %v18723_v28, %v18695_v58 }
0x2a81   :  { %v6934_v33 = vcombine.high %v6932_v54, %v6932_v54  ;;  %v7005_v31 = vmul.f32 2.0, %v6932_v54  ;;  %v7013_v27 = vmul.f32 2.0, %v6933_v48  ;;  %v18810_v30 = vadd.f32 %v7078_v0, %v6997_v19 }
0x2a82   :  { %v18813_v56 = vadd.f32 %v18649_v52, %v7019_v49  ;;  %v7383_v39 = vrot.slane %v7361_v32, %v16605_v11  ;;  %v7409_v9 = vcombine.low %v18789_v44, %v18798_v35  ;;  %v7410_v45 = vcombine.low %v18780_v8, %v18755_v63 }
0x2a83   :  { %v18823_v17 = vadd.f32 %v7175_v22, %v7013_v27  ;;  %v7362_v24 = vcombine.low %v18810_v30, %v18760_v60  ;;  %v7399_v0 = vrot.slane %v7391_v61, %v16605_v11  ;;  %v20830_v41 = vcombine.high %v18637_v43, %v18637_v43 }
0x2a84   :  { %v7021_v3 = vmul.f32 2.0, %v6934_v33  ;;  %v7418_v49 = vrot.slane %v7408_v53, %v16605_v11  ;;  %v7425_v37 = vrot.slane %v7409_v9, %v16605_v11  ;;  %v7457_v13 = vcombine.low %v18726_v26, %v18701_v23 }
0x2a85   :  { %v18831_v21 = vadd.f32 %v20830_v41, %v7005_v31  ;;  %v7390_v22 = vrot.slane %v7362_v24, %v16605_v11  ;;  %v7458_v14 = vcombine.low %v18731_v16, %v18706_v47  ;;  %v7459_v43 = vcombine.low %v18783_v50, %v18763_v38 }
0x2a86   :  { %v7432_v18 = vrot.slane %v7410_v45, %v16605_v11  ;;  %v7440_v54 = vcombine.low %v7418_v49, %v7425_v37  ;;  %v7460_v48 = vcombine.low %v18823_v17, %v18772_v40  ;;  %v20831_v19 = vcombine.high %v18632_v42, %v18632_v42 }
0x2a87   :  { %v7411_v62 = vcombine.low %v18831_v21, %v18803_v51  ;;  %v7392_v61 = vcombine.low %v7383_v39, %v7390_v22  ;;  %v7467_v33 = vrot.slane %v7457_v13, %v16605_v11  ;;  %v7474_v31 = vrot.slane %v7458_v14, %v16605_v11 }
0x2a88   :  { %v18851_v32 = vadd.f32 %v20831_v19, %v18720_v34  ;;  %v7481_v27 = vrot.slane %v7459_v43, %v16605_v11  ;;  %v7488_v9 = vrot.slane %v7460_v48, %v16605_v11  ;;  %v20832_v45 = vcombine.high %v18619_v36, %v18619_v36 }
0x2a89   :  { %v7439_v53 = vrot.slane %v7411_v62, %v16605_v11  ;;  %v20833_v42 = vcombine.high %v18649_v52, %v18649_v52  ;;  %v7406_v39 = vrot.slane %v7392_v61, %v16605_v11  ;;  %v7489_v49 = vcombine.low %v7467_v33, %v7474_v31 }
0x2a8a   :  { %v18862_v24 = vadd.f32 %v20832_v45, %v18698_v29  ;;  %v20834_v37 = vcombine.high %v18642_v10, %v18642_v10  ;;  %v7490_v22 = vcombine.low %v7481_v27, %v7488_v9  ;;  %v7506_v36 = vcombine.low %v18734_v5, %v18710_v25 }
0x2a8b   :  { %v18867_v34 = vadd.f32 %v20833_v42, %v7021_v3  ;;  %v7441_v41 = vcombine.low %v7432_v18, %v7439_v53  ;;  %v7508_v52 = vcombine.low %v18813_v56, %v18766_v1  ;;  %v18881_v3 = vcombine.low %v7399_v0, %v7406_v39 }
0x2a8c   :  { %v18873_v13 = vadd.f32 %v20834_v37, %v7022_v6  ;;  %v7507_v29 = vcombine.low %v18851_v32, %v18862_v24  ;;  %v7448_v62 = vrot.slane %v7440_v54, %v16605_v11  ;;  %v7497_v6 = vrot.slane %v7489_v49, %v16605_v11 }
0x2a8d   :  { %20835 = vst [vmem:[#allocation3_spill] sm:$0xff] %v18881_v3  ;;  %v7455_v14 = vrot.slane %v7441_v41, %v16605_v11  ;;  %v7504_v43 = vrot.slane %v7490_v22, %v16605_v11  ;;  %v7516_v18 = vrot.slane %v7506_v36, %v16605_v11  ;;  %v7559_v19 = vsel %vm166_vm0, %v18881_v3, 0.0 }
0x2a8e   :  { %v7509_v10 = vcombine.low %v18867_v34, %v18873_v13  ;;  %v7523_v48 = vrot.slane %v7507_v29, %v16605_v11  ;;  %v7530_v54 = vrot.slane %v7508_v52, %v16605_v11  ;;  %7560 = vadd.xlane.f32.xlu0 %v7559_v19  ;;  %v18910_v49 = vsub.s32 1, %v16590_v4 }
0x2a8f   :  { %v18893_v0 = vcombine.low %v7448_v62, %v7455_v14  ;;  %v18897_v53 = vcombine.low %v7497_v6, %v7504_v43  ;;  %v18913_v37 = vsub.s32 2, %v16590_v4  ;;  %v18916_v36 = vsub.s32 3, %v16590_v4 }
0x2a90   :  { %v7537_v61 = vrot.slane %v7509_v10, %v16605_v11  ;;  %v7538_v33 = vcombine.low %v7516_v18, %v7523_v48  ;;  %v18919_v29 = vsub.s32 4, %v16590_v4  ;;  %v18922_v52 = vsub.s32 5, %v16590_v4 }
0x2a91   :  { %20836 = vst [vmem:[#allocation4_spill] sm:$0xff] %v18893_v0  ;;  %20837 = vst [vmem:[#allocation5_spill] sm:$0xff] %v18897_v53  ;;  %v7562_v31 = vsel %vm166_vm0, %v18893_v0, 0.0  ;;  %v7565_v9 = vsel %vm166_vm0, %v18897_v53, 0.0  ;;  %v18925_v62 = vsub.s32 6, %v16590_v4  ;;  %v18928_v10 = vsub.s32 7, %v16590_v4 }
0x2a92   :  { %v7539_v27 = vcombine.low %v7530_v54, %v7537_v61  ;;  %7563 = vadd.xlane.f32.xlu1 %v7562_v31  ;;  %v7546_v45 = vrot.slane %v7538_v33, %v16605_v11  ;;  %7566 = vadd.xlane.f32.xlu0 %v7565_v9 }
0x2a94   :  { %v7553_v42 = vrot.slane %v7539_v27, %v16605_v11 }
0x2a96   :  { %v18905_v39 = vcombine.low %v7546_v45, %v7553_v42 }
0x2a98   :  { %20838 = vst [vmem:[#allocation6_spill] sm:$0xff] %v18905_v39  ;;  %v7568_v41 = vsel %vm166_vm0, %v18905_v39, 0.0 }
0x2a99   :  { %7569 = vadd.xlane.f32.xlu1 %v7568_v41 }
0x2b1b   :  { %v7561_v22 = vpop.xlane.xlu0 %7560 }
0x2b1c   :  { %v7571_v14 = vmul.f32 0.03125, %v7561_v22 }
0x2b1e   :  { %v7582_v18 = vrot.slane %v7571_v14, %v16608_v12  ;;  %v7586_v48 = vrot.slane %v7571_v14, %v18910_v49  ;;  %v7590_v19 = vrot.slane %v7571_v14, %v18913_v37  ;;  %v7594_v61 = vrot.slane %v7571_v14, %v18916_v36 }
0x2b1f   :  { %v7564_v6 = vpop.xlane.xlu1 %7563  ;;  %v7567_v54 = vpop.xlane.xlu0 %7566  ;;  %v7598_v33 = vrot.slane %v7571_v14, %v18919_v29  ;;  %v7602_v31 = vrot.slane %v7571_v14, %v18922_v52  ;;  %v7606_v27 = vrot.slane %v7571_v14, %v18925_v62  ;;  %v7610_v4 = vrot.slane %v7571_v14, %v18928_v10 }
0x2b20   :  { %v7572_v43 = vmul.f32 0.03125, %v7564_v6  ;;  %v18937_v9 = vmul.f32 0.03125, %v7567_v54  ;;  %v18941_v45 = vsub.f32 %v18713_v7, %v7582_v18  ;;  %v18944_v42 = vsub.f32 %v18685_v55, %v7586_v48 }
0x2b21   :  { %v18947_v41 = vsub.f32 %v18718_v20, %v7590_v19  ;;  %v18950_v22 = vsub.f32 %v18692_v15, %v7594_v61  ;;  %v18953_v6 = vsub.f32 %v18776_v46, %v7598_v33  ;;  %v18956_v54 = vsub.f32 %v18749_v59, %v7602_v31 }
0x2b22   :  { %v18959_v14 = vsub.f32 %v18810_v30, %v7606_v27  ;;  %v18962_v7 = vsub.f32 %v18760_v60, %v7610_v4  ;;  %v7771_v55 = vmul.f32 %v18941_v45, %v18941_v45  ;;  %v7772_v20 = vmul.f32 %v18944_v42, %v18944_v42 }
0x2b23   :  { %v7773_v46 = vmul.f32 %v18947_v41, %v18947_v41  ;;  %v7774_v59 = vmul.f32 %v18950_v22, %v18950_v22  ;;  %v7775_v30 = vmul.f32 %v18953_v6, %v18953_v6  ;;  %v7776_v60 = vmul.f32 %v18956_v54, %v18956_v54 }
0x2b24   :  { %20839 = vst [vmem:[#allocation7_spill] sm:$0xff] %v18959_v14  ;;  %20840 = vst [vmem:[#allocation8_spill] sm:$0xff] %v18962_v7  ;;  %v7777_v48 = vmul.f32 %v18959_v14, %v18959_v14  ;;  %v7778_v19 = vmul.f32 %v18962_v7, %v18962_v7  ;;  %v7835_v61 = vcombine.low %v7771_v55, %v7772_v20 }
0x2b25   :  { %v7836_v33 = vcombine.low %v7773_v46, %v7774_v59  ;;  %v7837_v31 = vcombine.low %v7775_v30, %v7776_v60  ;;  %v7614_v27 = vrot.slane %v7572_v43, %v16608_v12  ;;  %v7618_v4 = vrot.slane %v7572_v43, %v18910_v49 }
0x2b26   :  { %v7570_v15 = vpop.xlane.xlu1 %7569  ;;  %v7838_v39 = vcombine.low %v7777_v48, %v7778_v19  ;;  %v7845_v0 = vrot.slane %v7835_v61, %v16605_v11  ;;  %v7622_v53 = vrot.slane %v7572_v43, %v18913_v37  ;;  %v7630_v7 = vrot.slane %v7572_v43, %v18919_v29 }
0x2b27   :  { %v18976_v18 = vmul.f32 0.03125, %v7570_v15  ;;  %v7626_v15 = vrot.slane %v7572_v43, %v18916_v36  ;;  %v7852_v3 = vrot.slane %v7836_v33, %v16605_v11  ;;  %v7859_v14 = vrot.slane %v7837_v31, %v16605_v11 }
0x2b28   :  { %v7634_v55 = vrot.slane %v7572_v43, %v18922_v52  ;;  %v7866_v20 = vrot.slane %v7838_v39, %v16605_v11  ;;  %v7638_v46 = vrot.slane %v7572_v43, %v18925_v62  ;;  %v7642_v59 = vrot.slane %v7572_v43, %v18928_v10 }
0x2b29   :  { %v18995_v30 = vsub.f32 %v18723_v28, %v7614_v27  ;;  %v7867_v60 = vcombine.low %v7845_v0, %v7852_v3  ;;  %v18998_v48 = vsub.f32 %v18695_v58, %v7618_v4  ;;  %v19001_v19 = vsub.f32 %v18789_v44, %v7622_v53 }
0x2b2a   :  { %v19004_v61 = vsub.f32 %v18798_v35, %v7626_v15  ;;  %v7868_v33 = vcombine.low %v7859_v14, %v7866_v20  ;;  %v19007_v39 = vsub.f32 %v18780_v8, %v7630_v7  ;;  %v19010_v31 = vsub.f32 %v18755_v63, %v7634_v55 }
0x2b2b   :  { %v19013_v28 = vsub.f32 %v18831_v21, %v7638_v46  ;;  %v7875_v3 = vrot.slane %v7867_v60, %v16605_v11  ;;  %v19017_v58 = vsub.f32 %v18803_v51, %v7642_v59  ;;  %v7779_v44 = vmul.f32 %v18995_v30, %v18995_v30 }
0x2b2c   :  { %v7780_v35 = vmul.f32 %v18998_v48, %v18998_v48  ;;  %v7882_v8 = vrot.slane %v7868_v33, %v16605_v11  ;;  %v7781_v63 = vmul.f32 %v19001_v19, %v19001_v19  ;;  %v7782_v21 = vmul.f32 %v19004_v61, %v19004_v61 }
0x2b2d   :  { %v7783_v0 = vmul.f32 %v19007_v39, %v19007_v39  ;;  %v7784_v51 = vmul.f32 %v19010_v31, %v19010_v31  ;;  %v7785_v53 = vmul.f32 %v19013_v28, %v19013_v28  ;;  %v7786_v43 = vmul.f32 %v19017_v58, %v19017_v58 }
0x2b2e   :  { %v7884_v14 = vcombine.low %v7779_v44, %v7780_v35  ;;  %v7883_v7 = vcombine.low %v7875_v3, %v7882_v8  ;;  %v7885_v27 = vcombine.low %v7781_v63, %v7782_v21  ;;  %v7646_v4 = vrot.slane %v18937_v9, %v16608_v12 }
0x2b2f   :  { %v7650_v15 = vrot.slane %v18937_v9, %v18910_v49  ;;  %v7886_v55 = vcombine.low %v7783_v0, %v7784_v51  ;;  %v7887_v20 = vcombine.low %v7785_v53, %v7786_v43  ;;  %v7654_v59 = vrot.slane %v18937_v9, %v18913_v37 }
0x2b30   :  { %v7894_v46 = vrot.slane %v7884_v14, %v16605_v11  ;;  %v8035_v60 = vsel %vm166_vm0, %v7883_v7, 0.0  ;;  %v7901_v33 = vrot.slane %v7885_v27, %v16605_v11  ;;  %v7658_v3 = vrot.slane %v18937_v9, %v18916_v36 }
0x2b31   :  { %v7662_v44 = vrot.slane %v18937_v9, %v18919_v29  ;;  %8036 = vadd.xlane.f32.xlu0 %v8035_v60  ;;  %v7908_v35 = vrot.slane %v7886_v55, %v16605_v11  ;;  %v7915_v8 = vrot.slane %v7887_v20, %v16605_v11  ;;  %v7666_v63 = vrot.slane %v18937_v9, %v18922_v52 }
0x2b32   :  { %v7670_v21 = vrot.slane %v18937_v9, %v18925_v62  ;;  %v7916_v0 = vcombine.low %v7894_v46, %v7901_v33  ;;  %v7674_v51 = vrot.slane %v18937_v9, %v18928_v10  ;;  %v19058_v53 = vsub.f32 %v18726_v26, %v7646_v4 }
0x2b33   :  { %v19061_v43 = vsub.f32 %v18701_v23, %v7650_v15  ;;  %v7917_v14 = vcombine.low %v7908_v35, %v7915_v8  ;;  %v19064_v7 = vsub.f32 %v18731_v16, %v7654_v59  ;;  %v19067_v27 = vsub.f32 %v18706_v47, %v7658_v3 }
0x2b34   :  { %v19070_v55 = vsub.f32 %v18783_v50, %v7662_v44  ;;  %v7924_v20 = vrot.slane %v7916_v0, %v16605_v11  ;;  %v19074_v9 = vsub.f32 %v18763_v38, %v7666_v63  ;;  %v19077_v26 = vsub.f32 %v18823_v17, %v7670_v21 }
0x2b35   :  { %v19080_v23 = vsub.f32 %v18772_v40, %v7674_v51  ;;  %v7931_v16 = vrot.slane %v7917_v14, %v16605_v11  ;;  %v7787_v47 = vmul.f32 %v19058_v53, %v19058_v53  ;;  %v7788_v50 = vmul.f32 %v19061_v43, %v19061_v43 }
0x2b36   :  { %20841 = vst [vmem:[#allocation9_spill] sm:$0xff] %v19070_v55  ;;  %20842 = vst [vmem:[#allocation10_spill] sm:$0xff] %v19074_v9  ;;  %v7789_v4 = vmul.f32 %v19064_v7, %v19064_v7  ;;  %v7790_v38 = vmul.f32 %v19067_v27, %v19067_v27  ;;  %v7791_v17 = vmul.f32 %v19070_v55, %v19070_v55 }
0x2b37   :  { %20843 = vst [vmem:[#allocation11_spill] sm:$0xff] %v19077_v26  ;;  %20844 = vst [vmem:[#allocation12_spill] sm:$0xff] %v19080_v23  ;;  %v7792_v40 = vmul.f32 %v19074_v9, %v19074_v9  ;;  %v7793_v15 = vmul.f32 %v19077_v26, %v19077_v26  ;;  %v7932_v46 = vcombine.low %v7924_v20, %v7931_v16 }
0x2b38   :  { %v7794_v59 = vmul.f32 %v19080_v23, %v19080_v23  ;;  %v7933_v60 = vcombine.low %v7787_v47, %v7788_v50  ;;  %v7678_v33 = vrot.slane %v18976_v18, %v16608_v12  ;;  %v7934_v3 = vcombine.low %v7789_v4, %v7790_v38  ;;  %v20855_v23 = vld [vmem:[#allocation8_spill] sm:$0xff] }
0x2b39   :  { %v7935_v44 = vcombine.low %v7791_v17, %v7792_v40  ;;  %v7682_v35 = vrot.slane %v18976_v18, %v18910_v49  ;;  %v7686_v8 = vrot.slane %v18976_v18, %v18913_v37  ;;  %v8038_v63 = vsel %vm166_vm0, %v7932_v46, 0.0 }
0x2b3a   :  { %v7936_v21 = vcombine.low %v7793_v15, %v7794_v59  ;;  %v7943_v0 = vrot.slane %v7933_v60, %v16605_v11  ;;  %v7690_v51 = vrot.slane %v18976_v18, %v18916_v36  ;;  %8039 = vadd.xlane.f32.xlu1 %v8038_v63  ;;  %v7950_v14 = vrot.slane %v7934_v3, %v16605_v11 }
0x2b3b   :  { %v7957_v20 = vrot.slane %v7935_v44, %v16605_v11  ;;  %v7694_v16 = vrot.slane %v18976_v18, %v18919_v29  ;;  %v7698_v47 = vrot.slane %v18976_v18, %v18922_v52  ;;  %v7702_v4 = vrot.slane %v18976_v18, %v18925_v62 }
0x2b3c   :  { %v7964_v50 = vrot.slane %v7936_v21, %v16605_v11  ;;  %v7706_v38 = vrot.slane %v18976_v18, %v18928_v10  ;;  %v19121_v17 = vsub.f32 %v18734_v5, %v7678_v33  ;;  %v7965_v40 = vcombine.low %v7943_v0, %v7950_v14 }
0x2b3d   :  { %v19124_v15 = vsub.f32 %v18710_v25, %v7682_v35  ;;  %v19127_v46 = vsub.f32 %v18851_v32, %v7686_v8  ;;  %v19130_v59 = vsub.f32 %v18862_v24, %v7690_v51  ;;  %v19133_v3 = vsub.f32 %v18813_v56, %v7694_v16 }
0x2b3e   :  { %20845 = vst [vmem:[#allocation13_spill] sm:$0xff] %v19121_v17  ;;  %v7966_v60 = vcombine.low %v7957_v20, %v7964_v50  ;;  %v19136_v44 = vsub.f32 %v18766_v1, %v7698_v47  ;;  %v19139_v5 = vsub.f32 %v18867_v34, %v7702_v4  ;;  %v7973_v18 = vrot.slane %v7965_v40, %v16605_v11 }
0x2b3f   :  { %20846 = vst [vmem:[#allocation14_spill] sm:$0xff] %v19124_v15  ;;  %20847 = vst [vmem:[#allocation15_spill] sm:$0xff] %v19127_v46  ;;  %v19143_v25 = vsub.f32 %v18873_v13, %v7706_v38  ;;  %v7795_v32 = vmul.f32 %v19121_v17, %v19121_v17  ;;  %v7796_v24 = vmul.f32 %v19124_v15, %v19124_v15 }
0x2b40   :  { %20848 = vst [vmem:[#allocation16_spill] sm:$0xff] %v19130_v59  ;;  %20849 = vst [vmem:[#allocation17_spill] sm:$0xff] %v19133_v3  ;;  %v7980_v56 = vrot.slane %v7966_v60, %v16605_v11  ;;  %v7797_v1 = vmul.f32 %v19127_v46, %v19127_v46  ;;  %v7798_v34 = vmul.f32 %v19130_v59, %v19130_v59  ;;  %v20854_v59 = vld [vmem:[#allocation7_spill] sm:$0xff] }
0x2b41   :  { %20850 = vst [vmem:[#allocation18_spill] sm:$0xff] %v19136_v44  ;;  %20851 = vst [vmem:[#allocation19_spill] sm:$0xff] %v19139_v5  ;;  %v7799_v33 = vmul.f32 %v19133_v3, %v19133_v3  ;;  %v7800_v13 = vmul.f32 %v19136_v44, %v19136_v44  ;;  %v7801_v35 = vmul.f32 %v19139_v5, %v19139_v5 }
0x2b42   :  { %20852 = vst [vmem:[#allocation20_spill] sm:$0xff] %v19143_v25  ;;  %v7802_v8 = vmul.f32 %v19143_v25, %v19143_v25  ;;  %v7982_v63 = vcombine.low %v7795_v32, %v7796_v24  ;;  %v7981_v21 = vcombine.low %v7973_v18, %v7980_v56  ;;  %v7983_v0 = vcombine.low %v7797_v1, %v7798_v34  ;;  %v15929_v56 = vld [vmem:[%s20727_s16] sm:$0xff]   ;;  %v15930_v1 = vld [vmem:[%s20727_s16 + $0x8] sm:$0xff]  }
0x2b43   :  { %v7984_v51 = vcombine.low %v7799_v33, %v7800_v13  ;;  %15028 = vmatprep.subr.bf16.mxu1 %v15929_v56  ;;  %v20853_v34 = vmov 0.0  }
0x2b44   :  { %v7985_v14 = vcombine.low %v7801_v35, %v7802_v8  ;;  %v7992_v20 = vrot.slane %v7982_v63, %v16605_v11  ;;  %v8041_v16 = vsel %vm166_vm0, %v7981_v21, 0.0  ;;  %v7999_v47 = vrot.slane %v7983_v0, %v16605_v11  ;;  %15029 = vmatpush3.bf16.msra.mxu1 %v15929_v56  ;;  %v16437_v35 = vld [vmem:[%s20728_s14] ss:$0 sm:$0xff] }
0x2b45   :  { %8042 = vadd.xlane.f32.xlu0 %v8041_v16  ;;  %v8006_v50 = vrot.slane %v7984_v51, %v16605_v11  ;;  %15030 = vmatprep.subr.bf16.mxu1 %v15930_v1  ;;  %v8267_v8 = vrot.slane %v16437_v35, %v16605_v11  ;;  %v8274_v63 = vrot.slane %v17656_v2, %v16605_v11  ;;  %v16438_v21 = vld [vmem:[%s20729_s15] ss:$0 sm:$0xff] }
0x2b46   :  { %v8013_v4 = vrot.slane %v7985_v14, %v16605_v11  ;;  %v8014_v38 = vcombine.low %v7992_v20, %v7999_v47  ;;  %v8361_v0 = vrot.slane %v16438_v21, %v16605_v11  ;;  %v8368_v20 = vrot.slane %v17662_v57, %v16605_v11 }
0x2b47   :  { %v8275_v14 = vcombine.high %v8267_v8, %v8267_v8  ;;  %v8276_v47 = vcombine.high %v8274_v63, %v8274_v63 }
0x2b48   :  { %v8015_v40 = vcombine.low %v8006_v50, %v8013_v4  ;;  %v8022_v60 = vrot.slane %v8014_v38, %v16605_v11  ;;  %15031 = vmatpush3.bf16.msra.mxu1 %v15930_v1  ;;  %v8369_v16 = vcombine.high %v8361_v0, %v8361_v0  ;;  %v19190_v4 = vrot.slane %v8267_v8, %v16605_v11 }
0x2b49   :  { %15036 = vmatprep.subr.bf16.mxu1 %v20853_v34  ;;  %v19193_v2 = vrot.slane %v8275_v14, %v16605_v11  ;;  %v8370_v38 = vcombine.high %v8368_v20, %v8368_v20  ;;  %v19205_v57 = vrot.slane %v8276_v47, %v16605_v11  ;;  %v19208_v56 = vrot.slane %v8368_v20, %v16605_v11 }
0x2b4a   :  { %v8029_v18 = vrot.slane %v8015_v40, %v16605_v11  ;;  %v19212_v1 = vcombine.high %v19190_v4, %v19190_v4 }
0x2b4c   :  { %v8030_v32 = vcombine.low %v8022_v60, %v8029_v18  ;;  %v19196_v60 = vrot.slane %v8361_v0, %v16605_v11  ;;  %v19199_v18 = vrot.slane %v8369_v16, %v16605_v11 }
0x2b4e   :  { %v8044_v24 = vsel %vm166_vm0, %v8030_v32, 0.0  ;;  %v19202_v32 = vrot.slane %v8274_v63, %v16605_v11  ;;  %v19227_v63 = vcombine.high %v19205_v57, %v19205_v57  ;;  %v19231_v21 = vcombine.high %v19196_v60, %v19196_v60 }
0x2b4f   :  { %8045 = vadd.xlane.f32.xlu1 %v8044_v24  ;;  %v19235_v0 = vcombine.high %v19199_v18, %v19199_v18 }
0x2b50   :  { %v19223_v8 = vcombine.high %v19202_v32, %v19202_v32 }
0x2bbe   :  { %v8037_v33 = vpop.xlane.xlu0 %8036 }
0x2bbf   :  { %v8047_v13 = vmul.f32 0.03125, %v8037_v33  ;;  %v19216_v33 = vcombine.high %v19193_v2, %v19193_v2 }
0x2bc1   :  { %v8051_v51 = vadd.f32 1e-05, %v8047_v13  ;;  %v19219_v13 = vrot.slane %v8370_v38, %v16605_v11 }
0x2bc3   :  { %16277 = vrsqrt.f32 %v8051_v51 }
0x2bc7   :  { %v8040_v50 = vpop.xlane.xlu1 %8039 }
0x2bc8   :  { %v8048_v40 = vmul.f32 0.03125, %v8040_v50 }
0x2bca   :  { %v8052_v24 = vadd.f32 1e-05, %v8048_v40 }
0x2bcc   :  { %16279 = vrsqrt.f32 %v8052_v24 }
0x2bcd   :  { %v16278_v35 = vpop.eup %16277 }
0x2bce   :  { %v8066_v51 = vrot.slane %v16278_v35, %v16608_v12  ;;  %v8070_v14 = vrot.slane %v16278_v35, %v18910_v49  ;;  %v8074_v20 = vrot.slane %v16278_v35, %v18913_v37  ;;  %v8078_v16 = vrot.slane %v16278_v35, %v18916_v36 }
0x2bcf   :  { %v8082_v47 = vrot.slane %v16278_v35, %v18919_v29  ;;  %v8086_v50 = vrot.slane %v16278_v35, %v18922_v52  ;;  %v8090_v38 = vrot.slane %v16278_v35, %v18925_v62  ;;  %v8094_v40 = vrot.slane %v16278_v35, %v18928_v10 }
0x2bd0   :  { %v8223_v24 = vmul.f32 %v8066_v51, %v18941_v45  ;;  %v8224_v11 = vmul.f32 %v8070_v14, %v18944_v42  ;;  %v8225_v34 = vmul.f32 %v8074_v20, %v18947_v41  ;;  %v8226_v25 = vmul.f32 %v8078_v16, %v18950_v22 }
0x2bd1   :  { %v8227_v44 = vmul.f32 %v8082_v47, %v18953_v6  ;;  %v8228_v3 = vmul.f32 %v8086_v50, %v18956_v54  ;;  %v8229_v17 = vmul.f32 %v8090_v38, %v20854_v59  ;;  %v8230_v26 = vmul.f32 %v8094_v40, %v20855_v23 }
0x2bd2   :  { %v8043_v5 = vpop.xlane.xlu0 %8042  ;;  %v8317_v35 = vmul.f32 %v19190_v4, %v8223_v24  ;;  %v8318_v45 = vmul.f32 %v19193_v2, %v8224_v11  ;;  %v8319_v42 = vmul.f32 %v19212_v1, %v8225_v34  ;;  %v8320_v41 = vmul.f32 %v19216_v33, %v8226_v25 }
0x2bd3   :  { %v8049_v46 = vmul.f32 0.03125, %v8043_v5  ;;  %v8321_v22 = vmul.f32 %v19202_v32, %v8227_v44  ;;  %v8322_v51 = vmul.f32 %v19205_v57, %v8228_v3  ;;  %v19261_v6 = vcombine.high %v19208_v56, %v19208_v56 }
0x2bd4   :  { %v19265_v54 = vcombine.high %v19219_v13, %v19219_v13  ;;  %v8323_v59 = vmul.f32 %v19223_v8, %v8229_v17  ;;  %v8324_v11 = vmul.f32 %v19227_v63, %v8230_v26  ;;  %v19270_v5 = vadd.f32 %v19196_v60, %v8317_v35 }
0x2bd5   :  { %v8053_v23 = vadd.f32 1e-05, %v8049_v46  ;;  %v8412_v44 = vadd.f32 %v19199_v18, %v8318_v45  ;;  %v19274_v3 = vadd.f32 %v19231_v21, %v8319_v42  ;;  %v19277_v34 = vadd.f32 %v19235_v0, %v8320_v41 }
0x2bd6   :  { %v16280_v25 = vpop.eup %16279  ;;  %v19280_v14 = vadd.f32 %v19208_v56, %v8321_v22 }
0x2bd7   :  { %v8098_v46 = vrot.slane %v16280_v25, %v16608_v12  ;;  %v8102_v17 = vrot.slane %v16280_v25, %v18910_v49  ;;  %v8106_v26 = vrot.slane %v16280_v25, %v18913_v37  ;;  %v8110_v20 = vrot.slane %v16280_v25, %v18916_v36 }
0x2bd8   :  { %v8114_v16 = vrot.slane %v16280_v25, %v18919_v29  ;;  %v8118_v47 = vrot.slane %v16280_v25, %v18922_v52  ;;  %v8122_v50 = vrot.slane %v16280_v25, %v18925_v62  ;;  %v8126_v38 = vrot.slane %v16280_v25, %v18928_v10 }
0x2bd9   :  { %v8231_v40 = vmul.f32 %v8098_v46, %v18995_v30  ;;  %v8232_v24 = vmul.f32 %v8102_v17, %v18998_v48  ;;  %v8233_v35 = vmul.f32 %v8106_v26, %v19001_v19  ;;  %v8234_v45 = vmul.f32 %v8110_v20, %v19004_v61 }
0x2bda   :  { %v8235_v41 = vmul.f32 %v8114_v16, %v19007_v39  ;;  %v8236_v22 = vmul.f32 %v8118_v47, %v19010_v31  ;;  %v8237_v15 = vmul.f32 %v8122_v50, %v19013_v28  ;;  %v8238_v9 = vmul.f32 %v8126_v38, %v19017_v58 }
0x2bdb   :  { %v8325_v25 = vmul.f32 %v19190_v4, %v8231_v40  ;;  %v8326_v30 = vmul.f32 %v19193_v2, %v8232_v24  ;;  %v8327_v48 = vmul.f32 %v19212_v1, %v8233_v35  ;;  %v8328_v19 = vmul.f32 %v19216_v33, %v8234_v45 }
0x2bdc   :  { %v8046_v42 = vpop.xlane.xlu1 %8045  ;;  %v8329_v61 = vmul.f32 %v19202_v32, %v8235_v41  ;;  %v8330_v46 = vmul.f32 %v19205_v57, %v8236_v22  ;;  %v8331_v39 = vmul.f32 %v19223_v8, %v8237_v15  ;;  %v8332_v28 = vmul.f32 %v19227_v63, %v8238_v9 }
0x2bdd   :  { %v8050_v55 = vmul.f32 0.03125, %v8046_v42  ;;  %v8416_v58 = vadd.f32 %v19219_v13, %v8322_v51  ;;  %v8420_v17 = vadd.f32 %v19199_v18, %v8326_v30  ;;  %16281 = vrsqrt.f32 %v8053_v23 }
0x2bde   :  { %v8417_v26 = vadd.f32 %v19261_v6, %v8323_v59  ;;  %v8418_v20 = vadd.f32 %v19265_v54, %v8324_v11  ;;  %v8421_v16 = vadd.f32 %v19231_v21, %v8327_v48  ;;  %v8419_v47 = vadd.f32 %v19196_v60, %v8325_v25 }
0x2bdf   :  { %v8054_v31 = vadd.f32 1e-05, %v8050_v55  ;;  %v8422_v50 = vadd.f32 %v19235_v0, %v8328_v19  ;;  %v8443_v55 = vpack.c.bf16 %v19270_v5, %v19270_v5  ;;  %v8444_v9 = vpack.c.bf16 %v8412_v44, %v8412_v44 }
0x2be0   :  { %v8423_v15 = vadd.f32 %v19208_v56, %v8329_v61  ;;  %v8424_v51 = vadd.f32 %v19219_v13, %v8330_v46  ;;  %v8425_v23 = vadd.f32 %v19261_v6, %v8331_v39  ;;  %v8445_v59 = vpack.c.bf16 %v19274_v3, %v19274_v3 }
0x2be1   :  { %16283 = vrsqrt.f32 %v8054_v31  ;;  %v8426_v11 = vadd.f32 %v19265_v54, %v8332_v28  ;;  %v8446_v38 = vpack.c.bf16 %v19277_v34, %v19277_v34  ;;  %v8452_v40 = vpack.c.bf16 %v8420_v17, %v8420_v17 }
0x2be2   :  { %v8447_v5 = vpack.c.bf16 %v19280_v14, %v19280_v14  ;;  %v8448_v44 = vpack.c.bf16 %v8416_v58, %v8416_v58  ;;  %v8449_v24 = vpack.c.bf16 %v8417_v26, %v8417_v26  ;;  %v8453_v35 = vpack.c.bf16 %v8421_v16, %v8421_v16 }
0x2be3   :  { %v8450_v45 = vpack.c.bf16 %v8418_v20, %v8418_v20  ;;  %v8451_v42 = vpack.c.bf16 %v8419_v47, %v8419_v47  ;;  %v8454_v41 = vpack.c.bf16 %v8422_v50, %v8422_v50  ;;  %v8514_v3 = vunpack.c.l.b16 %v8444_v9 }
0x2be4   :  { %v8455_v22 = vpack.c.bf16 %v8423_v15, %v8423_v15  ;;  %v8456_v25 = vpack.c.bf16 %v8424_v51, %v8424_v51  ;;  %v8457_v30 = vpack.c.bf16 %v8425_v23, %v8425_v23  ;;  %v8515_v48 = vunpack.c.l.b16 %v8445_v59 }
0x2be5   :  { %v8458_v19 = vpack.c.bf16 %v8426_v11, %v8426_v11  ;;  %v8513_v34 = vunpack.c.l.b16 %v8443_v55  ;;  %v8516_v61 = vunpack.c.l.b16 %v8446_v38  ;;  %v8522_v46 = vunpack.c.l.b16 %v8452_v40 }
0x2be6   :  { %v8517_v39 = vunpack.c.l.b16 %v8447_v5  ;;  %v8518_v14 = vunpack.c.l.b16 %v8448_v44  ;;  %v8519_v31 = vunpack.c.l.b16 %v8449_v24  ;;  %v8523_v28 = vunpack.c.l.b16 %v8453_v35 }
0x2be7   :  { %v8520_v58 = vunpack.c.l.b16 %v8450_v45  ;;  %v8524_v17 = vunpack.c.l.b16 %v8454_v41  ;;  %v8545_v26 = vrot.slane %v8514_v3, 7  ;;  %v8548_v20 = vrot.slane %v8515_v48, 6  ;;  %v16282_v16 = vpop.eup %16281 }
0x2be8   :  { %v8521_v47 = vunpack.c.l.b16 %v8451_v42  ;;  %v8525_v50 = vunpack.c.l.b16 %v8455_v22  ;;  %v8526_v9 = vunpack.c.l.b16 %v8456_v25  ;;  %v8527_v15 = vunpack.c.l.b16 %v8457_v30 }
0x2be9   :  { %v8547_v51 = vsel %vm8546_vm5, %v8545_v26, %v8513_v34  ;;  %v8551_v23 = vrot.slane %v8516_v61, 5  ;;  %v8566_v55 = vrot.slane %v8522_v46, 7  ;;  %v8568_v59 = vrot.slane %v8523_v28, 6 }
0x2bea   :  { %v8528_v11 = vunpack.c.l.b16 %v8458_v19  ;;  %v8550_v38 = vsel %vm8549_vm6, %v8548_v20, %v8547_v51  ;;  %v8554_v40 = vrot.slane %v8517_v39, 4  ;;  %v8557_v5 = vrot.slane %v8518_v14, 3 }
0x2beb   :  { %v16284_v44 = vpop.eup %16283  ;;  %v8553_v24 = vsel %vm8552_vm7, %v8551_v23, %v8550_v38  ;;  %v8560_v35 = vrot.slane %v8519_v31, 2  ;;  %v8567_v45 = vsel %vm8546_vm5, %v8566_v55, %v8521_v47  ;;  %v8570_v42 = vrot.slane %v8524_v17, 5 }
0x2bec   :  { %v8556_v41 = vsel %vm8555_vm8, %v8554_v40, %v8553_v24  ;;  %v8563_v3 = vrot.slane %v8520_v58, 1  ;;  %v8569_v22 = vsel %vm8549_vm6, %v8568_v59, %v8567_v45  ;;  %v8572_v25 = vrot.slane %v8525_v50, 4  ;;  %v20856_v45 = vld [vmem:[#allocation9_spill] sm:$0xff] }
0x2bed   :  { %v8559_v30 = vsel %vm8558_vm9, %v8557_v5, %v8556_v41  ;;  %v8571_v48 = vsel %vm8552_vm7, %v8570_v42, %v8569_v22  ;;  %v8574_v19 = vrot.slane %v8526_v9, 3  ;;  %v8576_v34 = vrot.slane %v8527_v15, 2  ;;  %v20857_v42 = vld [vmem:[#allocation10_spill] sm:$0xff]  ;;  %v20860_v22 = vld [vmem:[#allocation11_spill] sm:$0xff] }
0x2bee   :  { %v8562_v61 = vsel %vm8561_vm10, %v8560_v35, %v8559_v30  ;;  %v8573_v46 = vsel %vm8555_vm8, %v8572_v25, %v8571_v48  ;;  %v8578_v39 = vrot.slane %v8528_v11, 1  ;;  %v8130_v14 = vrot.slane %v16282_v16, %v16608_v12  ;;  %v20858_v41 = vld [vmem:[#allocation14_spill] sm:$0xff]  ;;  %v20861_v25 = vld [vmem:[#allocation12_spill] sm:$0xff]  ;;  %v20862_v48 = vld [vmem:[#allocation13_spill] sm:$0xff] }
0x2bef   :  { %v8575_v31 = vsel %vm8558_vm9, %v8574_v19, %v8573_v46  ;;  %v8134_v28 = vrot.slane %v16282_v16, %v18910_v49  ;;  %v8138_v58 = vrot.slane %v16282_v16, %v18913_v37  ;;  %v8142_v17 = vrot.slane %v16282_v16, %v18916_v36  ;;  %v20863_v19 = vld [vmem:[#allocation16_spill] sm:$0xff] }
0x2bf0   :  { %v8565_v26 = vsel %vm8564_vm11, %v8563_v3, %v8562_v61  ;;  %v8577_v20 = vsel %vm8561_vm10, %v8576_v34, %v8575_v31  ;;  %v8146_v47 = vrot.slane %v16282_v16, %v18919_v29  ;;  %v8150_v50 = vrot.slane %v16282_v16, %v18922_v52  ;;  %v20859_v3 = vld [vmem:[#allocation15_spill] sm:$0xff]  ;;  %v20865_v34 = vld [vmem:[#allocation18_spill] sm:$0xff]  ;;  %v20867_v31 = vld [vmem:[#allocation20_spill] sm:$0xff] }
0x2bf1   :  { %v8579_v9 = vsel %vm8564_vm11, %v8578_v39, %v8577_v20  ;;  %v8154_v15 = vrot.slane %v16282_v16, %v18925_v62  ;;  %v8166_v51 = vrot.slane %v16284_v44, %v18910_v49  ;;  %v8170_v23 = vrot.slane %v16284_v44, %v18913_v37  ;;  %v20866_v39 = vld [vmem:[#allocation19_spill] sm:$0xff] }
0x2bf2   :  { %v8608_v55 = vpack.c.b16 %v8579_v9, %v8565_v26  ;;  %v8158_v59 = vrot.slane %v16282_v16, %v18928_v10  ;;  %v8162_v11 = vrot.slane %v16284_v44, %v16608_v12  ;;  %v8174_v38 = vrot.slane %v16284_v44, %v18916_v36 }
0x2bf3   :  { %v8178_v40 = vrot.slane %v16284_v44, %v18919_v29  ;;  %v8182_v5 = vrot.slane %v16284_v44, %v18922_v52  ;;  %v8240_v24 = vmul.f32 %v8134_v28, %v19061_v43  ;;  %v8241_v35 = vmul.f32 %v8138_v58, %v19064_v7 }
0x2bf4   :  { %15032 = vmatprep.mubr.msk.bf16.mxu1 %vm166_vm0, %v8608_v55  ;;  %v8186_v49 = vrot.slane %v16284_v44, %v18925_v62  ;;  %v8190_v37 = vrot.slane %v16284_v44, %v18928_v10  ;;  %v8239_v16 = vmul.f32 %v8130_v14, %v19058_v53  ;;  %v8242_v12 = vmul.f32 %v8142_v17, %v19067_v27  ;;  %v20864_v44 = vld [vmem:[#allocation17_spill] sm:$0xff] }
0x2bf5   :  { %v8243_v36 = vmul.f32 %v8146_v47, %v20856_v45  ;;  %v8244_v29 = vmul.f32 %v8150_v50, %v20857_v42  ;;  %v8248_v52 = vmul.f32 %v8166_v51, %v20858_v41  ;;  %v8249_v43 = vmul.f32 %v8170_v23, %v20859_v3 }
0x2bf6   :  { %v8245_v7 = vmul.f32 %v8154_v15, %v20860_v22  ;;  %v8246_v30 = vmul.f32 %v8158_v59, %v20861_v25  ;;  %v8247_v62 = vmul.f32 %v8162_v11, %v20862_v48  ;;  %v8250_v10 = vmul.f32 %v8174_v38, %v20863_v19 }
0x2bf7   :  { %v8251_v53 = vmul.f32 %v8178_v40, %v20864_v44  ;;  %v8252_v27 = vmul.f32 %v8182_v5, %v20865_v34  ;;  %v8334_v61 = vmul.f32 %v19193_v2, %v8240_v24  ;;  %v8335_v46 = vmul.f32 %v19212_v1, %v8241_v35 }
0x2bf8   :  { %v8253_v14 = vmul.f32 %v8186_v49, %v20866_v39  ;;  %v8254_v28 = vmul.f32 %v8190_v37, %v20867_v31  ;;  %v8333_v58 = vmul.f32 %v19190_v4, %v8239_v16  ;;  %v8336_v17 = vmul.f32 %v19216_v33, %v8242_v12 }
0x2bf9   :  { %v8337_v26 = vmul.f32 %v19202_v32, %v8243_v36  ;;  %v8338_v20 = vmul.f32 %v19205_v57, %v8244_v29  ;;  %v8342_v47 = vmul.f32 %v19193_v2, %v8248_v52  ;;  %v8343_v50 = vmul.f32 %v19212_v1, %v8249_v43 }
0x2bfa   :  { %v8339_v9 = vmul.f32 %v19223_v8, %v8245_v7  ;;  %v8340_v15 = vmul.f32 %v19227_v63, %v8246_v30  ;;  %v8341_v51 = vmul.f32 %v19190_v4, %v8247_v62  ;;  %v8344_v23 = vmul.f32 %v19216_v33, %v8250_v10 }
0x2bfb   :  { %v8345_v55 = vmul.f32 %v19202_v32, %v8251_v53  ;;  %v8346_v59 = vmul.f32 %v19205_v57, %v8252_v27  ;;  %v8428_v11 = vadd.f32 %v19199_v18, %v8334_v61  ;;  %v8429_v38 = vadd.f32 %v19231_v21, %v8335_v46 }
0x2bfc   :  { %v8347_v2 = vmul.f32 %v19223_v8, %v8253_v14  ;;  %v8348_v1 = vmul.f32 %v19227_v63, %v8254_v28  ;;  %v8427_v40 = vadd.f32 %v19196_v60, %v8333_v58  ;;  %v8430_v5 = vadd.f32 %v19235_v0, %v8336_v17 }
0x2bfd   :  { %v8431_v4 = vadd.f32 %v19208_v56, %v8337_v26  ;;  %v8432_v33 = vadd.f32 %v19219_v13, %v8338_v20  ;;  %v8436_v32 = vadd.f32 %v19199_v18, %v8342_v47  ;;  %v8437_v57 = vadd.f32 %v19231_v21, %v8343_v50 }
0x2bfe   :  { %v8433_v24 = vadd.f32 %v19261_v6, %v8339_v9  ;;  %v8434_v35 = vadd.f32 %v19265_v54, %v8340_v15  ;;  %v8435_v8 = vadd.f32 %v19196_v60, %v8341_v51  ;;  %v8438_v63 = vadd.f32 %v19235_v0, %v8344_v23 }
0x2bff   :  { %v8439_v49 = vadd.f32 %v19208_v56, %v8345_v55  ;;  %v8440_v37 = vadd.f32 %v19219_v13, %v8346_v59  ;;  %v8460_v16 = vpack.c.bf16 %v8428_v11, %v8428_v11  ;;  %v8461_v12 = vpack.c.bf16 %v8429_v38, %v8429_v38 }
0x2c00   :  { %v8441_v45 = vadd.f32 %v19261_v6, %v8347_v2  ;;  %v8442_v18 = vadd.f32 %v19265_v54, %v8348_v1  ;;  %v8459_v36 = vpack.c.bf16 %v8427_v40, %v8427_v40  ;;  %v8462_v21 = vpack.c.bf16 %v8430_v5, %v8430_v5 }
0x2c01   :  { %v8463_v42 = vpack.c.bf16 %v8431_v4, %v8431_v4  ;;  %v8464_v29 = vpack.c.bf16 %v8432_v33, %v8432_v33  ;;  %v8468_v41 = vpack.c.bf16 %v8436_v32, %v8436_v32  ;;  %v8469_v52 = vpack.c.bf16 %v8437_v57, %v8437_v57 }
0x2c02   :  { %v8465_v3 = vpack.c.bf16 %v8433_v24, %v8433_v24  ;;  %v8466_v60 = vpack.c.bf16 %v8434_v35, %v8434_v35  ;;  %v8467_v43 = vpack.c.bf16 %v8435_v8, %v8435_v8  ;;  %v8470_v0 = vpack.c.bf16 %v8438_v63, %v8438_v63 }
0x2c03   :  { %v8471_v22 = vpack.c.bf16 %v8439_v49, %v8439_v49  ;;  %v8472_v56 = vpack.c.bf16 %v8440_v37, %v8440_v37  ;;  %v8530_v7 = vunpack.c.l.b16 %v8460_v16  ;;  %v8531_v13 = vunpack.c.l.b16 %v8461_v12  ;;  %v13918_v12 = vld [vmem:[%s20730_s17] ss:$0 sm:$0xff] }
0x2c04   :  { %v8473_v25 = vpack.c.bf16 %v8441_v45, %v8441_v45  ;;  %v8474_v30 = vpack.c.bf16 %v8442_v18, %v8442_v18  ;;  %v8529_v48 = vunpack.c.l.b16 %v8459_v36  ;;  %v8532_v6 = vunpack.c.l.b16 %v8462_v21 }
0x2c05   :  { %v8533_v62 = vunpack.c.l.b16 %v8463_v42  ;;  %v8534_v54 = vunpack.c.l.b16 %v8464_v29  ;;  %v8538_v19 = vunpack.c.l.b16 %v8468_v41  ;;  %v8539_v10 = vunpack.c.l.b16 %v8469_v52 }
0x2c06   :  { %v8535_v44 = vunpack.c.l.b16 %v8465_v3  ;;  %v8536_v53 = vunpack.c.l.b16 %v8466_v60  ;;  %v8540_v34 = vunpack.c.l.b16 %v8470_v0  ;;  %v8580_v27 = vrot.slane %v8530_v7, 7 }
0x2c07   :  { %v8537_v61 = vunpack.c.l.b16 %v8467_v43  ;;  %v8541_v46 = vunpack.c.l.b16 %v8471_v22  ;;  %v8542_v39 = vunpack.c.l.b16 %v8472_v56  ;;  %v8582_v14 = vrot.slane %v8531_v13, 6 }
0x2c08   :  { %v8543_v31 = vunpack.c.l.b16 %v8473_v25  ;;  %v8581_v28 = vsel %vm8546_vm5, %v8580_v27, %v8529_v48  ;;  %v8584_v58 = vrot.slane %v8532_v6, 5  ;;  %v8594_v17 = vrot.slane %v8538_v19, 7 }
0x2c09   :  { %v8544_v26 = vunpack.c.l.b16 %v8474_v30  ;;  %v8583_v20 = vsel %vm8549_vm6, %v8582_v14, %v8581_v28  ;;  %v8586_v47 = vrot.slane %v8533_v62, 4  ;;  %v8596_v50 = vrot.slane %v8539_v10, 6 }
0x2c0a   :  { %v8585_v9 = vsel %vm8552_vm7, %v8584_v58, %v8583_v20  ;;  %v8588_v15 = vrot.slane %v8534_v54, 3  ;;  %v8595_v51 = vsel %vm8546_vm5, %v8594_v17, %v8537_v61  ;;  %v8598_v23 = vrot.slane %v8540_v34, 5 }
0x2c0b   :  { %v8587_v55 = vsel %vm8555_vm8, %v8586_v47, %v8585_v9  ;;  %v8590_v59 = vrot.slane %v8535_v44, 2  ;;  %v8597_v11 = vsel %vm8549_vm6, %v8596_v50, %v8595_v51  ;;  %v8600_v38 = vrot.slane %v8541_v46, 4 }
0x2c0c   :  { %v8589_v2 = vsel %vm8558_vm9, %v8588_v15, %v8587_v55  ;;  %v8599_v1 = vsel %vm8552_vm7, %v8598_v23, %v8597_v11  ;;  %v8602_v40 = vrot.slane %v8542_v39, 3  ;;  %v8604_v33 = vrot.slane %v8543_v31, 2 }
0x2c0d   :  { %v8591_v5 = vsel %vm8561_vm10, %v8590_v59, %v8589_v2  ;;  %v8601_v4 = vsel %vm8555_vm8, %v8600_v38, %v8599_v1  ;;  %v8592_v32 = vrot.slane %v8536_v53, 1  ;;  %v8606_v24 = vrot.slane %v8544_v26, 1 }
0x2c0e   :  { %v8603_v57 = vsel %vm8558_vm9, %v8602_v40, %v8601_v4  ;;  %v20868_v37 = vmov 0.0  }
0x2c0f   :  { %v8605_v35 = vsel %vm8561_vm10, %v8604_v33, %v8603_v57  ;;  %v8593_v8 = vsel %vm8564_vm11, %v8592_v32, %v8591_v5 }
0x2c10   :  { %v8607_v63 = vsel %vm8564_vm11, %v8606_v24, %v8605_v35 }
0x2c11   :  { %v8609_v49 = vpack.c.b16 %v8607_v63, %v8593_v8 }
0x2c13   :  { %15033 = vmatmul.mubr.msk.bf16.vlgmr.msra.gmra.mrb[160].mxu1 %vm166_vm0, %v8609_v49 }
0x2c14   :  { %15038 = vmatprep.mubr.msk.bf16.mxu1 %vm16443_vm1, %v20868_v37 }
0x2ce6   :  { %v15034_v16 = vpop.f32.mrb[160].mxu1 }
0x2ce7   :  { %v8662_v45 = vpop.f32.mrb[161].mxu1  ;;  %v8671_v36 = vadd.f32 %v15034_v16, %v13918_v12 }
0x2ce8   :  { %v15035_v18 = vpop.f32.mrb[162].mxu1  ;;  %v8663_v29 = vadd.f32 %v13918_v12, %v8662_v45 }
0x2ce9   :  { %v8674_v21 = vadd.f32 %v15035_v18, %v13918_v12  ;;  %v8665_v42 = vpop.f32.mrb[163].mxu1  ;;  %v19432_v43 = vpack.c.bf16 %v8671_v36, %v8671_v36 }
0x2cea   :  { %v8666_v41 = vadd.f32 %v13918_v12, %v8665_v42  ;;  %v19430_v60 = vpack.c.bf16 %v8663_v29, %v8663_v29 }
0x2ceb   :  { %v15758_v52 = vpack.i.bf16 %v8674_v21, %v8671_v36  ;;  %v19442_v22 = vpack.c.bf16 %v8674_v21, %v8674_v21 }
0x2cec   :  { %v15753_v3 = vpack.i.bf16 %v8666_v41, %v8663_v29  ;;  %v19438_v0 = vpack.c.bf16 %v8666_v41, %v8666_v41 }
0x2ced   :  { %15759 = vrot.lane.b32.xlu1 %v15758_v52, %s20819_s2 }
0x2cee   :  { %15754 = vrot.lane.b32.xlu0 %v15753_v3, %s20819_s2 }
0x2cf1   :  { %15764 = vrot.lane.b32.xlu1 %v15753_v3, %s20820_s6 }
0x2cf2   :  { %15774 = vrot.lane.b32.xlu0 %v15753_v3, %s20821_s4 }
0x2cf5   :  { %15769 = vrot.lane.b32.xlu1 %v15758_v52, %s20820_s6 }
0x2cf6   :  { %15779 = vrot.lane.b32.xlu0 %v15758_v52, %s20821_s4 }
0x2cf9   :  { %8734 = vrot.lane.b32.xlu1 %v19430_v60, %s20822_s27 }
0x2cfa   :  { %8832 = vrot.lane.b32.xlu0 %v19432_v43, %s20822_s27 }
0x2cfd   :  { %8783 = vrot.lane.b32.xlu1 %v19438_v0, %s20822_s27 }
0x2d01   :  { %8881 = vrot.lane.b32.xlu1 %v19442_v22, %s20822_s27 }
0x2d5f   :  { %v15760_v56 = vpop.permute.xlu1 %15759 }
0x2d60   :  { %v15755_v7 = vpop.permute.xlu0 %15754  ;;  %v15762_v30 = vunpack.i.h.bf16 %v15760_v56  ;;  %v15761_v48 = vunpack.i.l.bf16 %v15760_v56 }
0x2d61   :  { %v15757_v13 = vunpack.i.h.bf16 %v15755_v7  ;;  %v15756_v25 = vunpack.i.l.bf16 %v15755_v7 }
0x2d62   :  { %v19454_v19 = vpack.c.bf16 %v15762_v30, %v15762_v30  ;;  %v19456_v10 = vpack.c.bf16 %v15761_v48, %v15761_v48 }
0x2d63   :  { %v19446_v6 = vpack.c.bf16 %v15757_v13, %v15757_v13  ;;  %v19448_v62 = vpack.c.bf16 %v15756_v25, %v15756_v25  ;;  %v15765_v54 = vpop.permute.xlu1 %15764 }
0x2d64   :  { %v15767_v44 = vunpack.i.h.bf16 %v15765_v54  ;;  %v15766_v53 = vunpack.i.l.bf16 %v15765_v54  ;;  %v15775_v27 = vpop.permute.xlu0 %15774 }
0x2d65   :  { %8930 = vrot.lane.b32.xlu0 %v19448_v62, %s20822_s27  ;;  %8979 = vrot.lane.b32.xlu1 %v19446_v6, %s20822_s27  ;;  %v15776_v58 = vunpack.i.l.bf16 %v15775_v27  ;;  %v15777_v47 = vunpack.i.h.bf16 %v15775_v27 }
0x2d66   :  { %v19462_v61 = vpack.c.bf16 %v15767_v44, %v15767_v44  ;;  %v19464_v46 = vpack.c.bf16 %v15766_v53, %v15766_v53 }
0x2d67   :  { %v15770_v34 = vpop.permute.xlu1 %15769  ;;  %v19480_v9 = vpack.c.bf16 %v15776_v58, %v15776_v58  ;;  %v19482_v23 = vpack.c.bf16 %v15777_v47, %v15777_v47 }
0x2d68   :  { %v15772_v39 = vunpack.i.h.bf16 %v15770_v34  ;;  %v15771_v14 = vunpack.i.l.bf16 %v15770_v34  ;;  %v15780_v50 = vpop.permute.xlu0 %15779 }
0x2d69   :  { %9028 = vrot.lane.b32.xlu0 %v19456_v10, %s20822_s27  ;;  %9077 = vrot.lane.b32.xlu1 %v19454_v19, %s20822_s27  ;;  %v15781_v15 = vunpack.i.l.bf16 %v15780_v50  ;;  %v15782_v55 = vunpack.i.h.bf16 %v15780_v50 }
0x2d6a   :  { %v19471_v17 = vpack.c.bf16 %v15772_v39, %v15772_v39  ;;  %v19473_v26 = vpack.c.bf16 %v15771_v14, %v15771_v14 }
0x2d6b   :  { %v8735_v31 = vpop.permute.xlu1 %8734  ;;  %v19492_v38 = vpack.c.bf16 %v15781_v15, %v15781_v15  ;;  %v19496_v2 = vpack.c.bf16 %v15782_v55, %v15782_v55 }
0x2d6c   :  { %v8740_v28 = vsel %vm366_vm2, %v8735_v31, 0  ;;  %v8833_v1 = vpop.permute.xlu0 %8832 }
0x2d6d   :  { %9126 = vrot.lane.b32.xlu0 %v19464_v46, %s20822_s27  ;;  %9175 = vrot.lane.b32.xlu1 %v19462_v61, %s20822_s27  ;;  %v8838_v40 = vsel %vm366_vm2, %v8833_v1, 0 }
0x2d6e   :  { %15037 = vmatpush3.bf16.xpose.msra.mxu1 %v8740_v28 }
0x2d6f   :  { %v8784_v20 = vpop.permute.xlu1 %8783  ;;  %15042 = vmatprep.subr.bf16.mxu1 %v20868_v37 }
0x2d70   :  { %v8789_v11 = vsel %vm366_vm2, %v8784_v20, 0 }
0x2d71   :  { %9224 = vrot.lane.b32.xlu0 %v19473_v26, %s20822_s27  ;;  %9273 = vrot.lane.b32.xlu1 %v19471_v17, %s20822_s27 }
0x2d73   :  { %v8882_v51 = vpop.permute.xlu1 %8881 }
0x2d74   :  { %v8887_v59 = vsel %vm366_vm2, %v8882_v51, 0 }
0x2d75   :  { %15039 = vmatmul.mubr.msk.bf16.vlgmr.msra.gmra.mrb[164].mxu1 %vm366_vm2, %v19430_v60  ;;  %9322 = vrot.lane.b32.xlu0 %v19480_v9, %s20822_s27 }
0x2d76   :  { %9371 = vrot.lane.b32.xlu1 %v19482_v23, %s20822_s27  ;;  %15043 = vmatpush3.bf16.xpose.msra.mxu1 %v8789_v11 }
0x2d77   :  { %15055 = vmatpush3.bf16.xpose.msra.mxu0 %v8887_v59  ;;  %15044 = vmatprep.mubr.msk.bf16.mxu1 %vm16443_vm1, %v20868_v37 }
0x2d78   :  { %15048 = vmatprep.subr.bf16.mxu1 %v20868_v37  ;;  %15066 = vmatprep.subr.bf16.mxu0 %v20868_v37 }
0x2d79   :  { %9420 = vrot.lane.b32.xlu0 %v19492_v38, %s20822_s27 }
0x2d7a   :  { %9469 = vrot.lane.b32.xlu1 %v19496_v2, %s20822_s27 }
0x2d7d   :  { %15045 = vmatmul.mubr.msk.bf16.vlgmr.msra.gmra.mrb[168].mxu1 %vm366_vm2, %v19438_v0  ;;  %9709 = vrot.lane.b32.xlu0 %v19430_v60, %s20823_s26 }
0x2d7e   :  { %15057 = vmatmul.mubr.msk.bf16.vlgmr.msra.gmra.mrb[160].mxu0 %vm366_vm2, %v19442_v22  ;;  %9758 = vrot.lane.b32.xlu1 %v19438_v0, %s20823_s26 }
0x2d7f   :  { %15049 = vmatpush3.bf16.xpose.msra.mxu1 %v8838_v40  ;;  %15050 = vmatprep.mubr.msk.bf16.mxu1 %vm16443_vm1, %v20868_v37 }
0x2d80   :  { %15060 = vmatprep.subr.bf16.mxu1 %v20868_v37  ;;  %15068 = vmatprep.mubr.msk.bf16.mxu0 %vm16443_vm1, %v20868_v37 }
0x2d81   :  { %9806 = vrot.lane.b32.xlu0 %v19432_v43, %s20823_s26 }
0x2d82   :  { %9854 = vrot.lane.b32.xlu1 %v19442_v22, %s20823_s26 }
0x2d85   :  { %9902 = vrot.lane.b32.xlu0 %v19448_v62, %s20823_s26 }
0x2d86   :  { %15051 = vmatmul.mubr.msk.bf16.vlgmr.msra.gmra.mrb[172].mxu1 %vm366_vm2, %v19432_v43  ;;  %10046 = vrot.lane.b32.xlu1 %v19454_v19, %s20823_s26 }
0x2d87   :  { %15062 = vmatprep.mubr.msk.bf16.mxu1 %vm16443_vm1, %v20868_v37 }
0x2d89   :  { %9998 = vrot.lane.b32.xlu0 %v19456_v10, %s20823_s26 }
0x2d8a   :  { %9950 = vrot.lane.b32.xlu1 %v19446_v6, %s20823_s26 }
0x2dd7   :  { %v8931_v5 = vpop.permute.xlu0 %8930  ;;  %v8980_v4 = vpop.permute.xlu1 %8979 }
0x2dd8   :  { %v8936_v33 = vsel %vm366_vm2, %v8931_v5, 0  ;;  %v8985_v32 = vsel %vm366_vm2, %v8980_v4, 0 }
0x2dd9   :  { %15061 = vmatpush3.bf16.xpose.msra.mxu1 %v8936_v33  ;;  %15067 = vmatpush3.bf16.xpose.msra.mxu0 %v8985_v32 }
0x2dda   :  { %15072 = vmatprep.subr.bf16.mxu1 %v20868_v37  ;;  %15078 = vmatprep.subr.bf16.mxu0 %v20868_v37 }
0x2ddb   :  { %v9029_v57 = vpop.permute.xlu0 %9028  ;;  %v9078_v24 = vpop.permute.xlu1 %9077 }
0x2ddc   :  { %v9034_v35 = vsel %vm366_vm2, %v9029_v57, 0  ;;  %v9083_v8 = vsel %vm366_vm2, %v9078_v24, 0 }
0x2ddf   :  { %v9127_v63 = vpop.permute.xlu0 %9126  ;;  %v9176_v49 = vpop.permute.xlu1 %9175 }
0x2de0   :  { %15063 = vmatmul.mubr.msk.bf16.vlgmr.msra.gmra.mrb[176].mxu1 %vm366_vm2, %v19448_v62  ;;  %15069 = vmatmul.mubr.msk.bf16.vlgmr.msra.gmra.mrb[164].mxu0 %vm366_vm2, %v19446_v6  ;;  %v9132_v16 = vsel %vm366_vm2, %v9127_v63, 0  ;;  %v9181_v12 = vsel %vm366_vm2, %v9176_v49, 0 }
0x2de1   :  { %15073 = vmatpush3.bf16.xpose.msra.mxu1 %v9034_v35  ;;  %15079 = vmatpush3.bf16.xpose.msra.mxu0 %v9083_v8 }
0x2de2   :  { %15074 = vmatprep.mubr.msk.bf16.mxu1 %vm16443_vm1, %v20868_v37  ;;  %15080 = vmatprep.mubr.msk.bf16.mxu0 %vm16443_vm1, %v20868_v37 }
0x2de3   :  { %15084 = vmatprep.subr.bf16.mxu1 %v20868_v37  ;;  %15090 = vmatprep.subr.bf16.mxu0 %v20868_v37  ;;  %v9225_v45 = vpop.permute.xlu0 %9224  ;;  %v9274_v18 = vpop.permute.xlu1 %9273 }
0x2de4   :  { %v9230_v36 = vsel %vm366_vm2, %v9225_v45, 0  ;;  %v9279_v21 = vsel %vm366_vm2, %v9274_v18, 0 }
0x2de7   :  { %v9323_v42 = vpop.permute.xlu0 %9322 }
0x2de8   :  { %15075 = vmatmul.mubr.msk.bf16.vlgmr.msra.gmra.mrb[180].mxu1 %vm366_vm2, %v19456_v10  ;;  %15081 = vmatmul.mubr.msk.bf16.vlgmr.msra.gmra.mrb[168].mxu0 %vm366_vm2, %v19454_v19  ;;  %v9372_v29 = vpop.permute.xlu1 %9371  ;;  %v9328_v41 = vsel %vm366_vm2, %v9323_v42, 0 }
0x2de9   :  { %15085 = vmatpush3.bf16.xpose.msra.mxu1 %v9132_v16  ;;  %15091 = vmatpush3.bf16.xpose.msra.mxu0 %v9181_v12  ;;  %v9377_v52 = vsel %vm366_vm2, %v9372_v29, 0 }
0x2dea   :  { %15086 = vmatprep.mubr.msk.bf16.mxu1 %vm16443_vm1, %v20868_v37  ;;  %15092 = vmatprep.mubr.msk.bf16.mxu0 %vm16443_vm1, %v20868_v37 }
0x2deb   :  { %15096 = vmatprep.subr.bf16.mxu1 %v20868_v37  ;;  %15102 = vmatprep.subr.bf16.mxu0 %v20868_v37  ;;  %v9421_v3 = vpop.permute.xlu0 %9420 }
0x2dec   :  { %v9470_v60 = vpop.permute.xlu1 %9469  ;;  %v9426_v43 = vsel %vm366_vm2, %v9421_v3, 0 }
0x2ded   :  { %v9475_v0 = vsel %vm366_vm2, %v9470_v60, 0 }
0x2def   :  { %v9710_v22 = vpop.permute.xlu0 %9709 }
0x2df0   :  { %15087 = vmatmul.mubr.msk.bf16.vlgmr.msra.gmra.mrb[184].mxu1 %vm366_vm2, %v19464_v46  ;;  %15093 = vmatmul.mubr.msk.bf16.vlgmr.msra.gmra.mrb[172].mxu0 %vm366_vm2, %v19462_v61  ;;  %v9759_v56 = vpop.permute.xlu1 %9758  ;;  %v9716_v7 = vsel %vm9714_vm12, %v9710_v22, 0 }
0x2df1   :  { %15097 = vmatpush3.bf16.xpose.msra.mxu1 %v9230_v36  ;;  %15103 = vmatpush3.bf16.xpose.msra.mxu0 %v9279_v21  ;;  %v9764_v13 = vsel %vm9714_vm12, %v9759_v56, 0 }
0x2df2   :  { %15098 = vmatprep.mubr.msk.bf16.mxu1 %vm16443_vm1, %v20868_v37  ;;  %15104 = vmatprep.mubr.msk.bf16.mxu0 %vm16443_vm1, %v20868_v37 }
0x2df3   :  { %15108 = vmatprep.subr.bf16.mxu1 %v20868_v37  ;;  %15114 = vmatprep.subr.bf16.mxu0 %v20868_v37 }
0x2df8   :  { %15099 = vmatmul.mubr.msk.bf16.vlgmr.msra.gmra.mrb[188].mxu1 %vm366_vm2, %v19473_v26  ;;  %15105 = vmatmul.mubr.msk.bf16.vlgmr.msra.gmra.mrb[176].mxu0 %vm366_vm2, %v19471_v17 }
0x2df9   :  { %15109 = vmatpush3.bf16.xpose.msra.mxu1 %v9328_v41  ;;  %15115 = vmatpush3.bf16.xpose.msra.mxu0 %v9377_v52 }
0x2dfa   :  { %15110 = vmatprep.mubr.msk.bf16.mxu1 %vm16443_vm1, %v20868_v37  ;;  %15116 = vmatprep.mubr.msk.bf16.mxu0 %vm16443_vm1, %v20868_v37 }
0x2dfb   :  { %15120 = vmatprep.subr.bf16.mxu1 %v20868_v37  ;;  %15126 = vmatprep.subr.bf16.mxu0 %v20868_v37 }
0x2e00   :  { %15111 = vmatmul.mubr.msk.bf16.vlgmr.msra.gmra.mrb[192].mxu1 %vm366_vm2, %v19480_v9  ;;  %15117 = vmatmul.mubr.msk.bf16.vlgmr.msra.gmra.mrb[180].mxu0 %vm366_vm2, %v19482_v23 }
0x2e01   :  { %15121 = vmatpush3.bf16.xpose.msra.mxu1 %v9426_v43  ;;  %15127 = vmatpush3.bf16.xpose.msra.mxu0 %v9475_v0 }
0x2e02   :  { %15122 = vmatprep.mubr.msk.bf16.mxu1 %vm16443_vm1, %v20868_v37  ;;  %15128 = vmatprep.mubr.msk.bf16.mxu0 %vm16443_vm1, %v20868_v37 }
0x2e03   :  { %15132 = vmatprep.subr.bf16.mxu1 %v20868_v37  ;;  %15138 = vmatprep.subr.bf16.mxu0 %v20868_v37 }
0x2e08   :  { %15123 = vmatmul.mubr.msk.bf16.vlgmr.msra.gmra.mrb[196].mxu1 %vm366_vm2, %v19492_v38  ;;  %15129 = vmatmul.mubr.msk.bf16.vlgmr.msra.gmra.mrb[184].mxu0 %vm366_vm2, %v19496_v2 }
0x2e09   :  { %15133 = vmatpush3.bf16.msra.mxu1 %v9716_v7  ;;  %15139 = vmatpush3.bf16.msra.mxu0 %v9764_v13 }
0x2e0a   :  { %15134 = vmatprep.mubr.msk.bf16.mxu1 %vm16443_vm1, %v20868_v37  ;;  %15144 = vmatprep.subr.bf16.mxu1 %v20868_v37 }
0x2e0b   :  { %15140 = vmatprep.mubr.msk.bf16.mxu0 %vm16443_vm1, %v20868_v37  ;;  %15150 = vmatprep.subr.bf16.mxu0 %v20868_v37 }
0x2e48   :  { %v19610_v25 = vpop.f32.mrb[164].mxu1 }
0x2e49   :  { %v15040_v30 = vpop.f32.mrb[165].mxu1  ;;  %v9517_v48 = vsel %vm366_vm2, %v19610_v25, -inf }
0x2e4a   :  { %9518 = vmax.xlane.f32.xlu0 %v9517_v48  ;;  %v8779_v6 = vpop.f32.mrb[166].mxu1 }
0x2e4b   :  { %v15041_v62 = vpop.f32.mrb[167].mxu1 }
0x2e50   :  { %v19614_v54 = vpop.f32.mrb[168].mxu1 }
0x2e51   :  { %v19616_v19 = vpop.f32.mrb[160].mxu0  ;;  %v15046_v10 = vpop.f32.mrb[169].mxu1  ;;  %v9520_v44 = vsel %vm366_vm2, %v19614_v54, -inf }
0x2e52   :  { %v15058_v53 = vpop.f32.mrb[161].mxu0  ;;  %9521 = vmax.xlane.f32.xlu1 %v9520_v44  ;;  %v8828_v34 = vpop.f32.mrb[170].mxu1  ;;  %v9526_v27 = vsel %vm366_vm2, %v19616_v19, -inf }
0x2e53   :  { %9527 = vmax.xlane.f32.xlu0 %v9526_v27  ;;  %v8926_v39 = vpop.f32.mrb[162].mxu0  ;;  %v15047_v14 = vpop.f32.mrb[171].mxu1 }
0x2e54   :  { %v15059_v31 = vpop.f32.mrb[163].mxu0 }
0x2e59   :  { %v19622_v28 = vpop.f32.mrb[172].mxu1 }
0x2e5a   :  { %v15052_v58 = vpop.f32.mrb[173].mxu1  ;;  %v9523_v20 = vsel %vm366_vm2, %v19622_v28, -inf }
0x2e5b   :  { %v8877_v47 = vpop.f32.mrb[174].mxu1  ;;  %9524 = vmax.xlane.f32.xlu0 %v9523_v20 }
0x2e5c   :  { %v15053_v50 = vpop.f32.mrb[175].mxu1 }
0x2eb3   :  { %v19626_v15 = vpop.f32.mrb[176].mxu1  ;;  %v19628_v51 = vpop.f32.mrb[164].mxu0 }
0x2eb4   :  { %v15064_v55 = vpop.f32.mrb[177].mxu1  ;;  %v15070_v59 = vpop.f32.mrb[165].mxu0  ;;  %v9529_v11 = vsel %vm366_vm2, %v19626_v15, -inf  ;;  %v9532_v1 = vsel %vm366_vm2, %v19628_v51, -inf }
0x2eb5   :  { %v8975_v40 = vpop.f32.mrb[178].mxu1  ;;  %9530 = vmax.xlane.f32.xlu0 %v9529_v11  ;;  %9533 = vmax.xlane.f32.xlu1 %v9532_v1  ;;  %v9024_v5 = vpop.f32.mrb[166].mxu0 }
0x2eb6   :  { %v15065_v4 = vpop.f32.mrb[179].mxu1  ;;  %v15071_v33 = vpop.f32.mrb[167].mxu0 }
0x2ebb   :  { %v19634_v32 = vpop.f32.mrb[180].mxu1  ;;  %v19636_v57 = vpop.f32.mrb[168].mxu0 }
0x2ebc   :  { %v15076_v24 = vpop.f32.mrb[181].mxu1  ;;  %v15082_v35 = vpop.f32.mrb[169].mxu0  ;;  %v9535_v8 = vsel %vm366_vm2, %v19634_v32, -inf  ;;  %v9538_v63 = vsel %vm366_vm2, %v19636_v57, -inf }
0x2ebd   :  { %v9073_v49 = vpop.f32.mrb[182].mxu1  ;;  %9536 = vmax.xlane.f32.xlu0 %v9535_v8  ;;  %9539 = vmax.xlane.f32.xlu1 %v9538_v63  ;;  %v9122_v16 = vpop.f32.mrb[170].mxu0 }
0x2ebe   :  { %v15077_v12 = vpop.f32.mrb[183].mxu1  ;;  %v15083_v45 = vpop.f32.mrb[171].mxu0 }
0x2ebf   :  { %v19672_v24 = vpop.permute.xlu0 %9806  ;;  %v19682_v8 = vpop.permute.xlu1 %9854 }
0x2ec3   :  { %v19642_v18 = vpop.f32.mrb[184].mxu1  ;;  %v19644_v36 = vpop.f32.mrb[172].mxu0 }
0x2ec4   :  { %v15088_v21 = vpop.f32.mrb[185].mxu1  ;;  %v15094_v42 = vpop.f32.mrb[173].mxu0  ;;  %v9541_v29 = vsel %vm366_vm2, %v19642_v18, -inf  ;;  %v9544_v41 = vsel %vm366_vm2, %v19644_v36, -inf }
0x2ec5   :  { %v9171_v52 = vpop.f32.mrb[186].mxu1  ;;  %9542 = vmax.xlane.f32.xlu0 %v9541_v29  ;;  %9545 = vmax.xlane.f32.xlu1 %v9544_v41  ;;  %v9220_v3 = vpop.f32.mrb[174].mxu0 }
0x2ec6   :  { %v15089_v60 = vpop.f32.mrb[187].mxu1  ;;  %v15095_v43 = vpop.f32.mrb[175].mxu0 }
0x2ec7   :  { %v19678_v35 = vpop.permute.xlu0 %9902  ;;  %v19688_v16 = vpop.permute.xlu1 %10046 }
0x2ecb   :  { %v19650_v0 = vpop.f32.mrb[188].mxu1  ;;  %v19652_v22 = vpop.f32.mrb[176].mxu0 }
0x2ecc   :  { %v15100_v56 = vpop.f32.mrb[189].mxu1  ;;  %v15106_v7 = vpop.f32.mrb[177].mxu0  ;;  %v9547_v13 = vsel %vm366_vm2, %v19650_v0, -inf  ;;  %v9550_v30 = vsel %vm366_vm2, %v19652_v22, -inf }
0x2ecd   :  { %v9269_v48 = vpop.f32.mrb[190].mxu1  ;;  %9548 = vmax.xlane.f32.xlu0 %v9547_v13  ;;  %9551 = vmax.xlane.f32.xlu1 %v9550_v30  ;;  %v9318_v6 = vpop.f32.mrb[178].mxu0 }
0x2ece   :  { %v15101_v62 = vpop.f32.mrb[191].mxu1  ;;  %v15107_v10 = vpop.f32.mrb[179].mxu0 }
0x2ecf   :  { %v19684_v63 = vpop.permute.xlu0 %9998  ;;  %v19691_v45 = vpop.permute.xlu1 %9950 }
0x2ed3   :  { %v19658_v44 = vpop.f32.mrb[192].mxu1  ;;  %v19660_v53 = vpop.f32.mrb[180].mxu0 }
0x2ed4   :  { %v15112_v34 = vpop.f32.mrb[193].mxu1  ;;  %v15118_v27 = vpop.f32.mrb[181].mxu0  ;;  %v9553_v39 = vsel %vm366_vm2, %v19658_v44, -inf  ;;  %v9556_v14 = vsel %vm366_vm2, %v19660_v53, -inf }
0x2ed5   :  { %v9367_v31 = vpop.f32.mrb[194].mxu1  ;;  %9554 = vmax.xlane.f32.xlu0 %v9553_v39  ;;  %9557 = vmax.xlane.f32.xlu1 %v9556_v14  ;;  %v9416_v58 = vpop.f32.mrb[182].mxu0 }
0x2ed6   :  { %v15113_v20 = vpop.f32.mrb[195].mxu1  ;;  %v15119_v47 = vpop.f32.mrb[183].mxu0 }
0x2ed7   :  { %v9519_v49 = vpop.xlane.xlu0 %9518 }
0x2edb   :  { %v19666_v50 = vpop.f32.mrb[196].mxu1  ;;  %v19668_v55 = vpop.f32.mrb[184].mxu0 }
0x2edc   :  { %v15124_v59 = vpop.f32.mrb[197].mxu1  ;;  %v15130_v11 = vpop.f32.mrb[185].mxu0  ;;  %v9559_v1 = vsel %vm366_vm2, %v19666_v50, -inf }
0x2edd   :  { %v9465_v40 = vpop.f32.mrb[198].mxu1  ;;  %9560 = vmax.xlane.f32.xlu0 %v9559_v1  ;;  %v9514_v5 = vpop.f32.mrb[186].mxu0 }
0x2ede   :  { %v15125_v4 = vpop.f32.mrb[199].mxu1  ;;  %v15131_v33 = vpop.f32.mrb[187].mxu0 }
0x2edf   :  { %v9522_v29 = vpop.xlane.xlu1 %9521 }
0x2ee0   :  { %v9528_v12 = vpop.xlane.xlu0 %9527  ;;  %v9566_v52 = vsub.f32 %v19614_v54, %v9522_v29 }
0x2ee1   :  { %v9568_v21 = vsub.f32 %v19616_v19, %v9528_v12 }
0x2ee2   :  { %v9583_v3 = vmul.f32 1.442695, %v9566_v52 }
0x2ee3   :  { %v9587_v41 = vmul.f32 1.442695, %v9568_v21 }
0x2ee6   :  { %10142 = vrot.lane.b32.xlu1 %v19462_v61, %s20823_s26  ;;  %v9565_v61 = vsub.f32 %v19610_v25, %v9519_v49 }
0x2ee8   :  { %v9581_v42 = vmul.f32 1.442695, %v9565_v61 }
0x2eea   :  { %10190 = vrot.lane.b32.xlu1 %v19473_v26, %s20823_s26  ;;  %v9525_v26 = vpop.xlane.xlu0 %9524  ;;  %16285 = vpow2.f32 %v9581_v42 }
0x2eeb   :  { %16287 = vpow2.f32 %v9587_v41 }
0x2eee   :  { %10238 = vrot.lane.b32.xlu1 %v19471_v17, %s20823_s26  ;;  %v9567_v17 = vsub.f32 %v19622_v28, %v9525_v26  ;;  %v9562_v28 = vsel %vm366_vm2, %v19668_v55, -inf }
0x2ef3   :  { %10094 = vrot.lane.b32.xlu0 %v19464_v46, %s20823_s26  ;;  %v9585_v46 = vmul.f32 1.442695, %v9567_v17 }
0x2ef4   :  { %v19696_v60 = vpop.eup %16285 }
0x2ef5   :  { %16289 = vpow2.f32 %v9585_v46  ;;  %v19698_v25 = vpop.eup %16287  ;;  %v9613_v19 = vsel %vm366_vm2, %v19696_v60, 0.0 }
0x2ef6   :  { %16291 = vpow2.f32 %v9583_v3  ;;  %v9622_v56 = vsel %vm366_vm2, %v19698_v25, 0.0 }
0x2eff   :  { %v19704_v43 = vpop.eup %16289 }
0x2f00   :  { %v9619_v54 = vsel %vm366_vm2, %v19704_v43, 0.0  ;;  %v19710_v7 = vpop.eup %16291 }
0x2f01   :  { %v9616_v13 = vsel %vm366_vm2, %v19710_v7, 0.0 }
0x2f12   :  { %9614 = vadd.xlane.f32.xlu0 %v9613_v19  ;;  %9563 = vmax.xlane.f32.xlu1 %v9562_v28 }
0x2f16   :  { %9620 = vadd.xlane.f32.xlu0 %v9619_v54  ;;  %9623 = vadd.xlane.f32.xlu1 %v9622_v56 }
0x2f1a   :  { %9617 = vadd.xlane.f32.xlu1 %v9616_v13 }
0x2f42   :  { %v9531_v30 = vpop.xlane.xlu0 %9530  ;;  %v9534_v48 = vpop.xlane.xlu1 %9533 }
0x2f43   :  { %v9569_v6 = vsub.f32 %v19626_v15, %v9531_v30  ;;  %v9570_v62 = vsub.f32 %v19628_v51, %v9534_v48 }
0x2f45   :  { %v9589_v10 = vmul.f32 1.442695, %v9569_v6  ;;  %v9591_v34 = vmul.f32 1.442695, %v9570_v62 }
0x2f47   :  { %16293 = vpow2.f32 %v9589_v10 }
0x2f48   :  { %16295 = vpow2.f32 %v9591_v34 }
0x2f4a   :  { %v9537_v27 = vpop.xlane.xlu0 %9536  ;;  %v9540_v39 = vpop.xlane.xlu1 %9539 }
0x2f4b   :  { %v9571_v14 = vsub.f32 %v19634_v32, %v9537_v27  ;;  %v9572_v31 = vsub.f32 %v19636_v57, %v9540_v39 }
0x2f4d   :  { %v9593_v58 = vmul.f32 1.442695, %v9571_v14  ;;  %v9595_v20 = vmul.f32 1.442695, %v9572_v31 }
0x2f4f   :  { %16297 = vpow2.f32 %v9593_v58 }
0x2f50   :  { %16299 = vpow2.f32 %v9595_v20 }
0x2f51   :  { %v19718_v47 = vpop.eup %16293 }
0x2f52   :  { %v19720_v59 = vpop.eup %16295  ;;  %v9543_v15 = vpop.xlane.xlu0 %9542  ;;  %v9625_v11 = vsel %vm366_vm2, %v19718_v47, 0.0 }
0x2f53   :  { %v9546_v51 = vpop.xlane.xlu1 %9545  ;;  %v9573_v1 = vsub.f32 %v19642_v18, %v9543_v15  ;;  %9626 = vadd.xlane.f32.xlu0 %v9625_v11  ;;  %v9628_v32 = vsel %vm366_vm2, %v19720_v59, 0.0 }
0x2f54   :  { %v9574_v40 = vsub.f32 %v19644_v36, %v9546_v51  ;;  %9629 = vadd.xlane.f32.xlu1 %v9628_v32 }
0x2f55   :  { %v9597_v57 = vmul.f32 1.442695, %v9573_v1 }
0x2f56   :  { %v9599_v5 = vmul.f32 1.442695, %v9574_v40 }
0x2f57   :  { %16301 = vpow2.f32 %v9597_v57 }
0x2f58   :  { %16303 = vpow2.f32 %v9599_v5 }
0x2f59   :  { %v19728_v4 = vpop.eup %16297 }
0x2f5a   :  { %v19730_v33 = vpop.eup %16299  ;;  %v9549_v49 = vpop.xlane.xlu0 %9548  ;;  %v9631_v18 = vsel %vm366_vm2, %v19728_v4, 0.0 }
0x2f5b   :  { %v9552_v12 = vpop.xlane.xlu1 %9551  ;;  %v9575_v36 = vsub.f32 %v19650_v0, %v9549_v49  ;;  %9632 = vadd.xlane.f32.xlu0 %v9631_v18  ;;  %v9634_v26 = vsel %vm366_vm2, %v19730_v33, 0.0  ;;  %v9812_v49 = vsel %vm9714_vm12, %v19672_v24, 0 }
0x2f5c   :  { %v9576_v61 = vsub.f32 %v19652_v22, %v9552_v12  ;;  %9635 = vadd.xlane.f32.xlu1 %v9634_v26 }
0x2f5d   :  { %v9601_v21 = vmul.f32 1.442695, %v9575_v36 }
0x2f5e   :  { %v9603_v42 = vmul.f32 1.442695, %v9576_v61 }
0x2f5f   :  { %16305 = vpow2.f32 %v9601_v21  ;;  %v9860_v21 = vsel %vm9714_vm12, %v19682_v8, 0 }
0x2f60   :  { %16307 = vpow2.f32 %v9603_v42  ;;  %v9908_v42 = vsel %vm9714_vm12, %v19678_v35, 0  ;;  %v9956_v35 = vsel %vm9714_vm12, %v19691_v45, 0 }
0x2f61   :  { %v19738_v17 = vpop.eup %16301 }
0x2f62   :  { %v19740_v29 = vpop.eup %16303  ;;  %v9637_v41 = vsel %vm366_vm2, %v19738_v17, 0.0  ;;  %v9555_v19 = vpop.xlane.xlu0 %9554 }
0x2f63   :  { %9638 = vadd.xlane.f32.xlu1 %v9637_v41  ;;  %v9640_v0 = vsel %vm366_vm2, %v19740_v29, 0.0  ;;  %v9558_v28 = vpop.xlane.xlu1 %9557  ;;  %v9577_v54 = vsub.f32 %v19658_v44, %v9555_v19 }
0x2f64   :  { %9641 = vadd.xlane.f32.xlu0 %v9640_v0  ;;  %v9578_v56 = vsub.f32 %v19660_v53, %v9558_v28 }
0x2f65   :  { %v9605_v30 = vmul.f32 1.442695, %v9577_v54  ;;  %v10004_v54 = vsel %vm9714_vm12, %v19684_v63, 0 }
0x2f66   :  { %v9607_v6 = vmul.f32 1.442695, %v9578_v56  ;;  %v10052_v56 = vsel %vm9714_vm12, %v19688_v16, 0 }
0x2f67   :  { %v19761_v62 = vpop.permute.xlu1 %10142  ;;  %16309 = vpow2.f32 %v9605_v30 }
0x2f68   :  { %16311 = vpow2.f32 %v9607_v6 }
0x2f69   :  { %v19746_v22 = vpop.eup %16305 }
0x2f6a   :  { %v19748_v52 = vpop.eup %16307  ;;  %v9643_v46 = vsel %vm366_vm2, %v19746_v22, 0.0  ;;  %v9561_v13 = vpop.xlane.xlu0 %9560 }
0x2f6b   :  { %9644 = vadd.xlane.f32.xlu1 %v9643_v46  ;;  %v9646_v3 = vsel %vm366_vm2, %v19748_v52, 0.0  ;;  %v9579_v48 = vsub.f32 %v19666_v50, %v9561_v13 }
0x2f6c   :  { %9647 = vadd.xlane.f32.xlu0 %v9646_v3 }
0x2f6d   :  { %v9609_v10 = vmul.f32 1.442695, %v9579_v48 }
0x2f6f   :  { %16313 = vpow2.f32 %v9609_v10 }
0x2f71   :  { %v19769_v44 = vpop.eup %16309 }
0x2f72   :  { %v19771_v53 = vpop.eup %16311  ;;  %v9649_v50 = vsel %vm366_vm2, %v19769_v44, 0.0 }
0x2f73   :  { %v9652_v58 = vsel %vm366_vm2, %v19771_v53, 0.0 }
0x2f79   :  { %v19775_v14 = vpop.eup %16313 }
0x2f7a   :  { %v9655_v11 = vsel %vm366_vm2, %v19775_v14, 0.0 }
0x2f7c   :  { %10334 = vrot.lane.b32.xlu1 %v19482_v23, %s20823_s26  ;;  %v19763_v23 = vpop.permute.xlu1 %10190 }
0x2f80   :  { %v19767_v34 = vpop.permute.xlu1 %10238 }
0x2f82   :  { %10286 = vrot.lane.b32.xlu0 %v19480_v9, %s20823_s26  ;;  %v19765_v9 = vpop.permute.xlu0 %10094 }
0x2f83   :  { %v10100_v6 = vsel %vm9714_vm12, %v19765_v9, 0 }
0x2f9f   :  { %v9615_v27 = vpop.xlane.xlu0 %9614  ;;  %v9564_v39 = vpop.xlane.xlu1 %9563 }
0x2fa0   :  { %16315 = vrcp.f32 %v9615_v27  ;;  %v9580_v31 = vsub.f32 %v19668_v55, %v9564_v39  ;;  %9650 = vadd.xlane.f32.xlu1 %v9649_v50  ;;  %v10148_v27 = vsel %vm9714_vm12, %v19761_v62, 0 }
0x2fa1   :  { %9653 = vadd.xlane.f32.xlu0 %v9652_v58  ;;  %v10196_v58 = vsel %vm9714_vm12, %v19763_v23, 0 }
0x2fa2   :  { %v9611_v20 = vmul.f32 1.442695, %v9580_v31 }
0x2fa3   :  { %v9621_v15 = vpop.xlane.xlu0 %9620  ;;  %v9624_v51 = vpop.xlane.xlu1 %9623 }
0x2fa4   :  { %16317 = vpow2.f32 %v9611_v20  ;;  %9656 = vadd.xlane.f32.xlu1 %v9655_v11  ;;  %v10244_v20 = vsel %vm9714_vm12, %v19767_v34, 0 }
0x2fa5   :  { %16319 = vrcp.f32 %v9621_v15 }
0x2fa7   :  { %v9618_v1 = vpop.xlane.xlu1 %9617 }
0x2fa8   :  { %16321 = vrcp.f32 %v9618_v1 }
0x2fa9   :  { %16323 = vrcp.f32 %v9624_v51 }
0x2faa   :  { %v16316_v40 = vpop.eup %16315 }
0x2fab   :  { %v9662_v32 = vmul.f32 %v16316_v40, %v19696_v60 }
0x2fad   :  { %v9693_v55 = vpack.c.bf16 %v9662_v32, %v9662_v32 }
0x2fae   :  { %v19783_v57 = vpop.eup %16317 }
0x2faf   :  { %v16320_v5 = vpop.eup %16319  ;;  %15135 = vmatmul.mubr.msk.bf16.vlgmr.msra.gmra.mrb[200].mxu1 %vm366_vm2, %v9693_v55  ;;  %v9658_v12 = vsel %vm366_vm2, %v19783_v57, 0.0 }
0x2fb0   :  { %15145 = vmatpush3.bf16.msra.mxu1 %v9812_v49  ;;  %9659 = vadd.xlane.f32.xlu0 %v9658_v12  ;;  %v9666_v60 = vmul.f32 %v16320_v5, %v19704_v43 }
0x2fb1   :  { %15146 = vmatprep.mubr.msk.bf16.mxu1 %vm16443_vm1, %v20868_v37  ;;  %15156 = vmatprep.subr.bf16.mxu1 %v20868_v37 }
0x2fb2   :  { %v16322_v18 = vpop.eup %16321  ;;  %v9695_v61 = vpack.c.bf16 %v9666_v60, %v9666_v60 }
0x2fb3   :  { %v9664_v36 = vmul.f32 %v16322_v18, %v19710_v7  ;;  %v16324_v26 = vpop.eup %16323 }
0x2fb5   :  { %10430 = vrot.lane.b32.xlu1 %v19496_v2, %s20823_s26  ;;  %v9694_v24 = vpack.c.bf16 %v9664_v36, %v9664_v36  ;;  %v9668_v2 = vmul.f32 %v16324_v26, %v19698_v25 }
0x2fb7   :  { %15141 = vmatmul.mubr.msk.bf16.vlgmr.msra.gmra.mrb[188].mxu0 %vm366_vm2, %v9694_v24  ;;  %15147 = vmatmul.mubr.msk.bf16.vlgmr.msra.gmra.mrb[204].mxu1 %vm366_vm2, %v9695_v61  ;;  %v9696_v8 = vpack.c.bf16 %v9668_v2, %v9668_v2 }
0x2fb8   :  { %15151 = vmatpush3.bf16.msra.mxu0 %v9860_v21  ;;  %15157 = vmatpush3.bf16.msra.mxu1 %v9908_v42 }
0x2fb9   :  { %15152 = vmatprep.mubr.msk.bf16.mxu0 %vm16443_vm1, %v20868_v37  ;;  %15162 = vmatprep.subr.bf16.mxu0 %v20868_v37 }
0x2fba   :  { %15158 = vmatprep.mubr.msk.bf16.mxu1 %vm16443_vm1, %v20868_v37  ;;  %15168 = vmatprep.subr.bf16.mxu1 %v20868_v37 }
0x2fbf   :  { %15153 = vmatmul.mubr.msk.bf16.vlgmr.msra.gmra.mrb[192].mxu0 %vm366_vm2, %v9696_v8 }
0x2fc0   :  { %15163 = vmatpush3.bf16.msra.mxu0 %v9956_v35  ;;  %15164 = vmatprep.mubr.msk.bf16.mxu0 %vm16443_vm1, %v20868_v37 }
0x2fc1   :  { %15174 = vmatprep.subr.bf16.mxu0 %v20868_v37 }
0x2fc6   :  { %10382 = vrot.lane.b32.xlu0 %v19492_v38, %s20823_s26 }
0x2fe0   :  { %v9627_v25 = vpop.xlane.xlu0 %9626 }
0x2fe1   :  { %16325 = vrcp.f32 %v9627_v25  ;;  %v9630_v43 = vpop.xlane.xlu1 %9629 }
0x2fe2   :  { %16327 = vrcp.f32 %v9630_v43 }
0x2fe8   :  { %v9633_v7 = vpop.xlane.xlu0 %9632 }
0x2fe9   :  { %16329 = vrcp.f32 %v9633_v7  ;;  %v9636_v41 = vpop.xlane.xlu1 %9635 }
0x2fea   :  { %16331 = vrcp.f32 %v9636_v41 }
0x2feb   :  { %v16326_v45 = vpop.eup %16325 }
0x2fec   :  { %v16328_v0 = vpop.eup %16327  ;;  %v9670_v46 = vmul.f32 %v16326_v45, %v19718_v47 }
0x2fed   :  { %v9672_v3 = vmul.f32 %v16328_v0, %v19720_v59 }
0x2fee   :  { %v9697_v19 = vpack.c.bf16 %v9670_v46, %v9670_v46 }
0x2fef   :  { %v9698_v28 = vpack.c.bf16 %v9672_v3, %v9672_v3 }
0x2ff0   :  { %15159 = vmatmul.mubr.msk.bf16.vlgmr.msra.gmra.mrb[208].mxu1 %vm366_vm2, %v9697_v19  ;;  %v9639_v38 = vpop.xlane.xlu1 %9638 }
0x2ff1   :  { %15169 = vmatpush3.bf16.msra.mxu1 %v10004_v54  ;;  %v9642_v13 = vpop.xlane.xlu0 %9641  ;;  %15165 = vmatmul.mubr.msk.bf16.vlgmr.msra.gmra.mrb[196].mxu0 %vm366_vm2, %v9698_v28  ;;  %16333 = vrcp.f32 %v9639_v38 }
0x2ff2   :  { %16335 = vrcp.f32 %v9642_v13  ;;  %15175 = vmatpush3.bf16.msra.mxu0 %v10052_v56  ;;  %15170 = vmatprep.mubr.msk.bf16.mxu1 %vm16443_vm1, %v20868_v37 }
0x2ff3   :  { %v16330_v47 = vpop.eup %16329  ;;  %15176 = vmatprep.mubr.msk.bf16.mxu0 %vm16443_vm1, %v20868_v37  ;;  %15180 = vmatprep.subr.bf16.mxu1 %v20868_v37 }
0x2ff4   :  { %v16332_v63 = vpop.eup %16331  ;;  %15186 = vmatprep.subr.bf16.mxu0 %v20868_v37  ;;  %v9674_v16 = vmul.f32 %v16330_v47, %v19728_v4 }
0x2ff5   :  { %v9676_v59 = vmul.f32 %v16332_v63, %v19730_v33 }
0x2ff6   :  { %v9699_v30 = vpack.c.bf16 %v9674_v16, %v9674_v16 }
0x2ff7   :  { %v9700_v48 = vpack.c.bf16 %v9676_v59, %v9676_v59 }
0x2ff8   :  { %15171 = vmatmul.mubr.msk.bf16.vlgmr.msra.gmra.mrb[212].mxu1 %vm366_vm2, %v9699_v30  ;;  %v9645_v10 = vpop.xlane.xlu1 %9644 }
0x2ff9   :  { %15181 = vmatpush3.bf16.msra.mxu1 %v10100_v6  ;;  %v9648_v39 = vpop.xlane.xlu0 %9647  ;;  %15177 = vmatmul.mubr.msk.bf16.vlgmr.msra.gmra.mrb[200].mxu0 %vm366_vm2, %v9700_v48  ;;  %16337 = vrcp.f32 %v9645_v10 }
0x2ffa   :  { %16339 = vrcp.f32 %v9648_v39  ;;  %15187 = vmatpush3.bf16.msra.mxu0 %v10148_v27  ;;  %15182 = vmatprep.mubr.msk.bf16.mxu1 %vm16443_vm1, %v20868_v37 }
0x2ffb   :  { %v16334_v4 = vpop.eup %16333  ;;  %15188 = vmatprep.mubr.msk.bf16.mxu0 %vm16443_vm1, %v20868_v37  ;;  %15192 = vmatprep.subr.bf16.mxu1 %v20868_v37 }
0x2ffc   :  { %v16336_v33 = vpop.eup %16335  ;;  %15198 = vmatprep.subr.bf16.mxu0 %v20868_v37  ;;  %v9678_v62 = vmul.f32 %v16334_v4, %v19738_v17  ;;  %v10335_v51 = vpop.permute.xlu1 %10334 }
0x2ffd   :  { %v9680_v9 = vmul.f32 %v16336_v33, %v19740_v29  ;;  %v10287_v15 = vpop.permute.xlu0 %10286  ;;  %v10340_v32 = vsel %vm9714_vm12, %v10335_v51, 0 }
0x2ffe   :  { %v9701_v50 = vpack.c.bf16 %v9678_v62, %v9678_v62  ;;  %v10292_v40 = vsel %vm9714_vm12, %v10287_v15, 0 }
0x2fff   :  { %v9702_v31 = vpack.c.bf16 %v9680_v9, %v9680_v9 }
0x3000   :  { %15183 = vmatmul.mubr.msk.bf16.vlgmr.msra.gmra.mrb[216].mxu1 %vm366_vm2, %v9701_v50 }
0x3001   :  { %15189 = vmatmul.mubr.msk.bf16.vlgmr.msra.gmra.mrb[204].mxu0 %vm366_vm2, %v9702_v31  ;;  %15193 = vmatpush3.bf16.msra.mxu1 %v10196_v58 }
0x3002   :  { %15199 = vmatpush3.bf16.msra.mxu0 %v10244_v20  ;;  %15194 = vmatprep.mubr.msk.bf16.mxu1 %vm16443_vm1, %v20868_v37 }
0x3003   :  { %v16338_v17 = vpop.eup %16337  ;;  %15200 = vmatprep.mubr.msk.bf16.mxu0 %vm16443_vm1, %v20868_v37  ;;  %15204 = vmatprep.subr.bf16.mxu1 %v20868_v37 }
0x3004   :  { %v16340_v29 = vpop.eup %16339  ;;  %15210 = vmatprep.subr.bf16.mxu0 %v20868_v37  ;;  %v9682_v23 = vmul.f32 %v16338_v17, %v19746_v22 }
0x3005   :  { %v9684_v34 = vmul.f32 %v16340_v29, %v19748_v52 }
0x3006   :  { %v9703_v11 = vpack.c.bf16 %v9682_v23, %v9682_v23 }
0x3007   :  { %v9704_v1 = vpack.c.bf16 %v9684_v34, %v9684_v34 }
0x3008   :  { %15195 = vmatmul.mubr.msk.bf16.vlgmr.msra.gmra.mrb[220].mxu1 %vm366_vm2, %v9703_v11 }
0x3009   :  { %15201 = vmatmul.mubr.msk.bf16.vlgmr.msra.gmra.mrb[208].mxu0 %vm366_vm2, %v9704_v1  ;;  %15205 = vmatpush3.bf16.msra.mxu1 %v10292_v40 }
0x300a   :  { %15211 = vmatpush3.bf16.msra.mxu0 %v10340_v32  ;;  %15206 = vmatprep.mubr.msk.bf16.mxu1 %vm16443_vm1, %v20868_v37 }
0x300b   :  { %15212 = vmatprep.mubr.msk.bf16.mxu0 %vm16443_vm1, %v20868_v37  ;;  %15222 = vmatprep.subr.bf16.mxu0 %v20868_v37 }
0x300c   :  { %15216 = vmatprep.subr.bf16.mxu1 %v20868_v37 }
0x302d   :  { %v9651_v22 = vpop.xlane.xlu1 %9650 }
0x302e   :  { %v9654_v52 = vpop.xlane.xlu0 %9653  ;;  %16341 = vrcp.f32 %v9651_v22 }
0x302f   :  { %16343 = vrcp.f32 %v9654_v52 }
0x3031   :  { %v9657_v55 = vpop.xlane.xlu1 %9656 }
0x3032   :  { %16345 = vrcp.f32 %v9657_v55 }
0x3035   :  { %v10431_v18 = vpop.permute.xlu1 %10430 }
0x3036   :  { %v10436_v21 = vsel %vm9714_vm12, %v10431_v18, 0 }
0x3038   :  { %v16342_v5 = vpop.eup %16341 }
0x3039   :  { %v16344_v49 = vpop.eup %16343  ;;  %v9686_v12 = vmul.f32 %v16342_v5, %v19769_v44 }
0x303a   :  { %v9688_v60 = vmul.f32 %v16344_v49, %v19771_v53 }
0x303b   :  { %v9705_v36 = vpack.c.bf16 %v9686_v12, %v9686_v12 }
0x303c   :  { %v9706_v24 = vpack.c.bf16 %v9688_v60, %v9688_v60  ;;  %v16346_v61 = vpop.eup %16345 }
0x303d   :  { %v9660_v26 = vpop.xlane.xlu0 %9659  ;;  %15207 = vmatmul.mubr.msk.bf16.vlgmr.msra.gmra.mrb[224].mxu1 %vm366_vm2, %v9705_v36  ;;  %v9690_v44 = vmul.f32 %v16346_v61, %v19775_v14 }
0x303e   :  { %16347 = vrcp.f32 %v9660_v26  ;;  %15213 = vmatmul.mubr.msk.bf16.vlgmr.msra.gmra.mrb[212].mxu0 %vm366_vm2, %v9706_v24  ;;  %15218 = vmatprep.mubr.msk.bf16.mxu1 %vm16443_vm1, %v20868_v37  ;;  %v15931_v24 = vld [vmem:[%s20731_s18] sm:$0xff]  }
0x303f   :  { %15223 = vmatpush3.bf16.msra.mxu0 %v10436_v21  ;;  %15224 = vmatprep.mubr.msk.bf16.mxu0 %vm16443_vm1, %v20868_v37  ;;  %v9707_v2 = vpack.c.bf16 %v9690_v44, %v9690_v44 }
0x3041   :  { %v10383_v53 = vpop.permute.xlu0 %10382 }
0x3042   :  { %v10388_v42 = vsel %vm9714_vm12, %v10383_v53, 0 }
0x3043   :  { %15217 = vmatpush3.bf16.msra.mxu1 %v10388_v42 }
0x3044   :  { %15228 = vmatprep.subr.bf16.mxu1 %v15931_v24 }
0x3046   :  { %15219 = vmatmul.mubr.msk.bf16.vlgmr.msra.gmra.mrb[228].mxu1 %vm366_vm2, %v9707_v2 }
0x3047   :  { %15229 = vmatpush3.bf16.msra.mxu1 %v15931_v24 }
0x3048   :  { %v16348_v8 = vpop.eup %16347 }
0x3049   :  { %v9692_v35 = vmul.f32 %v16348_v8, %v19783_v57 }
0x304b   :  { %v9708_v25 = vpack.c.bf16 %v9692_v35, %v9692_v35 }
0x304d   :  { %15225 = vmatmul.mubr.msk.bf16.vlgmr.msra.gmra.mrb[216].mxu0 %vm366_vm2, %v9708_v25  ;;  %v15932_v25 = vld [vmem:[%s20731_s18 + $0x8] sm:$0xff]  }
0x304e   :  { %15230 = vmatprep.subr.bf16.mxu1 %v15932_v25 }
0x304f   :  { %15231 = vmatpush3.bf16.msra.mxu1 %v15932_v25 }
0x3082   :  { %v19886_v43 = vpop.f32.mrb[200].mxu1 }
0x3083   :  { %v15136_v7 = vpop.f32.mrb[201].mxu1 }
0x3084   :  { %v9755_v41 = vpop.f32.mrb[202].mxu1 }
0x3085   :  { %v15137_v45 = vpop.f32.mrb[203].mxu1 }
0x308a   :  { %v19888_v0 = vpop.f32.mrb[188].mxu0  ;;  %v19890_v14 = vpop.f32.mrb[204].mxu1 }
0x308b   :  { %v15142_v46 = vpop.f32.mrb[189].mxu0  ;;  %v15148_v3 = vpop.f32.mrb[205].mxu1 }
0x308c   :  { %v9803_v19 = vpop.f32.mrb[190].mxu0  ;;  %v9851_v28 = vpop.f32.mrb[206].mxu1 }
0x308d   :  { %v15143_v54 = vpop.f32.mrb[191].mxu0  ;;  %v15149_v38 = vpop.f32.mrb[207].mxu1 }
0x3092   :  { %v19892_v56 = vpop.f32.mrb[192].mxu0 }
0x3093   :  { %v15154_v57 = vpop.f32.mrb[193].mxu0 }
0x3094   :  { %v9899_v13 = vpop.f32.mrb[194].mxu0 }
0x3095   :  { %v15155_v47 = vpop.f32.mrb[195].mxu0 }
0x30c3   :  { %v9944_v63 = vpop.f32.mrb[208].mxu1 }
0x30c4   :  { %v9992_v16 = vpop.f32.mrb[196].mxu0  ;;  %v15160_v59 = vpop.f32.mrb[209].mxu1 }
0x30c5   :  { %v15783_v30 = vpack.i.bf16 %v9992_v16, %v9944_v63  ;;  %v15166_v48 = vpop.f32.mrb[197].mxu0  ;;  %v9947_v6 = vpop.f32.mrb[210].mxu1 }
0x30c6   :  { %v9995_v10 = vpop.f32.mrb[198].mxu0  ;;  %v15161_v27 = vpop.f32.mrb[211].mxu1 }
0x30c7   :  { %15784 = vrot.lane.b32.xlu0 %v15783_v30, %s20824_s5  ;;  %v15167_v39 = vpop.f32.mrb[199].mxu0 }
0x30cb   :  { %v10040_v4 = vpop.f32.mrb[212].mxu1 }
0x30cc   :  { %v10088_v33 = vpop.f32.mrb[200].mxu0  ;;  %v15172_v62 = vpop.f32.mrb[213].mxu1 }
0x30cd   :  { %v15788_v9 = vpack.i.bf16 %v10088_v33, %v10040_v4  ;;  %v15178_v50 = vpop.f32.mrb[201].mxu0  ;;  %v10043_v31 = vpop.f32.mrb[214].mxu1 }
0x30ce   :  { %v10091_v58 = vpop.f32.mrb[202].mxu0  ;;  %v15173_v20 = vpop.f32.mrb[215].mxu1 }
0x30cf   :  { %15789 = vrot.lane.b32.xlu1 %v15788_v9, %s20824_s5  ;;  %v15179_v17 = vpop.f32.mrb[203].mxu0 }
0x30d3   :  { %v10136_v29 = vpop.f32.mrb[216].mxu1 }
0x30d4   :  { %v10184_v23 = vpop.f32.mrb[204].mxu0  ;;  %v15184_v15 = vpop.f32.mrb[217].mxu1 }
0x30d5   :  { %v15793_v34 = vpack.i.bf16 %v10184_v23, %v10136_v29  ;;  %v15190_v51 = vpop.f32.mrb[205].mxu0  ;;  %v10139_v11 = vpop.f32.mrb[218].mxu1 }
0x30d6   :  { %v10187_v1 = vpop.f32.mrb[206].mxu0  ;;  %v15185_v40 = vpop.f32.mrb[219].mxu1 }
0x30d7   :  { %v15191_v32 = vpop.f32.mrb[207].mxu0  ;;  %15794 = vrot.lane.b32.xlu0 %v15793_v34, %s20825_s1 }
0x30db   :  { %v10232_v22 = vpop.f32.mrb[220].mxu1 }
0x30dc   :  { %v10280_v52 = vpop.f32.mrb[208].mxu0  ;;  %v15196_v55 = vpop.f32.mrb[221].mxu1 }
0x30dd   :  { %v15798_v5 = vpack.i.bf16 %v10280_v52, %v10232_v22  ;;  %v15202_v49 = vpop.f32.mrb[209].mxu0  ;;  %v10235_v12 = vpop.f32.mrb[222].mxu1 }
0x30de   :  { %v10283_v60 = vpop.f32.mrb[210].mxu0  ;;  %v15197_v18 = vpop.f32.mrb[223].mxu1  ;;  %v20869_v12 = vld [vmem:[#allocation3_spill] sm:$0xff] }
0x30df   :  { %v15203_v36 = vpop.f32.mrb[211].mxu0  ;;  %15799 = vrot.lane.b32.xlu1 %v15798_v5, %s20825_s1 }
0x30e0   :  { %v20870_v36 = vld [vmem:[#allocation5_spill] sm:$0xff] }
0x3110   :  { %v10328_v61 = vpop.f32.mrb[224].mxu1 }
0x3111   :  { %v10376_v26 = vpop.f32.mrb[212].mxu0  ;;  %v15208_v21 = vpop.f32.mrb[225].mxu1 }
0x3112   :  { %v15803_v44 = vpack.i.bf16 %v10376_v26, %v10328_v61  ;;  %v15214_v53 = vpop.f32.mrb[213].mxu0  ;;  %v10331_v42 = vpop.f32.mrb[226].mxu1  ;;  %v20871_v26 = vld [vmem:[#allocation4_spill] sm:$0xff] }
0x3113   :  { %v10379_v2 = vpop.f32.mrb[214].mxu0  ;;  %v15209_v8 = vpop.f32.mrb[227].mxu1  ;;  %v20872_v42 = vld [vmem:[#allocation6_spill] sm:$0xff] }
0x3114   :  { %v15215_v35 = vpop.f32.mrb[215].mxu0  ;;  %15804 = vrot.lane.b32.xlu0 %v15803_v44, %s20826_s0 }
0x3119   :  { %v10424_v7 = vpop.f32.mrb[228].mxu1 }
0x311a   :  { %v15220_v41 = vpop.f32.mrb[229].mxu1 }
0x311b   :  { %v10427_v45 = vpop.f32.mrb[230].mxu1 }
0x311c   :  { %v15221_v46 = vpop.f32.mrb[231].mxu1 }
0x3120   :  { %v10472_v3 = vpop.f32.mrb[216].mxu0 }
0x3121   :  { %v15808_v19 = vpack.i.bf16 %v10472_v3, %v10424_v7  ;;  %v15226_v28 = vpop.f32.mrb[217].mxu0 }
0x3122   :  { %v10475_v54 = vpop.f32.mrb[218].mxu0 }
0x3123   :  { %15809 = vrot.lane.b32.xlu1 %v15808_v19, %s20826_s0  ;;  %v15227_v38 = vpop.f32.mrb[219].mxu0 }
0x3139   :  { %v15785_v57 = vpop.permute.xlu0 %15784 }
0x313a   :  { %v15787_v47 = vunpack.i.h.bf16 %v15785_v57  ;;  %v15786_v63 = vunpack.i.l.bf16 %v15785_v57 }
0x313c   :  { %v10527_v48 = vsel %vm366_vm2, %v19888_v0, %v15787_v47  ;;  %v10526_v6 = vsel %vm366_vm2, %v19886_v43, %v15786_v63 }
0x3141   :  { %v15790_v50 = vpop.permute.xlu1 %15789 }
0x3142   :  { %v15792_v58 = vunpack.i.h.bf16 %v15790_v50  ;;  %v15791_v0 = vunpack.i.l.bf16 %v15790_v50  ;;  %v15939_v50 = vld [vmem:[%s20734_s24 + $0x20] sm:$0xff]  }
0x3144   :  { %v10529_v29 = vsel %vm366_vm2, %v19892_v56, %v15792_v58  ;;  %v10528_v23 = vsel %vm366_vm2, %v19890_v14, %v15791_v0  ;;  %v13955_v56 = vld [vmem:[%s20732_s19] ss:$0 sm:$0xff] }
0x3149   :  { %v15795_v13 = vpop.permute.xlu0 %15794 }
0x314a   :  { %v15797_v16 = vunpack.i.h.bf16 %v15795_v13  ;;  %v15796_v59 = vunpack.i.l.bf16 %v15795_v13 }
0x314c   :  { %v10531_v39 = vsel %vm764_vm3, %v10527_v48, %v15797_v16  ;;  %v10530_v4 = vsel %vm764_vm3, %v10526_v6, %v15796_v59 }
0x3151   :  { %v15800_v31 = vpop.permute.xlu1 %15799 }
0x3152   :  { %v15802_v20 = vunpack.i.h.bf16 %v15800_v31  ;;  %v15801_v17 = vunpack.i.l.bf16 %v15800_v31  ;;  %v15940_v31 = vld [vmem:[%s20734_s24 + $0x28] sm:$0xff]  }
0x3154   :  { %v10532_v51 = vsel %vm764_vm3, %v10528_v23, %v15801_v17  ;;  %v10533_v11 = vsel %vm764_vm3, %v10529_v29, %v15802_v20 }
0x3186   :  { %v15805_v30 = vpop.permute.xlu0 %15804 }
0x3187   :  { %v15807_v10 = vunpack.i.h.bf16 %v15805_v30  ;;  %v15806_v27 = vunpack.i.l.bf16 %v15805_v30 }
0x3189   :  { %v10535_v33 = vsel %vm1381_vm4, %v10531_v39, %v15807_v10  ;;  %v10534_v62 = vsel %vm1381_vm4, %v10530_v4, %v15806_v27  ;;  %v15933_v27 = vld [vmem:[%s20733_s22] sm:$0xff]   ;;  %v15934_v39 = vld [vmem:[%s20733_s22 + $0x8] sm:$0xff]  }
0x318a   :  { %v10538_v9 = vpack.c.bf16 %v10535_v33, %v10534_v62  ;;  %15236 = vmatprep.subr.bf16.mxu0 %v15933_v27  ;;  %v15935_v4 = vld [vmem:[%s20734_s24] sm:$0xff]   ;;  %v15936_v33 = vld [vmem:[%s20734_s24 + $0x8] sm:$0xff]   ;;  %v15937_v62 = vld [vmem:[%s20734_s24 + $0x10] sm:$0xff]  }
0x318b   :  { %15237 = vmatpush3.bf16.msra.mxu0 %v15933_v27  ;;  %15244 = vmatprep.subr.bf16.mxu1 %v15935_v4 }
0x318c   :  { %15232 = vmatprep.mubr.msk.bf16.mxu1 %vm166_vm0, %v10538_v9  ;;  %15238 = vmatprep.subr.bf16.mxu0 %v15934_v39  ;;  %v15938_v9 = vld [vmem:[%s20734_s24 + $0x18] sm:$0xff]  }
0x318f   :  { %15239 = vmatpush3.bf16.msra.mxu0 %v15934_v39 }
0x3195   :  { %v15810_v43 = vpop.permute.xlu1 %15809 }
0x3196   :  { %v15812_v15 = vunpack.i.h.bf16 %v15810_v43  ;;  %v15811_v34 = vunpack.i.l.bf16 %v15810_v43 }
0x3198   :  { %v10536_v1 = vsel %vm1381_vm4, %v10532_v51, %v15811_v34  ;;  %v10537_v40 = vsel %vm1381_vm4, %v10533_v11, %v15812_v15 }
0x3199   :  { %v10539_v32 = vpack.c.bf16 %v10537_v40, %v10536_v1 }
0x319b   :  { %15233 = vmatmul.mubr.msk.bf16.vlgmr.msra.gmra.mrb[232].mxu1 %vm166_vm0, %v10539_v32  ;;  %v13960_v32 = vld [vmem:[%s20735_s20] ss:$0 sm:$0xff] }
0x319c   :  { %15245 = vmatpush3.bf16.msra.mxu1 %v15935_v4 }
0x319d   :  { %15246 = vmatprep.subr.bf16.mxu1 %v15936_v33 }
0x31a0   :  { %15247 = vmatpush3.bf16.msra.mxu1 %v15936_v33 }
0x31a1   :  { %15248 = vmatprep.subr.bf16.mxu1 %v15937_v62 }
0x31a4   :  { %15249 = vmatpush3.bf16.msra.mxu1 %v15937_v62 }
0x31a5   :  { %15250 = vmatprep.subr.bf16.mxu1 %v15938_v9 }
0x31a8   :  { %15251 = vmatpush3.bf16.msra.mxu1 %v15938_v9 }
0x31a9   :  { %15252 = vmatprep.subr.bf16.mxu1 %v15939_v50 }
0x31ac   :  { %15253 = vmatpush3.bf16.msra.mxu1 %v15939_v50 }
0x31ad   :  { %15254 = vmatprep.subr.bf16.mxu1 %v15940_v31 }
0x31b0   :  { %15255 = vmatpush3.bf16.msra.mxu1 %v15940_v31 }
0x326e   :  { %v15234_v22 = vpop.f32.mrb[232].mxu1 }
0x326f   :  { %v10598_v52 = vpop.f32.mrb[233].mxu1  ;;  %v10607_v14 = vadd.f32 %v15234_v22, %v13955_v56 }
0x3270   :  { %v10599_v55 = vadd.f32 %v13955_v56, %v10598_v52  ;;  %v15235_v5 = vpop.f32.mrb[234].mxu1 }
0x3271   :  { %v10601_v49 = vpop.f32.mrb[235].mxu1  ;;  %v19931_v24 = vadd.f32 %v10607_v14, %v20870_v36  ;;  %v10610_v61 = vadd.f32 %v15235_v5, %v13955_v56  ;;  %v13961_v5 = vld [vmem:[%s20827_s9] ss:$0 sm:$0xff] }
0x3272   :  { %v19928_v60 = vadd.f32 %v10599_v55, %v20869_v12  ;;  %v10602_v18 = vadd.f32 %v13955_v56, %v10601_v49 }
0x3273   :  { %v19941_v2 = vadd.f32 %v10610_v61, %v20872_v42  ;;  %v10623_v8 = vsel %vm166_vm0, %v19931_v24, 0.0 }
0x3274   :  { %v19934_v21 = vadd.f32 %v10602_v18, %v20871_v26  ;;  %v10617_v44 = vsel %vm166_vm0, %v19928_v60, 0.0 }
0x3275   :  { %10618 = vadd.xlane.f32.xlu0 %v10617_v44  ;;  %v10626_v35 = vsel %vm166_vm0, %v19941_v2, 0.0 }
0x3276   :  { %v10620_v53 = vsel %vm166_vm0, %v19934_v21, 0.0 }
0x3277   :  { %10621 = vadd.xlane.f32.xlu1 %v10620_v53 }
0x3279   :  { %10624 = vadd.xlane.f32.xlu0 %v10623_v8 }
0x327d   :  { %10627 = vadd.xlane.f32.xlu0 %v10626_v35 }
0x3302   :  { %v10619_v25 = vpop.xlane.xlu0 %10618 }
0x3303   :  { %v10629_v7 = vmul.f32 0.03125, %v10619_v25 }
0x3304   :  { %v10622_v41 = vpop.xlane.xlu1 %10621 }
0x3305   :  { %v19948_v45 = vsub.f32 %v19928_v60, %v10629_v7  ;;  %v10630_v46 = vmul.f32 0.03125, %v10622_v41  ;;  %v15941_v7 = vld [vmem:[%s20734_s24 + $0x30] sm:$0xff]   ;;  %v15942_v41 = vld [vmem:[%s20734_s24 + $0x38] sm:$0xff]  }
0x3306   :  { %v10625_v3 = vpop.xlane.xlu0 %10624  ;;  %15256 = vmatprep.subr.bf16.mxu1 %v15941_v7 }
0x3307   :  { %v10634_v19 = vsub.f32 %v19934_v21, %v10630_v46  ;;  %v10631_v28 = vmul.f32 0.03125, %v10625_v3  ;;  %v10637_v54 = vmul.f32 %v19948_v45, %v19948_v45  ;;  %15257 = vmatpush3.bf16.msra.mxu1 %v15941_v7 }
0x3308   :  { %15258 = vmatprep.subr.bf16.mxu1 %v15942_v41 }
0x3309   :  { %v19954_v38 = vsub.f32 %v19931_v24, %v10631_v28  ;;  %v10641_v57 = vsel %vm166_vm0, %v10637_v54, 0.0  ;;  %v10638_v13 = vmul.f32 %v10634_v19, %v10634_v19 }
0x330a   :  { %10642 = vadd.xlane.f32.xlu0 %v10641_v57  ;;  %v10628_v47 = vpop.xlane.xlu0 %10627 }
0x330b   :  { %v10632_v63 = vmul.f32 0.03125, %v10628_v47  ;;  %v10644_v16 = vsel %vm166_vm0, %v10638_v13, 0.0  ;;  %v10639_v59 = vmul.f32 %v19954_v38, %v19954_v38  ;;  %15259 = vmatpush3.bf16.msra.mxu1 %v15942_v41 }
0x330c   :  { %10645 = vadd.xlane.f32.xlu1 %v10644_v16  ;;  %15290 = vmatprep.subr.bf16.mxu1 %v20868_v37 }
0x330d   :  { %v10636_v30 = vsub.f32 %v19941_v2, %v10632_v63  ;;  %v10647_v48 = vsel %vm166_vm0, %v10639_v59, 0.0 }
0x330e   :  { %10648 = vadd.xlane.f32.xlu0 %v10647_v48 }
0x330f   :  { %v10640_v6 = vmul.f32 %v10636_v30, %v10636_v30 }
0x3311   :  { %v10650_v10 = vsel %vm166_vm0, %v10640_v6, 0.0  ;;  %v13967_v6 = vld [vmem:[%s20829_s28] ss:$0 sm:$0xff] }
0x3312   :  { %10651 = vadd.xlane.f32.xlu1 %v10650_v10 }
0x3397   :  { %v10643_v58 = vpop.xlane.xlu0 %10642 }
0x3398   :  { %v10653_v0 = vmul.f32 0.03125, %v10643_v58 }
0x3399   :  { %v10646_v20 = vpop.xlane.xlu1 %10645 }
0x339a   :  { %v10657_v17 = vadd.f32 1e-05, %v10653_v0  ;;  %v10654_v43 = vmul.f32 0.03125, %v10646_v20 }
0x339b   :  { %v10649_v29 = vpop.xlane.xlu0 %10648 }
0x339c   :  { %16349 = vrsqrt.f32 %v10657_v17  ;;  %v10658_v23 = vadd.f32 1e-05, %v10654_v43  ;;  %v10655_v15 = vmul.f32 0.03125, %v10649_v29 }
0x339e   :  { %16351 = vrsqrt.f32 %v10658_v23  ;;  %v10659_v34 = vadd.f32 1e-05, %v10655_v15 }
0x339f   :  { %v10652_v51 = vpop.xlane.xlu1 %10651 }
0x33a0   :  { %16353 = vrsqrt.f32 %v10659_v34  ;;  %v10656_v11 = vmul.f32 0.03125, %v10652_v51 }
0x33a2   :  { %v10660_v1 = vadd.f32 1e-05, %v10656_v11 }
0x33a4   :  { %16355 = vrsqrt.f32 %v10660_v1 }
0x33a6   :  { %v16350_v40 = vpop.eup %16349 }
0x33a7   :  { %v10665_v56 = vmul.f32 %v16350_v40, %v19948_v45  ;;  %v13962_v45 = vld [vmem:[%s20828_s23] ss:$0 sm:$0xff] }
0x33a8   :  { %v16352_v22 = vpop.eup %16351 }
0x33a9   :  { %v10666_v52 = vmul.f32 %v16352_v22, %v10634_v19  ;;  %v10675_v14 = vmul.f32 %v13960_v32, %v10665_v56 }
0x33aa   :  { %v16354_v55 = vpop.eup %16353 }
0x33ab   :  { %v10667_v49 = vmul.f32 %v16354_v55, %v19954_v38  ;;  %v10676_v12 = vmul.f32 %v13960_v32, %v10666_v52  ;;  %v10685_v18 = vadd.f32 %v13961_v5, %v10675_v14 }
0x33ad   :  { %v10686_v36 = vadd.f32 %v13961_v5, %v10676_v12  ;;  %v10677_v26 = vmul.f32 %v13960_v32, %v10667_v49 }
0x33ae   :  { %v16356_v61 = vpop.eup %16355 }
0x33af   :  { %v10668_v44 = vmul.f32 %v16356_v61, %v10636_v30  ;;  %v10689_v53 = vpack.c.bf16 %v10686_v36, %v10685_v18  ;;  %v10687_v8 = vadd.f32 %v13961_v5, %v10677_v26  ;;  %v15943_v36 = vld [vmem:[%s20727_s16 + $0x10] sm:$0xff]   ;;  %v15944_v61 = vld [vmem:[%s20727_s16 + $0x18] sm:$0xff]  }
0x33b0   :  { %15264 = vmatprep.subr.bf16.mxu0 %v15943_v36 }
0x33b1   :  { %v10678_v42 = vmul.f32 %v13960_v32, %v10668_v44  ;;  %15240 = vmatprep.mubr.msk.bf16.mxu0 %vm166_vm0, %v10689_v53 }
0x33b3   :  { %v10688_v35 = vadd.f32 %v13961_v5, %v10678_v42 }
0x33b5   :  { %v10690_v25 = vpack.c.bf16 %v10688_v35, %v10687_v8 }
0x33b7   :  { %15241 = vmatmul.mubr.msk.bf16.vlgmr.msra.gmra.mrb[220].mxu0 %vm166_vm0, %v10690_v25 }
0x33b8   :  { %15265 = vmatpush3.bf16.msra.mxu0 %v15943_v36 }
0x33b9   :  { %15266 = vmatprep.subr.bf16.mxu0 %v15944_v61 }
0x33bc   :  { %15267 = vmatpush3.bf16.msra.mxu0 %v15944_v61 }
0x33bd   :  { %15272 = vmatprep.subr.bf16.mxu0 %v20868_v37 }
0x348a   :  { %v15242_v46 = vpop.f32.mrb[220].mxu0 }
0x348b   :  { %v10758_v3 = vadd.f32 %v15242_v46, %v13962_v45  ;;  %v10749_v19 = vpop.f32.mrb[221].mxu0 }
0x348c   :  { %v10750_v28 = vadd.f32 %v13962_v45, %v10749_v19  ;;  %v15243_v54 = vpop.f32.mrb[222].mxu0 }
0x348d   :  { %v10761_v38 = vadd.f32 %v15243_v54, %v13962_v45  ;;  %v10752_v57 = vpop.f32.mrb[223].mxu0  ;;  %v10766_v47 = vmax.f32 %v10758_v3, 0.0 }
0x348e   :  { %v10753_v13 = vadd.f32 %v13962_v45, %v10752_v57  ;;  %v10764_v16 = vmax.f32 %v10750_v28, 0.0  ;;  %v14012_v28 = vld [vmem:[%s20728_s14 + $0x1] ss:$0 sm:$0xff] }
0x348f   :  { %v10767_v63 = vmax.f32 %v10761_v38, 0.0 }
0x3490   :  { %v10765_v59 = vmax.f32 %v10753_v13, 0.0 }
0x3491   :  { %v10769_v30 = vpack.c.bf16 %v10767_v63, %v10766_v47  ;;  %v14013_v63 = vld [vmem:[%s20729_s15 + $0x1] ss:$0 sm:$0xff] }
0x3492   :  { %v10768_v48 = vpack.c.bf16 %v10765_v59, %v10764_v16 }
0x3494   :  { %15260 = vmatprep.mubr.bf16.mxu1 %v10768_v48 }
0x3495   :  { %15261 = vmatmul.mubr.bf16.vlgmr.msra.gmra.mrb[236].mxu1 %v10769_v30 }
0x3496   :  { %15292 = vmatprep.mubr.msk.bf16.mxu1 %vm16443_vm1, %v20868_v37 }
0x3568   :  { %v15262_v10 = vpop.f32.mrb[236].mxu1 }
0x3569   :  { %v10858_v27 = vpop.f32.mrb[237].mxu1  ;;  %v10867_v39 = vadd.f32 %v15262_v10, %v13967_v6 }
0x356a   :  { %v10859_v4 = vadd.f32 %v13967_v6, %v10858_v27  ;;  %v15263_v33 = vpop.f32.mrb[238].mxu1 }
0x356b   :  { %v10861_v62 = vpop.f32.mrb[239].mxu1  ;;  %v10870_v50 = vadd.f32 %v15263_v33, %v13967_v6  ;;  %v20016_v58 = vadd.f32 %v10867_v39, %v19931_v24 }
0x356c   :  { %v20013_v9 = vadd.f32 %v10859_v4, %v19928_v60  ;;  %v10862_v31 = vadd.f32 %v13967_v6, %v10861_v62 }
0x356d   :  { %v20024_v17 = vadd.f32 %v10870_v50, %v19941_v2  ;;  %v10919_v60 = vsel %vm166_vm0, %v20016_v58, 0.0 }
0x356e   :  { %v20019_v0 = vadd.f32 %v10862_v31, %v19934_v21  ;;  %v10913_v20 = vsel %vm166_vm0, %v20013_v9, 0.0 }
0x356f   :  { %10914 = vadd.xlane.f32.xlu0 %v10913_v20  ;;  %v10922_v24 = vsel %vm166_vm0, %v20024_v17, 0.0  ;;  %v14014_v20 = vld [vmem:[%s20730_s17 + $0x1] ss:$0 sm:$0xff] }
0x3570   :  { %v10916_v43 = vsel %vm166_vm0, %v20019_v0, 0.0 }
0x3571   :  { %10917 = vadd.xlane.f32.xlu1 %v10916_v43 }
0x3573   :  { %10920 = vadd.xlane.f32.xlu0 %v10919_v60 }
0x3575   :  { %10923 = vadd.xlane.f32.xlu1 %v10922_v24 }
0x35fc   :  { %v10915_v21 = vpop.xlane.xlu0 %10914 }
0x35fd   :  { %v10925_v29 = vmul.f32 0.03125, %v10915_v21 }
0x35fe   :  { %v10918_v23 = vpop.xlane.xlu1 %10917 }
0x35ff   :  { %v10929_v15 = vsub.f32 %v20013_v9, %v10925_v29  ;;  %v10926_v34 = vmul.f32 0.03125, %v10918_v23 }
0x3600   :  { %v10921_v2 = vpop.xlane.xlu0 %10920 }
0x3601   :  { %v10930_v51 = vsub.f32 %v20019_v0, %v10926_v34  ;;  %v10927_v11 = vmul.f32 0.03125, %v10921_v2  ;;  %v10933_v1 = vmul.f32 %v10929_v15, %v10929_v15 }
0x3602   :  { %v10924_v40 = vpop.xlane.xlu1 %10923 }
0x3603   :  { %v10931_v32 = vsub.f32 %v20016_v58, %v10927_v11  ;;  %v10928_v56 = vmul.f32 0.03125, %v10924_v40  ;;  %v10937_v22 = vsel %vm166_vm0, %v10933_v1, 0.0  ;;  %v10934_v52 = vmul.f32 %v10930_v51, %v10930_v51 }
0x3604   :  { %10938 = vadd.xlane.f32.xlu0 %v10937_v22 }
0x3605   :  { %v10932_v14 = vsub.f32 %v20024_v17, %v10928_v56  ;;  %v10940_v55 = vsel %vm166_vm0, %v10934_v52, 0.0  ;;  %v10935_v5 = vmul.f32 %v10931_v32, %v10931_v32 }
0x3606   :  { %10941 = vadd.xlane.f32.xlu1 %v10940_v55 }
0x3607   :  { %v10943_v49 = vsel %vm166_vm0, %v10935_v5, 0.0  ;;  %v10936_v12 = vmul.f32 %v10932_v14, %v10932_v14 }
0x3608   :  { %10944 = vadd.xlane.f32.xlu0 %v10943_v49 }
0x3609   :  { %v10946_v18 = vsel %vm166_vm0, %v10936_v12, 0.0 }
0x360a   :  { %10947 = vadd.xlane.f32.xlu1 %v10946_v18 }
0x3691   :  { %v10939_v26 = vpop.xlane.xlu0 %10938 }
0x3692   :  { %v10949_v44 = vmul.f32 0.03125, %v10939_v26 }
0x3693   :  { %v10942_v53 = vpop.xlane.xlu1 %10941 }
0x3694   :  { %v10953_v42 = vadd.f32 1e-05, %v10949_v44  ;;  %v10950_v8 = vmul.f32 0.03125, %v10942_v53 }
0x3695   :  { %v10945_v35 = vpop.xlane.xlu0 %10944 }
0x3696   :  { %16357 = vrsqrt.f32 %v10953_v42  ;;  %v10954_v25 = vadd.f32 1e-05, %v10950_v8  ;;  %v10951_v7 = vmul.f32 0.03125, %v10945_v35 }
0x3697   :  { %v10948_v41 = vpop.xlane.xlu1 %10947 }
0x3698   :  { %16359 = vrsqrt.f32 %v10954_v25  ;;  %v10955_v45 = vadd.f32 1e-05, %v10951_v7  ;;  %v10952_v46 = vmul.f32 0.03125, %v10948_v41 }
0x369a   :  { %16361 = vrsqrt.f32 %v10955_v45  ;;  %v10956_v3 = vadd.f32 1e-05, %v10952_v46 }
0x369c   :  { %16363 = vrsqrt.f32 %v10956_v3 }
0x36a0   :  { %v16358_v19 = vpop.eup %16357 }
0x36a1   :  { %v10961_v54 = vmul.f32 %v16358_v19, %v10929_v15 }
0x36a2   :  { %v16360_v38 = vpop.eup %16359 }
0x36a3   :  { %v10962_v57 = vmul.f32 %v16360_v38, %v10930_v51  ;;  %v10971_v13 = vmul.f32 %v14012_v28, %v10961_v54 }
0x36a4   :  { %v16362_v47 = vpop.eup %16361 }
0x36a5   :  { %v10963_v16 = vmul.f32 %v16362_v47, %v10931_v32  ;;  %v10972_v59 = vmul.f32 %v14012_v28, %v10962_v57  ;;  %v10981_v10 = vadd.f32 %v14013_v63, %v10971_v13 }
0x36a6   :  { %v16364_v30 = vpop.eup %16363 }
0x36a7   :  { %v10973_v48 = vmul.f32 %v14012_v28, %v10963_v16  ;;  %v10964_v6 = vmul.f32 %v16364_v30, %v10932_v14  ;;  %v10982_v27 = vadd.f32 %v14013_v63, %v10972_v59 }
0x36a9   :  { %v10974_v39 = vmul.f32 %v14012_v28, %v10964_v6  ;;  %v10985_v4 = vpack.c.bf16 %v10982_v27, %v10981_v10  ;;  %v10983_v33 = vadd.f32 %v14013_v63, %v10973_v48 }
0x36ab   :  { %15268 = vmatprep.mubr.msk.bf16.mxu0 %vm166_vm0, %v10985_v4  ;;  %v10984_v62 = vadd.f32 %v14013_v63, %v10974_v39 }
0x36ad   :  { %v10986_v50 = vpack.c.bf16 %v10984_v62, %v10983_v33 }
0x36af   :  { %15269 = vmatmul.mubr.msk.bf16.vlgmr.msra.gmra.mrb[224].mxu0 %vm166_vm0, %v10986_v50 }
0x36b0   :  { %15274 = vmatprep.mubr.msk.bf16.mxu0 %vm16443_vm1, %v20868_v37 }
0x3782   :  { %v15270_v31 = vpop.f32.mrb[224].mxu0 }
0x3783   :  { %v11045_v43 = vpop.f32.mrb[225].mxu0  ;;  %v11054_v24 = vadd.f32 %v15270_v31, %v14014_v20 }
0x3784   :  { %v15271_v60 = vpop.f32.mrb[226].mxu0  ;;  %v11046_v23 = vadd.f32 %v14014_v20, %v11045_v43 }
0x3785   :  { %v11057_v21 = vadd.f32 %v15271_v60, %v14014_v20  ;;  %v11048_v29 = vpop.f32.mrb[227].mxu0  ;;  %v20068_v11 = vpack.c.bf16 %v11054_v24, %v11054_v24 }
0x3786   :  { %v11049_v15 = vadd.f32 %v14014_v20, %v11048_v29  ;;  %v20066_v51 = vpack.c.bf16 %v11046_v23, %v11046_v23 }
0x3787   :  { %v15818_v34 = vpack.i.bf16 %v11057_v21, %v11054_v24  ;;  %v20078_v40 = vpack.c.bf16 %v11057_v21, %v11057_v21 }
0x3788   :  { %v15813_v2 = vpack.i.bf16 %v11049_v15, %v11046_v23  ;;  %v20074_v1 = vpack.c.bf16 %v11049_v15, %v11049_v15 }
0x3789   :  { %15819 = vrot.lane.b32.xlu1 %v15818_v34, %s20819_s2 }
0x378a   :  { %15814 = vrot.lane.b32.xlu0 %v15813_v2, %s20819_s2 }
0x378d   :  { %15824 = vrot.lane.b32.xlu1 %v15813_v2, %s20820_s6 }
0x378e   :  { %15834 = vrot.lane.b32.xlu0 %v15813_v2, %s20821_s4 }
0x3791   :  { %15829 = vrot.lane.b32.xlu1 %v15818_v34, %s20820_s6 }
0x3792   :  { %15839 = vrot.lane.b32.xlu0 %v15818_v34, %s20821_s4 }
0x3795   :  { %11117 = vrot.lane.b32.xlu1 %v20066_v51, %s20822_s27 }
0x3796   :  { %11215 = vrot.lane.b32.xlu0 %v20068_v11, %s20822_s27 }
0x3799   :  { %11166 = vrot.lane.b32.xlu1 %v20074_v1, %s20822_s27 }
0x379d   :  { %11264 = vrot.lane.b32.xlu1 %v20078_v40, %s20822_s27 }
0x37fb   :  { %v15820_v32 = vpop.permute.xlu1 %15819 }
0x37fc   :  { %v15815_v56 = vpop.permute.xlu0 %15814  ;;  %v15822_v14 = vunpack.i.h.bf16 %v15820_v32  ;;  %v15821_v55 = vunpack.i.l.bf16 %v15820_v32 }
0x37fd   :  { %v15817_v22 = vunpack.i.h.bf16 %v15815_v56  ;;  %v15816_v52 = vunpack.i.l.bf16 %v15815_v56 }
0x37fe   :  { %v20090_v18 = vpack.c.bf16 %v15822_v14, %v15822_v14  ;;  %v20092_v36 = vpack.c.bf16 %v15821_v55, %v15821_v55 }
0x37ff   :  { %v20082_v5 = vpack.c.bf16 %v15817_v22, %v15817_v22  ;;  %v20084_v49 = vpack.c.bf16 %v15816_v52, %v15816_v52  ;;  %v15825_v12 = vpop.permute.xlu1 %15824 }
0x3800   :  { %v15827_v61 = vunpack.i.h.bf16 %v15825_v12  ;;  %v15826_v26 = vunpack.i.l.bf16 %v15825_v12  ;;  %v15835_v53 = vpop.permute.xlu0 %15834 }
0x3801   :  { %11313 = vrot.lane.b32.xlu0 %v20084_v49, %s20822_s27  ;;  %11362 = vrot.lane.b32.xlu1 %v20082_v5, %s20822_s27  ;;  %v15836_v45 = vunpack.i.l.bf16 %v15835_v53  ;;  %v15837_v28 = vunpack.i.h.bf16 %v15835_v53 }
0x3802   :  { %v20098_v42 = vpack.c.bf16 %v15827_v61, %v15827_v61  ;;  %v20100_v8 = vpack.c.bf16 %v15826_v26, %v15826_v26 }
0x3803   :  { %v15830_v44 = vpop.permute.xlu1 %15829  ;;  %v20116_v38 = vpack.c.bf16 %v15836_v45, %v15836_v45  ;;  %v20118_v47 = vpack.c.bf16 %v15837_v28, %v15837_v28 }
0x3804   :  { %v15832_v35 = vunpack.i.h.bf16 %v15830_v44  ;;  %v15831_v25 = vunpack.i.l.bf16 %v15830_v44  ;;  %v15840_v54 = vpop.permute.xlu0 %15839 }
0x3805   :  { %11411 = vrot.lane.b32.xlu0 %v20092_v36, %s20822_s27  ;;  %11460 = vrot.lane.b32.xlu1 %v20090_v18, %s20822_s27  ;;  %v15841_v57 = vunpack.i.l.bf16 %v15840_v54  ;;  %v15842_v63 = vunpack.i.h.bf16 %v15840_v54 }
0x3806   :  { %v20107_v46 = vpack.c.bf16 %v15832_v35, %v15832_v35  ;;  %v20109_v3 = vpack.c.bf16 %v15831_v25, %v15831_v25 }
0x3807   :  { %v11118_v7 = vpop.permute.xlu1 %11117  ;;  %v20128_v30 = vpack.c.bf16 %v15841_v57, %v15841_v57  ;;  %v20132_v48 = vpack.c.bf16 %v15842_v63, %v15842_v63 }
0x3808   :  { %v11123_v41 = vsel %vm366_vm2, %v11118_v7, 0  ;;  %v11216_v6 = vpop.permute.xlu0 %11215 }
0x3809   :  { %11509 = vrot.lane.b32.xlu0 %v20100_v8, %s20822_s27  ;;  %11558 = vrot.lane.b32.xlu1 %v20098_v42, %s20822_s27  ;;  %v11221_v10 = vsel %vm366_vm2, %v11216_v6, 0 }
0x380a   :  { %15273 = vmatpush3.bf16.xpose.msra.mxu0 %v11123_v41 }
0x380b   :  { %v11167_v19 = vpop.permute.xlu1 %11166  ;;  %15278 = vmatprep.subr.bf16.mxu0 %v20868_v37 }
0x380c   :  { %v11172_v59 = vsel %vm366_vm2, %v11167_v19, 0 }
0x380d   :  { %11607 = vrot.lane.b32.xlu0 %v20109_v3, %s20822_s27  ;;  %11656 = vrot.lane.b32.xlu1 %v20107_v46, %s20822_s27 }
0x380f   :  { %v11265_v13 = vpop.permute.xlu1 %11264 }
0x3810   :  { %v11270_v16 = vsel %vm366_vm2, %v11265_v13, 0 }
0x3811   :  { %15275 = vmatmul.mubr.msk.bf16.vlgmr.msra.gmra.mrb[228].mxu0 %vm366_vm2, %v20066_v51  ;;  %11705 = vrot.lane.b32.xlu0 %v20116_v38, %s20822_s27 }
0x3812   :  { %11754 = vrot.lane.b32.xlu1 %v20118_v47, %s20822_s27  ;;  %15279 = vmatpush3.bf16.xpose.msra.mxu0 %v11172_v59 }
0x3813   :  { %15291 = vmatpush3.bf16.xpose.msra.mxu1 %v11270_v16  ;;  %15280 = vmatprep.mubr.msk.bf16.mxu0 %vm16443_vm1, %v20868_v37 }
0x3814   :  { %15284 = vmatprep.subr.bf16.mxu0 %v20868_v37  ;;  %15302 = vmatprep.subr.bf16.mxu1 %v20868_v37 }
0x3815   :  { %11803 = vrot.lane.b32.xlu0 %v20128_v30, %s20822_s27 }
0x3816   :  { %11852 = vrot.lane.b32.xlu1 %v20132_v48, %s20822_s27  ;;  %s20874_s27 = sld [smem:[#allocation35_spill]] }
0x3819   :  { %15281 = vmatmul.mubr.msk.bf16.vlgmr.msra.gmra.mrb[232].mxu0 %vm366_vm2, %v20074_v1  ;;  %12092 = vrot.lane.b32.xlu0 %v20066_v51, %s20823_s26 }
0x381a   :  { %15293 = vmatmul.mubr.msk.bf16.vlgmr.msra.gmra.mrb[240].mxu1 %vm366_vm2, %v20078_v40  ;;  %12140 = vrot.lane.b32.xlu1 %v20074_v1, %s20823_s26 }
0x381b   :  { %15285 = vmatpush3.bf16.xpose.msra.mxu0 %v11221_v10  ;;  %15286 = vmatprep.mubr.msk.bf16.mxu0 %vm16443_vm1, %v20868_v37 }
0x381c   :  { %15296 = vmatprep.subr.bf16.mxu0 %v20868_v37  ;;  %15304 = vmatprep.mubr.msk.bf16.mxu1 %vm16443_vm1, %v20868_v37 }
0x381d   :  { %12188 = vrot.lane.b32.xlu0 %v20068_v11, %s20823_s26 }
0x381e   :  { %12236 = vrot.lane.b32.xlu1 %v20078_v40, %s20823_s26 }
0x3821   :  { %12284 = vrot.lane.b32.xlu0 %v20084_v49, %s20823_s26 }
0x3822   :  { %15287 = vmatmul.mubr.msk.bf16.vlgmr.msra.gmra.mrb[236].mxu0 %vm366_vm2, %v20068_v11  ;;  %12428 = vrot.lane.b32.xlu1 %v20090_v18, %s20823_s26 }
0x3823   :  { %15298 = vmatprep.mubr.msk.bf16.mxu0 %vm16443_vm1, %v20868_v37 }
0x3825   :  { %12380 = vrot.lane.b32.xlu0 %v20092_v36, %s20823_s26 }
0x3826   :  { %12332 = vrot.lane.b32.xlu1 %v20082_v5, %s20823_s26 }
0x3873   :  { %v11314_v27 = vpop.permute.xlu0 %11313  ;;  %v11363_v39 = vpop.permute.xlu1 %11362 }
0x3874   :  { %v11319_v4 = vsel %vm366_vm2, %v11314_v27, 0  ;;  %v11368_v33 = vsel %vm366_vm2, %v11363_v39, 0 }
0x3875   :  { %15297 = vmatpush3.bf16.xpose.msra.mxu0 %v11319_v4  ;;  %15303 = vmatpush3.bf16.xpose.msra.mxu1 %v11368_v33 }
0x3876   :  { %15308 = vmatprep.subr.bf16.mxu0 %v20868_v37  ;;  %15314 = vmatprep.subr.bf16.mxu1 %v20868_v37 }
0x3877   :  { %v11412_v62 = vpop.permute.xlu0 %11411  ;;  %v11461_v50 = vpop.permute.xlu1 %11460 }
0x3878   :  { %v11417_v31 = vsel %vm366_vm2, %v11412_v62, 0  ;;  %v11466_v20 = vsel %vm366_vm2, %v11461_v50, 0 }
0x387b   :  { %v11510_v43 = vpop.permute.xlu0 %11509  ;;  %v11559_v60 = vpop.permute.xlu1 %11558 }
0x387c   :  { %15299 = vmatmul.mubr.msk.bf16.vlgmr.msra.gmra.mrb[240].mxu0 %vm366_vm2, %v20084_v49  ;;  %15305 = vmatmul.mubr.msk.bf16.vlgmr.msra.gmra.mrb[244].mxu1 %vm366_vm2, %v20082_v5  ;;  %v11515_v24 = vsel %vm366_vm2, %v11510_v43, 0  ;;  %v11564_v21 = vsel %vm366_vm2, %v11559_v60, 0 }
0x387d   :  { %15309 = vmatpush3.bf16.xpose.msra.mxu0 %v11417_v31  ;;  %15315 = vmatpush3.bf16.xpose.msra.mxu1 %v11466_v20 }
0x387e   :  { %15310 = vmatprep.mubr.msk.bf16.mxu0 %vm16443_vm1, %v20868_v37  ;;  %15316 = vmatprep.mubr.msk.bf16.mxu1 %vm16443_vm1, %v20868_v37 }
0x387f   :  { %15320 = vmatprep.subr.bf16.mxu0 %v20868_v37  ;;  %15326 = vmatprep.subr.bf16.mxu1 %v20868_v37  ;;  %v11608_v29 = vpop.permute.xlu0 %11607  ;;  %v11657_v23 = vpop.permute.xlu1 %11656 }
0x3880   :  { %v11613_v15 = vsel %vm366_vm2, %v11608_v29, 0  ;;  %v11662_v34 = vsel %vm366_vm2, %v11657_v23, 0 }
0x3883   :  { %v11706_v2 = vpop.permute.xlu0 %11705 }
0x3884   :  { %15311 = vmatmul.mubr.msk.bf16.vlgmr.msra.gmra.mrb[244].mxu0 %vm366_vm2, %v20092_v36  ;;  %15317 = vmatmul.mubr.msk.bf16.vlgmr.msra.gmra.mrb[248].mxu1 %vm366_vm2, %v20090_v18  ;;  %v11755_v51 = vpop.permute.xlu1 %11754  ;;  %v11711_v11 = vsel %vm366_vm2, %v11706_v2, 0 }
0x3885   :  { %15321 = vmatpush3.bf16.xpose.msra.mxu0 %v11515_v24  ;;  %15327 = vmatpush3.bf16.xpose.msra.mxu1 %v11564_v21  ;;  %v11760_v1 = vsel %vm366_vm2, %v11755_v51, 0 }
0x3886   :  { %15322 = vmatprep.mubr.msk.bf16.mxu0 %vm16443_vm1, %v20868_v37  ;;  %15328 = vmatprep.mubr.msk.bf16.mxu1 %vm16443_vm1, %v20868_v37 }
0x3887   :  { %15332 = vmatprep.subr.bf16.mxu0 %v20868_v37  ;;  %15338 = vmatprep.subr.bf16.mxu1 %v20868_v37  ;;  %v11804_v40 = vpop.permute.xlu0 %11803 }
0x3888   :  { %v11853_v32 = vpop.permute.xlu1 %11852  ;;  %v11809_v56 = vsel %vm366_vm2, %v11804_v40, 0 }
0x3889   :  { %v11858_v22 = vsel %vm366_vm2, %v11853_v32, 0 }
0x388b   :  { %v12093_v52 = vpop.permute.xlu0 %12092 }
0x388c   :  { %15323 = vmatmul.mubr.msk.bf16.vlgmr.msra.gmra.mrb[248].mxu0 %vm366_vm2, %v20100_v8  ;;  %15329 = vmatmul.mubr.msk.bf16.vlgmr.msra.gmra.mrb[252].mxu1 %vm366_vm2, %v20098_v42  ;;  %v12141_v14 = vpop.permute.xlu1 %12140  ;;  %v12098_v55 = vsel %vm9714_vm12, %v12093_v52, 0 }
0x388d   :  { %15333 = vmatpush3.bf16.xpose.msra.mxu0 %v11613_v15  ;;  %15339 = vmatpush3.bf16.xpose.msra.mxu1 %v11662_v34  ;;  %v12146_v5 = vsel %vm9714_vm12, %v12141_v14, 0 }
0x388e   :  { %15334 = vmatprep.mubr.msk.bf16.mxu0 %vm16443_vm1, %v20868_v37  ;;  %15340 = vmatprep.mubr.msk.bf16.mxu1 %vm16443_vm1, %v20868_v37 }
0x388f   :  { %15344 = vmatprep.subr.bf16.mxu0 %v20868_v37  ;;  %15350 = vmatprep.subr.bf16.mxu1 %v20868_v37 }
0x3894   :  { %15335 = vmatmul.mubr.msk.bf16.vlgmr.msra.gmra.mrb[252].mxu0 %vm366_vm2, %v20109_v3  ;;  %15341 = vmatmul.mubr.msk.bf16.vlgmr.msra.gmra.mrb[0].mxu1 %vm366_vm2, %v20107_v46 }
0x3895   :  { %15345 = vmatpush3.bf16.xpose.msra.mxu0 %v11711_v11  ;;  %15351 = vmatpush3.bf16.xpose.msra.mxu1 %v11760_v1 }
0x3896   :  { %15346 = vmatprep.mubr.msk.bf16.mxu0 %vm16443_vm1, %v20868_v37  ;;  %15352 = vmatprep.mubr.msk.bf16.mxu1 %vm16443_vm1, %v20868_v37 }
0x3897   :  { %15356 = vmatprep.subr.bf16.mxu0 %v20868_v37  ;;  %15362 = vmatprep.subr.bf16.mxu1 %v20868_v37 }
0x389c   :  { %15347 = vmatmul.mubr.msk.bf16.vlgmr.msra.gmra.mrb[0].mxu0 %vm366_vm2, %v20116_v38  ;;  %15353 = vmatmul.mubr.msk.bf16.vlgmr.msra.gmra.mrb[4].mxu1 %vm366_vm2, %v20118_v47 }
0x389d   :  { %15357 = vmatpush3.bf16.xpose.msra.mxu0 %v11809_v56  ;;  %15363 = vmatpush3.bf16.xpose.msra.mxu1 %v11858_v22 }
0x389e   :  { %15358 = vmatprep.mubr.msk.bf16.mxu0 %vm16443_vm1, %v20868_v37  ;;  %15364 = vmatprep.mubr.msk.bf16.mxu1 %vm16443_vm1, %v20868_v37 }
0x389f   :  { %15368 = vmatprep.subr.bf16.mxu0 %v20868_v37  ;;  %15374 = vmatprep.subr.bf16.mxu1 %v20868_v37 }
0x38a4   :  { %15359 = vmatmul.mubr.msk.bf16.vlgmr.msra.gmra.mrb[4].mxu0 %vm366_vm2, %v20128_v30  ;;  %15365 = vmatmul.mubr.msk.bf16.vlgmr.msra.gmra.mrb[8].mxu1 %vm366_vm2, %v20132_v48 }
0x38a5   :  { %15369 = vmatpush3.bf16.msra.mxu0 %v12098_v55  ;;  %15375 = vmatpush3.bf16.msra.mxu1 %v12146_v5 }
0x38a6   :  { %15370 = vmatprep.mubr.msk.bf16.mxu0 %vm16443_vm1, %v20868_v37  ;;  %15380 = vmatprep.subr.bf16.mxu0 %v20868_v37 }
0x38a7   :  { %15376 = vmatprep.mubr.msk.bf16.mxu1 %vm16443_vm1, %v20868_v37  ;;  %15386 = vmatprep.subr.bf16.mxu1 %v20868_v37 }
0x38e4   :  { %v20246_v49 = vpop.f32.mrb[228].mxu0 }
0x38e5   :  { %v15276_v12 = vpop.f32.mrb[229].mxu0  ;;  %v11900_v18 = vsel %vm366_vm2, %v20246_v49, -inf }
0x38e6   :  { %11901 = vmax.xlane.f32.xlu0 %v11900_v18  ;;  %v11162_v36 = vpop.f32.mrb[230].mxu0 }
0x38e7   :  { %v15277_v61 = vpop.f32.mrb[231].mxu0 }
0x38ec   :  { %v20250_v26 = vpop.f32.mrb[232].mxu0 }
0x38ed   :  { %v20252_v44 = vpop.f32.mrb[240].mxu1  ;;  %v15282_v53 = vpop.f32.mrb[233].mxu0  ;;  %v11903_v35 = vsel %vm366_vm2, %v20250_v26, -inf }
0x38ee   :  { %v15294_v25 = vpop.f32.mrb[241].mxu1  ;;  %11904 = vmax.xlane.f32.xlu1 %v11903_v35  ;;  %v11211_v7 = vpop.f32.mrb[234].mxu0  ;;  %v11909_v41 = vsel %vm366_vm2, %v20252_v44, -inf }
0x38ef   :  { %11910 = vmax.xlane.f32.xlu0 %v11909_v41  ;;  %v11309_v45 = vpop.f32.mrb[242].mxu1  ;;  %v15283_v19 = vpop.f32.mrb[235].mxu0 }
0x38f0   :  { %v15295_v28 = vpop.f32.mrb[243].mxu1 }
0x38f5   :  { %v20258_v54 = vpop.f32.mrb[236].mxu0 }
0x38f6   :  { %v15288_v57 = vpop.f32.mrb[237].mxu0  ;;  %v11906_v13 = vsel %vm366_vm2, %v20258_v54, -inf }
0x38f7   :  { %v11260_v63 = vpop.f32.mrb[238].mxu0  ;;  %11907 = vmax.xlane.f32.xlu0 %v11906_v13 }
0x38f8   :  { %v15289_v16 = vpop.f32.mrb[239].mxu0 }
0x394f   :  { %v20262_v59 = vpop.f32.mrb[240].mxu0  ;;  %v20264_v6 = vpop.f32.mrb[244].mxu1 }
0x3950   :  { %v15300_v10 = vpop.f32.mrb[241].mxu0  ;;  %v15306_v27 = vpop.f32.mrb[245].mxu1  ;;  %v11912_v39 = vsel %vm366_vm2, %v20262_v59, -inf  ;;  %v11915_v4 = vsel %vm366_vm2, %v20264_v6, -inf }
0x3951   :  { %v11358_v33 = vpop.f32.mrb[242].mxu0  ;;  %11913 = vmax.xlane.f32.xlu0 %v11912_v39  ;;  %11916 = vmax.xlane.f32.xlu1 %v11915_v4  ;;  %v11407_v62 = vpop.f32.mrb[246].mxu1 }
0x3952   :  { %v15301_v50 = vpop.f32.mrb[243].mxu0  ;;  %v15307_v31 = vpop.f32.mrb[247].mxu1 }
0x3957   :  { %v20270_v20 = vpop.f32.mrb[244].mxu0  ;;  %v20272_v43 = vpop.f32.mrb[248].mxu1 }
0x3958   :  { %v15312_v60 = vpop.f32.mrb[245].mxu0  ;;  %v15318_v24 = vpop.f32.mrb[249].mxu1  ;;  %v11918_v21 = vsel %vm366_vm2, %v20270_v20, -inf  ;;  %v11921_v29 = vsel %vm366_vm2, %v20272_v43, -inf }
0x3959   :  { %v11456_v23 = vpop.f32.mrb[246].mxu0  ;;  %11919 = vmax.xlane.f32.xlu0 %v11918_v21  ;;  %11922 = vmax.xlane.f32.xlu1 %v11921_v29  ;;  %v11505_v15 = vpop.f32.mrb[250].mxu1 }
0x395a   :  { %v15313_v34 = vpop.f32.mrb[247].mxu0  ;;  %v15319_v2 = vpop.f32.mrb[251].mxu1 }
0x395b   :  { %v20308_v23 = vpop.permute.xlu0 %12188  ;;  %v20318_v34 = vpop.permute.xlu1 %12236 }
0x395f   :  { %v20278_v51 = vpop.f32.mrb[248].mxu0  ;;  %v20280_v11 = vpop.f32.mrb[252].mxu1 }
0x3960   :  { %v15324_v1 = vpop.f32.mrb[249].mxu0  ;;  %v15330_v40 = vpop.f32.mrb[253].mxu1  ;;  %v11924_v32 = vsel %vm366_vm2, %v20278_v51, -inf  ;;  %v11927_v56 = vsel %vm366_vm2, %v20280_v11, -inf }
0x3961   :  { %v11554_v22 = vpop.f32.mrb[250].mxu0  ;;  %11925 = vmax.xlane.f32.xlu0 %v11924_v32  ;;  %11928 = vmax.xlane.f32.xlu1 %v11927_v56  ;;  %v11603_v52 = vpop.f32.mrb[254].mxu1 }
0x3962   :  { %v15325_v14 = vpop.f32.mrb[251].mxu0  ;;  %v15331_v55 = vpop.f32.mrb[255].mxu1 }
0x3963   :  { %v20314_v15 = vpop.permute.xlu0 %12284  ;;  %v20324_v40 = vpop.permute.xlu1 %12428 }
0x3967   :  { %v20286_v5 = vpop.f32.mrb[252].mxu0  ;;  %v20288_v12 = vpop.f32.mrb[0].mxu1 }
0x3968   :  { %v15336_v18 = vpop.f32.mrb[253].mxu0  ;;  %v15342_v36 = vpop.f32.mrb[1].mxu1  ;;  %v11930_v61 = vsel %vm366_vm2, %v20286_v5, -inf  ;;  %v11933_v53 = vsel %vm366_vm2, %v20288_v12, -inf }
0x3969   :  { %v11652_v35 = vpop.f32.mrb[254].mxu0  ;;  %11931 = vmax.xlane.f32.xlu0 %v11930_v61  ;;  %11934 = vmax.xlane.f32.xlu1 %v11933_v53  ;;  %v11701_v25 = vpop.f32.mrb[2].mxu1 }
0x396a   :  { %v15337_v7 = vpop.f32.mrb[255].mxu0  ;;  %v15343_v41 = vpop.f32.mrb[3].mxu1 }
0x396b   :  { %v20320_v2 = vpop.permute.xlu0 %12380  ;;  %v20327_v56 = vpop.permute.xlu1 %12332 }
0x396f   :  { %v20294_v45 = vpop.f32.mrb[0].mxu0  ;;  %v20296_v19 = vpop.f32.mrb[4].mxu1 }
0x3970   :  { %v15348_v28 = vpop.f32.mrb[1].mxu0  ;;  %v15354_v57 = vpop.f32.mrb[5].mxu1  ;;  %v11936_v13 = vsel %vm366_vm2, %v20294_v45, -inf  ;;  %v11939_v63 = vsel %vm366_vm2, %v20296_v19, -inf }
0x3971   :  { %v11750_v16 = vpop.f32.mrb[2].mxu0  ;;  %11937 = vmax.xlane.f32.xlu0 %v11936_v13  ;;  %11940 = vmax.xlane.f32.xlu1 %v11939_v63  ;;  %v11799_v10 = vpop.f32.mrb[6].mxu1 }
0x3972   :  { %v15349_v27 = vpop.f32.mrb[3].mxu0  ;;  %v15355_v39 = vpop.f32.mrb[7].mxu1 }
0x3973   :  { %v11902_v1 = vpop.xlane.xlu0 %11901 }
0x3977   :  { %v20302_v4 = vpop.f32.mrb[4].mxu0  ;;  %v20304_v33 = vpop.f32.mrb[8].mxu1 }
0x3978   :  { %v15360_v62 = vpop.f32.mrb[5].mxu0  ;;  %v15366_v50 = vpop.f32.mrb[9].mxu1  ;;  %v11942_v31 = vsel %vm366_vm2, %v20302_v4, -inf }
0x3979   :  { %v11848_v60 = vpop.f32.mrb[6].mxu0  ;;  %11943 = vmax.xlane.f32.xlu0 %v11942_v31  ;;  %v11897_v24 = vpop.f32.mrb[10].mxu1 }
0x397a   :  { %v15361_v21 = vpop.f32.mrb[7].mxu0  ;;  %v15367_v29 = vpop.f32.mrb[11].mxu1 }
0x397b   :  { %v11905_v14 = vpop.xlane.xlu1 %11904 }
0x397c   :  { %v11911_v32 = vpop.xlane.xlu0 %11910  ;;  %v11949_v18 = vsub.f32 %v20250_v26, %v11905_v14 }
0x397d   :  { %v11951_v22 = vsub.f32 %v20252_v44, %v11911_v32 }
0x397e   :  { %v11966_v36 = vmul.f32 1.442695, %v11949_v18 }
0x397f   :  { %v11970_v55 = vmul.f32 1.442695, %v11951_v22 }
0x3982   :  { %12524 = vrot.lane.b32.xlu1 %v20098_v42, %s20823_s26  ;;  %v11948_v42 = vsub.f32 %v20246_v49, %v11902_v1 }
0x3984   :  { %v11964_v52 = vmul.f32 1.442695, %v11948_v42 }
0x3986   :  { %12572 = vrot.lane.b32.xlu1 %v20109_v3, %s20823_s26  ;;  %v11908_v3 = vpop.xlane.xlu0 %11907  ;;  %16365 = vpow2.f32 %v11964_v52 }
0x3987   :  { %16367 = vpow2.f32 %v11970_v55 }
0x398a   :  { %12620 = vrot.lane.b32.xlu1 %v20107_v46, %s20823_s26  ;;  %v11950_v46 = vsub.f32 %v20258_v54, %v11908_v3  ;;  %v11945_v54 = vsel %vm366_vm2, %v20304_v33, -inf }
0x398f   :  { %12476 = vrot.lane.b32.xlu0 %v20100_v8, %s20823_s26  ;;  %v11968_v8 = vmul.f32 1.442695, %v11950_v46 }
0x3990   :  { %v20332_v61 = vpop.eup %16365 }
0x3991   :  { %16369 = vpow2.f32 %v11968_v8  ;;  %v20334_v49 = vpop.eup %16367  ;;  %v11996_v44 = vsel %vm366_vm2, %v20332_v61, 0.0 }
0x3992   :  { %16371 = vpow2.f32 %v11966_v36  ;;  %v12005_v35 = vsel %vm366_vm2, %v20334_v49, 0.0 }
0x399b   :  { %v20340_v53 = vpop.eup %16369 }
0x399c   :  { %v12002_v26 = vsel %vm366_vm2, %v20340_v53, 0.0  ;;  %v20346_v25 = vpop.eup %16371 }
0x399d   :  { %v11999_v7 = vsel %vm366_vm2, %v20346_v25, 0.0 }
0x39ae   :  { %11997 = vadd.xlane.f32.xlu0 %v11996_v44  ;;  %11946 = vmax.xlane.f32.xlu1 %v11945_v54 }
0x39b2   :  { %12003 = vadd.xlane.f32.xlu0 %v12002_v26  ;;  %12006 = vadd.xlane.f32.xlu1 %v12005_v35 }
0x39b6   :  { %12000 = vadd.xlane.f32.xlu1 %v11999_v7 }
0x39de   :  { %v11914_v41 = vpop.xlane.xlu0 %11913  ;;  %v11917_v28 = vpop.xlane.xlu1 %11916 }
0x39df   :  { %v11952_v57 = vsub.f32 %v20262_v59, %v11914_v41  ;;  %v11953_v13 = vsub.f32 %v20264_v6, %v11917_v28 }
0x39e1   :  { %v11972_v63 = vmul.f32 1.442695, %v11952_v57  ;;  %v11974_v16 = vmul.f32 1.442695, %v11953_v13 }
0x39e3   :  { %16373 = vpow2.f32 %v11972_v63 }
0x39e4   :  { %16375 = vpow2.f32 %v11974_v16 }
0x39e6   :  { %v11920_v10 = vpop.xlane.xlu0 %11919  ;;  %v11923_v27 = vpop.xlane.xlu1 %11922 }
0x39e7   :  { %v11954_v39 = vsub.f32 %v20270_v20, %v11920_v10  ;;  %v11955_v62 = vsub.f32 %v20272_v43, %v11923_v27 }
0x39e9   :  { %v11976_v50 = vmul.f32 1.442695, %v11954_v39  ;;  %v11978_v31 = vmul.f32 1.442695, %v11955_v62 }
0x39eb   :  { %16377 = vpow2.f32 %v11976_v50 }
0x39ec   :  { %16379 = vpow2.f32 %v11978_v31 }
0x39ed   :  { %v20354_v60 = vpop.eup %16373 }
0x39ee   :  { %v20356_v24 = vpop.eup %16375  ;;  %v11926_v59 = vpop.xlane.xlu0 %11925  ;;  %v12008_v21 = vsel %vm366_vm2, %v20354_v60, 0.0 }
0x39ef   :  { %v11929_v6 = vpop.xlane.xlu1 %11928  ;;  %v11956_v29 = vsub.f32 %v20278_v51, %v11926_v59  ;;  %12009 = vadd.xlane.f32.xlu0 %v12008_v21  ;;  %v12011_v20 = vsel %vm366_vm2, %v20356_v24, 0.0 }
0x39f0   :  { %v11957_v1 = vsub.f32 %v20280_v11, %v11929_v6  ;;  %12012 = vadd.xlane.f32.xlu1 %v12011_v20 }
0x39f1   :  { %v11980_v43 = vmul.f32 1.442695, %v11956_v29 }
0x39f2   :  { %v11982_v32 = vmul.f32 1.442695, %v11957_v1 }
0x39f3   :  { %16381 = vpow2.f32 %v11980_v43 }
0x39f4   :  { %16383 = vpow2.f32 %v11982_v32 }
0x39f5   :  { %v20364_v42 = vpop.eup %16377 }
0x39f6   :  { %v20366_v3 = vpop.eup %16379  ;;  %v11932_v22 = vpop.xlane.xlu0 %11931  ;;  %v12014_v51 = vsel %vm366_vm2, %v20364_v42, 0.0 }
0x39f7   :  { %v11935_v52 = vpop.xlane.xlu1 %11934  ;;  %v11958_v11 = vsub.f32 %v20286_v5, %v11932_v22  ;;  %12015 = vadd.xlane.f32.xlu0 %v12014_v51  ;;  %v12017_v14 = vsel %vm366_vm2, %v20366_v3, 0.0 }
0x39f8   :  { %v11959_v46 = vsub.f32 %v20288_v12, %v11935_v52  ;;  %12018 = vadd.xlane.f32.xlu1 %v12017_v14 }
0x39f9   :  { %v11984_v55 = vmul.f32 1.442695, %v11958_v11 }
0x39fa   :  { %v11986_v18 = vmul.f32 1.442695, %v11959_v46  ;;  %v12194_v46 = vsel %vm9714_vm12, %v20308_v23, 0 }
0x39fb   :  { %16385 = vpow2.f32 %v11984_v55 }
0x39fc   :  { %16387 = vpow2.f32 %v11986_v18 }
0x39fd   :  { %v20374_v8 = vpop.eup %16381 }
0x39fe   :  { %v20376_v36 = vpop.eup %16383  ;;  %v12020_v44 = vsel %vm366_vm2, %v20374_v8, 0.0  ;;  %v11938_v7 = vpop.xlane.xlu0 %11937 }
0x39ff   :  { %12021 = vadd.xlane.f32.xlu1 %v12020_v44  ;;  %v12023_v5 = vsel %vm366_vm2, %v20376_v36, 0.0  ;;  %v11941_v41 = vpop.xlane.xlu1 %11940  ;;  %v11960_v28 = vsub.f32 %v20294_v45, %v11938_v7 }
0x3a00   :  { %12024 = vadd.xlane.f32.xlu0 %v12023_v5  ;;  %v11961_v57 = vsub.f32 %v20296_v19, %v11941_v41 }
0x3a01   :  { %v11988_v63 = vmul.f32 1.442695, %v11960_v28 }
0x3a02   :  { %v11990_v10 = vmul.f32 1.442695, %v11961_v57 }
0x3a03   :  { %v20397_v27 = vpop.permute.xlu1 %12524  ;;  %16389 = vpow2.f32 %v11988_v63 }
0x3a04   :  { %16391 = vpow2.f32 %v11990_v10  ;;  %v12434_v10 = vsel %vm9714_vm12, %v20324_v40, 0 }
0x3a05   :  { %v20382_v12 = vpop.eup %16385 }
0x3a06   :  { %v20384_v54 = vpop.eup %16387  ;;  %v12026_v26 = vsel %vm366_vm2, %v20382_v12, 0.0  ;;  %v11944_v13 = vpop.xlane.xlu0 %11943 }
0x3a07   :  { %12027 = vadd.xlane.f32.xlu1 %v12026_v26  ;;  %v12029_v35 = vsel %vm366_vm2, %v20384_v54, 0.0  ;;  %v11962_v16 = vsub.f32 %v20302_v4, %v11944_v13  ;;  %v12242_v26 = vsel %vm9714_vm12, %v20318_v34, 0 }
0x3a08   :  { %12030 = vadd.xlane.f32.xlu0 %v12029_v35 }
0x3a09   :  { %v11992_v39 = vmul.f32 1.442695, %v11962_v16  ;;  %v12386_v16 = vsel %vm9714_vm12, %v20320_v2, 0 }
0x3a0b   :  { %16393 = vpow2.f32 %v11992_v39 }
0x3a0d   :  { %v20405_v45 = vpop.eup %16389 }
0x3a0e   :  { %v20407_v19 = vpop.eup %16391  ;;  %v12032_v4 = vsel %vm366_vm2, %v20405_v45, 0.0 }
0x3a0f   :  { %v12035_v21 = vsel %vm366_vm2, %v20407_v19, 0.0 }
0x3a15   :  { %v20411_v59 = vpop.eup %16393 }
0x3a16   :  { %v12038_v43 = vsel %vm366_vm2, %v20411_v59, 0.0 }
0x3a18   :  { %12716 = vrot.lane.b32.xlu1 %v20118_v47, %s20823_s26  ;;  %v20399_v47 = vpop.permute.xlu1 %12572 }
0x3a1c   :  { %v20403_v62 = vpop.permute.xlu1 %12620 }
0x3a1e   :  { %12668 = vrot.lane.b32.xlu0 %v20116_v38, %s20823_s26  ;;  %v20401_v38 = vpop.permute.xlu0 %12476 }
0x3a3b   :  { %v11998_v50 = vpop.xlane.xlu0 %11997  ;;  %v11947_v31 = vpop.xlane.xlu1 %11946 }
0x3a3c   :  { %16395 = vrcp.f32 %v11998_v50  ;;  %v11963_v6 = vsub.f32 %v20304_v33, %v11947_v31  ;;  %12033 = vadd.xlane.f32.xlu1 %v12032_v4  ;;  %v12482_v4 = vsel %vm9714_vm12, %v20401_v38, 0 }
0x3a3d   :  { %12036 = vadd.xlane.f32.xlu0 %v12035_v21  ;;  %v12530_v21 = vsel %vm9714_vm12, %v20397_v27, 0 }
0x3a3e   :  { %v11994_v29 = vmul.f32 1.442695, %v11963_v6 }
0x3a3f   :  { %v12004_v1 = vpop.xlane.xlu0 %12003  ;;  %v12007_v20 = vpop.xlane.xlu1 %12006 }
0x3a40   :  { %16397 = vpow2.f32 %v11994_v29  ;;  %12039 = vadd.xlane.f32.xlu1 %v12038_v43  ;;  %v12578_v43 = vsel %vm9714_vm12, %v20399_v47, 0 }
0x3a41   :  { %16399 = vrcp.f32 %v12004_v1 }
0x3a43   :  { %v12001_v32 = vpop.xlane.xlu1 %12000 }
0x3a44   :  { %16401 = vrcp.f32 %v12001_v32  ;;  %v12626_v32 = vsel %vm9714_vm12, %v20403_v62, 0 }
0x3a45   :  { %16403 = vrcp.f32 %v12007_v20 }
0x3a46   :  { %v16396_v22 = vpop.eup %16395 }
0x3a47   :  { %v12045_v52 = vmul.f32 %v16396_v22, %v20332_v61 }
0x3a49   :  { %v12076_v33 = vpack.c.bf16 %v12045_v52, %v12045_v52 }
0x3a4a   :  { %v20419_v51 = vpop.eup %16397 }
0x3a4b   :  { %v16400_v11 = vpop.eup %16399  ;;  %15371 = vmatmul.mubr.msk.bf16.vlgmr.msra.gmra.mrb[8].mxu0 %vm366_vm2, %v12076_v33  ;;  %v12041_v14 = vsel %vm366_vm2, %v20419_v51, 0.0 }
0x3a4c   :  { %15381 = vmatpush3.bf16.msra.mxu0 %v12194_v46  ;;  %12042 = vadd.xlane.f32.xlu0 %v12041_v14  ;;  %v12049_v55 = vmul.f32 %v16400_v11, %v20340_v53  ;;  %v12290_v53 = vsel %vm9714_vm12, %v20314_v15, 0  ;;  %v12338_v15 = vsel %vm9714_vm12, %v20327_v56, 0 }
0x3a4d   :  { %15382 = vmatprep.mubr.msk.bf16.mxu0 %vm16443_vm1, %v20868_v37  ;;  %15392 = vmatprep.subr.bf16.mxu0 %v20868_v37 }
0x3a4e   :  { %v16402_v61 = vpop.eup %16401  ;;  %v12078_v44 = vpack.c.bf16 %v12049_v55, %v12049_v55 }
0x3a4f   :  { %v12047_v18 = vmul.f32 %v16402_v61, %v20346_v25  ;;  %v16404_v23 = vpop.eup %16403 }
0x3a50   :  { %v12051_v25 = vmul.f32 %v16404_v23, %v20334_v49 }
0x3a51   :  { %v12077_v5 = vpack.c.bf16 %v12047_v18, %v12047_v18  ;;  %12812 = vrot.lane.b32.xlu1 %v20132_v48, %s20823_s26 }
0x3a52   :  { %v12079_v48 = vpack.c.bf16 %v12051_v25, %v12051_v25 }
0x3a53   :  { %15377 = vmatmul.mubr.msk.bf16.vlgmr.msra.gmra.mrb[12].mxu1 %vm366_vm2, %v12077_v5  ;;  %15383 = vmatmul.mubr.msk.bf16.vlgmr.msra.gmra.mrb[12].mxu0 %vm366_vm2, %v12078_v44 }
0x3a54   :  { %15387 = vmatpush3.bf16.msra.mxu1 %v12242_v26  ;;  %15393 = vmatpush3.bf16.msra.mxu0 %v12290_v53 }
0x3a55   :  { %15388 = vmatprep.mubr.msk.bf16.mxu1 %vm16443_vm1, %v20868_v37  ;;  %15398 = vmatprep.subr.bf16.mxu1 %v20868_v37 }
0x3a56   :  { %15394 = vmatprep.mubr.msk.bf16.mxu0 %vm16443_vm1, %v20868_v37  ;;  %15404 = vmatprep.subr.bf16.mxu0 %v20868_v37 }
0x3a5b   :  { %15389 = vmatmul.mubr.msk.bf16.vlgmr.msra.gmra.mrb[16].mxu1 %vm366_vm2, %v12079_v48 }
0x3a5c   :  { %15399 = vmatpush3.bf16.msra.mxu1 %v12338_v15  ;;  %15400 = vmatprep.mubr.msk.bf16.mxu1 %vm16443_vm1, %v20868_v37 }
0x3a5d   :  { %15410 = vmatprep.subr.bf16.mxu1 %v20868_v37 }
0x3a62   :  { %12764 = vrot.lane.b32.xlu0 %v20128_v30, %s20823_s26 }
0x3a7c   :  { %v12010_v34 = vpop.xlane.xlu0 %12009 }
0x3a7d   :  { %16405 = vrcp.f32 %v12010_v34  ;;  %v12013_v49 = vpop.xlane.xlu1 %12012 }
0x3a7e   :  { %16407 = vrcp.f32 %v12013_v49 }
0x3a84   :  { %v12016_v35 = vpop.xlane.xlu0 %12015 }
0x3a85   :  { %16409 = vrcp.f32 %v12016_v35  ;;  %v12019_v7 = vpop.xlane.xlu1 %12018 }
0x3a86   :  { %16411 = vrcp.f32 %v12019_v7 }
0x3a87   :  { %v16406_v56 = vpop.eup %16405 }
0x3a88   :  { %v16408_v41 = vpop.eup %16407  ;;  %v12053_v28 = vmul.f32 %v16406_v56, %v20354_v60 }
0x3a89   :  { %v12055_v57 = vmul.f32 %v16408_v41, %v20356_v24 }
0x3a8a   :  { %v12080_v13 = vpack.c.bf16 %v12053_v28, %v12053_v28 }
0x3a8b   :  { %v12081_v63 = vpack.c.bf16 %v12055_v57, %v12055_v57 }
0x3a8c   :  { %15395 = vmatmul.mubr.msk.bf16.vlgmr.msra.gmra.mrb[16].mxu0 %vm366_vm2, %v12080_v13  ;;  %v12022_v30 = vpop.xlane.xlu1 %12021 }
0x3a8d   :  { %15405 = vmatpush3.bf16.msra.mxu0 %v12386_v16  ;;  %v12025_v39 = vpop.xlane.xlu0 %12024  ;;  %15401 = vmatmul.mubr.msk.bf16.vlgmr.msra.gmra.mrb[20].mxu1 %vm366_vm2, %v12081_v63  ;;  %16413 = vrcp.f32 %v12022_v30 }
0x3a8e   :  { %16415 = vrcp.f32 %v12025_v39  ;;  %15411 = vmatpush3.bf16.msra.mxu1 %v12434_v10  ;;  %15406 = vmatprep.mubr.msk.bf16.mxu0 %vm16443_vm1, %v20868_v37 }
0x3a8f   :  { %v16410_v60 = vpop.eup %16409  ;;  %15412 = vmatprep.mubr.msk.bf16.mxu1 %vm16443_vm1, %v20868_v37  ;;  %15416 = vmatprep.subr.bf16.mxu0 %v20868_v37 }
0x3a90   :  { %v16412_v2 = vpop.eup %16411  ;;  %v12057_v24 = vmul.f32 %v16410_v60, %v20364_v42  ;;  %15422 = vmatprep.subr.bf16.mxu1 %v20868_v37 }
0x3a91   :  { %v12059_v40 = vmul.f32 %v16412_v2, %v20366_v3 }
0x3a92   :  { %v12082_v50 = vpack.c.bf16 %v12057_v24, %v12057_v24 }
0x3a93   :  { %v12083_v31 = vpack.c.bf16 %v12059_v40, %v12059_v40 }
0x3a94   :  { %15407 = vmatmul.mubr.msk.bf16.vlgmr.msra.gmra.mrb[20].mxu0 %vm366_vm2, %v12082_v50  ;;  %v12028_v6 = vpop.xlane.xlu1 %12027 }
0x3a95   :  { %15417 = vmatpush3.bf16.msra.mxu0 %v12482_v4  ;;  %v12031_v29 = vpop.xlane.xlu0 %12030  ;;  %15413 = vmatmul.mubr.msk.bf16.vlgmr.msra.gmra.mrb[24].mxu1 %vm366_vm2, %v12083_v31  ;;  %16417 = vrcp.f32 %v12028_v6 }
0x3a96   :  { %16419 = vrcp.f32 %v12031_v29  ;;  %15423 = vmatpush3.bf16.msra.mxu1 %v12530_v21  ;;  %15418 = vmatprep.mubr.msk.bf16.mxu0 %vm16443_vm1, %v20868_v37 }
0x3a97   :  { %v16414_v42 = vpop.eup %16413  ;;  %15424 = vmatprep.mubr.msk.bf16.mxu1 %vm16443_vm1, %v20868_v37  ;;  %15428 = vmatprep.subr.bf16.mxu0 %v20868_v37 }
0x3a98   :  { %v16416_v3 = vpop.eup %16415  ;;  %v12061_v38 = vmul.f32 %v16414_v42, %v20374_v8  ;;  %15434 = vmatprep.subr.bf16.mxu1 %v20868_v37  ;;  %v12717_v33 = vpop.permute.xlu1 %12716 }
0x3a99   :  { %v12063_v27 = vmul.f32 %v16416_v3, %v20376_v36  ;;  %v12669_v22 = vpop.permute.xlu0 %12668  ;;  %v12722_v14 = vsel %vm9714_vm12, %v12717_v33, 0 }
0x3a9a   :  { %v12084_v1 = vpack.c.bf16 %v12061_v38, %v12061_v38  ;;  %v12674_v46 = vsel %vm9714_vm12, %v12669_v22, 0 }
0x3a9b   :  { %v12085_v20 = vpack.c.bf16 %v12063_v27, %v12063_v27 }
0x3a9c   :  { %15419 = vmatmul.mubr.msk.bf16.vlgmr.msra.gmra.mrb[24].mxu0 %vm366_vm2, %v12084_v1 }
0x3a9d   :  { %15425 = vmatmul.mubr.msk.bf16.vlgmr.msra.gmra.mrb[28].mxu1 %vm366_vm2, %v12085_v20  ;;  %15429 = vmatpush3.bf16.msra.mxu0 %v12578_v43 }
0x3a9e   :  { %15435 = vmatpush3.bf16.msra.mxu1 %v12626_v32  ;;  %15430 = vmatprep.mubr.msk.bf16.mxu0 %vm16443_vm1, %v20868_v37 }
0x3a9f   :  { %v16418_v8 = vpop.eup %16417  ;;  %15436 = vmatprep.mubr.msk.bf16.mxu1 %vm16443_vm1, %v20868_v37  ;;  %15440 = vmatprep.subr.bf16.mxu0 %v20868_v37 }
0x3aa0   :  { %v16420_v36 = vpop.eup %16419  ;;  %v12065_v47 = vmul.f32 %v16418_v8, %v20382_v12  ;;  %15446 = vmatprep.subr.bf16.mxu1 %v20868_v37 }
0x3aa1   :  { %v12067_v62 = vmul.f32 %v16420_v36, %v20384_v54 }
0x3aa2   :  { %v12086_v52 = vpack.c.bf16 %v12065_v47, %v12065_v47 }
0x3aa3   :  { %v12087_v11 = vpack.c.bf16 %v12067_v62, %v12067_v62 }
0x3aa4   :  { %15431 = vmatmul.mubr.msk.bf16.vlgmr.msra.gmra.mrb[28].mxu0 %vm366_vm2, %v12086_v52 }
0x3aa5   :  { %15437 = vmatmul.mubr.msk.bf16.vlgmr.msra.gmra.mrb[32].mxu1 %vm366_vm2, %v12087_v11  ;;  %15441 = vmatpush3.bf16.msra.mxu0 %v12674_v46 }
0x3aa6   :  { %15447 = vmatpush3.bf16.msra.mxu1 %v12722_v14  ;;  %15442 = vmatprep.mubr.msk.bf16.mxu0 %vm16443_vm1, %v20868_v37 }
0x3aa7   :  { %15448 = vmatprep.mubr.msk.bf16.mxu1 %vm16443_vm1, %v20868_v37  ;;  %15458 = vmatprep.subr.bf16.mxu1 %v20868_v37 }
0x3aa8   :  { %15452 = vmatprep.subr.bf16.mxu0 %v20868_v37 }
0x3ac9   :  { %v12034_v12 = vpop.xlane.xlu1 %12033 }
0x3aca   :  { %v12037_v54 = vpop.xlane.xlu0 %12036  ;;  %16421 = vrcp.f32 %v12034_v12 }
0x3acb   :  { %16423 = vrcp.f32 %v12037_v54 }
0x3acd   :  { %v12040_v55 = vpop.xlane.xlu1 %12039 }
0x3ace   :  { %16425 = vrcp.f32 %v12040_v55 }
0x3ad1   :  { %v12813_v26 = vpop.permute.xlu1 %12812 }
0x3ad2   :  { %v12818_v15 = vsel %vm9714_vm12, %v12813_v26, 0 }
0x3ad4   :  { %v16422_v61 = vpop.eup %16421 }
0x3ad5   :  { %v16424_v18 = vpop.eup %16423  ;;  %v12069_v44 = vmul.f32 %v16422_v61, %v20405_v45 }
0x3ad6   :  { %v12071_v5 = vmul.f32 %v16424_v18, %v20407_v19 }
0x3ad7   :  { %v12088_v23 = vpack.c.bf16 %v12069_v44, %v12069_v44 }
0x3ad8   :  { %v12089_v53 = vpack.c.bf16 %v12071_v5, %v12071_v5  ;;  %v16426_v25 = vpop.eup %16425 }
0x3ad9   :  { %v12043_v48 = vpop.xlane.xlu0 %12042  ;;  %15443 = vmatmul.mubr.msk.bf16.vlgmr.msra.gmra.mrb[32].mxu0 %vm366_vm2, %v12088_v23  ;;  %v12073_v45 = vmul.f32 %v16426_v25, %v20411_v59 }
0x3ada   :  { %16427 = vrcp.f32 %v12043_v48  ;;  %15449 = vmatmul.mubr.msk.bf16.vlgmr.msra.gmra.mrb[36].mxu1 %vm366_vm2, %v12089_v53  ;;  %15454 = vmatprep.mubr.msk.bf16.mxu0 %vm16443_vm1, %v20868_v37 }
0x3adb   :  { %15459 = vmatpush3.bf16.msra.mxu1 %v12818_v15  ;;  %15460 = vmatprep.mubr.msk.bf16.mxu1 %vm16443_vm1, %v20868_v37  ;;  %v12090_v49 = vpack.c.bf16 %v12073_v45, %v12073_v45  ;;  %v15945_v15 = vld [vmem:[%s20731_s18 + $0x10] sm:$0xff]  }
0x3add   :  { %v12765_v19 = vpop.permute.xlu0 %12764 }
0x3ade   :  { %v12770_v34 = vsel %vm9714_vm12, %v12765_v19, 0 }
0x3adf   :  { %15453 = vmatpush3.bf16.msra.mxu0 %v12770_v34 }
0x3ae0   :  { %15464 = vmatprep.subr.bf16.mxu0 %v15945_v15 }
0x3ae2   :  { %15455 = vmatmul.mubr.msk.bf16.vlgmr.msra.gmra.mrb[36].mxu0 %vm366_vm2, %v12090_v49 }
0x3ae3   :  { %15465 = vmatpush3.bf16.msra.mxu0 %v15945_v15 }
0x3ae4   :  { %v16428_v35 = vpop.eup %16427 }
0x3ae5   :  { %v12075_v7 = vmul.f32 %v16428_v35, %v20419_v51 }
0x3ae7   :  { %v12091_v56 = vpack.c.bf16 %v12075_v7, %v12075_v7 }
0x3ae9   :  { %15461 = vmatmul.mubr.msk.bf16.vlgmr.msra.gmra.mrb[40].mxu1 %vm366_vm2, %v12091_v56 }
0x3b1e   :  { %v20522_v41 = vpop.f32.mrb[8].mxu0 }
0x3b1f   :  { %v15372_v28 = vpop.f32.mrb[9].mxu0 }
0x3b20   :  { %v12137_v57 = vpop.f32.mrb[10].mxu0 }
0x3b21   :  { %v15373_v37 = vpop.f32.mrb[11].mxu0 }
0x3b22   :  { %v15946_v37 = vld [vmem:[%s20731_s18 + $0x18] sm:$0xff]  }
0x3b23   :  { %15466 = vmatprep.subr.bf16.mxu0 %v15946_v37 }
0x3b24   :  { %15467 = vmatpush3.bf16.msra.mxu0 %v15946_v37 }
0x3b26   :  { %v20524_v13 = vpop.f32.mrb[12].mxu1  ;;  %v20526_v59 = vpop.f32.mrb[12].mxu0 }
0x3b27   :  { %v15378_v63 = vpop.f32.mrb[13].mxu1  ;;  %v15384_v16 = vpop.f32.mrb[13].mxu0 }
0x3b28   :  { %v12185_v30 = vpop.f32.mrb[14].mxu1  ;;  %v12233_v10 = vpop.f32.mrb[14].mxu0 }
0x3b29   :  { %v15379_v39 = vpop.f32.mrb[15].mxu1  ;;  %v15385_v60 = vpop.f32.mrb[15].mxu0 }
0x3b2e   :  { %v20528_v2 = vpop.f32.mrb[16].mxu1 }
0x3b2f   :  { %v15390_v51 = vpop.f32.mrb[17].mxu1 }
0x3b30   :  { %v12281_v24 = vpop.f32.mrb[18].mxu1 }
0x3b31   :  { %v15391_v40 = vpop.f32.mrb[19].mxu1 }
0x3b5f   :  { %v12326_v50 = vpop.f32.mrb[16].mxu0 }
0x3b60   :  { %v12374_v31 = vpop.f32.mrb[20].mxu1  ;;  %v15396_v4 = vpop.f32.mrb[17].mxu0 }
0x3b61   :  { %v15843_v6 = vpack.i.bf16 %v12374_v31, %v12326_v50  ;;  %v15402_v21 = vpop.f32.mrb[21].mxu1  ;;  %v12329_v29 = vpop.f32.mrb[18].mxu0 }
0x3b62   :  { %v12377_v42 = vpop.f32.mrb[22].mxu1  ;;  %v15397_v3 = vpop.f32.mrb[19].mxu0 }
0x3b63   :  { %15844 = vrot.lane.b32.xlu0 %v15843_v6, %s20824_s5  ;;  %v15403_v38 = vpop.f32.mrb[23].mxu1 }
0x3b67   :  { %v12422_v27 = vpop.f32.mrb[20].mxu0 }
0x3b68   :  { %v12470_v1 = vpop.f32.mrb[24].mxu1  ;;  %v15408_v20 = vpop.f32.mrb[21].mxu0 }
0x3b69   :  { %v15848_v43 = vpack.i.bf16 %v12470_v1, %v12422_v27  ;;  %v15414_v32 = vpop.f32.mrb[25].mxu1  ;;  %v12425_v8 = vpop.f32.mrb[22].mxu0 }
0x3b6a   :  { %v12473_v36 = vpop.f32.mrb[26].mxu1  ;;  %v15409_v47 = vpop.f32.mrb[23].mxu0 }
0x3b6b   :  { %15849 = vrot.lane.b32.xlu1 %v15848_v43, %s20824_s5  ;;  %v15415_v62 = vpop.f32.mrb[27].mxu1 }
0x3b6f   :  { %v12518_v22 = vpop.f32.mrb[24].mxu0 }
0x3b70   :  { %v12566_v52 = vpop.f32.mrb[28].mxu1  ;;  %v15420_v33 = vpop.f32.mrb[25].mxu0 }
0x3b71   :  { %v15853_v11 = vpack.i.bf16 %v12566_v52, %v12518_v22  ;;  %v15426_v46 = vpop.f32.mrb[29].mxu1  ;;  %v12521_v14 = vpop.f32.mrb[26].mxu0 }
0x3b72   :  { %v12569_v12 = vpop.f32.mrb[30].mxu1  ;;  %v15421_v54 = vpop.f32.mrb[27].mxu0 }
0x3b73   :  { %v15427_v55 = vpop.f32.mrb[31].mxu1  ;;  %15854 = vrot.lane.b32.xlu0 %v15853_v11, %s20825_s1 }
0x3b77   :  { %v12614_v61 = vpop.f32.mrb[28].mxu0 }
0x3b78   :  { %v12662_v18 = vpop.f32.mrb[32].mxu1  ;;  %v15432_v44 = vpop.f32.mrb[29].mxu0 }
0x3b79   :  { %v15858_v5 = vpack.i.bf16 %v12662_v18, %v12614_v61  ;;  %v15438_v23 = vpop.f32.mrb[33].mxu1  ;;  %v12617_v26 = vpop.f32.mrb[30].mxu0 }
0x3b7a   :  { %v12665_v53 = vpop.f32.mrb[34].mxu1  ;;  %v15433_v25 = vpop.f32.mrb[31].mxu0 }
0x3b7b   :  { %v15439_v48 = vpop.f32.mrb[35].mxu1  ;;  %15859 = vrot.lane.b32.xlu1 %v15858_v5, %s20825_s1 }
0x3bac   :  { %v12710_v45 = vpop.f32.mrb[32].mxu0 }
0x3bad   :  { %v12758_v19 = vpop.f32.mrb[36].mxu1  ;;  %v15444_v34 = vpop.f32.mrb[33].mxu0 }
0x3bae   :  { %v15863_v49 = vpack.i.bf16 %v12758_v19, %v12710_v45  ;;  %v15450_v35 = vpop.f32.mrb[37].mxu1  ;;  %v12713_v7 = vpop.f32.mrb[34].mxu0 }
0x3baf   :  { %v12761_v56 = vpop.f32.mrb[38].mxu1  ;;  %v15445_v28 = vpop.f32.mrb[35].mxu0 }
0x3bb0   :  { %v15451_v57 = vpop.f32.mrb[39].mxu1  ;;  %15864 = vrot.lane.b32.xlu0 %v15863_v49, %s20826_s0 }
0x3bb5   :  { %v12806_v63 = vpop.f32.mrb[36].mxu0 }
0x3bb6   :  { %v15456_v16 = vpop.f32.mrb[37].mxu0 }
0x3bb7   :  { %v12809_v30 = vpop.f32.mrb[38].mxu0 }
0x3bb8   :  { %v15457_v10 = vpop.f32.mrb[39].mxu0 }
0x3bbc   :  { %v12854_v39 = vpop.f32.mrb[40].mxu1 }
0x3bbd   :  { %v15868_v60 = vpack.i.bf16 %v12854_v39, %v12806_v63  ;;  %v15462_v51 = vpop.f32.mrb[41].mxu1 }
0x3bbe   :  { %v12857_v24 = vpop.f32.mrb[42].mxu1 }
0x3bbf   :  { %15869 = vrot.lane.b32.xlu1 %v15868_v60, %s20826_s0  ;;  %v15463_v40 = vpop.f32.mrb[43].mxu1 }
0x3bd5   :  { %v15845_v50 = vpop.permute.xlu0 %15844 }
0x3bd6   :  { %v15847_v4 = vunpack.i.h.bf16 %v15845_v50  ;;  %v15846_v6 = vunpack.i.l.bf16 %v15845_v50 }
0x3bd8   :  { %v12909_v3 = vsel %vm366_vm2, %v20524_v13, %v15847_v4  ;;  %v12908_v38 = vsel %vm366_vm2, %v20522_v41, %v15846_v6 }
0x3bdd   :  { %v15850_v47 = vpop.permute.xlu1 %15849 }
0x3bde   :  { %v15852_v22 = vunpack.i.h.bf16 %v15850_v47  ;;  %v15851_v13 = vunpack.i.l.bf16 %v15850_v47 }
0x3be0   :  { %v12911_v11 = vsel %vm366_vm2, %v20528_v2, %v15852_v22  ;;  %v12910_v46 = vsel %vm366_vm2, %v20526_v59, %v15851_v13  ;;  %v14051_v2 = vld [vmem:[%s20732_s19 + $0x1] ss:$0 sm:$0xff] }
0x3be5   :  { %v15855_v31 = vpop.permute.xlu0 %15854 }
0x3be6   :  { %v15857_v21 = vunpack.i.h.bf16 %v15855_v31  ;;  %v15856_v29 = vunpack.i.l.bf16 %v15855_v31 }
0x3be8   :  { %v12913_v20 = vsel %vm764_vm3, %v12909_v3, %v15857_v21  ;;  %v12912_v43 = vsel %vm764_vm3, %v12908_v38, %v15856_v29  ;;  %v15947_v29 = vld [vmem:[%s20733_s22 + $0x10] sm:$0xff]   ;;  %v15949_v3 = vld [vmem:[%s20734_s24 + $0x40] sm:$0xff]   ;;  %v15950_v38 = vld [vmem:[%s20734_s24 + $0x48] sm:$0xff]  }
0x3be9   :  { %15472 = vmatprep.subr.bf16.mxu1 %v15947_v29  ;;  %15480 = vmatprep.subr.bf16.mxu0 %v15949_v3 }
0x3bea   :  { %15473 = vmatpush3.bf16.msra.mxu1 %v15947_v29 }
0x3bed   :  { %v15860_v62 = vpop.permute.xlu1 %15859 }
0x3bee   :  { %v15862_v52 = vunpack.i.h.bf16 %v15860_v62  ;;  %v15861_v33 = vunpack.i.l.bf16 %v15860_v62 }
0x3bf0   :  { %v12914_v54 = vsel %vm764_vm3, %v12910_v46, %v15861_v33  ;;  %v12915_v55 = vsel %vm764_vm3, %v12911_v11, %v15862_v52 }
0x3c22   :  { %v15865_v42 = vpop.permute.xlu0 %15864 }
0x3c23   :  { %v15867_v27 = vunpack.i.h.bf16 %v15865_v42  ;;  %v15866_v1 = vunpack.i.l.bf16 %v15865_v42  ;;  %v15948_v42 = vld [vmem:[%s20733_s22 + $0x18] sm:$0xff]  }
0x3c24   :  { %15474 = vmatprep.subr.bf16.mxu1 %v15948_v42 }
0x3c25   :  { %v12917_v32 = vsel %vm1381_vm4, %v12913_v20, %v15867_v27  ;;  %v12916_v8 = vsel %vm1381_vm4, %v12912_v43, %v15866_v1  ;;  %15475 = vmatpush3.bf16.msra.mxu1 %v15948_v42  ;;  %v15951_v27 = vld [vmem:[%s20734_s24 + $0x50] sm:$0xff]   ;;  %v15952_v1 = vld [vmem:[%s20734_s24 + $0x58] sm:$0xff]   ;;  %v15953_v20 = vld [vmem:[%s20734_s24 + $0x60] sm:$0xff]  }
0x3c26   :  { %v12920_v36 = vpack.c.bf16 %v12917_v32, %v12916_v8  ;;  %v15954_v43 = vld [vmem:[%s20734_s24 + $0x68] sm:$0xff]  }
0x3c28   :  { %15468 = vmatprep.mubr.msk.bf16.mxu0 %vm166_vm0, %v12920_v36 }
0x3c31   :  { %v15870_v41 = vpop.permute.xlu1 %15869 }
0x3c32   :  { %v15872_v14 = vunpack.i.h.bf16 %v15870_v41  ;;  %v15871_v12 = vunpack.i.l.bf16 %v15870_v41 }
0x3c34   :  { %v12918_v61 = vsel %vm1381_vm4, %v12914_v54, %v15871_v12  ;;  %v12919_v18 = vsel %vm1381_vm4, %v12915_v55, %v15872_v14  ;;  %v14056_v12 = vld [vmem:[%s20735_s20 + $0x1] ss:$0 sm:$0xff] }
0x3c35   :  { %v12921_v44 = vpack.c.bf16 %v12919_v18, %v12918_v61 }
0x3c37   :  { %15469 = vmatmul.mubr.msk.bf16.vlgmr.msra.gmra.mrb[40].mxu0 %vm166_vm0, %v12921_v44 }
0x3c38   :  { %15481 = vmatpush3.bf16.msra.mxu0 %v15949_v3 }
0x3c39   :  { %15482 = vmatprep.subr.bf16.mxu0 %v15950_v38 }
0x3c3c   :  { %15483 = vmatpush3.bf16.msra.mxu0 %v15950_v38 }
0x3c3d   :  { %15484 = vmatprep.subr.bf16.mxu0 %v15951_v27 }
0x3c40   :  { %15485 = vmatpush3.bf16.msra.mxu0 %v15951_v27 }
0x3c41   :  { %15486 = vmatprep.subr.bf16.mxu0 %v15952_v1 }
0x3c44   :  { %15487 = vmatpush3.bf16.msra.mxu0 %v15952_v1 }
0x3c45   :  { %15488 = vmatprep.subr.bf16.mxu0 %v15953_v20 }
0x3c48   :  { %15489 = vmatpush3.bf16.msra.mxu0 %v15953_v20 }
0x3c49   :  { %15490 = vmatprep.subr.bf16.mxu0 %v15954_v43 }
0x3c4c   :  { %15491 = vmatpush3.bf16.msra.mxu0 %v15954_v43 }
0x3d0a   :  { %v15470_v5 = vpop.f32.mrb[40].mxu0 }
0x3d0b   :  { %v12980_v23 = vpop.f32.mrb[41].mxu0  ;;  %v12989_v59 = vadd.f32 %v15470_v5, %v14051_v2 }
0x3d0c   :  { %v12981_v26 = vadd.f32 %v14051_v2, %v12980_v23  ;;  %v15471_v53 = vpop.f32.mrb[42].mxu0 }
0x3d0d   :  { %v12983_v25 = vpop.f32.mrb[43].mxu0  ;;  %v20567_v45 = vadd.f32 %v12989_v59, %v20016_v58  ;;  %v12992_v19 = vadd.f32 %v15471_v53, %v14051_v2 }
0x3d0e   :  { %v20564_v48 = vadd.f32 %v12981_v26, %v20013_v9  ;;  %v12984_v15 = vadd.f32 %v14051_v2, %v12983_v25  ;;  %v14057_v2 = vld [vmem:[%s20827_s9 + $0x1] ss:$0 sm:$0xff] }
0x3d0f   :  { %v20577_v7 = vadd.f32 %v12992_v19, %v20024_v17  ;;  %v13005_v9 = vsel %vm166_vm0, %v20567_v45, 0.0 }
0x3d10   :  { %v20570_v34 = vadd.f32 %v12984_v15, %v20019_v0  ;;  %v12999_v49 = vsel %vm166_vm0, %v20564_v48, 0.0 }
0x3d11   :  { %13000 = vadd.xlane.f32.xlu0 %v12999_v49  ;;  %v13008_v58 = vsel %vm166_vm0, %v20577_v7, 0.0 }
0x3d12   :  { %v13002_v35 = vsel %vm166_vm0, %v20570_v34, 0.0 }
0x3d13   :  { %13003 = vadd.xlane.f32.xlu1 %v13002_v35 }
0x3d15   :  { %13006 = vadd.xlane.f32.xlu0 %v13005_v9 }
0x3d19   :  { %13009 = vadd.xlane.f32.xlu0 %v13008_v58 }
0x3d9e   :  { %v13001_v0 = vpop.xlane.xlu0 %13000 }
0x3d9f   :  { %v13011_v56 = vmul.f32 0.03125, %v13001_v0  ;;  %v15955_v0 = vld [vmem:[%s20734_s24 + $0x70] sm:$0xff]  }
0x3da0   :  { %v13004_v28 = vpop.xlane.xlu1 %13003  ;;  %15492 = vmatprep.subr.bf16.mxu0 %v15955_v0 }
0x3da1   :  { %v20584_v57 = vsub.f32 %v20564_v48, %v13011_v56  ;;  %v13012_v37 = vmul.f32 0.03125, %v13004_v28  ;;  %15493 = vmatpush3.bf16.msra.mxu0 %v15955_v0  ;;  %v15956_v56 = vld [vmem:[%s20734_s24 + $0x78] sm:$0xff]   ;;  %v14058_v28 = vld [vmem:[%s20828_s23 + $0x1] ss:$0 sm:$0xff] }
0x3da2   :  { %v13007_v63 = vpop.xlane.xlu0 %13006  ;;  %15494 = vmatprep.subr.bf16.mxu0 %v15956_v56 }
0x3da3   :  { %v13016_v16 = vsub.f32 %v20570_v34, %v13012_v37  ;;  %v13013_v17 = vmul.f32 0.03125, %v13007_v63  ;;  %v13019_v30 = vmul.f32 %v20584_v57, %v20584_v57 }
0x3da5   :  { %v20590_v10 = vsub.f32 %v20567_v45, %v13013_v17  ;;  %v13023_v39 = vsel %vm166_vm0, %v13019_v30, 0.0  ;;  %v13020_v60 = vmul.f32 %v13016_v16, %v13016_v16  ;;  %15495 = vmatpush3.bf16.msra.mxu0 %v15956_v56 }
0x3da6   :  { %13024 = vadd.xlane.f32.xlu0 %v13023_v39  ;;  %v13010_v51 = vpop.xlane.xlu0 %13009 }
0x3da7   :  { %v13014_v24 = vmul.f32 0.03125, %v13010_v51  ;;  %v13026_v40 = vsel %vm166_vm0, %v13020_v60, 0.0  ;;  %v13021_v50 = vmul.f32 %v20590_v10, %v20590_v10 }
0x3da8   :  { %13027 = vadd.xlane.f32.xlu1 %v13026_v40 }
0x3da9   :  { %v13018_v31 = vsub.f32 %v20577_v7, %v13014_v24  ;;  %v13029_v4 = vsel %vm166_vm0, %v13021_v50, 0.0 }
0x3daa   :  { %13030 = vadd.xlane.f32.xlu0 %v13029_v4  ;;  %v14063_v4 = vld [vmem:[%s20829_s28 + $0x1] ss:$0 sm:$0xff] }
0x3dab   :  { %v13022_v6 = vmul.f32 %v13018_v31, %v13018_v31 }
0x3dad   :  { %v13032_v21 = vsel %vm166_vm0, %v13022_v6, 0.0 }
0x3dae   :  { %13033 = vadd.xlane.f32.xlu1 %v13032_v21 }
0x3e33   :  { %v13025_v32 = vpop.xlane.xlu0 %13024 }
0x3e34   :  { %v13035_v8 = vmul.f32 0.03125, %v13025_v32 }
0x3e35   :  { %v13028_v36 = vpop.xlane.xlu1 %13027 }
0x3e36   :  { %v13039_v47 = vadd.f32 1e-05, %v13035_v8  ;;  %v13036_v62 = vmul.f32 0.03125, %v13028_v36  ;;  %v20873_v8 = vld [vmem:[#allocation2_spill] sm:$0xff] }
0x3e37   :  { %v13031_v22 = vpop.xlane.xlu0 %13030 }
0x3e38   :  { %16429 = vrsqrt.f32 %v13039_v47  ;;  %v13040_v13 = vadd.f32 1e-05, %v13036_v62  ;;  %v13037_v52 = vmul.f32 0.03125, %v13031_v22 }
0x3e3a   :  { %16431 = vrsqrt.f32 %v13040_v13  ;;  %v13041_v33 = vadd.f32 1e-05, %v13037_v52 }
0x3e3b   :  { %v13034_v41 = vpop.xlane.xlu1 %13033 }
0x3e3c   :  { %16433 = vrsqrt.f32 %v13041_v33  ;;  %v13038_v11 = vmul.f32 0.03125, %v13034_v41 }
0x3e3e   :  { %v13042_v46 = vadd.f32 1e-05, %v13038_v11 }
0x3e40   :  { %16435 = vrsqrt.f32 %v13042_v46 }
0x3e42   :  { %v16430_v14 = vpop.eup %16429 }
0x3e43   :  { %v13047_v54 = vmul.f32 %v16430_v14, %v20584_v57 }
0x3e44   :  { %v16432_v55 = vpop.eup %16431 }
0x3e45   :  { %v13048_v61 = vmul.f32 %v16432_v55, %v13016_v16  ;;  %v13057_v18 = vmul.f32 %v14056_v12, %v13047_v54 }
0x3e46   :  { %v16434_v44 = vpop.eup %16433 }
0x3e47   :  { %v13049_v5 = vmul.f32 %v16434_v44, %v20590_v10  ;;  %v13058_v23 = vmul.f32 %v14056_v12, %v13048_v61  ;;  %v13067_v59 = vadd.f32 %v14057_v2, %v13057_v18 }
0x3e49   :  { %v13068_v26 = vadd.f32 %v14057_v2, %v13058_v23  ;;  %v13059_v25 = vmul.f32 %v14056_v12, %v13049_v5 }
0x3e4a   :  { %v16436_v53 = vpop.eup %16435 }
0x3e4b   :  { %v13050_v15 = vmul.f32 %v16436_v53, %v13018_v31  ;;  %v13071_v19 = vpack.c.bf16 %v13068_v26, %v13067_v59  ;;  %v13069_v35 = vadd.f32 %v14057_v2, %v13059_v25 }
0x3e4d   :  { %v13060_v49 = vmul.f32 %v14056_v12, %v13050_v15  ;;  %15476 = vmatprep.mubr.msk.bf16.mxu1 %vm166_vm0, %v13071_v19 }
0x3e4f   :  { %v13070_v9 = vadd.f32 %v14057_v2, %v13060_v49 }
0x3e51   :  { %v13072_v58 = vpack.c.bf16 %v13070_v9, %v13069_v35 }
0x3e53   :  { %15477 = vmatmul.mubr.msk.bf16.vlgmr.msra.gmra.mrb[44].mxu1 %vm166_vm0, %v13072_v58 }
0x3f26   :  { %v15478_v57 = vpop.f32.mrb[44].mxu1 }
0x3f27   :  { %v13140_v37 = vadd.f32 %v15478_v57, %v14058_v28  ;;  %v13131_v63 = vpop.f32.mrb[45].mxu1 }
0x3f28   :  { %v13132_v16 = vadd.f32 %v14058_v28, %v13131_v63  ;;  %v15479_v17 = vpop.f32.mrb[46].mxu1 }
0x3f29   :  { %v13143_v30 = vadd.f32 %v15479_v17, %v14058_v28  ;;  %v13134_v10 = vpop.f32.mrb[47].mxu1  ;;  %v13148_v60 = vmax.f32 %v13140_v37, 0.0 }
0x3f2a   :  { %v13135_v39 = vadd.f32 %v14058_v28, %v13134_v10  ;;  %v13146_v24 = vmax.f32 %v13132_v16, 0.0 }
0x3f2b   :  { %v13149_v51 = vmax.f32 %v13143_v30, 0.0 }
0x3f2c   :  { %v13147_v40 = vmax.f32 %v13135_v39, 0.0 }
0x3f2d   :  { %v13151_v50 = vpack.c.bf16 %v13149_v51, %v13148_v60 }
0x3f2e   :  { %v13150_v31 = vpack.c.bf16 %v13147_v40, %v13146_v24 }
0x3f30   :  { %15496 = vmatprep.mubr.bf16.mxu0 %v13150_v31 }
0x3f31   :  { %15497 = vmatmul.mubr.bf16.vlgmr.msra.gmra.mrb[44].mxu0 %v13151_v50 }
0x4004   :  { %v15498_v6 = vpop.f32.mrb[44].mxu0 }
0x4005   :  { %v13249_v21 = vadd.f32 %v15498_v6, %v14063_v4  ;;  %v13240_v29 = vpop.f32.mrb[45].mxu0 }
0x4006   :  { %v13241_v42 = vadd.f32 %v14063_v4, %v13240_v29  ;;  %v15499_v3 = vpop.f32.mrb[46].mxu0 }
0x4007   :  { %v13257_v38 = vadd.f32 %v13249_v21, %v20567_v45  ;;  %v13252_v27 = vadd.f32 %v15499_v3, %v14063_v4  ;;  %v13243_v1 = vpop.f32.mrb[47].mxu0 }
0x4008   :  { %v13255_v20 = vadd.f32 %v13241_v42, %v20564_v48  ;;  %v13244_v43 = vadd.f32 %v14063_v4, %v13243_v1 }
0x4009   :  { %v13360_v32 = vcombine.high %v13257_v38, %v13257_v38  ;;  %v13367_v36 = vrot.slane %v13257_v38, %v20873_v8  ;;  %v13258_v47 = vadd.f32 %v13252_v27, %v20577_v7 }
0x400a   :  { %v13260_v62 = vcombine.high %v13255_v20, %v13255_v20  ;;  %v13267_v22 = vrot.slane %v13255_v20, %v20873_v8  ;;  %v13256_v11 = vadd.f32 %v13244_v43, %v20570_v34 }
0x400b   :  { %v13374_v13 = vrot.slane %v13360_v32, %v20873_v8  ;;  %v13375_v52 = vcombine.high %v13367_v36, %v13367_v36  ;;  %v13410_v33 = vcombine.high %v13258_v47, %v13258_v47  ;;  %v13417_v45 = vrot.slane %v13258_v47, %v20873_v8 }
0x400c   :  { %v13274_v41 = vrot.slane %v13260_v62, %v20873_v8  ;;  %v13383_v46 = vrot.slane %v13367_v36, %v20873_v8  ;;  %v13275_v54 = vcombine.high %v13267_v22, %v13267_v22  ;;  %v13310_v23 = vcombine.high %v13256_v11, %v13256_v11 }
0x400d   :  { %v13376_v48 = vcombine.high %v13374_v13, %v13374_v13  ;;  %v13424_v14 = vrot.slane %v13410_v33, %v20873_v8  ;;  %v13390_v7 = vrot.slane %v13374_v13, %v20873_v8  ;;  %v13397_v12 = vrot.slane %v13375_v52, %v20873_v8 }
0x400e   :  { %v13425_v55 = vcombine.high %v13417_v45, %v13417_v45  ;;  %v13276_v61 = vcombine.high %v13274_v41, %v13274_v41  ;;  %v13433_v44 = vrot.slane %v13417_v45, %v20873_v8  ;;  %v13317_v59 = vrot.slane %v13256_v11, %v20873_v8 }
0x400f   :  { %v13426_v18 = vcombine.high %v13424_v14, %v13424_v14  ;;  %v13440_v2 = vrot.slane %v13424_v14, %v20873_v8  ;;  %v13404_v5 = vrot.slane %v13376_v48, %v20873_v8  ;;  %v13324_v9 = vrot.slane %v13310_v23, %v20873_v8 }
0x4010   :  { %v13447_v34 = vrot.slane %v13425_v55, %v20873_v8  ;;  %v13460_v53 = vcombine.low %v13383_v46, %v13433_v44  ;;  %v14073_v25 = vcombine.high %v13383_v46, %v13433_v44  ;;  %v13283_v58 = vrot.slane %v13267_v22, %v20873_v8 }
0x4011   :  { %v13454_v26 = vrot.slane %v13426_v18, %v20873_v8  ;;  %v13558_v15 = vcombine.low %v13390_v7, %v13440_v2  ;;  %v14077_v35 = vcombine.high %v13390_v7, %v13440_v2  ;;  %v13290_v0 = vrot.slane %v13274_v41, %v20873_v8 }
0x4012   :  { %v13462_v19 = vcombine.low %v13397_v12, %v13447_v34  ;;  %v14075_v49 = vcombine.high %v13397_v12, %v13447_v34  ;;  %v13297_v56 = vrot.slane %v13275_v54, %v20873_v8  ;;  %v13304_v57 = vrot.slane %v13276_v61, %v20873_v8 }
0x4013   :  { %v13560_v28 = vcombine.low %v13404_v5, %v13454_v26  ;;  %v13476_v37 = vrot.slane %v13460_v53, %v20873_v8  ;;  %v13525_v63 = vrot.slane %v14073_v25, %v20873_v8  ;;  %v14079_v16 = vcombine.high %v13404_v5, %v13454_v26 }
0x4014   :  { %v13574_v17 = vrot.slane %v13558_v15, %v20873_v8  ;;  %v13325_v30 = vcombine.high %v13317_v59, %v13317_v59  ;;  %v13326_v10 = vcombine.high %v13324_v9, %v13324_v9  ;;  %v13333_v39 = vrot.slane %v13317_v59, %v20873_v8 }
0x4015   :  { %v13490_v60 = vrot.slane %v13462_v19, %v20873_v8  ;;  %v13539_v51 = vrot.slane %v14075_v49, %v20873_v8  ;;  %v13623_v24 = vrot.slane %v14077_v35, %v20873_v8  ;;  %v13340_v40 = vrot.slane %v13324_v9, %v20873_v8 }
0x4016   :  { %v13347_v50 = vrot.slane %v13325_v30, %v20873_v8  ;;  %v13354_v31 = vrot.slane %v13326_v10, %v20873_v8  ;;  %v13459_v4 = vcombine.low %v13283_v58, %v13333_v39  ;;  %v14072_v6 = vcombine.high %v13283_v58, %v13333_v39 }
0x4017   :  { %v13588_v21 = vrot.slane %v13560_v28, %v20873_v8  ;;  %v13637_v29 = vrot.slane %v14079_v16, %v20873_v8  ;;  %v13557_v42 = vcombine.low %v13290_v0, %v13340_v40  ;;  %v14076_v3 = vcombine.high %v13290_v0, %v13340_v40 }
0x4018   :  { %v13461_v38 = vcombine.low %v13297_v56, %v13347_v50  ;;  %v13469_v27 = vrot.slane %v13459_v4, %v20873_v8  ;;  %v14074_v1 = vcombine.high %v13297_v56, %v13347_v50  ;;  %v13518_v20 = vrot.slane %v14072_v6, %v20873_v8 }
0x4019   :  { %v13559_v43 = vcombine.low %v13304_v57, %v13354_v31  ;;  %v13567_v32 = vrot.slane %v13557_v42, %v20873_v8  ;;  %v14078_v36 = vcombine.high %v13304_v57, %v13354_v31  ;;  %v13616_v47 = vrot.slane %v14076_v3, %v20873_v8 }
0x401a   :  { %v13483_v62 = vrot.slane %v13461_v38, %v20873_v8  ;;  %v13491_v22 = vcombine.low %v13469_v27, %v13476_v37  ;;  %v13532_v13 = vrot.slane %v14074_v1, %v20873_v8  ;;  %v13540_v52 = vcombine.low %v13518_v20, %v13525_v63 }
0x401b   :  { %v13581_v33 = vrot.slane %v13559_v43, %v20873_v8  ;;  %v13589_v41 = vcombine.low %v13567_v32, %v13574_v17  ;;  %v13630_v45 = vrot.slane %v14078_v36, %v20873_v8  ;;  %v13638_v11 = vcombine.low %v13616_v47, %v13623_v24 }
0x401c   :  { %v13492_v48 = vcombine.low %v13483_v62, %v13490_v60  ;;  %v13541_v46 = vcombine.low %v13532_v13, %v13539_v51  ;;  %v13499_v12 = vrot.slane %v13491_v22, %v20873_v8  ;;  %v13548_v55 = vrot.slane %v13540_v52, %v20873_v8 }
0x401d   :  { %v13590_v14 = vcombine.low %v13581_v33, %v13588_v21  ;;  %v13639_v7 = vcombine.low %v13630_v45, %v13637_v29  ;;  %v13597_v18 = vrot.slane %v13589_v41, %v20873_v8  ;;  %v13646_v2 = vrot.slane %v13638_v11, %v20873_v8 }
0x401e   :  { %v13506_v54 = vrot.slane %v13492_v48, %v20873_v8  ;;  %v13555_v61 = vrot.slane %v13541_v46, %v20873_v8 }
0x401f   :  { %v13604_v44 = vrot.slane %v13590_v14, %v20873_v8  ;;  %v13653_v5 = vrot.slane %v13639_v7, %v20873_v8 }
0x4020   :  { %v13507_v34 = vcombine.low %v13499_v12, %v13506_v54  ;;  %v13556_v23 = vcombine.low %v13548_v55, %v13555_v61 }
0x4021   :  { %v13605_v59 = vcombine.low %v13597_v18, %v13604_v44  ;;  %v13654_v26 = vcombine.low %v13646_v2, %v13653_v5 }
0x4022   :  { %13659 = vst.msk [vmem:[%s20874_s27] sm:$0xff] %vm166_vm0, %v13507_v34  ;;  %13660 = vst.msk [vmem:[%s20874_s27 + $0x8] sm:$0xff] %vm166_vm0, %v13556_v23 }
0x4023   :  { %13661 = vst.msk [vmem:[%s20874_s27 + $0x10] sm:$0xff] %vm166_vm0, %v13605_v59  ;;  %13662 = vst.msk [vmem:[%s20874_s27 + $0x18] sm:$0xff] %vm166_vm0, %v13654_v26 }

</bundles_post_ra>
